<compile_context>
chip_gen: v5e
topology: v5e:2x2
jax: 0.10.0
libtpu: 0.0.40
codegen_flags: <defaults>
</compile_context>

<pallas_src>
import jax
import jax.numpy as jnp
from jax import lax
from jax.experimental import pallas as pl
from jax.experimental.pallas import tpu as pltpu

EPS = 1e-5  # PyTorch InstanceNorm2d default


# ----------------------------- kernel helpers -------------------------------
def _reflect_pad1(x_hwc):
    """1-pixel ReflectionPad2d on an (H, W, C) value (in-kernel, VMEM)."""
    H, W = x_hwc.shape[0], x_hwc.shape[1]
    x = jnp.concatenate([x_hwc[1:2], x_hwc, x_hwc[H - 2:H - 1]], axis=0)
    x = jnp.concatenate([x[:, 1:2], x, x[:, W - 2:W - 1]], axis=1)
    return x


def _conv3x3_instnorm(x_hwc, w_ref, b_ref, g_ref, beta_ref):
    """ReflectPad1 -> 3x3 conv (single im2col MXU dot) -> InstanceNorm (affine).

    x_hwc:    (H, W, C) f32 activation
    w_ref:    (9C, C) weight ref, rows ordered (kh, kw, cin); dtype = MXU operand dtype
    b_ref/g_ref/beta_ref: (1, C) f32 conv bias / IN gamma / IN beta
    returns:  (H*W, C) f32
    """
    H, W, C = x_hwc.shape
    xp = _reflect_pad1(x_hwc)                                   # (H+2, W+2, C) f32

    # im2col: 9 shifted views concatenated along channels -> one MXU contraction
    # with K = 9C (instead of 9 separate K=C dots).
    taps = []
    for k in range(9):
        dy, dx = divmod(k, 3)
        taps.append(xp[dy:dy + H, dx:dx + W, :].reshape(H * W, C))
    slab = jnp.concatenate(taps, axis=-1)                       # (H*W, 9C) f32

    y = jnp.dot(slab.astype(w_ref.dtype), w_ref[...],
                preferred_element_type=jnp.float32)             # (H*W, C) f32
    y = y + b_ref[0, :].astype(jnp.float32)

    # One-pass instance-norm statistics (biased variance, matching PyTorch).
    inv_n = 1.0 / (H * W)
    mean = jnp.sum(y, axis=0, keepdims=True) * inv_n
    ex2 = jnp.sum(y * y, axis=0, keepdims=True) * inv_n
    var = ex2 - mean * mean
    y = (y - mean) * lax.rsqrt(var + EPS)
    return y * g_ref[0, :].astype(jnp.float32) + beta_ref[0, :].astype(jnp.float32)


def _residual_block_kernel(x_ref, w1_ref, b1_ref, g1_ref, bt1_ref,
                           w2_ref, b2_ref, g2_ref, bt2_ref, o_ref):
    _, H, W, C = x_ref.shape
    x = x_ref[0].astype(jnp.float32)                            # (H, W, C)

    # Stage 1: pad -> conv -> IN -> ReLU (kept entirely in VMEM).
    h = _conv3x3_instnorm(x, w1_ref, b1_ref, g1_ref, bt1_ref)   # (H*W, C)
    h = jnp.maximum(h, 0.0)

    # Stage 2: pad -> conv -> IN, then residual add.
    h = _conv3x3_instnorm(h.reshape(H, W, C), w2_ref, b2_ref, g2_ref, bt2_ref)
    h = h + x.reshape(H * W, C)

    # Lane-dense, channel-major output: trailing dim H*W (multiple of 128 for
    # H*W >= 128) -> unmasked stores, and the NCHW result needs no exit transpose.
    o_ref[...] = h.T.reshape(1, C, H * W).astype(o_ref.dtype)


# --------------------------------- wrapper ----------------------------------
def _param_spec(shape):
    # Un-gridded parameter: same whole-array block at every grid step.
    return pl.BlockSpec(shape, lambda b: (0,) * len(shape))


@jax.jit
def residual_block(x_nchw, params):
    """ResidualBlock forward. NCHW f32 in / NCHW f32 out (PyTorch convention)."""
    B, C, H, W = x_nchw.shape
    # The single remaining layout pass: NCHW -> NHWC so channels sit on lanes
    # for the im2col matmul.  (The output side is produced channel-major by the
    # kernel itself, so there is no exit transpose.)
    x = jnp.transpose(x_nchw, (0, 2, 3, 1))

    out = pl.pallas_call(
        _residual_block_kernel,
        out_shape=jax.ShapeDtypeStruct((B, C, H * W), jnp.float32),
        grid=(B,),
        in_specs=[
            pl.BlockSpec((1, H, W, C), lambda b: (b, 0, 0, 0)),
            _param_spec((9 * C, C)),
            _param_spec((1, C)),
            _param_spec((1, C)),
            _param_spec((1, C)),
            _param_spec((9 * C, C)),
            _param_spec((1, C)),
            _param_spec((1, C)),
            _param_spec((1, C)),
        ],
        out_specs=pl.BlockSpec((1, C, H * W), lambda b: (b, 0, 0)),
        compiler_params=pltpu.CompilerParams(
            dimension_semantics=("parallel",),        # batch across megacore TCs
            vmem_limit_bytes=32 * 1024 * 1024,        # explicit scoped-VMEM budget
        ),
    )(x, params["w1"], params["b1"], params["g1"], params["beta1"],
      params["w2"], params["b2"], params["g2"], params["beta2"])
    return out.reshape(B, C, H, W)


# ------------------------- pure-JAX reference -------------------------------
def _ref_conv_instnorm(x_nhwc, w_mat, b, g, beta):
    C = x_nhwc.shape[-1]
    xp = jnp.pad(x_nhwc, ((0, 0), (1, 1), (1, 1), (0, 0)), mode="reflect")
    mm_dtype = w_mat.dtype                      # same MXU operand dtype as the kernel
    y = lax.conv_general_dilated(
        xp.astype(mm_dtype), w_mat.reshape(3, 3, C, C),
        window_strides=(1, 1), padding="VALID",
        dimension_numbers=("NHWC", "HWIO", "NHWC"),
        preferred_element_type=jnp.float32)
    y = y + b.reshape(1, 1, 1, C).astype(jnp.float32)
    mean = jnp.mean(y, axis=(1, 2), keepdims=True)
    var = jnp.mean((y - mean) ** 2, axis=(1, 2), keepdims=True)
    y = (y - mean) * lax.rsqrt(var + EPS)
    return y * g.reshape(1, 1, 1, C) + beta.reshape(1, 1, 1, C)


def residual_block_ref(x_nchw, p):
    x = jnp.transpose(x_nchw, (0, 2, 3, 1))
    o = jnp.maximum(_ref_conv_instnorm(x, p["w1"], p["b1"], p["g1"], p["beta1"]), 0.0)
    o = _ref_conv_instnorm(o, p["w2"], p["b2"], p["g2"], p["beta2"])
    o = o + x
    return jnp.transpose(o, (0, 3, 1, 2))


# ----------------------------------------------------------------------------
def make_params(key, channels, matmul_dtype=jnp.float32):
    """Deterministic synthetic parameters.

    Conv weights are stored as (9*C, C) matrices with row order (kh, kw, cin),
    i.e. torch weight (cout, cin, kh, kw).transpose(2, 3, 1, 0).reshape(9*C, C).
    `matmul_dtype` is the MXU operand dtype (bf16 recommended on TPU); all other
    parameters and all non-matmul math stay f32.
    """
    C = channels
    ks = jax.random.split(key, 8)
    s = 0.1
    return {
        "w1": (s * jax.random.normal(ks[0], (9 * C, C), jnp.float32)).astype(matmul_dtype),
        "b1": s * jax.random.normal(ks[1], (1, C), jnp.float32),
        "g1": 1.0 + s * jax.random.normal(ks[2], (1, C), jnp.float32),
        "beta1": s * jax.random.normal(ks[3], (1, C), jnp.float32),
        "w2": (s * jax.random.normal(ks[4], (9 * C, C), jnp.float32)).astype(matmul_dtype),
        "b2": s * jax.random.normal(ks[5], (1, C), jnp.float32),
        "g2": 1.0 + s * jax.random.normal(ks[6], (1, C), jnp.float32),
        "beta2": s * jax.random.normal(ks[7], (1, C), jnp.float32),
    }


if __name__ == "__main__":
    B, C, H, W = 2, 4, 16, 16
    key = jax.random.PRNGKey(0)
    kx, kp = jax.random.split(key)
    x = jax.random.normal(kx, (B, C, H, W), jnp.float32)   # NCHW like PyTorch

    # 1) Strict parity check: f32 MXU operands vs. the PyTorch-equivalent reference.
    params_f32 = make_params(kp, C, matmul_dtype=jnp.float32)
    out_f32 = jax.block_until_ready(residual_block(x, params_f32))
    ref_f32 = jax.block_until_ready(residual_block_ref(x, params_f32))
    assert out_f32.shape == (B, C, H, W)
    assert jnp.allclose(out_f32, ref_f32, atol=1e-4, rtol=1e-4), (
        f"f32 max err {jnp.max(jnp.abs(out_f32 - ref_f32))}")

    # 2) Recommended fast path: bf16 MXU operands, f32 accumulation/statistics.
    #    Compared against a matched-precision reference; the looser tolerance only
    #    covers rare bf16 re-rounding of the stage-1 handoff at rounding
    #    boundaries (typical max difference is ~1e-3).
    params_bf16 = make_params(kp, C, matmul_dtype=jnp.bfloat16)
    out_bf16 = jax.block_until_ready(residual_block(x, params_bf16))
    ref_bf16 = jax.block_until_ready(residual_block_ref(x, params_bf16))
    assert out_bf16.shape == (B, C, H, W)
    assert jnp.allclose(out_bf16, ref_bf16, atol=5e-2, rtol=5e-2), (
        f"bf16 max err {jnp.max(jnp.abs(out_bf16 - ref_bf16))}")

    print("KERNEL_OK")
</pallas_src>

<mosaic_0001>
module attributes {stable_mosaic.version = 11 : i64} {
  func.func @_residual_block_kernel(%arg0: i32, %arg1: memref<1x16x16x4xf32, #tpu.memory_space<vmem>>, %arg2: memref<36x4xf32, #tpu.memory_space<vmem>>, %arg3: memref<1x4xf32, #tpu.memory_space<vmem>>, %arg4: memref<1x4xf32, #tpu.memory_space<vmem>>, %arg5: memref<1x4xf32, #tpu.memory_space<vmem>>, %arg6: memref<36x4xf32, #tpu.memory_space<vmem>>, %arg7: memref<1x4xf32, #tpu.memory_space<vmem>>, %arg8: memref<1x4xf32, #tpu.memory_space<vmem>>, %arg9: memref<1x4xf32, #tpu.memory_space<vmem>>, %arg10: memref<1x4x256xf32, #tpu.memory_space<vmem>>) attributes {dimension_semantics = [#tpu.dimension_semantics<parallel>], iteration_bounds = array<i64: 2>, scalar_prefetch = 0 : i64, scratch_operands = 0 : i64, tpu.core_type = #tpu.core_type<tc>, window_params = [{transform_indices = @transform_0, window_bounds = array<i64: 1, 16, 16, 4>}, {pipeline_mode = #tpu.pipeline_mode<synchronous>, transform_indices = @transform_1, window_bounds = array<i64: 36, 4>}, {pipeline_mode = #tpu.pipeline_mode<synchronous>, transform_indices = @transform_2, window_bounds = array<i64: 1, 4>}, {pipeline_mode = #tpu.pipeline_mode<synchronous>, transform_indices = @transform_3, window_bounds = array<i64: 1, 4>}, {pipeline_mode = #tpu.pipeline_mode<synchronous>, transform_indices = @transform_4, window_bounds = array<i64: 1, 4>}, {pipeline_mode = #tpu.pipeline_mode<synchronous>, transform_indices = @transform_5, window_bounds = array<i64: 36, 4>}, {pipeline_mode = #tpu.pipeline_mode<synchronous>, transform_indices = @transform_6, window_bounds = array<i64: 1, 4>}, {pipeline_mode = #tpu.pipeline_mode<synchronous>, transform_indices = @transform_7, window_bounds = array<i64: 1, 4>}, {pipeline_mode = #tpu.pipeline_mode<synchronous>, transform_indices = @transform_8, window_bounds = array<i64: 1, 4>}, {transform_indices = @transform_9, window_bounds = array<i64: 1, 4, 256>}]} {
    %c0 = arith.constant 0 : index
    %c0_0 = arith.constant 0 : index
    %c0_1 = arith.constant 0 : index
    %c0_2 = arith.constant 0 : index
    %0 = vector.load %arg1[%c0, %c0_0, %c0_1, %c0_2] : memref<1x16x16x4xf32, #tpu.memory_space<vmem>>, vector<1x16x16x4xf32>
    %1 = vector.shape_cast %0 : vector<1x16x16x4xf32> to vector<16x16x4xf32>
    %2 = vector.extract_strided_slice %1 {offsets = [1, 0, 0], sizes = [1, 16, 4], strides = [1, 1, 1]} : vector<16x16x4xf32> to vector<1x16x4xf32>
    %3 = vector.extract_strided_slice %1 {offsets = [14, 0, 0], sizes = [1, 16, 4], strides = [1, 1, 1]} : vector<16x16x4xf32> to vector<1x16x4xf32>
    %4 = tpu.concatenate %2, %1, %3 in 0 : vector<1x16x4xf32>, vector<16x16x4xf32>, vector<1x16x4xf32> -> vector<18x16x4xf32>
    %5 = vector.extract_strided_slice %4 {offsets = [0, 1, 0], sizes = [18, 1, 4], strides = [1, 1, 1]} : vector<18x16x4xf32> to vector<18x1x4xf32>
    %6 = vector.extract_strided_slice %4 {offsets = [0, 14, 0], sizes = [18, 1, 4], strides = [1, 1, 1]} : vector<18x16x4xf32> to vector<18x1x4xf32>
    %7 = tpu.concatenate %5, %4, %6 in 1 : vector<18x1x4xf32>, vector<18x16x4xf32>, vector<18x1x4xf32> -> vector<18x18x4xf32>
    %8 = vector.extract_strided_slice %7 {offsets = [0, 0, 0], sizes = [16, 16, 4], strides = [1, 1, 1]} : vector<18x18x4xf32> to vector<16x16x4xf32>
    %9 = vector.shape_cast %8 : vector<16x16x4xf32> to vector<256x4xf32>
    %10 = vector.extract_strided_slice %7 {offsets = [0, 1, 0], sizes = [16, 16, 4], strides = [1, 1, 1]} : vector<18x18x4xf32> to vector<16x16x4xf32>
    %11 = vector.shape_cast %10 : vector<16x16x4xf32> to vector<256x4xf32>
    %12 = vector.extract_strided_slice %7 {offsets = [0, 2, 0], sizes = [16, 16, 4], strides = [1, 1, 1]} : vector<18x18x4xf32> to vector<16x16x4xf32>
    %13 = vector.shape_cast %12 : vector<16x16x4xf32> to vector<256x4xf32>
    %14 = vector.extract_strided_slice %7 {offsets = [1, 0, 0], sizes = [16, 16, 4], strides = [1, 1, 1]} : vector<18x18x4xf32> to vector<16x16x4xf32>
    %15 = vector.shape_cast %14 : vector<16x16x4xf32> to vector<256x4xf32>
    %16 = vector.extract_strided_slice %7 {offsets = [1, 1, 0], sizes = [16, 16, 4], strides = [1, 1, 1]} : vector<18x18x4xf32> to vector<16x16x4xf32>
    %17 = vector.shape_cast %16 : vector<16x16x4xf32> to vector<256x4xf32>
    %18 = vector.extract_strided_slice %7 {offsets = [1, 2, 0], sizes = [16, 16, 4], strides = [1, 1, 1]} : vector<18x18x4xf32> to vector<16x16x4xf32>
    %19 = vector.shape_cast %18 : vector<16x16x4xf32> to vector<256x4xf32>
    %20 = vector.extract_strided_slice %7 {offsets = [2, 0, 0], sizes = [16, 16, 4], strides = [1, 1, 1]} : vector<18x18x4xf32> to vector<16x16x4xf32>
    %21 = vector.shape_cast %20 : vector<16x16x4xf32> to vector<256x4xf32>
    %22 = vector.extract_strided_slice %7 {offsets = [2, 1, 0], sizes = [16, 16, 4], strides = [1, 1, 1]} : vector<18x18x4xf32> to vector<16x16x4xf32>
    %23 = vector.shape_cast %22 : vector<16x16x4xf32> to vector<256x4xf32>
    %24 = vector.extract_strided_slice %7 {offsets = [2, 2, 0], sizes = [16, 16, 4], strides = [1, 1, 1]} : vector<18x18x4xf32> to vector<16x16x4xf32>
    %25 = vector.shape_cast %24 : vector<16x16x4xf32> to vector<256x4xf32>
    %26 = tpu.concatenate %9, %11, %13, %15, %17, %19, %21, %23, %25 in 1 : vector<256x4xf32>, vector<256x4xf32>, vector<256x4xf32>, vector<256x4xf32>, vector<256x4xf32>, vector<256x4xf32>, vector<256x4xf32>, vector<256x4xf32>, vector<256x4xf32> -> vector<256x36xf32>
    %c0_3 = arith.constant 0 : index
    %c0_4 = arith.constant 0 : index
    %27 = vector.load %arg2[%c0_3, %c0_4] : memref<36x4xf32, #tpu.memory_space<vmem>>, vector<36x4xf32>
    %cst = arith.constant dense<0.000000e+00> : vector<256x4xf32>
    %28 = tpu.matmul %26, %27, %cst {dimension_numbers = #tpu.dot_dimension_numbers<[1], [0], [0], [1], [0, 0, 1, 1], [], []>} : vector<256x36xf32>, vector<36x4xf32>, vector<256x4xf32> -> vector<256x4xf32>
    %c0_5 = arith.constant 0 : index
    %c0_6 = arith.constant 0 : index
    %29 = vector.load %arg3[%c0_5, %c0_6] : memref<1x4xf32, #tpu.memory_space<vmem>>, vector<1x4xf32>
    %30 = vector.shape_cast %29 : vector<1x4xf32> to vector<4xf32>
    %31 = vector.shape_cast %30 : vector<4xf32> to vector<1x4xf32>
    %32 = vector.broadcast %31 : vector<1x4xf32> to vector<256x4xf32>
    %33 = arith.addf %28, %32 : vector<256x4xf32>
    %cst_7 = arith.constant dense<0.000000e+00> : vector<4xf32>
    %34 = vector.multi_reduction <add>, %33, %cst_7 [0] : vector<256x4xf32> to vector<4xf32>
    %35 = vector.shape_cast %34 : vector<4xf32> to vector<1x4xf32>
    %cst_8 = arith.constant 3.906250e-03 : f32
    %36 = vector.broadcast %cst_8 : f32 to vector<1x4xf32>
    %37 = arith.mulf %35, %36 : vector<1x4xf32>
    %38 = arith.mulf %33, %33 : vector<256x4xf32>
    %cst_9 = arith.constant dense<0.000000e+00> : vector<4xf32>
    %39 = vector.multi_reduction <add>, %38, %cst_9 [0] : vector<256x4xf32> to vector<4xf32>
    %40 = vector.shape_cast %39 : vector<4xf32> to vector<1x4xf32>
    %cst_10 = arith.constant 3.906250e-03 : f32
    %41 = vector.broadcast %cst_10 : f32 to vector<1x4xf32>
    %42 = arith.mulf %40, %41 : vector<1x4xf32>
    %43 = arith.mulf %37, %37 : vector<1x4xf32>
    %44 = arith.subf %42, %43 : vector<1x4xf32>
    %45 = vector.broadcast %37 : vector<1x4xf32> to vector<256x4xf32>
    %46 = arith.subf %33, %45 : vector<256x4xf32>
    %cst_11 = arith.constant 9.99999974E-6 : f32
    %47 = vector.broadcast %cst_11 : f32 to vector<1x4xf32>
    %48 = arith.addf %44, %47 : vector<1x4xf32>
    %49 = math.rsqrt %48 : vector<1x4xf32>
    %50 = vector.broadcast %49 : vector<1x4xf32> to vector<256x4xf32>
    %51 = arith.mulf %46, %50 : vector<256x4xf32>
    %c0_12 = arith.constant 0 : index
    %c0_13 = arith.constant 0 : index
    %52 = vector.load %arg4[%c0_12, %c0_13] : memref<1x4xf32, #tpu.memory_space<vmem>>, vector<1x4xf32>
    %53 = vector.shape_cast %52 : vector<1x4xf32> to vector<4xf32>
    %54 = vector.shape_cast %53 : vector<4xf32> to vector<1x4xf32>
    %55 = vector.broadcast %54 : vector<1x4xf32> to vector<256x4xf32>
    %56 = arith.mulf %51, %55 : vector<256x4xf32>
    %c0_14 = arith.constant 0 : index
    %c0_15 = arith.constant 0 : index
    %57 = vector.load %arg5[%c0_14, %c0_15] : memref<1x4xf32, #tpu.memory_space<vmem>>, vector<1x4xf32>
    %58 = vector.shape_cast %57 : vector<1x4xf32> to vector<4xf32>
    %59 = vector.shape_cast %58 : vector<4xf32> to vector<1x4xf32>
    %60 = vector.broadcast %59 : vector<1x4xf32> to vector<256x4xf32>
    %61 = arith.addf %56, %60 : vector<256x4xf32>
    %cst_16 = arith.constant 0.000000e+00 : f32
    %62 = vector.broadcast %cst_16 : f32 to vector<256x4xf32>
    %63 = arith.maximumf %61, %62 : vector<256x4xf32>
    %64 = vector.shape_cast %63 : vector<256x4xf32> to vector<16x16x4xf32>
    %65 = vector.extract_strided_slice %64 {offsets = [1, 0, 0], sizes = [1, 16, 4], strides = [1, 1, 1]} : vector<16x16x4xf32> to vector<1x16x4xf32>
    %66 = vector.extract_strided_slice %64 {offsets = [14, 0, 0], sizes = [1, 16, 4], strides = [1, 1, 1]} : vector<16x16x4xf32> to vector<1x16x4xf32>
    %67 = tpu.concatenate %65, %64, %66 in 0 : vector<1x16x4xf32>, vector<16x16x4xf32>, vector<1x16x4xf32> -> vector<18x16x4xf32>
    %68 = vector.extract_strided_slice %67 {offsets = [0, 1, 0], sizes = [18, 1, 4], strides = [1, 1, 1]} : vector<18x16x4xf32> to vector<18x1x4xf32>
    %69 = vector.extract_strided_slice %67 {offsets = [0, 14, 0], sizes = [18, 1, 4], strides = [1, 1, 1]} : vector<18x16x4xf32> to vector<18x1x4xf32>
    %70 = tpu.concatenate %68, %67, %69 in 1 : vector<18x1x4xf32>, vector<18x16x4xf32>, vector<18x1x4xf32> -> vector<18x18x4xf32>
    %71 = vector.extract_strided_slice %70 {offsets = [0, 0, 0], sizes = [16, 16, 4], strides = [1, 1, 1]} : vector<18x18x4xf32> to vector<16x16x4xf32>
    %72 = vector.shape_cast %71 : vector<16x16x4xf32> to vector<256x4xf32>
    %73 = vector.extract_strided_slice %70 {offsets = [0, 1, 0], sizes = [16, 16, 4], strides = [1, 1, 1]} : vector<18x18x4xf32> to vector<16x16x4xf32>
    %74 = vector.shape_cast %73 : vector<16x16x4xf32> to vector<256x4xf32>
    %75 = vector.extract_strided_slice %70 {offsets = [0, 2, 0], sizes = [16, 16, 4], strides = [1, 1, 1]} : vector<18x18x4xf32> to vector<16x16x4xf32>
    %76 = vector.shape_cast %75 : vector<16x16x4xf32> to vector<256x4xf32>
    %77 = vector.extract_strided_slice %70 {offsets = [1, 0, 0], sizes = [16, 16, 4], strides = [1, 1, 1]} : vector<18x18x4xf32> to vector<16x16x4xf32>
    %78 = vector.shape_cast %77 : vector<16x16x4xf32> to vector<256x4xf32>
    %79 = vector.extract_strided_slice %70 {offsets = [1, 1, 0], sizes = [16, 16, 4], strides = [1, 1, 1]} : vector<18x18x4xf32> to vector<16x16x4xf32>
    %80 = vector.shape_cast %79 : vector<16x16x4xf32> to vector<256x4xf32>
    %81 = vector.extract_strided_slice %70 {offsets = [1, 2, 0], sizes = [16, 16, 4], strides = [1, 1, 1]} : vector<18x18x4xf32> to vector<16x16x4xf32>
    %82 = vector.shape_cast %81 : vector<16x16x4xf32> to vector<256x4xf32>
    %83 = vector.extract_strided_slice %70 {offsets = [2, 0, 0], sizes = [16, 16, 4], strides = [1, 1, 1]} : vector<18x18x4xf32> to vector<16x16x4xf32>
    %84 = vector.shape_cast %83 : vector<16x16x4xf32> to vector<256x4xf32>
    %85 = vector.extract_strided_slice %70 {offsets = [2, 1, 0], sizes = [16, 16, 4], strides = [1, 1, 1]} : vector<18x18x4xf32> to vector<16x16x4xf32>
    %86 = vector.shape_cast %85 : vector<16x16x4xf32> to vector<256x4xf32>
    %87 = vector.extract_strided_slice %70 {offsets = [2, 2, 0], sizes = [16, 16, 4], strides = [1, 1, 1]} : vector<18x18x4xf32> to vector<16x16x4xf32>
    %88 = vector.shape_cast %87 : vector<16x16x4xf32> to vector<256x4xf32>
    %89 = tpu.concatenate %72, %74, %76, %78, %80, %82, %84, %86, %88 in 1 : vector<256x4xf32>, vector<256x4xf32>, vector<256x4xf32>, vector<256x4xf32>, vector<256x4xf32>, vector<256x4xf32>, vector<256x4xf32>, vector<256x4xf32>, vector<256x4xf32> -> vector<256x36xf32>
    %c0_17 = arith.constant 0 : index
    %c0_18 = arith.constant 0 : index
    %90 = vector.load %arg6[%c0_17, %c0_18] : memref<36x4xf32, #tpu.memory_space<vmem>>, vector<36x4xf32>
    %cst_19 = arith.constant dense<0.000000e+00> : vector<256x4xf32>
    %91 = tpu.matmul %89, %90, %cst_19 {dimension_numbers = #tpu.dot_dimension_numbers<[1], [0], [0], [1], [0, 0, 1, 1], [], []>} : vector<256x36xf32>, vector<36x4xf32>, vector<256x4xf32> -> vector<256x4xf32>
    %c0_20 = arith.constant 0 : index
    %c0_21 = arith.constant 0 : index
    %92 = vector.load %arg7[%c0_20, %c0_21] : memref<1x4xf32, #tpu.memory_space<vmem>>, vector<1x4xf32>
    %93 = vector.shape_cast %92 : vector<1x4xf32> to vector<4xf32>
    %94 = vector.shape_cast %93 : vector<4xf32> to vector<1x4xf32>
    %95 = vector.broadcast %94 : vector<1x4xf32> to vector<256x4xf32>
    %96 = arith.addf %91, %95 : vector<256x4xf32>
    %cst_22 = arith.constant dense<0.000000e+00> : vector<4xf32>
    %97 = vector.multi_reduction <add>, %96, %cst_22 [0] : vector<256x4xf32> to vector<4xf32>
    %98 = vector.shape_cast %97 : vector<4xf32> to vector<1x4xf32>
    %cst_23 = arith.constant 3.906250e-03 : f32
    %99 = vector.broadcast %cst_23 : f32 to vector<1x4xf32>
    %100 = arith.mulf %98, %99 : vector<1x4xf32>
    %101 = arith.mulf %96, %96 : vector<256x4xf32>
    %cst_24 = arith.constant dense<0.000000e+00> : vector<4xf32>
    %102 = vector.multi_reduction <add>, %101, %cst_24 [0] : vector<256x4xf32> to vector<4xf32>
    %103 = vector.shape_cast %102 : vector<4xf32> to vector<1x4xf32>
    %cst_25 = arith.constant 3.906250e-03 : f32
    %104 = vector.broadcast %cst_25 : f32 to vector<1x4xf32>
    %105 = arith.mulf %103, %104 : vector<1x4xf32>
    %106 = arith.mulf %100, %100 : vector<1x4xf32>
    %107 = arith.subf %105, %106 : vector<1x4xf32>
    %108 = vector.broadcast %100 : vector<1x4xf32> to vector<256x4xf32>
    %109 = arith.subf %96, %108 : vector<256x4xf32>
    %cst_26 = arith.constant 9.99999974E-6 : f32
    %110 = vector.broadcast %cst_26 : f32 to vector<1x4xf32>
    %111 = arith.addf %107, %110 : vector<1x4xf32>
    %112 = math.rsqrt %111 : vector<1x4xf32>
    %113 = vector.broadcast %112 : vector<1x4xf32> to vector<256x4xf32>
    %114 = arith.mulf %109, %113 : vector<256x4xf32>
    %c0_27 = arith.constant 0 : index
    %c0_28 = arith.constant 0 : index
    %115 = vector.load %arg8[%c0_27, %c0_28] : memref<1x4xf32, #tpu.memory_space<vmem>>, vector<1x4xf32>
    %116 = vector.shape_cast %115 : vector<1x4xf32> to vector<4xf32>
    %117 = vector.shape_cast %116 : vector<4xf32> to vector<1x4xf32>
    %118 = vector.broadcast %117 : vector<1x4xf32> to vector<256x4xf32>
    %119 = arith.mulf %114, %118 : vector<256x4xf32>
    %c0_29 = arith.constant 0 : index
    %c0_30 = arith.constant 0 : index
    %120 = vector.load %arg9[%c0_29, %c0_30] : memref<1x4xf32, #tpu.memory_space<vmem>>, vector<1x4xf32>
    %121 = vector.shape_cast %120 : vector<1x4xf32> to vector<4xf32>
    %122 = vector.shape_cast %121 : vector<4xf32> to vector<1x4xf32>
    %123 = vector.broadcast %122 : vector<1x4xf32> to vector<256x4xf32>
    %124 = arith.addf %119, %123 : vector<256x4xf32>
    %125 = vector.shape_cast %1 : vector<16x16x4xf32> to vector<256x4xf32>
    %126 = arith.addf %124, %125 : vector<256x4xf32>
    %127 = tpu.transpose %126, [1, 0] : vector<256x4xf32> -> vector<4x256xf32>
    %128 = vector.shape_cast %127 : vector<4x256xf32> to vector<1x4x256xf32>
    %c0_31 = arith.constant 0 : index
    %c0_32 = arith.constant 0 : index
    %c0_33 = arith.constant 0 : index
    %129 = vector.load %arg10[%c0_31, %c0_32, %c0_33] : memref<1x4x256xf32, #tpu.memory_space<vmem>>, vector<1x4x256xf32>
    tpu.vector_store %arg10[%c0_31, %c0_32, %c0_33], %128 {strides = array<i32>} : memref<1x4x256xf32, #tpu.memory_space<vmem>>, vector<1x4x256xf32>,
    return
  }
  func.func @transform_0(%arg0: i32) -> (i32, i32, i32, i32) {
    %c0_i32 = arith.constant 0 : i32
    %c0_i32_0 = arith.constant 0 : i32
    %c0_i32_1 = arith.constant 0 : i32
    %c0_i32_2 = arith.constant 0 : i32
    return %arg0, %c0_i32, %c0_i32_0, %c0_i32_1 : i32, i32, i32, i32
  }
  func.func @transform_1(%arg0: i32) -> (i32, i32) {
    %c0_i32 = arith.constant 0 : i32
    %c0_i32_0 = arith.constant 0 : i32
    %c0_i32_1 = arith.constant 0 : i32
    return %c0_i32, %c0_i32_0 : i32, i32
  }
  func.func @transform_2(%arg0: i32) -> (i32, i32) {
    %c0_i32 = arith.constant 0 : i32
    %c0_i32_0 = arith.constant 0 : i32
    %c0_i32_1 = arith.constant 0 : i32
    return %c0_i32, %c0_i32_0 : i32, i32
  }
  func.func @transform_3(%arg0: i32) -> (i32, i32) {
    %c0_i32 = arith.constant 0 : i32
    %c0_i32_0 = arith.constant 0 : i32
    %c0_i32_1 = arith.constant 0 : i32
    return %c0_i32, %c0_i32_0 : i32, i32
  }
  func.func @transform_4(%arg0: i32) -> (i32, i32) {
    %c0_i32 = arith.constant 0 : i32
    %c0_i32_0 = arith.constant 0 : i32
    %c0_i32_1 = arith.constant 0 : i32
    return %c0_i32, %c0_i32_0 : i32, i32
  }
  func.func @transform_5(%arg0: i32) -> (i32, i32) {
    %c0_i32 = arith.constant 0 : i32
    %c0_i32_0 = arith.constant 0 : i32
    %c0_i32_1 = arith.constant 0 : i32
    return %c0_i32, %c0_i32_0 : i32, i32
  }
  func.func @transform_6(%arg0: i32) -> (i32, i32) {
    %c0_i32 = arith.constant 0 : i32
    %c0_i32_0 = arith.constant 0 : i32
    %c0_i32_1 = arith.constant 0 : i32
    return %c0_i32, %c0_i32_0 : i32, i32
  }
  func.func @transform_7(%arg0: i32) -> (i32, i32) {
    %c0_i32 = arith.constant 0 : i32
    %c0_i32_0 = arith.constant 0 : i32
    %c0_i32_1 = arith.constant 0 : i32
    return %c0_i32, %c0_i32_0 : i32, i32
  }
  func.func @transform_8(%arg0: i32) -> (i32, i32) {
    %c0_i32 = arith.constant 0 : i32
    %c0_i32_0 = arith.constant 0 : i32
    %c0_i32_1 = arith.constant 0 : i32
    return %c0_i32, %c0_i32_0 : i32, i32
  }
  func.func @transform_9(%arg0: i32) -> (i32, i32, i32) {
    %c0_i32 = arith.constant 0 : i32
    %c0_i32_0 = arith.constant 0 : i32
    %c0_i32_1 = arith.constant 0 : i32
    return %arg0, %c0_i32, %c0_i32_0 : i32, i32, i32
  }
}

</mosaic_0001>

<bundles_post_ra>
// kernel: residual_block.1
= control target key start
LH: loop header
LB: loop body
LE: loop exit
PB: predicated region body
PF: predicated region fallthrough
CT: control target
= control target key end

     0   :  { %s4674_s30 = smov 0   ;;  %s9672_s0 = inlined_call_operand.vmem [shape: f32[2,16,16,4], index: 0, kind: input, shape index: {}]   ;;  %s9673_s1 = inlined_call_operand.vmem [shape: f32[36,4], index: 1, kind: input, shape index: {}]   ;;  %s9674_s2 = inlined_call_operand.vmem [shape: f32[1,4], index: 2, kind: input, shape index: {}]   ;;  %s9675_s3 = inlined_call_operand.vmem [shape: f32[1,4], index: 3, kind: input, shape index: {}]   ;;  %s9676_s4 = inlined_call_operand.vmem [shape: f32[1,4], index: 4, kind: input, shape index: {}]   ;;  %s9677_s5 = inlined_call_operand.vmem [shape: f32[36,4], index: 5, kind: input, shape index: {}]   ;;  %s9678_s6 = inlined_call_operand.vmem [shape: f32[1,4], index: 6, kind: input, shape index: {}]   ;;  %s9679_s7 = inlined_call_operand.vmem [shape: f32[1,4], index: 7, kind: input, shape index: {}]   ;;  %s9680_s8 = inlined_call_operand.vmem [shape: f32[1,4], index: 8, kind: input, shape index: {}]   ;;  %s9681_s9 = inlined_call_operand.vmem [shape: f32[2,4,256], index: 9, kind: output, shape index: {}]  }
   0x1 LB: > { %s4461_s10 = sadd.s32 4294967295, %s4614_s30   ;;  %p4465_p0 = scmp.ge.s32.totalorder %s4614_s30, 1  ;;  %s4614_s30 = sphi %s4674_s30, %s19_s30  }
   0x2   : > { %p287_p1 = scmp.lt.s32.totalorder %s4614_s30, 3 }
   0x4   : > { %p288_p2 = pnand %p4465_p0, %p287_p1 }
   0x6   : > { %291 = sbr.rel (%p288_p2) target bundleno = 2216 (0x8a8), region = 56 }
   0xb   : > { %p323_p3 = scmp.lt.s32.totalorder %s4461_s10, 1  ;;  %vm429_vm0 = vcmask 1040384   ;;  %vm619_vm1 = vcmask 1046528   ;;  %s4616_s15 = smov 4   ;;  %vm695_vm2 = vcmask 1045504   ;;  %vm1887_vm3 = vcmask 1043456  }
   0xc   : > { %s4617_s16 = smov 8   ;;  %s4618_s17 = smov 12   ;;  %vm1521_vm4 = vcmask 31744   ;;  %vm1552_vm5 = vcmask 64512   ;;  %vm1616_vm6 = vcmask 130048   ;;  %vm1583_vm7 = vcmask 97280  }
   0xd   : > { %s10821_s10 = smov (!%p323_p3, %s4461_s10), 1  ;;  %s4619_s18 = smov 16   ;;  %vm1649_vm8 = vcmask 162816   ;;  %vm1682_vm9 = vcmask 195584   ;;  %vm1715_vm10 = vcmask 228352   ;;  %vm1790_vm11 = vcmask 293888  }
   0xe   : > { %s4538_s11 = sshll.u32 %s10821_s10, 8  ;;  %s4620_s19 = smov 20   ;;  %vm1748_vm12 = vcmask 261120  }
   0xf   : > { %s4688_s14 = scalar_lea.vmem %s9672_s0, %s4538_s11  ;;  %s4621_s20 = smov 24  }
  0x10   : > { %v337_v0 = vld [vmem:[%s4688_s14 + $0x20] sm:$0xff]  ;;  %v338_v1 = vld [vmem:[%s4688_s14 + $0x28] sm:$0xff]  ;;  %v335_v2 = vld [vmem:[%s4688_s14 + $0x10] sm:$0xff]  ;;  %s4622_s21 = smov 28   ;;  %s4623_s22 = smov 32  }
  0x11   : > { %v383_v3 = vrot.slane %v337_v0, 1  ;;  %v436_v4 = vrot.slane %v337_v0, 7  ;;  %v437_v5 = vrot.slane %v338_v1, 7  ;;  %v336_v6 = vld [vmem:[%s4688_s14 + $0x18] sm:$0xff]  ;;  %v381_v7 = vrot.slane %v335_v2, 1  ;;  %v333_v8 = vld [vmem:[%s4688_s14] sm:$0xff] }
  0x12   : > { %v430_v9 = vrot.slane %v335_v2, 7  ;;  %v431_v10 = vrot.slane %v336_v6, 7  ;;  %v334_v11 = vld [vmem:[%s4688_s14 + $0x8] sm:$0xff]  ;;  %v382_v12 = vrot.slane %v333_v8, 1  ;;  %v433_v13 = vrot.slane %v333_v8, 7  ;;  %v341_v26 = vld [vmem:[%s4688_s14 + $0x40] sm:$0xff] }
  0x13   : > { %v4697_v14 = vsel %vm429_vm0, %v436_v4, %v437_v5  ;;  %v4700_v15 = vsel %vm429_vm0, %v383_v3, %v436_v4  ;;  %v434_v16 = vrot.slane %v334_v11, 7  ;;  %v527_v17 = vrot.slane %v338_v1, 5  ;;  %v342_v31 = vld [vmem:[%s4688_s14 + $0x48] sm:$0xff]  ;;  %v339_v35 = vld [vmem:[%s4688_s14 + $0x30] sm:$0xff]  ;;  %v340_v39 = vld [vmem:[%s4688_s14 + $0x38] sm:$0xff]  ;;  %s4539_s27 = sshll.u32 %s10821_s10, 3 }
  0x14   : > { %v630_v18 = vrot.slane %v4700_v15, 1  ;;  %v631_v19 = vrot.slane %v4697_v14, 1  ;;  %v4705_v20 = vsel %vm429_vm0, %v430_v9, %v431_v10  ;;  %v4708_v21 = vsel %vm429_vm0, %v381_v7, %v430_v9  ;;  %v343_v54 = vld [vmem:[%s4688_s14 + $0x50] sm:$0xff]  ;;  %v344_v55 = vld [vmem:[%s4688_s14 + $0x58] sm:$0xff] }
  0x15   : > { %v620_v22 = vrot.slane %v4708_v21, 1  ;;  %v621_v23 = vrot.slane %v4705_v20, 1  ;;  %v4713_v24 = vsel %vm429_vm0, %v433_v13, %v434_v16  ;;  %v4716_v25 = vsel %vm429_vm0, %v382_v12, %v433_v13  ;;  %v348_v13 = vld [vmem:[%s4688_s14 + $0x78] sm:$0xff] }
  0x16   : > { %9928 = vst [vmem:[#allocation2_spill] sm:$0xff] %v4713_v24  ;;  %v4720_v27 = vsel %vm619_vm1, %v630_v18, %v631_v19  ;;  %v625_v28 = vrot.slane %v4716_v25, 1  ;;  %v626_v29 = vrot.slane %v4713_v24, 1  ;;  %v4725_v30 = vsel %vm429_vm0, %v437_v5, %v527_v17  ;;  %v346_v17 = vld [vmem:[%s4688_s14 + $0x68] sm:$0xff] }
  0x17   : > { %9929 = vst [vmem:[#allocation3_spill] sm:$0xff] %v4716_v25  ;;  %791 = vrot.lane.b32.xlu2 %v4720_v27, %s4616_s15  ;;  %v4731_v32 = vsel %vm619_vm1, %v620_v22, %v621_v23  ;;  %v525_v33 = vrot.slane %v336_v6, 5  ;;  %v526_v34 = vrot.slane %v334_v11, 5  ;;  %v633_v37 = vrot.slane %v4725_v30, 1  ;;  %v347_v11 = vld [vmem:[%s4688_s14 + $0x70] sm:$0xff] }
  0x18   : > { %9930 = vst [vmem:[#allocation4_spill] sm:$0xff] %v4720_v27  ;;  %783 = vrot.lane.b32.xlu0 %v4731_v32, %s4616_s15  ;;  %v4737_v36 = vsel %vm619_vm1, %v625_v28, %v626_v29  ;;  %v385_v38 = vrot.slane %v341_v26, 1  ;;  %v442_v42 = vrot.slane %v341_v26, 7  ;;  %v443_v43 = vrot.slane %v342_v31, 7 }
  0x19   : > { %787 = vrot.lane.b32.xlu1 %v4737_v36, %s4616_s15  ;;  %v4744_v40 = vsel %vm429_vm0, %v431_v10, %v525_v33  ;;  %v4747_v41 = vsel %vm429_vm0, %v434_v16, %v526_v34  ;;  %v384_v46 = vrot.slane %v339_v35, 1  ;;  %v439_v47 = vrot.slane %v339_v35, 7  ;;  %v345_v16 = vld [vmem:[%s4688_s14 + $0x60] sm:$0xff] }
  0x1a   : > { %v623_v44 = vrot.slane %v4744_v40, 1  ;;  %v628_v45 = vrot.slane %v4747_v41, 1  ;;  %v440_v48 = vrot.slane %v340_v39, 7  ;;  %v4752_v49 = vsel %vm619_vm1, %v631_v19, %v633_v37 }
  0x1b   : > { %9931 = vst [vmem:[#allocation5_spill] sm:$0xff] %v4752_v49  ;;  %v528_v50 = vrot.slane %v340_v39, 5  ;;  %v4758_v52 = vsel %vm429_vm0, %v442_v42, %v443_v43  ;;  %v4761_v53 = vsel %vm429_vm0, %v385_v38, %v442_v42  ;;  %v4772_v58 = vsel %vm429_vm0, %v384_v46, %v439_v47 }
  0x1c   : > { %v4755_v51 = vsel %vm619_vm1, %v621_v23, %v623_v44  ;;  %9932 = vst [vmem:[#allocation6_spill] sm:$0xff] %v4758_v52  ;;  %v4766_v56 = vsel %vm619_vm1, %v626_v29, %v628_v45  ;;  %v4769_v57 = vsel %vm429_vm0, %v439_v47, %v440_v48  ;;  %v640_v60 = vrot.slane %v4761_v53, 1  ;;  %v349_v47 = vld [vmem:[%s4688_s14 + $0x80] sm:$0xff] }
  0x1d   : > { %9933 = vst [vmem:[#allocation7_spill] sm:$0xff] %v4761_v53  ;;  %v4777_v59 = vsel %vm429_vm0, %v440_v48, %v528_v50  ;;  %v641_v61 = vrot.slane %v4758_v52, 1  ;;  %v445_v62 = vrot.slane %v343_v54, 7  ;;  %v446_v63 = vrot.slane %v344_v55, 7  ;;  %v350_v48 = vld [vmem:[%s4688_s14 + $0x88] sm:$0xff] }
  0x1e   : > { %9934 = vst [vmem:[#allocation8_spill] sm:$0xff] %v4769_v57  ;;  %v635_v0 = vrot.slane %v4772_v58, 1  ;;  %v636_v1 = vrot.slane %v4769_v57, 1  ;;  %v530_v2 = vrot.slane %v344_v55, 5  ;;  %v529_v3 = vrot.slane %v342_v31, 5 }
  0x1f   : > { %793 = vrot.lane.b32.xlu2 %v4752_v49, %s4616_s15  ;;  %v638_v4 = vrot.slane %v4777_v59, 1  ;;  %v386_v5 = vrot.slane %v343_v54, 1  ;;  %v4789_v6 = vsel %vm619_vm1, %v640_v60, %v641_v61  ;;  %v4792_v7 = vsel %vm429_vm0, %v445_v62, %v446_v63 }
  0x20   : > { %785 = vrot.lane.b32.xlu0 %v4755_v51, %s4616_s15  ;;  %9935 = vst [vmem:[#allocation9_spill] sm:$0xff] %v4789_v6  ;;  %v4795_v8 = vsel %vm619_vm1, %v635_v0, %v636_v1  ;;  %v4798_v9 = vsel %vm429_vm0, %v446_v63, %v530_v2  ;;  %v4801_v10 = vsel %vm429_vm0, %v443_v43, %v529_v3  ;;  %v646_v18 = vrot.slane %v4792_v7, 1 }
  0x21   : > { %789 = vrot.lane.b32.xlu1 %v4766_v56, %s4616_s15  ;;  %9936 = vst [vmem:[#allocation10_spill] sm:$0xff] %v4792_v7  ;;  %v4805_v12 = vsel %vm619_vm1, %v636_v1, %v638_v4  ;;  %v4814_v19 = vsel %vm429_vm0, %v386_v5, %v445_v62  ;;  %v648_v22 = vrot.slane %v4798_v9, 1  ;;  %v643_v23 = vrot.slane %v4801_v10, 1 }
  0x22   : > { %9937 = vst [vmem:[#allocation11_spill] sm:$0xff] %v4795_v8  ;;  %v388_v26 = vrot.slane %v347_v11, 1  ;;  %v451_v28 = vrot.slane %v347_v11, 7  ;;  %v452_v29 = vrot.slane %v348_v13, 7  ;;  %v387_v31 = vrot.slane %v345_v16, 1 }
  0x23   : > { %9938 = vst [vmem:[#allocation12_spill] sm:$0xff] %v4805_v12  ;;  %v448_v33 = vrot.slane %v345_v16, 7  ;;  %v449_v34 = vrot.slane %v346_v17, 7  ;;  %v645_v35 = vrot.slane %v4814_v19, 1  ;;  %v531_v37 = vrot.slane %v346_v17, 5 }
  0x24   : > { %9939 = vst [vmem:[#allocation13_spill] sm:$0xff] %v4814_v19  ;;  %v4824_v38 = vsel %vm619_vm1, %v646_v18, %v648_v22  ;;  %v4827_v39 = vsel %vm619_vm1, %v641_v61, %v643_v23  ;;  %v4830_v42 = vsel %vm429_vm0, %v451_v28, %v452_v29  ;;  %v4833_v43 = vsel %vm429_vm0, %v388_v26, %v451_v28  ;;  %v354_v22 = vld [vmem:[%s4688_s14 + $0xa8] sm:$0xff]  ;;  %v351_v23 = vld [vmem:[%s4688_s14 + $0x90] sm:$0xff]  ;;  %v352_v28 = vld [vmem:[%s4688_s14 + $0x98] sm:$0xff] }
  0x25   : > { %9940 = vst [vmem:[#allocation14_spill] sm:$0xff] %v4824_v38  ;;  %v4836_v44 = vsel %vm429_vm0, %v448_v33, %v449_v34  ;;  %v4839_v45 = vsel %vm429_vm0, %v387_v31, %v448_v33  ;;  %v4842_v46 = vsel %vm619_vm1, %v645_v35, %v646_v18  ;;  %v4849_v50 = vsel %vm429_vm0, %v449_v34, %v531_v37  ;;  %v353_v18 = vld [vmem:[%s4688_s14 + $0xa0] sm:$0xff] }
  0x26   : > { %9941 = vst [vmem:[#allocation15_spill] sm:$0xff] %v4827_v39  ;;  %v655_v54 = vrot.slane %v4833_v43, 1  ;;  %v656_v55 = vrot.slane %v4830_v42, 1  ;;  %v650_v60 = vrot.slane %v4839_v45, 1  ;;  %v651_v61 = vrot.slane %v4836_v44, 1 }
  0x27   : > { %799 = vrot.lane.b32.xlu2 %v4789_v6, %s4616_s15  ;;  %9942 = vst [vmem:[#allocation16_spill] sm:$0xff] %v4836_v44  ;;  %v454_v62 = vrot.slane %v349_v47, 7  ;;  %v455_v63 = vrot.slane %v350_v48, 7  ;;  %v533_v0 = vrot.slane %v350_v48, 5  ;;  %v532_v1 = vrot.slane %v348_v13, 5 }
  0x28   : > { %795 = vrot.lane.b32.xlu0 %v4795_v8, %s4616_s15  ;;  %9943 = vst [vmem:[#allocation17_spill] sm:$0xff] %v4839_v45  ;;  %v653_v2 = vrot.slane %v4849_v50, 1  ;;  %v389_v3 = vrot.slane %v349_v47, 1  ;;  %v4861_v4 = vsel %vm619_vm1, %v655_v54, %v656_v55  ;;  %v4864_v5 = vsel %vm619_vm1, %v650_v60, %v651_v61 }
  0x29   : > { %797 = vrot.lane.b32.xlu1 %v4805_v12, %s4616_s15  ;;  %9944 = vst [vmem:[#allocation18_spill] sm:$0xff] %v4842_v46  ;;  %v4867_v11 = vsel %vm429_vm0, %v454_v62, %v455_v63  ;;  %v4870_v16 = vsel %vm429_vm0, %v455_v63, %v533_v0  ;;  %v4873_v17 = vsel %vm429_vm0, %v452_v29, %v532_v1  ;;  %v391_v34 = vrot.slane %v353_v18, 1 }
  0x2a   : > { %9945 = vst [vmem:[#allocation19_spill] sm:$0xff] %v4861_v4  ;;  %v4877_v13 = vsel %vm619_vm1, %v651_v61, %v653_v2  ;;  %v4884_v26 = vsel %vm429_vm0, %v389_v3, %v454_v62  ;;  %v661_v31 = vrot.slane %v4867_v11, 1  ;;  %v663_v29 = vrot.slane %v4870_v16, 1  ;;  %v355_v3 = vld [vmem:[%s4688_s14 + $0xb0] sm:$0xff] }
  0x2b   : > { %9946 = vst [vmem:[#allocation20_spill] sm:$0xff] %v4864_v5  ;;  %v658_v33 = vrot.slane %v4873_v17, 1  ;;  %v460_v35 = vrot.slane %v353_v18, 7  ;;  %v461_v37 = vrot.slane %v354_v22, 7  ;;  %v390_v47 = vrot.slane %v351_v23, 1 }
  0x2c   : > { %9947 = vst [vmem:[#allocation21_spill] sm:$0xff] %v4877_v13  ;;  %v457_v48 = vrot.slane %v351_v23, 7  ;;  %v660_v54 = vrot.slane %v4884_v26, 1  ;;  %v458_v60 = vrot.slane %v352_v28, 7  ;;  %v534_v61 = vrot.slane %v352_v28, 5  ;;  %v356_v28 = vld [vmem:[%s4688_s14 + $0xb8] sm:$0xff] }
  0x2d   : > { %v4896_v62 = vsel %vm619_vm1, %v661_v31, %v663_v29  ;;  %v4899_v63 = vsel %vm619_vm1, %v656_v55, %v658_v33  ;;  %v4902_v0 = vsel %vm429_vm0, %v460_v35, %v461_v37  ;;  %v4905_v1 = vsel %vm429_vm0, %v391_v34, %v460_v35 }
  0x2e   : > { %9948 = vst [vmem:[#allocation22_spill] sm:$0xff] %v4896_v62  ;;  %v4908_v2 = vsel %vm429_vm0, %v390_v47, %v457_v48  ;;  %v4912_v18 = vsel %vm619_vm1, %v660_v54, %v661_v31  ;;  %v4915_v23 = vsel %vm429_vm0, %v457_v48, %v458_v60  ;;  %v4921_v55 = vsel %vm429_vm0, %v458_v60, %v534_v61 }
  0x2f   : > { %805 = vrot.lane.b32.xlu2 %v4824_v38, %s4616_s15  ;;  %9949 = vst [vmem:[#allocation23_spill] sm:$0xff] %v4899_v63  ;;  %v670_v29 = vrot.slane %v4905_v1, 1  ;;  %v671_v33 = vrot.slane %v4902_v0, 1  ;;  %v665_v31 = vrot.slane %v4908_v2, 1  ;;  %v463_v34 = vrot.slane %v355_v3, 7  ;;  %v357_v38 = vld [vmem:[%s4688_s14 + $0xc0] sm:$0xff] }
  0x30   : > { %801 = vrot.lane.b32.xlu0 %v4827_v39, %s4616_s15  ;;  %9950 = vst [vmem:[#allocation24_spill] sm:$0xff] %v4902_v0  ;;  %v666_v35 = vrot.slane %v4915_v23, 1  ;;  %v464_v47 = vrot.slane %v356_v28, 7  ;;  %v536_v48 = vrot.slane %v356_v28, 5  ;;  %v535_v54 = vrot.slane %v354_v22, 5  ;;  %v359_v28 = vld [vmem:[%s4688_s14 + $0xd0] sm:$0xff] }
  0x31   : > { %803 = vrot.lane.b32.xlu1 %v4842_v46, %s4616_s15  ;;  %9951 = vst [vmem:[#allocation25_spill] sm:$0xff] %v4905_v1  ;;  %v668_v60 = vrot.slane %v4921_v55, 1  ;;  %v392_v61 = vrot.slane %v355_v3, 1  ;;  %v360_v3 = vld [vmem:[%s4688_s14 + $0xd8] sm:$0xff]  ;;  %v362_v39 = vld [vmem:[%s4688_s14 + $0xe8] sm:$0xff] }
  0x32   : > { %9952 = vst [vmem:[#allocation26_spill] sm:$0xff] %v4912_v18 }
  0x33   : > { %9953 = vst [vmem:[#allocation27_spill] sm:$0xff] %v4915_v23  ;;  %v4949_v22 = vsel %vm619_vm1, %v666_v35, %v668_v60  ;;  %v470_v60 = vrot.slane %v360_v3, 7 }
  0x34   : > { %9957 = vst [vmem:[#allocation31_spill] sm:$0xff] %v4949_v22 }
  0x37   : > { %811 = vrot.lane.b32.xlu2 %v4861_v4, %s4616_s15  ;;  %v4936_v4 = vsel %vm619_vm1, %v665_v31, %v666_v35  ;;  %v358_v31 = vld [vmem:[%s4688_s14 + $0xc8] sm:$0xff]  ;;  %v394_v35 = vrot.slane %v359_v28, 1 }
  0x38   : > { %807 = vrot.lane.b32.xlu0 %v4864_v5, %s4616_s15  ;;  %9955 = vst [vmem:[#allocation29_spill] sm:$0xff] %v4936_v4  ;;  %v467_v46 = vrot.slane %v358_v31, 7 }
  0x39   : > { %809 = vrot.lane.b32.xlu1 %v4877_v13, %s4616_s15  ;;  %v4939_v13 = vsel %vm429_vm0, %v463_v34, %v464_v47 }
  0x3a   : > { %9956 = vst [vmem:[#allocation30_spill] sm:$0xff] %v4939_v13 }
  0x3f   : > { %817 = vrot.lane.b32.xlu2 %v4896_v62, %s4616_s15  ;;  %v4933_v62 = vsel %vm619_vm1, %v670_v29, %v671_v33  ;;  %v4956_v29 = vsel %vm429_vm0, %v392_v61, %v463_v34  ;;  %v393_v34 = vrot.slane %v357_v38, 1  ;;  %v466_v61 = vrot.slane %v357_v38, 7 }
  0x40   : > { %813 = vrot.lane.b32.xlu0 %v4899_v63, %s4616_s15  ;;  %9954 = vst [vmem:[#allocation28_spill] sm:$0xff] %v4933_v62  ;;  %v4945_v63 = vsel %vm429_vm0, %v461_v37, %v535_v54  ;;  %v469_v54 = vrot.slane %v359_v28, 7 }
  0x41   : > { %815 = vrot.lane.b32.xlu1 %v4912_v18, %s4616_s15  ;;  %v4942_v18 = vsel %vm429_vm0, %v464_v47, %v536_v48  ;;  %9958 = vst [vmem:[#allocation32_spill] sm:$0xff] %v4956_v29  ;;  %v676_v47 = vrot.slane %v4939_v13, 1  ;;  %v673_v48 = vrot.slane %v4945_v63, 1  ;;  %v4980_v28 = vsel %vm429_vm0, %v393_v34, %v466_v61 }
  0x42   : > { %v678_v37 = vrot.slane %v4942_v18, 1  ;;  %v4974_v12 = vsel %vm429_vm0, %v469_v54, %v470_v60  ;;  %9963 = vst [vmem:[#allocation37_spill] sm:$0xff] %v4980_v28  ;;  %v473_v34 = vrot.slane %v362_v39, 7 }
  0x43   : > { %v4971_v6 = vsel %vm619_vm1, %v671_v33, %v673_v48  ;;  %9961 = vst [vmem:[#allocation35_spill] sm:$0xff] %v4974_v12 }
  0x44   : > { %v4968_v5 = vsel %vm619_vm1, %v676_v47, %v678_v37  ;;  %9960 = vst [vmem:[#allocation34_spill] sm:$0xff] %v4971_v6  ;;  %v361_v37 = vld [vmem:[%s4688_s14 + $0xe0] sm:$0xff] }
  0x45   : > { %9959 = vst [vmem:[#allocation33_spill] sm:$0xff] %v4968_v5 }
  0x47   : > { %823 = vrot.lane.b32.xlu2 %v4933_v62, %s4616_s15  ;;  %v675_v62 = vrot.slane %v4956_v29, 1 }
  0x48   : > { %819 = vrot.lane.b32.xlu0 %v4936_v4, %s4616_s15  ;;  %v537_v4 = vrot.slane %v358_v31, 5  ;;  %v4986_v31 = vsel %vm429_vm0, %v466_v61, %v467_v46  ;;  %v539_v61 = vrot.slane %v362_v39, 5 }
  0x49   : > { %821 = vrot.lane.b32.xlu1 %v4949_v22, %s4616_s15  ;;  %v4977_v22 = vsel %vm429_vm0, %v394_v35, %v469_v54  ;;  %v4983_v38 = vsel %vm619_vm1, %v675_v62, %v676_v47  ;;  %9965 = vst [vmem:[#allocation39_spill] sm:$0xff] %v4986_v31  ;;  %v686_v35 = vrot.slane %v4974_v12, 1  ;;  %v680_v62 = vrot.slane %v4980_v28, 1 }
  0x4a   : > { %9962 = vst [vmem:[#allocation36_spill] sm:$0xff] %v4977_v22  ;;  %v4993_v33 = vsel %vm429_vm0, %v467_v46, %v537_v4  ;;  %v685_v48 = vrot.slane %v4977_v22, 1  ;;  %v681_v47 = vrot.slane %v4986_v31, 1  ;;  %v472_v54 = vrot.slane %v361_v37, 7 }
  0x4b   : > { %9964 = vst [vmem:[#allocation38_spill] sm:$0xff] %v4983_v38  ;;  %v683_v46 = vrot.slane %v4993_v33, 1  ;;  %v538_v4 = vrot.slane %v360_v3, 5 }
  0x4c   : > { %v5008_v49 = vsel %vm619_vm1, %v680_v62, %v681_v47  ;;  %v5011_v27 = vsel %vm429_vm0, %v472_v54, %v473_v34 }
  0x4d   : > { %9966 = vst [vmem:[#allocation40_spill] sm:$0xff] %v5008_v49  ;;  %v5017_v8 = vsel %vm619_vm1, %v681_v47, %v683_v46  ;;  %v5020_v39 = vsel %vm429_vm0, %v470_v60, %v538_v4  ;;  %v697_v46 = vrot.slane %v4705_v20, 2  ;;  %v699_v4 = vrot.slane %v4744_v40, 2 }
  0x4e   : > { %9967 = vst [vmem:[#allocation41_spill] sm:$0xff] %v5011_v27  ;;  %v688_v62 = vrot.slane %v5020_v39, 1  ;;  %v709_v40 = vrot.slane %v4725_v30, 2  ;;  %v716_v30 = vrot.slane %v4761_v53, 2 }
  0x4f   : > { %829 = vrot.lane.b32.xlu2 %v4968_v5, %s4616_s15  ;;  %v395_v5 = vrot.slane %v361_v37, 1  ;;  %v691_v37 = vrot.slane %v5011_v27, 1 }
  0x50   : > { %825 = vrot.lane.b32.xlu0 %v4971_v6, %s4616_s15  ;;  %v5005_v6 = vsel %vm619_vm1, %v685_v48, %v686_v35 }
  0x51   : > { %827 = vrot.lane.b32.xlu1 %v4983_v38, %s4616_s15  ;;  %v5014_v38 = vsel %vm429_vm0, %v473_v34, %v539_v61  ;;  %v5025_v3 = vsel %vm429_vm0, %v395_v5, %v472_v54  ;;  %v5039_v5 = vsel %vm619_vm1, %v686_v35, %v688_v62  ;;  %v701_v34 = vrot.slane %v4716_v25, 2 }
  0x52   : > { %9968 = vst [vmem:[#allocation42_spill] sm:$0xff] %v5025_v3  ;;  %v693_v48 = vrot.slane %v5014_v38, 1  ;;  %v690_v60 = vrot.slane %v5025_v3, 1  ;;  %v702_v61 = vrot.slane %v4713_v24, 2  ;;  %v696_v35 = vrot.slane %v4708_v21, 2 }
  0x53   : > { %9969 = vst [vmem:[#allocation43_spill] sm:$0xff] %v5039_v5  ;;  %v5062_v62 = vsel %vm695_vm2, %v697_v46, %v699_v4 }
  0x54   : > { %v5036_v47 = vsel %vm619_vm1, %v691_v37, %v693_v48  ;;  %v5042_v54 = vsel %vm619_vm1, %v690_v60, %v691_v37  ;;  %v5056_v37 = vsel %vm695_vm2, %v701_v34, %v702_v61  ;;  %v5059_v48 = vsel %vm695_vm2, %v696_v35, %v697_v46  ;;  %9972 = vst [vmem:[#allocation46_spill] sm:$0xff] %v5062_v62 }
  0x55   : > { %9970 = vst [vmem:[#allocation44_spill] sm:$0xff] %v5056_v37  ;;  %v707_v60 = vrot.slane %v4697_v14, 2  ;;  %v704_v34 = vrot.slane %v4747_v41, 2  ;;  %v706_v35 = vrot.slane %v4700_v15, 2  ;;  %v717_v41 = vrot.slane %v4758_v52, 2 }
  0x56   : > { %9971 = vst [vmem:[#allocation45_spill] sm:$0xff] %v5059_v48 }
  0x57   : > { %835 = vrot.lane.b32.xlu2 %v5005_v6, %s4616_s15  ;;  %v5075_v46 = vsel %vm695_vm2, %v707_v60, %v709_v40  ;;  %v5078_v4 = vsel %vm695_vm2, %v702_v61, %v704_v34  ;;  %v711_v61 = vrot.slane %v4772_v58, 2  ;;  %v714_v34 = vrot.slane %v4777_v59, 2 }
  0x58   : > { %831 = vrot.lane.b32.xlu0 %v5008_v49, %s4616_s15  ;;  %9973 = vst [vmem:[#allocation47_spill] sm:$0xff] %v5075_v46 }
  0x59   : > { %833 = vrot.lane.b32.xlu1 %v5017_v8, %s4616_s15 }
  0x5f   : > { %841 = vrot.lane.b32.xlu2 %v5036_v47, %s4616_s15 }
  0x60   : > { %837 = vrot.lane.b32.xlu0 %v5039_v5, %s4616_s15 }
  0x61   : > { %839 = vrot.lane.b32.xlu1 %v5042_v54, %s4616_s15 }
  0x67   : > { %877 = vrot.lane.b32.xlu2 %v5056_v37, %s4617_s16  ;;  %v5081_v37 = vsel %vm695_vm2, %v706_v35, %v707_v60  ;;  %v712_v60 = vrot.slane %v4769_v57, 2  ;;  %v5097_v35 = vsel %vm695_vm2, %v716_v30, %v717_v41  ;;  %v719_v30 = vrot.slane %v4801_v10, 2 }
  0x68   : > { %873 = vrot.lane.b32.xlu0 %v5059_v48, %s4617_s16  ;;  %9975 = vst [vmem:[#allocation49_spill] sm:$0xff] %v5097_v35  ;;  %v724_v48 = vrot.slane %v4798_v9, 2  ;;  %v731_v9 = vrot.slane %v4833_v43, 2  ;;  %v732_v10 = vrot.slane %v4830_v42, 2 }
  0x69   : > { %875 = vrot.lane.b32.xlu1 %v5062_v62, %s4617_s16  ;;  %v5103_v62 = vsel %vm695_vm2, %v712_v60, %v714_v34  ;;  %v5121_v34 = vsel %vm695_vm2, %v717_v41, %v719_v30  ;;  %v726_v41 = vrot.slane %v4839_v45, 2  ;;  %v729_v30 = vrot.slane %v4849_v50, 2 }
  0x6a   : > { %9979 = vst [vmem:[#allocation53_spill] sm:$0xff] %v5121_v34 }
  0x6f   : > { %883 = vrot.lane.b32.xlu2 %v5075_v46, %s4617_s16  ;;  %v5100_v46 = vsel %vm695_vm2, %v711_v61, %v712_v60  ;;  %v721_v61 = vrot.slane %v4814_v19, 2 }
  0x70   : > { %879 = vrot.lane.b32.xlu0 %v5078_v4, %s4617_s16  ;;  %9976 = vst [vmem:[#allocation50_spill] sm:$0xff] %v5100_v46 }
  0x71   : > { %881 = vrot.lane.b32.xlu1 %v5081_v37, %s4617_s16  ;;  %v5091_v40 = vpop.permute.xlu2 %791 }
  0x72   : > { %9974 = vst [vmem:[#allocation48_spill] sm:$0xff] %v5091_v40  ;;  %v722_v40 = vrot.slane %v4792_v7, 2 }
  0x74   : > { %v5118_v60 = vsel %vm695_vm2, %v722_v40, %v724_v48 }
  0x75   : > { %9978 = vst [vmem:[#allocation52_spill] sm:$0xff] %v5118_v60 }
  0x77   : > { %889 = vrot.lane.b32.xlu2 %v5097_v35, %s4617_s16  ;;  %v5124_v35 = vsel %vm695_vm2, %v721_v61, %v722_v40  ;;  %v727_v40 = vrot.slane %v4836_v44, 2  ;;  %v5140_v61 = vsel %vm695_vm2, %v731_v9, %v732_v10  ;;  %v734_v9 = vrot.slane %v4873_v17, 2 }
  0x78   : > { %885 = vrot.lane.b32.xlu0 %v5100_v46, %s4617_s16  ;;  %9981 = vst [vmem:[#allocation55_spill] sm:$0xff] %v5140_v61  ;;  %v746_v17 = vrot.slane %v4905_v1, 2 }
  0x79   : > { %887 = vrot.lane.b32.xlu1 %v5103_v62, %s4617_s16  ;;  %v5113_v59 = vpop.permute.xlu2 %793 }
  0x7a   : > { %9977 = vst [vmem:[#allocation51_spill] sm:$0xff] %v5113_v59  ;;  %v5143_v59 = vsel %vm695_vm2, %v726_v41, %v727_v40 }
  0x7b   : > { %9982 = vst [vmem:[#allocation56_spill] sm:$0xff] %v5143_v59 }
  0x7f   : > { %895 = vrot.lane.b32.xlu2 %v5118_v60, %s4617_s16  ;;  %v5146_v60 = vsel %vm695_vm2, %v727_v40, %v729_v30  ;;  %v736_v40 = vrot.slane %v4884_v26, 2 }
  0x80   : > { %891 = vrot.lane.b32.xlu0 %v5121_v34, %s4617_s16  ;;  %v739_v34 = vrot.slane %v4870_v16, 2 }
  0x81   : > { %893 = vrot.lane.b32.xlu1 %v5124_v35, %s4617_s16  ;;  %v5134_v48 = vpop.permute.xlu2 %799 }
  0x82   : > { %9980 = vst [vmem:[#allocation54_spill] sm:$0xff] %v5134_v48  ;;  %v737_v48 = vrot.slane %v4867_v11, 2 }
  0x84   : > { %v5171_v16 = vsel %vm695_vm2, %v736_v40, %v737_v48  ;;  %v744_v40 = vrot.slane %v4921_v55, 2  ;;  %v754_v55 = vrot.slane %v4942_v18, 2 }
  0x87   : > { %901 = vrot.lane.b32.xlu2 %v5140_v61, %s4617_s16  ;;  %v5165_v61 = vsel %vm695_vm2, %v737_v48, %v739_v34  ;;  %v742_v48 = vrot.slane %v4915_v23, 2 }
  0x88   : > { %897 = vrot.lane.b32.xlu0 %v5143_v59, %s4617_s16  ;;  %9986 = vst [vmem:[#allocation60_spill] sm:$0xff] %v5165_v61  ;;  %v5168_v59 = vsel %vm695_vm2, %v732_v10, %v734_v9  ;;  %v741_v10 = vrot.slane %v4908_v2, 2 }
  0x89   : > { %899 = vrot.lane.b32.xlu1 %v5146_v60, %s4617_s16  ;;  %v5156_v50 = vpop.permute.xlu2 %805  ;;  %9987 = vst [vmem:[#allocation61_spill] sm:$0xff] %v5168_v59 }
  0x8a   : > { %9983 = vst [vmem:[#allocation57_spill] sm:$0xff] %v5156_v50  ;;  %v5159_v41 = vpop.permute.xlu0 %783  ;;  %v747_v50 = vrot.slane %v4902_v0, 2 }
  0x8b   : > { %9984 = vst [vmem:[#allocation58_spill] sm:$0xff] %v5159_v41  ;;  %v5162_v30 = vpop.permute.xlu1 %787 }
  0x8c   : > { %9985 = vst [vmem:[#allocation59_spill] sm:$0xff] %v5162_v30  ;;  %v5191_v41 = vsel %vm695_vm2, %v746_v17, %v747_v50 }
  0x8d   : > { %9991 = vst [vmem:[#allocation65_spill] sm:$0xff] %v5191_v41 }
  0x8f   : > { %907 = vrot.lane.b32.xlu2 %v5165_v61, %s4617_s16  ;;  %v5194_v61 = vsel %vm695_vm2, %v741_v10, %v742_v48  ;;  %v749_v10 = vrot.slane %v4945_v63, 2  ;;  %v761_v63 = vrot.slane %v4977_v22, 2 }
  0x90   : > { %903 = vrot.lane.b32.xlu0 %v5168_v59, %s4617_s16  ;;  %9992 = vst [vmem:[#allocation66_spill] sm:$0xff] %v5194_v61  ;;  %v5197_v59 = vsel %vm695_vm2, %v742_v48, %v744_v40  ;;  %v751_v48 = vrot.slane %v4956_v29, 2 }
  0x91   : > { %905 = vrot.lane.b32.xlu1 %v5171_v16, %s4617_s16  ;;  %v5181_v34 = vpop.permute.xlu2 %811 }
  0x92   : > { %9988 = vst [vmem:[#allocation62_spill] sm:$0xff] %v5181_v34  ;;  %v5185_v9 = vpop.permute.xlu0 %785  ;;  %v752_v34 = vrot.slane %v4939_v13, 2 }
  0x93   : > { %9989 = vst [vmem:[#allocation63_spill] sm:$0xff] %v5185_v9  ;;  %v5188_v30 = vpop.permute.xlu1 %789 }
  0x94   : > { %9990 = vst [vmem:[#allocation64_spill] sm:$0xff] %v5188_v30  ;;  %v5216_v9 = vsel %vm695_vm2, %v752_v34, %v754_v55  ;;  %v5222_v18 = vsel %vm695_vm2, %v751_v48, %v752_v34  ;;  %v757_v34 = vrot.slane %v4986_v31, 2  ;;  %v759_v48 = vrot.slane %v4993_v33, 2 }
  0x95   : > { %9996 = vst [vmem:[#allocation70_spill] sm:$0xff] %v5216_v9  ;;  %v769_v33 = vrot.slane %v5014_v38, 2 }
  0x97   : > { %913 = vrot.lane.b32.xlu2 %v5191_v41, %s4617_s16  ;;  %v5219_v41 = vsel %vm695_vm2, %v747_v50, %v749_v10  ;;  %v756_v50 = vrot.slane %v4980_v28, 2 }
  0x98   : > { %909 = vrot.lane.b32.xlu0 %v5194_v61, %s4617_s16  ;;  %9997 = vst [vmem:[#allocation71_spill] sm:$0xff] %v5219_v41 }
  0x99   : > { %911 = vrot.lane.b32.xlu1 %v5197_v59, %s4617_s16  ;;  %v5207_v17 = vpop.permute.xlu2 %817 }
  0x9a   : > { %9993 = vst [vmem:[#allocation67_spill] sm:$0xff] %v5207_v17  ;;  %v5210_v30 = vpop.permute.xlu0 %795  ;;  %v762_v17 = vrot.slane %v4974_v12, 2 }
  0x9b   : > { %9994 = vst [vmem:[#allocation68_spill] sm:$0xff] %v5210_v30  ;;  %v5213_v40 = vpop.permute.xlu1 %797 }
  0x9c   : > { %9995 = vst [vmem:[#allocation69_spill] sm:$0xff] %v5213_v40  ;;  %v5242_v30 = vsel %vm695_vm2, %v761_v63, %v762_v17 }
  0x9d   : > { %10001 = vst [vmem:[#allocation75_spill] sm:$0xff] %v5242_v30 }
  0x9f   : > { %919 = vrot.lane.b32.xlu2 %v5216_v9, %s4617_s16  ;;  %v5245_v9 = vsel %vm695_vm2, %v756_v50, %v757_v34  ;;  %v764_v50 = vrot.slane %v5020_v39, 2 }
  0xa0   : > { %915 = vrot.lane.b32.xlu0 %v5219_v41, %s4617_s16  ;;  %10002 = vst [vmem:[#allocation76_spill] sm:$0xff] %v5245_v9  ;;  %v5248_v41 = vsel %vm695_vm2, %v757_v34, %v759_v48  ;;  %v766_v34 = vrot.slane %v5025_v3, 2 }
  0xa1   : > { %917 = vrot.lane.b32.xlu1 %v5222_v18, %s4617_s16  ;;  %v5232_v55 = vpop.permute.xlu2 %823 }
  0xa2   : > { %9998 = vst [vmem:[#allocation72_spill] sm:$0xff] %v5232_v55  ;;  %v5236_v10 = vpop.permute.xlu0 %801  ;;  %v767_v55 = vrot.slane %v5011_v27, 2 }
  0xa3   : > { %9999 = vst [vmem:[#allocation73_spill] sm:$0xff] %v5236_v10  ;;  %v5239_v40 = vpop.permute.xlu1 %803 }
  0xa4   : > { %10000 = vst [vmem:[#allocation74_spill] sm:$0xff] %v5239_v40  ;;  %v5267_v10 = vsel %vm695_vm2, %v767_v55, %v769_v33  ;;  %v5273_v38 = vsel %vm695_vm2, %v766_v34, %v767_v55 }
  0xa5   : > { %10006 = vst [vmem:[#allocation80_spill] sm:$0xff] %v5273_v38 }
  0xa7   : > { %925 = vrot.lane.b32.xlu2 %v5242_v30, %s4617_s16  ;;  %v5270_v30 = vsel %vm695_vm2, %v762_v17, %v764_v50 }
  0xa8   : > { %921 = vrot.lane.b32.xlu0 %v5245_v9, %s4617_s16 }
  0xa9   : > { %923 = vrot.lane.b32.xlu1 %v5248_v41, %s4617_s16  ;;  %v5258_v63 = vpop.permute.xlu2 %829 }
  0xaa   : > { %10003 = vst [vmem:[#allocation77_spill] sm:$0xff] %v5258_v63  ;;  %v5261_v40 = vpop.permute.xlu0 %807 }
  0xab   : > { %10004 = vst [vmem:[#allocation78_spill] sm:$0xff] %v5261_v40  ;;  %v5264_v48 = vpop.permute.xlu1 %809 }
  0xac   : > { %10005 = vst [vmem:[#allocation79_spill] sm:$0xff] %v5264_v48 }
  0xaf   : > { %931 = vrot.lane.b32.xlu2 %v5267_v10, %s4617_s16 }
  0xb0   : > { %927 = vrot.lane.b32.xlu0 %v5270_v30, %s4617_s16 }
  0xb1   : > { %929 = vrot.lane.b32.xlu1 %v5273_v38, %s4617_s16  ;;  %v5281_v39 = vpop.permute.xlu2 %835 }
  0xb2   : > { %10007 = vst [vmem:[#allocation81_spill] sm:$0xff] %v5281_v39  ;;  %v5283_v48 = vpop.permute.xlu0 %813 }
  0xb3   : > { %10008 = vst [vmem:[#allocation82_spill] sm:$0xff] %v5283_v48  ;;  %v5285_v33 = vpop.permute.xlu1 %815 }
  0xb4   : > { %10009 = vst [vmem:[#allocation83_spill] sm:$0xff] %v5285_v33 }
  0xb7   : > { %967 = vrot.lane.b32.xlu2 %v4708_v21, %s4618_s17 }
  0xb8   : > { %963 = vrot.lane.b32.xlu0 %v4716_v25, %s4618_s17 }
  0xb9   : > { %965 = vrot.lane.b32.xlu1 %v4713_v24, %s4618_s17  ;;  %v5293_v17 = vpop.permute.xlu2 %841 }
  0xba   : > { %10010 = vst [vmem:[#allocation84_spill] sm:$0xff] %v5293_v17  ;;  %v5295_v55 = vpop.permute.xlu0 %819 }
  0xbb   : > { %10011 = vst [vmem:[#allocation85_spill] sm:$0xff] %v5295_v55  ;;  %v5297_v50 = vpop.permute.xlu1 %821 }
  0xbc   : > { %10012 = vst [vmem:[#allocation86_spill] sm:$0xff] %v5297_v50 }
  0xbf   : > { %973 = vrot.lane.b32.xlu2 %v4697_v14, %s4618_s17 }
  0xc0   : > { %969 = vrot.lane.b32.xlu0 %v4705_v20, %s4618_s17 }
  0xc1   : > { %971 = vrot.lane.b32.xlu1 %v4700_v15, %s4618_s17  ;;  %v5305_v34 = vpop.permute.xlu2 %877 }
  0xc2   : > { %10013 = vst [vmem:[#allocation87_spill] sm:$0xff] %v5305_v34  ;;  %v5307_v39 = vpop.permute.xlu0 %825 }
  0xc3   : > { %10014 = vst [vmem:[#allocation88_spill] sm:$0xff] %v5307_v39  ;;  %v5309_v63 = vpop.permute.xlu1 %827 }
  0xc4   : > { %10015 = vst [vmem:[#allocation89_spill] sm:$0xff] %v5309_v63 }
  0xc7   : > { %979 = vrot.lane.b32.xlu2 %v4761_v53, %s4618_s17 }
  0xc8   : > { %975 = vrot.lane.b32.xlu0 %v4772_v58, %s4618_s17 }
  0xc9   : > { %977 = vrot.lane.b32.xlu1 %v4769_v57, %s4618_s17  ;;  %v5317_v17 = vpop.permute.xlu2 %883 }
  0xca   : > { %10016 = vst [vmem:[#allocation90_spill] sm:$0xff] %v5317_v17  ;;  %v5319_v40 = vpop.permute.xlu0 %831 }
  0xcb   : > { %10017 = vst [vmem:[#allocation91_spill] sm:$0xff] %v5319_v40  ;;  %v5321_v50 = vpop.permute.xlu1 %833 }
  0xcc   : > { %10018 = vst [vmem:[#allocation92_spill] sm:$0xff] %v5321_v50 }
  0xcf   : > { %985 = vrot.lane.b32.xlu2 %v4792_v7, %s4618_s17 }
  0xd0   : > { %981 = vrot.lane.b32.xlu0 %v4758_v52, %s4618_s17 }
  0xd1   : > { %983 = vrot.lane.b32.xlu1 %v4814_v19, %s4618_s17  ;;  %v5329_v63 = vpop.permute.xlu2 %889 }
  0xd2   : > { %10019 = vst [vmem:[#allocation93_spill] sm:$0xff] %v5329_v63  ;;  %v5331_v39 = vpop.permute.xlu0 %837 }
  0xd3   : > { %10020 = vst [vmem:[#allocation94_spill] sm:$0xff] %v5331_v39  ;;  %v5333_v55 = vpop.permute.xlu1 %839 }
  0xd4   : > { %10021 = vst [vmem:[#allocation95_spill] sm:$0xff] %v5333_v55 }
  0xd7   : > { %991 = vrot.lane.b32.xlu2 %v4833_v43, %s4618_s17 }
  0xd8   : > { %987 = vrot.lane.b32.xlu0 %v4839_v45, %s4618_s17 }
  0xd9   : > { %989 = vrot.lane.b32.xlu1 %v4836_v44, %s4618_s17  ;;  %v5341_v50 = vpop.permute.xlu2 %895 }
  0xda   : > { %10022 = vst [vmem:[#allocation96_spill] sm:$0xff] %v5341_v50  ;;  %v5343_v40 = vpop.permute.xlu0 %873 }
  0xdb   : > { %10023 = vst [vmem:[#allocation97_spill] sm:$0xff] %v5343_v40  ;;  %v5345_v17 = vpop.permute.xlu1 %875 }
  0xdc   : > { %10024 = vst [vmem:[#allocation98_spill] sm:$0xff] %v5345_v17 }
  0xdf   : > { %997 = vrot.lane.b32.xlu2 %v4867_v11, %s4618_s17 }
  0xe0   : > { %993 = vrot.lane.b32.xlu0 %v4830_v42, %s4618_s17 }
  0xe1   : > { %995 = vrot.lane.b32.xlu1 %v4884_v26, %s4618_s17  ;;  %v5353_v55 = vpop.permute.xlu2 %901 }
  0xe2   : > { %10025 = vst [vmem:[#allocation99_spill] sm:$0xff] %v5353_v55  ;;  %v5355_v39 = vpop.permute.xlu0 %879 }
  0xe3   : > { %10026 = vst [vmem:[#allocation100_spill] sm:$0xff] %v5355_v39  ;;  %v5357_v63 = vpop.permute.xlu1 %881 }
  0xe4   : > { %10027 = vst [vmem:[#allocation101_spill] sm:$0xff] %v5357_v63 }
  0xe7   : > { %1003 = vrot.lane.b32.xlu2 %v4905_v1, %s4618_s17 }
  0xe8   : > { %999 = vrot.lane.b32.xlu0 %v4908_v2, %s4618_s17 }
  0xe9   : > { %1001 = vrot.lane.b32.xlu1 %v4915_v23, %s4618_s17  ;;  %v5365_v50 = vpop.permute.xlu2 %907 }
  0xea   : > { %10028 = vst [vmem:[#allocation102_spill] sm:$0xff] %v5365_v50  ;;  %v5367_v33 = vpop.permute.xlu0 %885 }
  0xeb   : > { %10029 = vst [vmem:[#allocation103_spill] sm:$0xff] %v5367_v33  ;;  %v5369_v48 = vpop.permute.xlu1 %887 }
  0xec   : > { %10030 = vst [vmem:[#allocation104_spill] sm:$0xff] %v5369_v48 }
  0xef   : > { %1009 = vrot.lane.b32.xlu2 %v4939_v13, %s4618_s17 }
  0xf0   : > { %1005 = vrot.lane.b32.xlu0 %v4902_v0, %s4618_s17 }
  0xf1   : > { %1007 = vrot.lane.b32.xlu1 %v4956_v29, %s4618_s17  ;;  %v5377_v63 = vpop.permute.xlu2 %913 }
  0xf2   : > { %10031 = vst [vmem:[#allocation105_spill] sm:$0xff] %v5377_v63  ;;  %v5379_v55 = vpop.permute.xlu0 %891  ;;  %v363_v63 = vld [vmem:[%s4688_s14 + $0xf0] sm:$0xff] }
  0xf3   : > { %10032 = vst [vmem:[#allocation106_spill] sm:$0xff] %v5379_v55  ;;  %v5381_v39 = vpop.permute.xlu1 %893  ;;  %v396_v24 = vrot.slane %v363_v63, 1 }
  0xf4   : > { %10033 = vst [vmem:[#allocation107_spill] sm:$0xff] %v5381_v39  ;;  %v5399_v39 = vld [vmem:[%s4688_s14 + $0xf8] sm:$0xff] }
  0xf7   : > { %1015 = vrot.lane.b32.xlu2 %v4977_v22, %s4618_s17 }
  0xf8   : > { %1011 = vrot.lane.b32.xlu0 %v4980_v28, %s4618_s17 }
  0xf9   : > { %1013 = vrot.lane.b32.xlu1 %v4986_v31, %s4618_s17  ;;  %v5389_v48 = vpop.permute.xlu2 %919 }
  0xfa   : > { %10034 = vst [vmem:[#allocation108_spill] sm:$0xff] %v5389_v48  ;;  %v5391_v50 = vpop.permute.xlu0 %897  ;;  %v475_v48 = vrot.slane %v363_v63, 7 }
  0xfb   : > { %10035 = vst [vmem:[#allocation109_spill] sm:$0xff] %v5391_v50  ;;  %v5393_v33 = vpop.permute.xlu1 %899 }
  0xfc   : > { %10036 = vst [vmem:[#allocation110_spill] sm:$0xff] %v5393_v33  ;;  %v9753_v33 = vrot.slane %v5399_v39, 7  ;;  %v5413_v25 = vsel %vm429_vm0, %v396_v24, %v475_v48 }
  0xfe   : > { %v5418_v17 = vsel %vm429_vm0, %v475_v48, %v9753_v33 }
  0xff   : > { %1021 = vrot.lane.b32.xlu2 %v5011_v27, %s4618_s17 }
 0x100   : > { %1017 = vrot.lane.b32.xlu0 %v4974_v12, %s4618_s17 }
 0x101   : > { %1019 = vrot.lane.b32.xlu1 %v5025_v3, %s4618_s17  ;;  %v5405_v55 = vpop.permute.xlu2 %925 }
 0x102   : > { %10037 = vst [vmem:[#allocation111_spill] sm:$0xff] %v5405_v55  ;;  %v5407_v34 = vpop.permute.xlu0 %903 }
 0x103   : > { %10038 = vst [vmem:[#allocation112_spill] sm:$0xff] %v5407_v34  ;;  %v5410_v50 = vpop.permute.xlu1 %905 }
 0x104   : > { %10039 = vst [vmem:[#allocation113_spill] sm:$0xff] %v5410_v50 }
 0x107   : > { %1059 = vrot.lane.b32.xlu2 %v4737_v36, %s4619_s18 }
 0x108   : > { %1023 = vrot.lane.b32.xlu0 %v5413_v25, %s4618_s17 }
 0x109   : > { %1025 = vrot.lane.b32.xlu1 %v5418_v17, %s4618_s17  ;;  %v5426_v63 = vpop.permute.xlu2 %931 }
 0x10a   : > { %10040 = vst [vmem:[#allocation114_spill] sm:$0xff] %v5426_v63  ;;  %v5428_v55 = vpop.permute.xlu0 %909  ;;  %v10046_v63 = vld [vmem:[#allocation11_spill] sm:$0xff] }
 0x10b   : > { %10041 = vst [vmem:[#allocation115_spill] sm:$0xff] %v5428_v55  ;;  %v5430_v24 = vpop.permute.xlu1 %911  ;;  %v10048_v55 = vld [vmem:[#allocation5_spill] sm:$0xff] }
 0x10c   : > { %10042 = vst [vmem:[#allocation116_spill] sm:$0xff] %v5430_v24  ;;  %v10047_v24 = vld [vmem:[#allocation4_spill] sm:$0xff] }
 0x10f   : > { %1065 = vrot.lane.b32.xlu2 %v4755_v51, %s4619_s18 }
 0x110   : > { %1061 = vrot.lane.b32.xlu0 %v4766_v56, %s4619_s18 }
 0x111   : > { %1063 = vrot.lane.b32.xlu1 %v4731_v32, %s4619_s18  ;;  %v5438_v36 = vpop.permute.xlu2 %967 }
 0x112   : > { %10043 = vst [vmem:[#allocation117_spill] sm:$0xff] %v5438_v36  ;;  %v5440_v48 = vpop.permute.xlu0 %915  ;;  %v10052_v36 = vld [vmem:[#allocation15_spill] sm:$0xff] }
 0x113   : > { %10044 = vst [vmem:[#allocation118_spill] sm:$0xff] %v5440_v48  ;;  %v5442_v33 = vpop.permute.xlu1 %917  ;;  %v10054_v48 = vld [vmem:[#allocation9_spill] sm:$0xff] }
 0x114   : > { %10045 = vst [vmem:[#allocation119_spill] sm:$0xff] %v5442_v33  ;;  %v10053_v33 = vld [vmem:[#allocation12_spill] sm:$0xff] }
 0x117   : > { %1071 = vrot.lane.b32.xlu2 %v10046_v63, %s4619_s18 }
 0x118   : > { %1067 = vrot.lane.b32.xlu0 %v10047_v24, %s4619_s18 }
 0x119   : > { %1069 = vrot.lane.b32.xlu1 %v10048_v55, %s4619_s18  ;;  %v5450_v50 = vpop.permute.xlu2 %973 }
 0x11a   : > { %10049 = vst [vmem:[#allocation4_spill] sm:$0xff] %v5450_v50  ;;  %v5452_v56 = vpop.permute.xlu0 %921  ;;  %v10058_v50 = vld [vmem:[#allocation20_spill] sm:$0xff] }
 0x11b   : > { %10050 = vst [vmem:[#allocation120_spill] sm:$0xff] %v5452_v56  ;;  %v5454_v34 = vpop.permute.xlu1 %923  ;;  %v10060_v56 = vld [vmem:[#allocation14_spill] sm:$0xff] }
 0x11c   : > { %10051 = vst [vmem:[#allocation121_spill] sm:$0xff] %v5454_v34  ;;  %v10059_v34 = vld [vmem:[#allocation18_spill] sm:$0xff] }
 0x11f   : > { %1077 = vrot.lane.b32.xlu2 %v10052_v36, %s4619_s18 }
 0x120   : > { %1073 = vrot.lane.b32.xlu0 %v10053_v33, %s4619_s18 }
 0x121   : > { %1075 = vrot.lane.b32.xlu1 %v10054_v48, %s4619_s18  ;;  %v5462_v40 = vpop.permute.xlu2 %979 }
 0x122   : > { %10055 = vst [vmem:[#allocation122_spill] sm:$0xff] %v5462_v40  ;;  %v5464_v63 = vpop.permute.xlu0 %927  ;;  %v10064_v40 = vld [vmem:[#allocation23_spill] sm:$0xff] }
 0x123   : > { %10056 = vst [vmem:[#allocation123_spill] sm:$0xff] %v5464_v63  ;;  %v5466_v55 = vpop.permute.xlu1 %929  ;;  %v10066_v63 = vld [vmem:[#allocation19_spill] sm:$0xff] }
 0x124   : > { %10057 = vst [vmem:[#allocation124_spill] sm:$0xff] %v5466_v55  ;;  %v10065_v55 = vld [vmem:[#allocation21_spill] sm:$0xff] }
 0x127   : > { %1083 = vrot.lane.b32.xlu2 %v10058_v50, %s4619_s18 }
 0x128   : > { %1079 = vrot.lane.b32.xlu0 %v10059_v34, %s4619_s18 }
 0x129   : > { %1081 = vrot.lane.b32.xlu1 %v10060_v56, %s4619_s18  ;;  %v5474_v36 = vpop.permute.xlu2 %985 }
 0x12a   : > { %10061 = vst [vmem:[#allocation125_spill] sm:$0xff] %v5474_v36  ;;  %v5476_v33 = vpop.permute.xlu0 %963  ;;  %v10070_v36 = vld [vmem:[#allocation29_spill] sm:$0xff] }
 0x12b   : > { %10062 = vst [vmem:[#allocation126_spill] sm:$0xff] %v5476_v33  ;;  %v5478_v48 = vpop.permute.xlu1 %965  ;;  %v10072_v33 = vld [vmem:[#allocation22_spill] sm:$0xff] }
 0x12c   : > { %10063 = vst [vmem:[#allocation127_spill] sm:$0xff] %v5478_v48  ;;  %v10071_v48 = vld [vmem:[#allocation26_spill] sm:$0xff] }
 0x12f   : > { %1089 = vrot.lane.b32.xlu2 %v10064_v40, %s4619_s18 }
 0x130   : > { %1085 = vrot.lane.b32.xlu0 %v10065_v55, %s4619_s18 }
 0x131   : > { %1087 = vrot.lane.b32.xlu1 %v10066_v63, %s4619_s18  ;;  %v5486_v50 = vpop.permute.xlu2 %991 }
 0x132   : > { %10067 = vst [vmem:[#allocation128_spill] sm:$0xff] %v5486_v50  ;;  %v5488_v34 = vpop.permute.xlu0 %969  ;;  %v10076_v50 = vld [vmem:[#allocation34_spill] sm:$0xff] }
 0x133   : > { %10068 = vst [vmem:[#allocation129_spill] sm:$0xff] %v5488_v34  ;;  %v5490_v56 = vpop.permute.xlu1 %971  ;;  %v10078_v34 = vld [vmem:[#allocation28_spill] sm:$0xff] }
 0x134   : > { %10069 = vst [vmem:[#allocation130_spill] sm:$0xff] %v5490_v56  ;;  %v10077_v56 = vld [vmem:[#allocation31_spill] sm:$0xff] }
 0x137   : > { %1095 = vrot.lane.b32.xlu2 %v10070_v36, %s4619_s18 }
 0x138   : > { %1091 = vrot.lane.b32.xlu0 %v10071_v48, %s4619_s18 }
 0x139   : > { %1093 = vrot.lane.b32.xlu1 %v10072_v33, %s4619_s18  ;;  %v5498_v40 = vpop.permute.xlu2 %997 }
 0x13a   : > { %10073 = vst [vmem:[#allocation131_spill] sm:$0xff] %v5498_v40  ;;  %v5500_v55 = vpop.permute.xlu0 %975  ;;  %v10083_v40 = vld [vmem:[#allocation33_spill] sm:$0xff] }
 0x13b   : > { %10074 = vst [vmem:[#allocation132_spill] sm:$0xff] %v5500_v55  ;;  %v5502_v63 = vpop.permute.xlu1 %977 }
 0x13c   : > { %10075 = vst [vmem:[#allocation133_spill] sm:$0xff] %v5502_v63  ;;  %v10082_v63 = vld [vmem:[#allocation38_spill] sm:$0xff] }
 0x13f   : > { %1101 = vrot.lane.b32.xlu2 %v10076_v50, %s4619_s18 }
 0x140   : > { %1097 = vrot.lane.b32.xlu0 %v10077_v56, %s4619_s18 }
 0x141   : > { %1099 = vrot.lane.b32.xlu1 %v10078_v34, %s4619_s18  ;;  %v5510_v36 = vpop.permute.xlu2 %1003 }
 0x142   : > { %10079 = vst [vmem:[#allocation31_spill] sm:$0xff] %v5510_v36  ;;  %v5512_v48 = vpop.permute.xlu0 %981  ;;  %v774_v36 = vrot.slane %v5418_v17, 1 }
 0x143   : > { %10080 = vst [vmem:[#allocation134_spill] sm:$0xff] %v5512_v48  ;;  %v5514_v33 = vpop.permute.xlu1 %983 }
 0x144   : > { %10081 = vst [vmem:[#allocation135_spill] sm:$0xff] %v5514_v33  ;;  %v773_v33 = vrot.slane %v5413_v25, 1 }
 0x147   : > { %1107 = vrot.lane.b32.xlu2 %v5008_v49, %s4619_s18  ;;  %v10090_v49 = vrot.slane %v5399_v39, 7 }
 0x148   : > { %1103 = vrot.lane.b32.xlu0 %v10082_v63, %s4619_s18 }
 0x149   : > { %1105 = vrot.lane.b32.xlu1 %v10083_v40, %s4619_s18  ;;  %v5522_v55 = vpop.permute.xlu2 %1009 }
 0x14a   : > { %10084 = vst [vmem:[#allocation38_spill] sm:$0xff] %v5522_v55  ;;  %v5524_v50 = vpop.permute.xlu0 %987 }
 0x14b   : > { %10085 = vst [vmem:[#allocation136_spill] sm:$0xff] %v5524_v50  ;;  %v5526_v34 = vpop.permute.xlu1 %989  ;;  %v540_v50 = vrot.slane %v5399_v39, 5  ;;  %v10094_v39 = vld [vmem:[#allocation44_spill] sm:$0xff] }
 0x14c   : > { %10086 = vst [vmem:[#allocation137_spill] sm:$0xff] %v5526_v34 }
 0x14d   : > { %v5549_v40 = vsel %vm429_vm0, %v10090_v49, %v540_v50 }
 0x14f   : > { %1113 = vrot.lane.b32.xlu2 %v5039_v5, %s4619_s18  ;;  %v5544_v5 = vsel %vm619_vm1, %v773_v33, %v774_v36 }
 0x150   : > { %1109 = vrot.lane.b32.xlu0 %v5017_v8, %s4619_s18 }
 0x151   : > { %1111 = vrot.lane.b32.xlu1 %v5005_v6, %s4619_s18  ;;  %v5536_v48 = vpop.permute.xlu2 %1015 }
 0x152   : > { %10087 = vst [vmem:[#allocation138_spill] sm:$0xff] %v5536_v48  ;;  %v5538_v55 = vpop.permute.xlu0 %993 }
 0x153   : > { %10088 = vst [vmem:[#allocation139_spill] sm:$0xff] %v5538_v55  ;;  %v5541_v34 = vpop.permute.xlu1 %995  ;;  %v776_v55 = vrot.slane %v5549_v40, 1 }
 0x154   : > { %10089 = vst [vmem:[#allocation140_spill] sm:$0xff] %v5541_v34 }
 0x155   : > { %v5565_v49 = vsel %vm619_vm1, %v774_v36, %v776_v55  ;;  %v10098_v55 = vld [vmem:[#allocation45_spill] sm:$0xff] }
 0x157   : > { %1119 = vrot.lane.b32.xlu2 %v5544_v5, %s4619_s18 }
 0x158   : > { %1115 = vrot.lane.b32.xlu0 %v5042_v54, %s4619_s18 }
 0x159   : > { %1117 = vrot.lane.b32.xlu1 %v5036_v47, %s4619_s18  ;;  %v5557_v48 = vpop.permute.xlu2 %1021 }
 0x15a   : > { %10091 = vst [vmem:[#allocation141_spill] sm:$0xff] %v5557_v48  ;;  %v5560_v33 = vpop.permute.xlu0 %999 }
 0x15b   : > { %10092 = vst [vmem:[#allocation142_spill] sm:$0xff] %v5560_v33  ;;  %v5562_v34 = vpop.permute.xlu1 %1001 }
 0x15c   : > { %10093 = vst [vmem:[#allocation143_spill] sm:$0xff] %v5562_v34 }
 0x15f   : > { %1157 = vrot.lane.b32.xlu2 %v5078_v4, %s4620_s19  ;;  %v10099_v4 = vld [vmem:[#allocation46_spill] sm:$0xff] }
 0x160   : > { %1121 = vrot.lane.b32.xlu0 %v5565_v49, %s4619_s18 }
 0x161   : > { %1155 = vrot.lane.b32.xlu1 %v10094_v39, %s4620_s19  ;;  %v5573_v50 = vpop.permute.xlu2 %1059 }
 0x162   : > { %10095 = vst [vmem:[#allocation44_spill] sm:$0xff] %v5573_v50  ;;  %v5575_v48 = vpop.permute.xlu0 %1005 }
 0x163   : > { %10096 = vst [vmem:[#allocation144_spill] sm:$0xff] %v5575_v48  ;;  %v5577_v33 = vpop.permute.xlu1 %1007 }
 0x164   : > { %10097 = vst [vmem:[#allocation145_spill] sm:$0xff] %v5577_v33  ;;  %v10103_v33 = vld [vmem:[#allocation47_spill] sm:$0xff] }
 0x167   : > { %1163 = vrot.lane.b32.xlu2 %v5081_v37, %s4620_s19 }
 0x168   : > { %1159 = vrot.lane.b32.xlu0 %v10098_v55, %s4620_s19 }
 0x169   : > { %1161 = vrot.lane.b32.xlu1 %v10099_v4, %s4620_s19  ;;  %v5585_v36 = vpop.permute.xlu2 %1065 }
 0x16a   : > { %10100 = vst [vmem:[#allocation45_spill] sm:$0xff] %v5585_v36  ;;  %v5587_v34 = vpop.permute.xlu0 %1011 }
 0x16b   : > { %10101 = vst [vmem:[#allocation146_spill] sm:$0xff] %v5587_v34  ;;  %v5589_v39 = vpop.permute.xlu1 %1013  ;;  %v10108_v34 = vld [vmem:[#allocation53_spill] sm:$0xff] }
 0x16c   : > { %10102 = vst [vmem:[#allocation147_spill] sm:$0xff] %v5589_v39  ;;  %v10107_v39 = vld [vmem:[#allocation49_spill] sm:$0xff] }
 0x16f   : > { %1169 = vrot.lane.b32.xlu2 %v5103_v62, %s4620_s19 }
 0x170   : > { %1165 = vrot.lane.b32.xlu0 %v10103_v33, %s4620_s19 }
 0x171   : > { %1167 = vrot.lane.b32.xlu1 %v5100_v46, %s4620_s19  ;;  %v5597_v48 = vpop.permute.xlu2 %1071 }
 0x172   : > { %10104 = vst [vmem:[#allocation148_spill] sm:$0xff] %v5597_v48  ;;  %v5599_v50 = vpop.permute.xlu0 %1017 }
 0x173   : > { %10105 = vst [vmem:[#allocation149_spill] sm:$0xff] %v5599_v50  ;;  %v5601_v4 = vpop.permute.xlu1 %1019  ;;  %v10113_v50 = vld [vmem:[#allocation56_spill] sm:$0xff] }
 0x174   : > { %10106 = vst [vmem:[#allocation150_spill] sm:$0xff] %v5601_v4  ;;  %v10112_v4 = vld [vmem:[#allocation52_spill] sm:$0xff] }
 0x177   : > { %1175 = vrot.lane.b32.xlu2 %v5124_v35, %s4620_s19 }
 0x178   : > { %1171 = vrot.lane.b32.xlu0 %v10107_v39, %s4620_s19 }
 0x179   : > { %1173 = vrot.lane.b32.xlu1 %v10108_v34, %s4620_s19  ;;  %v5609_v36 = vpop.permute.xlu2 %1077 }
 0x17a   : > { %10109 = vst [vmem:[#allocation151_spill] sm:$0xff] %v5609_v36  ;;  %v5611_v33 = vpop.permute.xlu0 %1023 }
 0x17b   : > { %10110 = vst [vmem:[#allocation152_spill] sm:$0xff] %v5611_v33  ;;  %v5613_v46 = vpop.permute.xlu1 %1025  ;;  %v10118_v33 = vld [vmem:[#allocation61_spill] sm:$0xff] }
 0x17c   : > { %10111 = vst [vmem:[#allocation153_spill] sm:$0xff] %v5613_v46  ;;  %v10117_v46 = vld [vmem:[#allocation55_spill] sm:$0xff] }
 0x17f   : > { %1181 = vrot.lane.b32.xlu2 %v5146_v60, %s4620_s19 }
 0x180   : > { %1177 = vrot.lane.b32.xlu0 %v10112_v4, %s4620_s19 }
 0x181   : > { %1179 = vrot.lane.b32.xlu1 %v10113_v50, %s4620_s19  ;;  %v5621_v48 = vpop.permute.xlu2 %1083 }
 0x182   : > { %10114 = vst [vmem:[#allocation154_spill] sm:$0xff] %v5621_v48  ;;  %v5623_v39 = vpop.permute.xlu0 %1061  ;;  %v10122_v48 = vld [vmem:[#allocation60_spill] sm:$0xff] }
 0x183   : > { %10115 = vst [vmem:[#allocation155_spill] sm:$0xff] %v5623_v39  ;;  %v5625_v34 = vpop.permute.xlu1 %1063 }
 0x184   : > { %10116 = vst [vmem:[#allocation156_spill] sm:$0xff] %v5625_v34 }
 0x187   : > { %1187 = vrot.lane.b32.xlu2 %v5171_v16, %s4620_s19 }
 0x188   : > { %1183 = vrot.lane.b32.xlu0 %v10117_v46, %s4620_s19 }
 0x189   : > { %1185 = vrot.lane.b32.xlu1 %v10118_v33, %s4620_s19  ;;  %v5633_v36 = vpop.permute.xlu2 %1089 }
 0x18a   : > { %10119 = vst [vmem:[#allocation55_spill] sm:$0xff] %v5633_v36  ;;  %v5635_v4 = vpop.permute.xlu0 %1067  ;;  %v10126_v36 = vld [vmem:[#allocation65_spill] sm:$0xff] }
 0x18b   : > { %10120 = vst [vmem:[#allocation157_spill] sm:$0xff] %v5635_v4  ;;  %v5637_v50 = vpop.permute.xlu1 %1069 }
 0x18c   : > { %10121 = vst [vmem:[#allocation158_spill] sm:$0xff] %v5637_v50  ;;  %v10127_v50 = vld [vmem:[#allocation71_spill] sm:$0xff] }
 0x18f   : > { %1193 = vrot.lane.b32.xlu2 %v5197_v59, %s4620_s19 }
 0x190   : > { %1189 = vrot.lane.b32.xlu0 %v10122_v48, %s4620_s19 }
 0x191   : > { %1191 = vrot.lane.b32.xlu1 %v5194_v61, %s4620_s19  ;;  %v5645_v34 = vpop.permute.xlu2 %1095 }
 0x192   : > { %10123 = vst [vmem:[#allocation159_spill] sm:$0xff] %v5645_v34  ;;  %v5647_v39 = vpop.permute.xlu0 %1073 }
 0x193   : > { %10124 = vst [vmem:[#allocation160_spill] sm:$0xff] %v5647_v39  ;;  %v5649_v33 = vpop.permute.xlu1 %1075 }
 0x194   : > { %10125 = vst [vmem:[#allocation161_spill] sm:$0xff] %v5649_v33  ;;  %v10131_v33 = vld [vmem:[#allocation70_spill] sm:$0xff] }
 0x197   : > { %1199 = vrot.lane.b32.xlu2 %v5222_v18, %s4620_s19 }
 0x198   : > { %1195 = vrot.lane.b32.xlu0 %v10126_v36, %s4620_s19 }
 0x199   : > { %1197 = vrot.lane.b32.xlu1 %v10127_v50, %s4620_s19  ;;  %v5657_v4 = vpop.permute.xlu2 %1101 }
 0x19a   : > { %10128 = vst [vmem:[#allocation65_spill] sm:$0xff] %v5657_v4  ;;  %v5659_v48 = vpop.permute.xlu0 %1079  ;;  %v10135_v4 = vld [vmem:[#allocation75_spill] sm:$0xff] }
 0x19b   : > { %10129 = vst [vmem:[#allocation162_spill] sm:$0xff] %v5659_v48  ;;  %v5661_v61 = vpop.permute.xlu1 %1081  ;;  %v781_v48 = vrot.slane %v5549_v40, 2 }
 0x19c   : > { %10130 = vst [vmem:[#allocation163_spill] sm:$0xff] %v5661_v61  ;;  %v779_v61 = vrot.slane %v5418_v17, 2 }
 0x19f   : > { %1205 = vrot.lane.b32.xlu2 %v5248_v41, %s4620_s19 }
 0x1a0   : > { %1201 = vrot.lane.b32.xlu0 %v10131_v33, %s4620_s19 }
 0x1a1   : > { %1203 = vrot.lane.b32.xlu1 %v5245_v9, %s4620_s19  ;;  %v5669_v34 = vpop.permute.xlu2 %1107 }
 0x1a2   : > { %10132 = vst [vmem:[#allocation164_spill] sm:$0xff] %v5669_v34  ;;  %v5671_v39 = vpop.permute.xlu0 %1085  ;;  %v778_v34 = vrot.slane %v5413_v25, 2 }
 0x1a3   : > { %10133 = vst [vmem:[#allocation165_spill] sm:$0xff] %v5671_v39  ;;  %v5673_v50 = vpop.permute.xlu1 %1087 }
 0x1a4   : > { %10134 = vst [vmem:[#allocation166_spill] sm:$0xff] %v5673_v50  ;;  %v5694_v33 = vsel %vm695_vm2, %v778_v34, %v779_v61 }
 0x1a7   : > { %1211 = vrot.lane.b32.xlu2 %v5273_v38, %s4620_s19  ;;  %v5691_v38 = vsel %vm695_vm2, %v779_v61, %v781_v48 }
 0x1a8   : > { %1207 = vrot.lane.b32.xlu0 %v10135_v4, %s4620_s19 }
 0x1a9   : > { %1209 = vrot.lane.b32.xlu1 %v5270_v30, %s4620_s19  ;;  %v5683_v9 = vpop.permute.xlu2 %1113 }
 0x1aa   : > { %10136 = vst [vmem:[#allocation75_spill] sm:$0xff] %v5683_v9  ;;  %v5686_v39 = vpop.permute.xlu0 %1091 }
 0x1ab   : > { %v5688_v50 = vpop.permute.xlu1 %1093 }
 0x1ac   : > { %10137 = vst [vmem:[#allocation167_spill] sm:$0xff] %v5688_v50 }
 0x1af   : > { %1217 = vrot.lane.b32.xlu2 %v5691_v38, %s4620_s19 }
 0x1b0   : > { %1213 = vrot.lane.b32.xlu0 %v5267_v10, %s4620_s19 }
 0x1b1   : > { %1215 = vrot.lane.b32.xlu1 %v5694_v33, %s4620_s19  ;;  %v5702_v40 = vpop.permute.xlu2 %1119 }
 0x1b2   : > { %10138 = vst [vmem:[#allocation168_spill] sm:$0xff] %v5702_v40  ;;  %v5704_v9 = vpop.permute.xlu0 %1097 }
 0x1b3   : > { %10139 = vst [vmem:[#allocation169_spill] sm:$0xff] %v5704_v9  ;;  %v5706_v50 = vpop.permute.xlu1 %1099 }
 0x1b4   : > { %10140 = vst [vmem:[#allocation170_spill] sm:$0xff] %v5706_v50 }
 0x1b7   : > { %1255 = vrot.lane.b32.xlu2 %v4700_v15, %s4621_s20 }
 0x1b8   : > { %1251 = vrot.lane.b32.xlu0 %v4708_v21, %s4621_s20 }
 0x1b9   : > { %1253 = vrot.lane.b32.xlu1 %v4705_v20, %s4621_s20  ;;  %v5714_v61 = vpop.permute.xlu2 %1157 }
 0x1ba   : > { %v5716_v34 = vpop.permute.xlu0 %1103 }
 0x1bb   : > { %10141 = vst [vmem:[#allocation171_spill] sm:$0xff] %v5716_v34  ;;  %v5718_v48 = vpop.permute.xlu1 %1105 }
 0x1bc   : > { %10142 = vst [vmem:[#allocation172_spill] sm:$0xff] %v5718_v48 }
 0x1bf   : > { %1261 = vrot.lane.b32.xlu2 %v4769_v57, %s4621_s20 }
 0x1c0   : > { %1257 = vrot.lane.b32.xlu0 %v4697_v14, %s4621_s20 }
 0x1c1   : > { %1259 = vrot.lane.b32.xlu1 %v4772_v58, %s4621_s20  ;;  %v5726_v40 = vpop.permute.xlu2 %1163 }
 0x1c2   : > { %v5728_v50 = vpop.permute.xlu0 %1109 }
 0x1c3   : > { %10143 = vst [vmem:[#allocation173_spill] sm:$0xff] %v5728_v50  ;;  %v5730_v9 = vpop.permute.xlu1 %1111 }
 0x1c4   : > { %10144 = vst [vmem:[#allocation174_spill] sm:$0xff] %v5730_v9 }
 0x1c7   : > { %1267 = vrot.lane.b32.xlu2 %v4814_v19, %s4621_s20 }
 0x1c8   : > { %1263 = vrot.lane.b32.xlu0 %v4761_v53, %s4621_s20 }
 0x1c9   : > { %1265 = vrot.lane.b32.xlu1 %v4758_v52, %s4621_s20  ;;  %v5738_v48 = vpop.permute.xlu2 %1169 }
 0x1ca   : > { %v5740_v34 = vpop.permute.xlu0 %1115 }
 0x1cb   : > { %10145 = vst [vmem:[#allocation175_spill] sm:$0xff] %v5740_v34  ;;  %v5742_v57 = vpop.permute.xlu1 %1117 }
 0x1cc   : > { %10146 = vst [vmem:[#allocation176_spill] sm:$0xff] %v5742_v57 }
 0x1cf   : > { %1273 = vrot.lane.b32.xlu2 %v4836_v44, %s4621_s20 }
 0x1d0   : > { %1269 = vrot.lane.b32.xlu0 %v4792_v7, %s4621_s20 }
 0x1d1   : > { %1271 = vrot.lane.b32.xlu1 %v4839_v45, %s4621_s20  ;;  %v5750_v9 = vpop.permute.xlu2 %1175 }
 0x1d2   : > { %10147 = vst [vmem:[#allocation177_spill] sm:$0xff] %v5750_v9  ;;  %v5752_v50 = vpop.permute.xlu0 %1121 }
 0x1d3   : > { %10148 = vst [vmem:[#allocation178_spill] sm:$0xff] %v5752_v50  ;;  %v5754_v19 = vpop.permute.xlu1 %1155 }
 0x1d7   : > { %1279 = vrot.lane.b32.xlu2 %v4884_v26, %s4621_s20 }
 0x1d8   : > { %1275 = vrot.lane.b32.xlu0 %v4833_v43, %s4621_s20 }
 0x1d9   : > { %1277 = vrot.lane.b32.xlu1 %v4830_v42, %s4621_s20  ;;  %v5762_v57 = vpop.permute.xlu2 %1181 }
 0x1da   : > { %10149 = vst [vmem:[#allocation179_spill] sm:$0xff] %v5762_v57  ;;  %v5764_v34 = vpop.permute.xlu0 %1159 }
 0x1db   : > { %v5766_v44 = vpop.permute.xlu1 %1161 }
 0x1df   : > { %1285 = vrot.lane.b32.xlu2 %v4915_v23, %s4621_s20 }
 0x1e0   : > { %1281 = vrot.lane.b32.xlu0 %v4867_v11, %s4621_s20 }
 0x1e1   : > { %1283 = vrot.lane.b32.xlu1 %v4908_v2, %s4621_s20  ;;  %v5774_v50 = vpop.permute.xlu2 %1187 }
 0x1e2   : > { %v5776_v45 = vpop.permute.xlu0 %1165 }
 0x1e3   : > { %v5778_v7 = vpop.permute.xlu1 %1167 }
 0x1e7   : > { %1291 = vrot.lane.b32.xlu2 %v4956_v29, %s4621_s20 }
 0x1e8   : > { %1287 = vrot.lane.b32.xlu0 %v4905_v1, %s4621_s20 }
 0x1e9   : > { %1289 = vrot.lane.b32.xlu1 %v4902_v0, %s4621_s20  ;;  %v5786_v57 = vpop.permute.xlu2 %1193 }
 0x1ea   : > { %v5788_v52 = vpop.permute.xlu0 %1171 }
 0x1eb   : > { %v5790_v9 = vpop.permute.xlu1 %1173 }
 0x1ef   : > { %1297 = vrot.lane.b32.xlu2 %v4986_v31, %s4621_s20 }
 0x1f0   : > { %1293 = vrot.lane.b32.xlu0 %v4939_v13, %s4621_s20 }
 0x1f1   : > { %1295 = vrot.lane.b32.xlu1 %v4980_v28, %s4621_s20  ;;  %v5798_v29 = vpop.permute.xlu2 %1199 }
 0x1f2   : > { %10150 = vst [vmem:[#allocation180_spill] sm:$0xff] %v5798_v29  ;;  %v5800_v1 = vpop.permute.xlu0 %1177  ;;  %v10169_v29 = vld [vmem:[#allocation21_spill] sm:$0xff] }
 0x1f3   : > { %10151 = vst [vmem:[#allocation181_spill] sm:$0xff] %v5800_v1  ;;  %v5802_v0 = vpop.permute.xlu1 %1179  ;;  %v10174_v1 = vld [vmem:[#allocation26_spill] sm:$0xff] }
 0x1f4   : > { %10152 = vst [vmem:[#allocation182_spill] sm:$0xff] %v5802_v0 }
 0x1f7   : > { %1303 = vrot.lane.b32.xlu2 %v5025_v3, %s4621_s20 }
 0x1f8   : > { %1299 = vrot.lane.b32.xlu0 %v4977_v22, %s4621_s20 }
 0x1f9   : > { %1301 = vrot.lane.b32.xlu1 %v4974_v12, %s4621_s20  ;;  %v5810_v31 = vpop.permute.xlu2 %1205 }
 0x1fa   : > { %10153 = vst [vmem:[#allocation183_spill] sm:$0xff] %v5810_v31  ;;  %v5812_v13 = vpop.permute.xlu0 %1183 }
 0x1fb   : > { %10154 = vst [vmem:[#allocation184_spill] sm:$0xff] %v5812_v13  ;;  %v5814_v28 = vpop.permute.xlu1 %1185  ;;  %v10165_v13 = vld [vmem:[#allocation9_spill] sm:$0xff] }
 0x1fc   : > { %10155 = vst [vmem:[#allocation185_spill] sm:$0xff] %v5814_v28  ;;  %v10160_v28 = vld [vmem:[#allocation5_spill] sm:$0xff] }
 0x1ff   : > { %1309 = vrot.lane.b32.xlu2 %v5418_v17, %s4621_s20 }
 0x200   : > { %1305 = vrot.lane.b32.xlu0 %v5011_v27, %s4621_s20 }
 0x201   : > { %1307 = vrot.lane.b32.xlu1 %v5413_v25, %s4621_s20  ;;  %v5822_v3 = vpop.permute.xlu2 %1211 }
 0x202   : > { %10156 = vst [vmem:[#allocation186_spill] sm:$0xff] %v5822_v3  ;;  %v5824_v22 = vpop.permute.xlu0 %1189  ;;  %v10159_v3 = vld [vmem:[#allocation12_spill] sm:$0xff] }
 0x203   : > { %v5826_v12 = vpop.permute.xlu1 %1191 }
 0x207   : > { %1345 = vrot.lane.b32.xlu2 %v10047_v24, %s4622_s21  ;;  %v10161_v24 = vld [vmem:[#allocation11_spill] sm:$0xff] }
 0x208   : > { %1341 = vrot.lane.b32.xlu0 %v4731_v32, %s4622_s21 }
 0x209   : > { %1343 = vrot.lane.b32.xlu1 %v4755_v51, %s4622_s21  ;;  %v5834_v17 = vpop.permute.xlu2 %1217 }
 0x20a   : > { %10157 = vst [vmem:[#allocation187_spill] sm:$0xff] %v5834_v17  ;;  %v5836_v27 = vpop.permute.xlu0 %1195  ;;  %v10164_v17 = vld [vmem:[#allocation18_spill] sm:$0xff] }
 0x20b   : > { %v5838_v25 = vpop.permute.xlu1 %1197 }
 0x20c   : > { %10158 = vst [vmem:[#allocation188_spill] sm:$0xff] %v5838_v25 }
 0x20f   : > { %1351 = vrot.lane.b32.xlu2 %v10159_v3, %s4622_s21  ;;  %v10166_v3 = vld [vmem:[#allocation15_spill] sm:$0xff] }
 0x210   : > { %1347 = vrot.lane.b32.xlu0 %v10160_v28, %s4622_s21 }
 0x211   : > { %1349 = vrot.lane.b32.xlu1 %v10161_v24, %s4622_s21  ;;  %v5846_v31 = vpop.permute.xlu2 %1255 }
 0x212   : > { %v5848_v32 = vpop.permute.xlu0 %1201 }
 0x213   : > { %10162 = vst [vmem:[#allocation12_spill] sm:$0xff] %v5848_v32  ;;  %v5850_v51 = vpop.permute.xlu1 %1203 }
 0x214   : > { %10163 = vst [vmem:[#allocation5_spill] sm:$0xff] %v5850_v51  ;;  %v10170_v51 = vld [vmem:[#allocation14_spill] sm:$0xff] }
 0x217   : > { %1357 = vrot.lane.b32.xlu2 %v10164_v17, %s4622_s21  ;;  %v10171_v17 = vld [vmem:[#allocation20_spill] sm:$0xff] }
 0x218   : > { %1353 = vrot.lane.b32.xlu0 %v10165_v13, %s4622_s21 }
 0x219   : > { %1355 = vrot.lane.b32.xlu1 %v10166_v3, %s4622_s21  ;;  %v5858_v0 = vpop.permute.xlu2 %1261 }
 0x21a   : > { %v5860_v28 = vpop.permute.xlu0 %1207 }
 0x21b   : > { %10167 = vst [vmem:[#allocation11_spill] sm:$0xff] %v5860_v28  ;;  %v5862_v24 = vpop.permute.xlu1 %1209 }
 0x21c   : > { %10168 = vst [vmem:[#allocation18_spill] sm:$0xff] %v5862_v24  ;;  %v10175_v24 = vld [vmem:[#allocation19_spill] sm:$0xff] }
 0x21f   : > { %1363 = vrot.lane.b32.xlu2 %v10169_v29, %s4622_s21  ;;  %v10176_v29 = vld [vmem:[#allocation23_spill] sm:$0xff] }
 0x220   : > { %1359 = vrot.lane.b32.xlu0 %v10170_v51, %s4622_s21 }
 0x221   : > { %1361 = vrot.lane.b32.xlu1 %v10171_v17, %s4622_s21  ;;  %v5870_v32 = vpop.permute.xlu2 %1267 }
 0x222   : > { %v5872_v13 = vpop.permute.xlu0 %1213 }
 0x223   : > { %10172 = vst [vmem:[#allocation9_spill] sm:$0xff] %v5872_v13  ;;  %v5874_v3 = vpop.permute.xlu1 %1215 }
 0x224   : > { %10173 = vst [vmem:[#allocation15_spill] sm:$0xff] %v5874_v3  ;;  %v10178_v3 = vld [vmem:[#allocation22_spill] sm:$0xff] }
 0x227   : > { %1369 = vrot.lane.b32.xlu2 %v10174_v1, %s4622_s21  ;;  %v10179_v1 = vld [vmem:[#allocation29_spill] sm:$0xff] }
 0x228   : > { %1365 = vrot.lane.b32.xlu0 %v10175_v24, %s4622_s21 }
 0x229   : > { %1367 = vrot.lane.b32.xlu1 %v10176_v29, %s4622_s21  ;;  %v5882_v28 = vpop.permute.xlu2 %1273 }
 0x22a   : > { %10177 = vst [vmem:[#allocation21_spill] sm:$0xff] %v5882_v28  ;;  %v5884_v51 = vpop.permute.xlu0 %1251  ;;  %v10181_v28 = vld [vmem:[#allocation28_spill] sm:$0xff] }
 0x22b   : > { %v5886_v17 = vpop.permute.xlu1 %1253 }
 0x22f   : > { %1375 = vrot.lane.b32.xlu2 %v10077_v56, %s4622_s21  ;;  %v10182_v56 = vld [vmem:[#allocation34_spill] sm:$0xff] }
 0x230   : > { %1371 = vrot.lane.b32.xlu0 %v10178_v3, %s4622_s21 }
 0x231   : > { %1373 = vrot.lane.b32.xlu1 %v10179_v1, %s4622_s21  ;;  %v5894_v13 = vpop.permute.xlu2 %1279 }
 0x232   : > { %10180 = vst [vmem:[#allocation14_spill] sm:$0xff] %v5894_v13  ;;  %v5896_v24 = vpop.permute.xlu0 %1257  ;;  %v10183_v13 = vld [vmem:[#allocation33_spill] sm:$0xff] }
 0x233   : > { %v5898_v29 = vpop.permute.xlu1 %1259 }
 0x237   : > { %1381 = vrot.lane.b32.xlu2 %v10082_v63, %s4622_s21  ;;  %v10184_v63 = vld [vmem:[#allocation40_spill] sm:$0xff] }
 0x238   : > { %1377 = vrot.lane.b32.xlu0 %v10181_v28, %s4622_s21 }
 0x239   : > { %1379 = vrot.lane.b32.xlu1 %v10182_v56, %s4622_s21  ;;  %v5906_v25 = vpop.permute.xlu2 %1285 }
 0x23a   : > { %v5908_v3 = vpop.permute.xlu0 %1263 }
 0x23b   : > { %v5910_v1 = vpop.permute.xlu1 %1265 }
 0x23f   : > { %1387 = vrot.lane.b32.xlu2 %v5017_v8, %s4622_s21  ;;  %v10188_v8 = vld [vmem:[#allocation43_spill] sm:$0xff] }
 0x240   : > { %1383 = vrot.lane.b32.xlu0 %v10183_v13, %s4622_s21 }
 0x241   : > { %1385 = vrot.lane.b32.xlu1 %v10184_v63, %s4622_s21  ;;  %v5918_v23 = vpop.permute.xlu2 %1291 }
 0x242   : > { %10185 = vst [vmem:[#allocation20_spill] sm:$0xff] %v5918_v23  ;;  %v5920_v28 = vpop.permute.xlu0 %1269  ;;  %v10239_v23 = vld [vmem:[#allocation155_spill] sm:$0xff] }
 0x243   : > { %10186 = vst [vmem:[#allocation26_spill] sm:$0xff] %v5920_v28  ;;  %v5922_v56 = vpop.permute.xlu1 %1271  ;;  %v10241_v28 = vld [vmem:[#allocation3_spill] sm:$0xff] }
 0x244   : > { %10187 = vst [vmem:[#allocation19_spill] sm:$0xff] %v5922_v56 }
 0x247   : > { %1393 = vrot.lane.b32.xlu2 %v5042_v54, %s4622_s21 }
 0x248   : > { %1389 = vrot.lane.b32.xlu0 %v5005_v6, %s4622_s21 }
 0x249   : > { %1391 = vrot.lane.b32.xlu1 %v10188_v8, %s4622_s21  ;;  %v5930_v53 = vpop.permute.xlu2 %1297 }
 0x24a   : > { %10189 = vst [vmem:[#allocation23_spill] sm:$0xff] %v5930_v53  ;;  %v5932_v13 = vpop.permute.xlu0 %1275 }
 0x24b   : > { %10190 = vst [vmem:[#allocation22_spill] sm:$0xff] %v5932_v13  ;;  %v5934_v63 = vpop.permute.xlu1 %1277  ;;  %v10204_v13 = vld [vmem:[#allocation52_spill] sm:$0xff] }
 0x24c   : > { %10191 = vst [vmem:[#allocation29_spill] sm:$0xff] %v5934_v63 }
 0x24f   : > { %1399 = vrot.lane.b32.xlu2 %v5565_v49, %s4622_s21  ;;  %v10194_v49 = vld [vmem:[#allocation46_spill] sm:$0xff] }
 0x250   : > { %1395 = vrot.lane.b32.xlu0 %v5036_v47, %s4622_s21 }
 0x251   : > { %1397 = vrot.lane.b32.xlu1 %v5544_v5, %s4622_s21  ;;  %v5942_v54 = vpop.permute.xlu2 %1303 }
 0x252   : > { %10192 = vst [vmem:[#allocation28_spill] sm:$0xff] %v5942_v54  ;;  %v5944_v6 = vpop.permute.xlu0 %1281  ;;  %v10196_v54 = vld [vmem:[#allocation47_spill] sm:$0xff] }
 0x253   : > { %10193 = vst [vmem:[#allocation34_spill] sm:$0xff] %v5944_v6  ;;  %v5946_v8 = vpop.permute.xlu1 %1283 }
 0x257   : > { %1435 = vrot.lane.b32.xlu2 %v5081_v37, %s4623_s22  ;;  %v10197_v37 = vld [vmem:[#allocation50_spill] sm:$0xff] }
 0x258   : > { %1431 = vrot.lane.b32.xlu0 %v10098_v55, %s4623_s22 }
 0x259   : > { %1433 = vrot.lane.b32.xlu1 %v10194_v49, %s4623_s22  ;;  %v5954_v47 = vpop.permute.xlu2 %1309 }
 0x25a   : > { %10195 = vst [vmem:[#allocation33_spill] sm:$0xff] %v5954_v47  ;;  %v5956_v63 = vpop.permute.xlu0 %1287  ;;  %v10200_v47 = vld [vmem:[#allocation49_spill] sm:$0xff] }
 0x25b   : > { %v5958_v5 = vpop.permute.xlu1 %1289 }
 0x25f   : > { %1441 = vrot.lane.b32.xlu2 %v5103_v62, %s4623_s22  ;;  %v10201_v62 = vld [vmem:[#allocation53_spill] sm:$0xff] }
 0x260   : > { %1437 = vrot.lane.b32.xlu0 %v10196_v54, %s4623_s22 }
 0x261   : > { %1439 = vrot.lane.b32.xlu1 %v10197_v37, %s4623_s22  ;;  %v5968_v55 = vpop.permute.xlu2 %1345 }
 0x262   : > { %v5966_v6 = vpop.permute.xlu0 %1293 }
 0x263   : > { %10198 = vst [vmem:[#allocation40_spill] sm:$0xff] %v5966_v6  ;;  %v5970_v49 = vpop.permute.xlu1 %1295  ;;  %v10218_v6 = vld [vmem:[#allocation80_spill] sm:$0xff] }
 0x264   : > { %10199 = vst [vmem:[#allocation43_spill] sm:$0xff] %v5970_v49 }
 0x267   : > { %1447 = vrot.lane.b32.xlu2 %v5124_v35, %s4623_s22  ;;  %v10205_v35 = vld [vmem:[#allocation56_spill] sm:$0xff] }
 0x268   : > { %1443 = vrot.lane.b32.xlu0 %v10200_v47, %s4623_s22 }
 0x269   : > { %1445 = vrot.lane.b32.xlu1 %v10201_v62, %s4623_s22  ;;  %v5982_v37 = vpop.permute.xlu2 %1351 }
 0x26a   : > { %v5978_v53 = vpop.permute.xlu0 %1299 }
 0x26b   : > { %10202 = vst [vmem:[#allocation46_spill] sm:$0xff] %v5978_v53  ;;  %v5980_v54 = vpop.permute.xlu1 %1301 }
 0x26c   : > { %10203 = vst [vmem:[#allocation47_spill] sm:$0xff] %v5980_v54 }
 0x26f   : > { %1453 = vrot.lane.b32.xlu2 %v5146_v60, %s4623_s22  ;;  %v10208_v60 = vld [vmem:[#allocation61_spill] sm:$0xff] }
 0x270   : > { %1449 = vrot.lane.b32.xlu0 %v10204_v13, %s4623_s22 }
 0x271   : > { %1451 = vrot.lane.b32.xlu1 %v10205_v35, %s4623_s22  ;;  %v5994_v62 = vpop.permute.xlu2 %1357  ;;  %v10209_v35 = vld [vmem:[#allocation60_spill] sm:$0xff] }
 0x272   : > { %v5990_v49 = vpop.permute.xlu0 %1305 }
 0x273   : > { %10206 = vst [vmem:[#allocation50_spill] sm:$0xff] %v5990_v49  ;;  %v5992_v47 = vpop.permute.xlu1 %1307 }
 0x274   : > { %10207 = vst [vmem:[#allocation49_spill] sm:$0xff] %v5992_v47 }
 0x277   : > { %1459 = vrot.lane.b32.xlu2 %v5171_v16, %s4623_s22  ;;  %v10211_v16 = vld [vmem:[#allocation66_spill] sm:$0xff] }
 0x278   : > { %1455 = vrot.lane.b32.xlu0 %v10117_v46, %s4623_s22 }
 0x279   : > { %1457 = vrot.lane.b32.xlu1 %v10208_v60, %s4623_s22  ;;  %v6010_v47 = vpop.permute.xlu2 %1363 }
 0x27a   : > { %v6002_v54 = vpop.permute.xlu0 %1341  ;;  %10210 = vst [vmem:[#allocation53_spill] sm:$0xff] %v6010_v47 }
 0x27b   : > { %v6004_v13 = vpop.permute.xlu1 %1343 }
 0x27f   : > { %1465 = vrot.lane.b32.xlu2 %v5197_v59, %s4623_s22  ;;  %v10212_v59 = vld [vmem:[#allocation71_spill] sm:$0xff] }
 0x280   : > { %1461 = vrot.lane.b32.xlu0 %v10209_v35, %s4623_s22 }
 0x281   : > { %1463 = vrot.lane.b32.xlu1 %v10211_v16, %s4623_s22  ;;  %v6026_v35 = vpop.permute.xlu2 %1369  ;;  %v10214_v16 = vld [vmem:[#allocation70_spill] sm:$0xff] }
 0x282   : > { %v6014_v49 = vpop.permute.xlu0 %1347  ;;  %10213 = vst [vmem:[#allocation52_spill] sm:$0xff] %v6026_v35 }
 0x283   : > { %v6016_v46 = vpop.permute.xlu1 %1349 }
 0x287   : > { %1471 = vrot.lane.b32.xlu2 %v5222_v18, %s4623_s22  ;;  %v10215_v18 = vld [vmem:[#allocation76_spill] sm:$0xff] }
 0x288   : > { %1467 = vrot.lane.b32.xlu0 %v10126_v36, %s4623_s22 }
 0x289   : > { %1469 = vrot.lane.b32.xlu1 %v10212_v59, %s4623_s22  ;;  %v6040_v59 = vpop.permute.xlu2 %1375 }
 0x28a   : > { %v6024_v60 = vpop.permute.xlu0 %1353 }
 0x28b   : > { %v6028_v53 = vpop.permute.xlu1 %1355 }
 0x28f   : > { %1477 = vrot.lane.b32.xlu2 %v5248_v41, %s4623_s22 }
 0x290   : > { %1473 = vrot.lane.b32.xlu0 %v10214_v16, %s4623_s22 }
 0x291   : > { %1475 = vrot.lane.b32.xlu1 %v10215_v18, %s4623_s22  ;;  %v6052_v18 = vpop.permute.xlu2 %1381 }
 0x292   : > { %v6036_v47 = vpop.permute.xlu0 %1359  ;;  %10221 = vst [vmem:[#allocation71_spill] sm:$0xff] %v6052_v18 }
 0x293   : > { %10216 = vst [vmem:[#allocation56_spill] sm:$0xff] %v6036_v47  ;;  %v6038_v36 = vpop.permute.xlu1 %1361  ;;  %v10232_v47 = vld [vmem:[#allocation58_spill] sm:$0xff] }
 0x294   : > { %10217 = vst [vmem:[#allocation61_spill] sm:$0xff] %v6038_v36 }
 0x297   : > { %1483 = vrot.lane.b32.xlu2 %v10218_v6, %s4623_s22 }
 0x298   : > { %1479 = vrot.lane.b32.xlu0 %v10135_v4, %s4623_s22 }
 0x299   : > { %1481 = vrot.lane.b32.xlu1 %v5270_v30, %s4623_s22  ;;  %v1785_v30 = vld [vmem:[%s9673_s1 + $0x20] sm:$0xf] }
 0x29a   : > { %v6048_v41 = vpop.permute.xlu0 %1365  ;;  %4470 = vmatpush.msk.msra.mxu0 %vm1887_vm3, %v1785_v30  ;;  %4540 = vmatpush.msk.msra.mxu2 %vm1887_vm3, %v1785_v30  ;;  %v1781_v30 = vld [vmem:[%s9673_s1] sm:$0xff] }
 0x29b   : > { %10219 = vst [vmem:[#allocation60_spill] sm:$0xff] %v6048_v41  ;;  %v6050_v16 = vpop.permute.xlu1 %1367 }
 0x29c   : > { %10220 = vst [vmem:[#allocation66_spill] sm:$0xff] %v6050_v16 }
 0x29f   : > { %1489 = vrot.lane.b32.xlu2 %v5691_v38, %s4623_s22  ;;  %v1784_v38 = vld [vmem:[%s9673_s1 + $0x18] sm:$0xff] }
 0x2a0   : > { %1485 = vrot.lane.b32.xlu0 %v5267_v10, %s4623_s22  ;;  %v1783_v10 = vld [vmem:[%s9673_s1 + $0x10] sm:$0xff]  ;;  %1903 = vmatpush.msra.mxu0 %v1784_v38 }
 0x2a1   : > { %1487 = vrot.lane.b32.xlu1 %v5694_v33, %s4623_s22  ;;  %4541 = vmatpush.msra.mxu2 %v1784_v38  ;;  %v1782_v33 = vld [vmem:[%s9673_s1 + $0x8] sm:$0xff] }
 0x2a2   : > { %v6060_v6 = vpop.permute.xlu0 %1371  ;;  %1904 = vmatpush.msra.mxu0 %v1783_v10 }
 0x2a3   : > { %10222 = vst [vmem:[#allocation70_spill] sm:$0xff] %v6060_v6  ;;  %v6062_v4 = vpop.permute.xlu1 %1373  ;;  %4542 = vmatpush.msra.mxu2 %v1783_v10  ;;  %v6078_v6 = vpop.permute.xlu2 %1387 }
 0x2a4   : > { %10223 = vst [vmem:[#allocation76_spill] sm:$0xff] %v6078_v6  ;;  %1905 = vmatpush.msra.mxu0 %v1782_v33 }
 0x2a5   : > { %4543 = vmatpush.msra.mxu2 %v1782_v33 }
 0x2a6   : > { %1906 = vmatpush.msra.mxu0 %v1781_v30 }
 0x2a7   : > { %4544 = vmatpush.msra.mxu2 %v1781_v30  ;;  %v1522_v30 = vsel %vm1521_vm4, %v4708_v21, %v10232_v47 }
 0x2aa   : > { %v6080_v35 = vpop.permute.xlu0 %1377 }
 0x2ab   : > { %v6082_v16 = vpop.permute.xlu1 %1379  ;;  %v6089_v41 = vpop.permute.xlu2 %1393 }
 0x2ac   : > { %10225 = vst [vmem:[#allocation189_spill] sm:$0xff] %v6089_v41  ;;  %v10233_v41 = vld [vmem:[#allocation97_spill] sm:$0xff] }
 0x2b2   : > { %v6087_v38 = vpop.permute.xlu0 %1383 }
 0x2b3   : > { %10224 = vst [vmem:[#allocation80_spill] sm:$0xff] %v6087_v38  ;;  %v6091_v36 = vpop.permute.xlu1 %1385  ;;  %v6097_v56 = vpop.permute.xlu2 %1399  ;;  %v10235_v38 = vld [vmem:[#allocation44_spill] sm:$0xff] }
 0x2b4   : > { %10226 = vst [vmem:[#allocation190_spill] sm:$0xff] %v6091_v36  ;;  %v1553_v36 = vsel %vm1552_vm5, %v1522_v30, %v10233_v41 }
 0x2b5   : > { %10229 = vst [vmem:[#allocation193_spill] sm:$0xff] %v6097_v56 }
 0x2ba   : > { %v6093_v10 = vpop.permute.xlu0 %1389 }
 0x2bb   : > { %10227 = vst [vmem:[#allocation191_spill] sm:$0xff] %v6093_v10  ;;  %v6095_v6 = vpop.permute.xlu1 %1391  ;;  %v10234_v10 = vld [vmem:[#allocation126_spill] sm:$0xff] }
 0x2bc   : > { %10228 = vst [vmem:[#allocation192_spill] sm:$0xff] %v6095_v6  ;;  %v1584_v6 = vsel %vm1583_vm7, %v1553_v36, %v10234_v10 }
 0x2bd   : > { %v1617_v56 = vsel %vm1616_vm6, %v1584_v6, %v10235_v38  ;;  %v10236_v6 = vld [vmem:[#allocation63_spill] sm:$0xff] }
 0x2be   : > { %v1523_v38 = vsel %vm1521_vm4, %v4705_v20, %v10236_v6 }
 0x2c2   : > { %v6099_v33 = vpop.permute.xlu0 %1395 }
 0x2c3   : > { %10230 = vst [vmem:[#allocation194_spill] sm:$0xff] %v6099_v33  ;;  %v6101_v18 = vpop.permute.xlu1 %1397  ;;  %v1436_v33 = vpop.permute.xlu2 %1435 }
 0x2c4   : > { %10231 = vst [vmem:[#allocation195_spill] sm:$0xff] %v6101_v18  ;;  %v1650_v18 = vsel %vm1649_vm8, %v1617_v56, %v5754_v19  ;;  %v10237_v19 = vld [vmem:[#allocation98_spill] sm:$0xff] }
 0x2c5   : > { %v1683_v21 = vsel %vm1682_vm9, %v1650_v18, %v5884_v51  ;;  %v1554_v56 = vsel %vm1552_vm5, %v1523_v38, %v10237_v19  ;;  %v10238_v51 = vld [vmem:[#allocation127_spill] sm:$0xff] }
 0x2c6   : > { %v1716_v47 = vsel %vm1715_vm10, %v1683_v21, %v6002_v54  ;;  %v1585_v18 = vsel %vm1583_vm7, %v1554_v56, %v10238_v51  ;;  %v10240_v19 = vld [vmem:[#allocation59_spill] sm:$0xff] }
 0x2c7   : > { %v1618_v54 = vsel %vm1616_vm6, %v1585_v18, %v10239_v23  ;;  %v1524_v51 = vsel %vm1521_vm4, %v10241_v28, %v10240_v19  ;;  %v10242_v23 = vld [vmem:[#allocation87_spill] sm:$0xff]  ;;  %v10243_v18 = vld [vmem:[#allocation117_spill] sm:$0xff] }
 0x2c8   : > { %v1651_v21 = vsel %vm1649_vm8, %v1618_v54, %v5714_v61  ;;  %v1555_v61 = vsel %vm1552_vm5, %v1524_v51, %v10242_v23  ;;  %v10244_v54 = vld [vmem:[#allocation156_spill] sm:$0xff]  ;;  %v10246_v23 = vld [vmem:[#allocation2_spill] sm:$0xff] }
 0x2c9   : > { %v10245_v51 = vld [vmem:[#allocation64_spill] sm:$0xff] }
 0x2ca   : > { %v1432_v41 = vpop.permute.xlu0 %1431 }
 0x2cb   : > { %v1434_v10 = vpop.permute.xlu1 %1433  ;;  %v1749_v30 = vsel %vm1748_vm12, %v1716_v47, %v1432_v41  ;;  %v1684_v47 = vsel %vm1682_vm9, %v1651_v21, %v5886_v17  ;;  %v1442_v41 = vpop.permute.xlu2 %1441  ;;  %v1586_v17 = vsel %vm1583_vm7, %v1555_v61, %v10243_v18  ;;  %v1525_v61 = vsel %vm1521_vm4, %v10246_v23, %v10245_v51  ;;  %v10250_v23 = vld [vmem:[#allocation130_spill] sm:$0xff] }
 0x2cc   : > { %4471 = vmatmul.msk.f32.vlgmr.msra.gmra.mxu0 %vm1790_vm11, %v1749_v30  ;;  %v1717_v20 = vsel %vm1715_vm10, %v1684_v47, %v6004_v13  ;;  %v1619_v21 = vsel %vm1616_vm6, %v1586_v17, %v10244_v54 }
 0x2cd   : > { %v1750_v38 = vsel %vm1748_vm12, %v1717_v20, %v1434_v10  ;;  %v1652_v13 = vsel %vm1649_vm8, %v1619_v21, %v5764_v34  ;;  %v10247_v34 = vld [vmem:[#allocation100_spill] sm:$0xff] }
 0x2ce   : > { %v1685_v10 = vsel %vm1682_vm9, %v1652_v13, %v5846_v31  ;;  %v1556_v18 = vsel %vm1552_vm5, %v1525_v61, %v10247_v34  ;;  %v10248_v31 = vld [vmem:[#allocation129_spill] sm:$0xff]  ;;  %v1588_v61 = vsel %vm1583_vm7, %v1553_v36, %v10250_v23 }
 0x2cf   : > { %v1718_v28 = vsel %vm1715_vm10, %v1685_v10, %v5968_v55  ;;  %v1587_v17 = vsel %vm1583_vm7, %v1556_v18, %v10248_v31  ;;  %v10249_v55 = vld [vmem:[#allocation45_spill] sm:$0xff] }
 0x2d0   : > { %v1751_v19 = vsel %vm1748_vm12, %v1718_v28, %v1436_v33  ;;  %v1620_v54 = vsel %vm1616_vm6, %v1587_v17, %v10249_v55  ;;  %v10252_v17 = vld [vmem:[#allocation62_spill] sm:$0xff] }
 0x2d1   : > { %v1653_v21 = vsel %vm1649_vm8, %v1620_v54, %v5766_v44  ;;  %v10251_v44 = vld [vmem:[#allocation157_spill] sm:$0xff]  ;;  %v1536_v36 = vsel %vm1521_vm4, %v4833_v43, %v10252_v17  ;;  %v10253_v54 = vld [vmem:[#allocation99_spill] sm:$0xff]  ;;  %v10261_v17 = vld [vmem:[#allocation132_spill] sm:$0xff] }
 0x2d2   : > { %v1438_v30 = vpop.permute.xlu0 %1437  ;;  %v1686_v33 = vsel %vm1682_vm9, %v1653_v21, %v5896_v24  ;;  %v1621_v34 = vsel %vm1616_vm6, %v1588_v61, %v10251_v44  ;;  %v10254_v21 = vld [vmem:[#allocation4_spill] sm:$0xff] }
 0x2d3   : > { %v1440_v6 = vpop.permute.xlu1 %1439  ;;  %v6152_v20 = vpop.permute.xlu2 %1447  ;;  %v1719_v13 = vsel %vm1715_vm10, %v1686_v33, %v6014_v49  ;;  %v1654_v24 = vsel %vm1649_vm8, %v1621_v34, %v5726_v40  ;;  %v1567_v40 = vsel %vm1552_vm5, %v1536_v36, %v10253_v54  ;;  %v10255_v33 = vld [vmem:[#allocation140_spill] sm:$0xff] }
 0x2d4   : > { %4472 = vmatmul.msk.f32.gmra.mxu0 %vm1790_vm11, %v1750_v38  ;;  %v1687_v49 = vsel %vm1682_vm9, %v1654_v24, %v5898_v29  ;;  %v1589_v29 = vsel %vm1583_vm7, %v1554_v56, %v10254_v21 }
 0x2d5   : > { %v1720_v18 = vsel %vm1715_vm10, %v1687_v49, %v6016_v46  ;;  %v1600_v46 = vsel %vm1583_vm7, %v1567_v40, %v10255_v33  ;;  %v10263_v40 = vld [vmem:[#allocation148_spill] sm:$0xff] }
 0x2d6   : > { %v1753_v31 = vsel %vm1748_vm12, %v1720_v18, %v1440_v6  ;;  %v1633_v23 = vsel %vm1616_vm6, %v1600_v46, %v5686_v39  ;;  %v10257_v18 = vld [vmem:[#allocation48_spill] sm:$0xff] }
 0x2d7   : > { %v1666_v61 = vsel %vm1649_vm8, %v1633_v23, %v5774_v50  ;;  %v10258_v50 = vld [vmem:[#allocation82_spill] sm:$0xff] }
 0x2d8   : > { %v1699_v44 = vsel %vm1682_vm9, %v1666_v61, %v5946_v8  ;;  %v1537_v8 = vsel %vm1521_vm4, %v4830_v42, %v10258_v50  ;;  %v10264_v42 = vld [vmem:[#allocation167_spill] sm:$0xff] }
 0x2d9   : > { %v1732_v24 = vsel %vm1715_vm10, %v1699_v44, %v6062_v4  ;;  %v10260_v4 = vld [vmem:[#allocation112_spill] sm:$0xff]  ;;  %v10272_v50 = vld [vmem:[#allocation159_spill] sm:$0xff] }
 0x2da   : > { %v1444_v47 = vpop.permute.xlu0 %1443 }
 0x2db   : > { %v6154_v38 = vpop.permute.xlu1 %1445  ;;  %v6179_v51 = vpop.permute.xlu2 %1453 }
 0x2dc   : > { %4473 = vmatmul.msk.f32.gmra.mxu0 %vm1790_vm11, %v1751_v19  ;;  %v1752_v19 = vsel %vm1748_vm12, %v1719_v13, %v1438_v30  ;;  %v10256_v13 = vld [vmem:[#allocation158_spill] sm:$0xff] }
 0x2dd   : > { %v1622_v6 = vsel %vm1616_vm6, %v1589_v29, %v10256_v13 }
 0x2de   : > { %v1655_v43 = vsel %vm1649_vm8, %v1622_v6, %v5776_v45  ;;  %v1526_v45 = vsel %vm1521_vm4, %v4700_v15, %v10257_v18  ;;  %v10262_v15 = vld [vmem:[#allocation131_spill] sm:$0xff] }
 0x2df   : > { %v1688_v56 = vsel %vm1682_vm9, %v1655_v43, %v5858_v0 }
 0x2e0   : > { %v1721_v34 = vsel %vm1715_vm10, %v1688_v56, %v5982_v37 }
 0x2e1   : > { %v1754_v39 = vsel %vm1748_vm12, %v1721_v34, %v1442_v41  ;;  %v1568_v41 = vsel %vm1552_vm5, %v1537_v8, %v10260_v4  ;;  %v10265_v34 = vld [vmem:[#allocation51_spill] sm:$0xff] }
 0x2e2   : > { %v6173_v10 = vpop.permute.xlu0 %1449  ;;  %v1601_v54 = vsel %vm1583_vm7, %v1568_v41, %v10262_v15 }
 0x2e3   : > { %v6175_v28 = vpop.permute.xlu1 %1451  ;;  %v1634_v33 = vsel %vm1616_vm6, %v1601_v54, %v10264_v42  ;;  %v10274_v54 = vld [vmem:[#allocation67_spill] sm:$0xff] }
 0x2e4   : > { %4474 = vmatmul.msk.f32.gmra.mxu0 %vm1790_vm11, %v1752_v19  ;;  %v6208_v19 = vpop.permute.xlu2 %1459  ;;  %v1667_v13 = vsel %vm1649_vm8, %v1634_v33, %v5824_v22 }
 0x2e5   : > { %v1700_v43 = vsel %vm1682_vm9, %v1667_v13, %v5906_v25 }
 0x2e6   : > { %v1733_v56 = vsel %vm1715_vm10, %v1700_v43, %v6040_v59  ;;  %v10268_v59 = vld [vmem:[#allocation113_spill] sm:$0xff] }
 0x2ea   : > { %v6198_v55 = vpop.permute.xlu0 %1455 }
 0x2eb   : > { %v6191_v30 = vpop.permute.xlu1 %1457 }
 0x2ec   : > { %4475 = vmatmul.msk.f32.gmra.mxu0 %vm1790_vm11, %v1753_v31  ;;  %v10259_v31 = vld [vmem:[#allocation101_spill] sm:$0xff]  ;;  %v1466_v23 = vpop.permute.xlu2 %1465 }
 0x2ed   : > { %v1557_v37 = vsel %vm1552_vm5, %v1526_v45, %v10259_v31  ;;  %v1766_v22 = vsel %vm1748_vm12, %v1733_v56, %v1466_v23  ;;  %v10271_v45 = vld [vmem:[#allocation160_spill] sm:$0xff] }
 0x2ee   : > { %v1590_v36 = vsel %vm1583_vm7, %v1557_v37, %v10261_v17 }
 0x2ef   : > { %v1623_v21 = vsel %vm1616_vm6, %v1590_v36, %v10263_v40  ;;  %v10275_v40 = vld [vmem:[#allocation103_spill] sm:$0xff] }
 0x2f0   : > { %v1656_v46 = vsel %vm1649_vm8, %v1623_v21, %v5778_v7  ;;  %v1527_v7 = vsel %vm1521_vm4, %v4697_v14, %v10265_v34  ;;  %v10270_v14 = vld [vmem:[#allocation142_spill] sm:$0xff] }
 0x2f1   : > { %v1689_v6 = vsel %vm1682_vm9, %v1656_v46, %v5908_v3  ;;  %v10266_v3 = vld [vmem:[#allocation83_spill] sm:$0xff]  ;;  %v10277_v21 = vld [vmem:[#allocation122_spill] sm:$0xff]  ;;  %v10279_v46 = vld [vmem:[#allocation161_spill] sm:$0xff] }
 0x2f2   : > { %v6244_v29 = vpop.permute.xlu0 %1461  ;;  %v1722_v61 = vsel %vm1715_vm10, %v1689_v6, %v6024_v60  ;;  %v1538_v25 = vsel %vm1521_vm4, %v4884_v26, %v10266_v3  ;;  %v10280_v6 = vld [vmem:[#allocation169_spill] sm:$0xff]  ;;  %v10282_v3 = vld [vmem:[#allocation8_spill] sm:$0xff] }
 0x2f3   : > { %v1464_v49 = vpop.permute.xlu1 %1463  ;;  %v1755_v44 = vsel %vm1748_vm12, %v1722_v61, %v1444_v47  ;;  %v1569_v47 = vsel %vm1552_vm5, %v1538_v25, %v10268_v59  ;;  %v10283_v25 = vld [vmem:[#allocation85_spill] sm:$0xff] }
 0x2f4   : > { %4476 = vmatmul.msk.f32.gmra.mxu0 %vm1790_vm11, %v1754_v39  ;;  %v1765_v0 = vsel %vm1748_vm12, %v1732_v24, %v1464_v49  ;;  %v10267_v24 = vld [vmem:[#allocation90_spill] sm:$0xff]  ;;  %v10269_v49 = vld [vmem:[#allocation133_spill] sm:$0xff]  ;;  %v1602_v18 = vsel %vm1583_vm7, %v1569_v47, %v10270_v14  ;;  %v10287_v47 = vld [vmem:[#allocation31_spill] sm:$0xff] }
 0x2f5   : > { %4487 = vmatmul.msk.f32.vlgmr.msra.gmra.mxu2 %vm1790_vm11, %v1765_v0  ;;  %v1558_v60 = vsel %vm1552_vm5, %v1527_v7, %v10267_v24  ;;  %v1635_v26 = vsel %vm1616_vm6, %v1602_v18, %v10272_v50  ;;  %v10284_v24 = vld [vmem:[#allocation104_spill] sm:$0xff]  ;;  %v10289_v18 = vld [vmem:[#allocation170_spill] sm:$0xff] }
 0x2f6   : > { %v1591_v39 = vsel %vm1583_vm7, %v1558_v60, %v10269_v49  ;;  %v1668_v31 = vsel %vm1649_vm8, %v1635_v26, %v5826_v12  ;;  %v10286_v60 = vld [vmem:[#allocation134_spill] sm:$0xff] }
 0x2f7   : > { %v1624_v0 = vsel %vm1616_vm6, %v1591_v39, %v10271_v45  ;;  %v1701_v41 = vsel %vm1682_vm9, %v1668_v31, %v5956_v63  ;;  %v1539_v63 = vsel %vm1521_vm4, %v4867_v11, %v10274_v54  ;;  %v10288_v39 = vld [vmem:[#allocation151_spill] sm:$0xff]  ;;  %v10290_v50 = vld [vmem:[#allocation26_spill] sm:$0xff]  ;;  %v10291_v31 = vld [vmem:[#allocation20_spill] sm:$0xff] }
 0x2f8   : > { %v1657_v8 = vsel %vm1649_vm8, %v1624_v0, %v5738_v48  ;;  %v1734_v36 = vsel %vm1715_vm10, %v1701_v41, %v6080_v35  ;;  %v10273_v48 = vld [vmem:[#allocation68_spill] sm:$0xff]  ;;  %v10276_v35 = vld [vmem:[#allocation102_spill] sm:$0xff]  ;;  %v10297_v54 = vld [vmem:[#allocation27_spill] sm:$0xff] }
 0x2f9   : > { %v1690_v37 = vsel %vm1682_vm9, %v1657_v8, %v5910_v1  ;;  %v1528_v12 = vsel %vm1521_vm4, %v4772_v58, %v10273_v48  ;;  %v10278_v58 = vld [vmem:[#allocation143_spill] sm:$0xff]  ;;  %v1472_v8 = vpop.permute.xlu2 %1471 }
 0x2fa   : > { %v1468_v4 = vpop.permute.xlu0 %1467  ;;  %v1723_v17 = vsel %vm1715_vm10, %v1690_v37, %v6028_v53  ;;  %v1559_v53 = vsel %vm1552_vm5, %v1528_v12, %v10275_v40  ;;  %v10295_v48 = vld [vmem:[#allocation7_spill] sm:$0xff]  ;;  %v10298_v40 = vld [vmem:[#allocation93_spill] sm:$0xff] }
 0x2fb   : > { %v1756_v15 = vsel %vm1748_vm12, %v1723_v17, %v6154_v38  ;;  %v1767_v1 = vsel %vm1748_vm12, %v1734_v36, %v1468_v4  ;;  %v1570_v38 = vsel %vm1552_vm5, %v1539_v63, %v10276_v35  ;;  %v1592_v42 = vsel %vm1583_vm7, %v1559_v53, %v10277_v21  ;;  %v1470_v56 = vpop.permute.xlu1 %1469  ;;  %v10292_v4 = vld [vmem:[#allocation56_spill] sm:$0xff]  ;;  %v10293_v17 = vld [vmem:[#allocation71_spill] sm:$0xff] }
 0x2fc   : > { %4477 = vmatmul.msk.f32.gmra.mxu0 %vm1790_vm11, %v1755_v44  ;;  %v1603_v33 = vsel %vm1583_vm7, %v1570_v38, %v10278_v58  ;;  %v1625_v13 = vsel %vm1616_vm6, %v1592_v42, %v10279_v46  ;;  %v10299_v35 = vld [vmem:[#allocation116_spill] sm:$0xff]  ;;  %v10300_v38 = vld [vmem:[#allocation135_spill] sm:$0xff] }
 0x2fd   : > { %4488 = vmatmul.msk.f32.gmra.mxu2 %vm1790_vm11, %v1766_v22  ;;  %v1636_v11 = vsel %vm1616_vm6, %v1603_v33, %v10280_v6  ;;  %v1658_v23 = vsel %vm1649_vm8, %v1625_v13, %v5788_v52  ;;  %v10281_v52 = vld [vmem:[#allocation69_spill] sm:$0xff]  ;;  %v10301_v42 = vld [vmem:[#allocation144_spill] sm:$0xff]  ;;  %v10302_v33 = vld [vmem:[#allocation162_spill] sm:$0xff] }
 0x2fe   : > { %v1669_v43 = vsel %vm1649_vm8, %v1636_v11, %v5786_v57  ;;  %v1691_v61 = vsel %vm1682_vm9, %v1658_v23, %v5870_v32  ;;  %v1529_v57 = vsel %vm1521_vm4, %v10282_v3, %v10281_v52  ;;  %v10303_v13 = vld [vmem:[#allocation65_spill] sm:$0xff] }
 0x2ff   : > { %v1702_v44 = vsel %vm1682_vm9, %v1669_v43, %v5958_v5  ;;  %v1724_v34 = vsel %vm1715_vm10, %v1691_v61, %v5994_v62  ;;  %v1540_v5 = vsel %vm1521_vm4, %v4908_v2, %v10283_v25  ;;  %v1560_v62 = vsel %vm1552_vm5, %v1529_v57, %v10284_v24  ;;  %v10304_v11 = vld [vmem:[#allocation177_spill] sm:$0xff]  ;;  %v10305_v43 = vld [vmem:[#allocation188_spill] sm:$0xff]  ;;  %v10311_v24 = vld [vmem:[#allocation6_spill] sm:$0xff] }
 0x300   : > { %v1735_v7 = vsel %vm1715_vm10, %v1702_v44, %v6082_v16  ;;  %v1757_v22 = vsel %vm1748_vm12, %v1724_v34, %v6152_v20  ;;  %v10285_v16 = vld [vmem:[#allocation115_spill] sm:$0xff]  ;;  %v1593_v59 = vsel %vm1583_vm7, %v1560_v62, %v10286_v60  ;;  %v10308_v52 = vld [vmem:[#allocation61_spill] sm:$0xff]  ;;  %v10309_v57 = vld [vmem:[#allocation80_spill] sm:$0xff] }
 0x301   : > { %v1768_v32 = vsel %vm1748_vm12, %v1735_v7, %v1470_v56  ;;  %v1571_v20 = vsel %vm1552_vm5, %v1540_v5, %v10285_v16  ;;  %v1626_v14 = vsel %vm1616_vm6, %v1593_v59, %v10288_v39  ;;  %v10306_v56 = vld [vmem:[#allocation19_spill] sm:$0xff]  ;;  %v10307_v7 = vld [vmem:[#allocation40_spill] sm:$0xff]  ;;  %v10310_v5 = vld [vmem:[#allocation73_spill] sm:$0xff] }
 0x302   : > { %v1604_v49 = vsel %vm1583_vm7, %v1571_v20, %v10287_v47  ;;  %v1659_v45 = vsel %vm1649_vm8, %v1626_v14, %v5790_v9  ;;  %v10294_v9 = vld [vmem:[#allocation54_spill] sm:$0xff]  ;;  %v1474_v34 = vpop.permute.xlu0 %1473  ;;  %v1531_v62 = vsel %vm1521_vm4, %v10311_v24, %v10310_v5  ;;  %v10312_v20 = vld [vmem:[#allocation72_spill] sm:$0xff]  ;;  %v10313_v60 = vld [vmem:[#allocation25_spill] sm:$0xff] }
 0x303   : > { %v1637_v2 = vsel %vm1616_vm6, %v1604_v49, %v10289_v18  ;;  %v1692_v26 = vsel %vm1682_vm9, %v1659_v45, %v10290_v50  ;;  %v1542_v59 = vsel %vm1521_vm4, %v10313_v60, %v10312_v20  ;;  %v10314_v47 = vld [vmem:[#allocation106_spill] sm:$0xff]  ;;  %v10315_v39 = vld [vmem:[#allocation105_spill] sm:$0xff]  ;;  %v10340_v24 = vld [vmem:[#allocation60_spill] sm:$0xff] }
 0x304   : > { %4478 = vmatmul.msk.f32.gmra.mxu0 %vm1790_vm11, %v1756_v15  ;;  %v1670_v0 = vsel %vm1649_vm8, %v1637_v2, %v5836_v27  ;;  %v1725_v41 = vsel %vm1715_vm10, %v1692_v26, %v10292_v4  ;;  %v1530_v27 = vsel %vm1521_vm4, %v10295_v48, %v10294_v9  ;;  %v1562_v49 = vsel %vm1552_vm5, %v1531_v62, %v10314_v47  ;;  %v10316_v14 = vld [vmem:[#allocation125_spill] sm:$0xff]  ;;  %v10319_v26 = vld [vmem:[#allocation171_spill] sm:$0xff]  ;;  %v10321_v4 = vld [vmem:[#allocation180_spill] sm:$0xff] }
 0x305   : > { %4489 = vmatmul.msk.f32.gmra.mxu2 %vm1790_vm11, %v1767_v1  ;;  %v1703_v37 = vsel %vm1682_vm9, %v1670_v0, %v10291_v31  ;;  %v1758_v15 = vsel %vm1748_vm12, %v1725_v41, %v6173_v10  ;;  %v10296_v1 = vld [vmem:[#allocation86_spill] sm:$0xff]  ;;  %v1561_v53 = vsel %vm1552_vm5, %v1530_v27, %v10298_v40  ;;  %v1595_v18 = vsel %vm1583_vm7, %v1562_v49, %v10316_v14  ;;  %v10317_v2 = vld [vmem:[#allocation145_spill] sm:$0xff]  ;;  %v10318_v0 = vld [vmem:[#allocation163_spill] sm:$0xff] }
 0x306   : > { %v1736_v36 = vsel %vm1715_vm10, %v1703_v37, %v10293_v17  ;;  %v1541_v63 = vsel %vm1521_vm4, %v10297_v54, %v10296_v1  ;;  %v1594_v21 = vsel %vm1583_vm7, %v1561_v53, %v10300_v38  ;;  %v1628_v50 = vsel %vm1616_vm6, %v1595_v18, %v10318_v0  ;;  %v10320_v31 = vld [vmem:[#allocation181_spill] sm:$0xff]  ;;  %v10323_v9 = vld [vmem:[#allocation43_spill] sm:$0xff]  ;;  %v10325_v1 = vld [vmem:[#allocation190_spill] sm:$0xff] }
 0x307   : > { %v1769_v12 = vsel %vm1748_vm12, %v1736_v36, %v1472_v8  ;;  %v1572_v10 = vsel %vm1552_vm5, %v1541_v63, %v10299_v35  ;;  %v1627_v46 = vsel %vm1616_vm6, %v1594_v21, %v10302_v33  ;;  %v1661_v37 = vsel %vm1649_vm8, %v1628_v50, %v10320_v31  ;;  %v10322_v17 = vld [vmem:[#allocation21_spill] sm:$0xff]  ;;  %v10326_v40 = vld [vmem:[#allocation74_spill] sm:$0xff]  ;;  %v10328_v38 = vld [vmem:[#allocation88_spill] sm:$0xff] }
 0x308   : > { %v1605_v58 = vsel %vm1583_vm7, %v1572_v10, %v10301_v42  ;;  %v1660_v23 = vsel %vm1649_vm8, %v1627_v46, %v10304_v11  ;;  %v1694_v36 = vsel %vm1682_vm9, %v1661_v37, %v10322_v17  ;;  %v10324_v27 = vld [vmem:[#allocation53_spill] sm:$0xff]  ;;  %v10329_v21 = vld [vmem:[#allocation24_spill] sm:$0xff]  ;;  %v10331_v46 = vld [vmem:[#allocation118_spill] sm:$0xff] }
 0x309   : > { %v1638_v6 = vsel %vm1616_vm6, %v1605_v58, %v10303_v13  ;;  %v1693_v44 = vsel %vm1682_vm9, %v1660_v23, %v10306_v56  ;;  %v10327_v53 = vld [vmem:[#allocation13_spill] sm:$0xff]  ;;  %v1543_v42 = vsel %vm1521_vm4, %v10329_v21, %v10328_v38  ;;  %v10330_v58 = vld [vmem:[#allocation107_spill] sm:$0xff]  ;;  %v10332_v13 = vld [vmem:[#allocation136_spill] sm:$0xff] }
 0x30a   : > { %v1671_v61 = vsel %vm1649_vm8, %v1638_v6, %v10305_v43  ;;  %v1726_v3 = vsel %vm1715_vm10, %v1693_v44, %v10308_v52  ;;  %v1532_v35 = vsel %vm1521_vm4, %v10327_v53, %v10326_v40  ;;  %v10333_v11 = vld [vmem:[#allocation38_spill] sm:$0xff]  ;;  %v10335_v56 = vld [vmem:[#allocation172_spill] sm:$0xff]  ;;  %v10347_v0 = vld [vmem:[#allocation119_spill] sm:$0xff] }
 0x30b   : > { %v1759_v25 = vsel %vm1748_vm12, %v1726_v3, %v6175_v28  ;;  %v1573_v28 = vsel %vm1552_vm5, %v1542_v59, %v10315_v39  ;;  %v1563_v33 = vsel %vm1552_vm5, %v1532_v35, %v10330_v58  ;;  %v10334_v43 = vld [vmem:[#allocation154_spill] sm:$0xff]  ;;  %v10342_v59 = vld [vmem:[#allocation57_spill] sm:$0xff]  ;;  %v10345_v14 = vld [vmem:[#allocation32_spill] sm:$0xff] }
 0x30c   : > { %4479 = vmatmul.msk.f32.gmra.mxu0 %vm1790_vm11, %v1757_v22  ;;  %v1704_v22 = vsel %vm1682_vm9, %v1671_v61, %v10307_v7  ;;  %v1606_v45 = vsel %vm1583_vm7, %v1573_v28, %v10317_v2  ;;  %v1596_v6 = vsel %vm1583_vm7, %v1563_v33, %v10332_v13  ;;  %v10338_v3 = vld [vmem:[#allocation22_spill] sm:$0xff]  ;;  %v10344_v28 = vld [vmem:[#allocation89_spill] sm:$0xff]  ;;  %v10346_v2 = vld [vmem:[#allocation96_spill] sm:$0xff] }
 0x30d   : > { %4490 = vmatmul.msk.f32.gmra.mxu2 %vm1790_vm11, %v1768_v32  ;;  %v1737_v32 = vsel %vm1715_vm10, %v1704_v22, %v10309_v57  ;;  %v1639_v8 = vsel %vm1616_vm6, %v1606_v45, %v10319_v26  ;;  %v1629_v61 = vsel %vm1616_vm6, %v1596_v6, %v10334_v43  ;;  %v10337_v22 = vld [vmem:[#allocation12_spill] sm:$0xff]  ;;  %v10343_v47 = vld [vmem:[#allocation10_spill] sm:$0xff]  ;;  %v1544_v18 = vsel %vm1521_vm4, %v10345_v14, %v10344_v28  ;;  %v10348_v50 = vld [vmem:[#allocation137_spill] sm:$0xff] }
 0x30e   : > { %v1770_v16 = vsel %vm1748_vm12, %v1737_v32, %v1474_v34  ;;  %v1672_v41 = vsel %vm1649_vm8, %v1639_v8, %v10321_v4  ;;  %v10336_v34 = vld [vmem:[#allocation182_spill] sm:$0xff]  ;;  %v1478_v32 = vpop.permute.xlu2 %1477  ;;  %v1533_v49 = vsel %vm1521_vm4, %v10343_v47, %v10342_v59  ;;  %v10350_v37 = vld [vmem:[#allocation165_spill] sm:$0xff]  ;;  %v10357_v35 = vld [vmem:[#allocation191_spill] sm:$0xff] }
 0x30f   : > { %v1705_v48 = vsel %vm1682_vm9, %v1672_v41, %v10323_v9  ;;  %v1662_v7 = vsel %vm1649_vm8, %v1629_v61, %v10336_v34  ;;  %v1564_v45 = vsel %vm1552_vm5, %v1533_v49, %v10346_v2  ;;  %v10349_v8 = vld [vmem:[#allocation146_spill] sm:$0xff]  ;;  %v10351_v41 = vld [vmem:[#allocation164_spill] sm:$0xff]  ;;  %v10353_v9 = vld [vmem:[#allocation5_spill] sm:$0xff] }
 0x310   : > { %v1738_v54 = vsel %vm1715_vm10, %v1705_v48, %v10325_v1  ;;  %v1695_v57 = vsel %vm1682_vm9, %v1662_v7, %v10338_v3  ;;  %v1597_v26 = vsel %vm1583_vm7, %v1564_v45, %v10348_v50  ;;  %v1480_v1 = vpop.permute.xlu0 %1479  ;;  %v10356_v40 = vld [vmem:[#allocation66_spill] sm:$0xff]  ;;  %v10362_v6 = vld [vmem:[#allocation109_spill] sm:$0xff]  ;;  %v10364_v43 = vld [vmem:[#allocation128_spill] sm:$0xff] }
 0x311   : > { %v1728_v62 = vsel %vm1715_vm10, %v1695_v57, %v10340_v24  ;;  %v1630_v4 = vsel %vm1616_vm6, %v1597_v26, %v10350_v37  ;;  %v10358_v21 = vld [vmem:[#allocation78_spill] sm:$0xff]  ;;  %v10368_v3 = vld [vmem:[#allocation184_spill] sm:$0xff]  ;;  %v10374_v28 = vld [vmem:[#allocation79_spill] sm:$0xff] }
 0x312   : > { %v1761_v60 = vsel %vm1748_vm12, %v1728_v62, %v6198_v55  ;;  %v1575_v55 = vsel %vm1552_vm5, %v1544_v18, %v10347_v0  ;;  %v10366_v34 = vld [vmem:[#allocation166_spill] sm:$0xff]  ;;  %v10373_v47 = vld [vmem:[#allocation192_spill] sm:$0xff]  ;;  %v10376_v45 = vld [vmem:[#allocation91_spill] sm:$0xff] }
 0x313   : > { %v1608_v31 = vsel %vm1583_vm7, %v1575_v55, %v10349_v8  ;;  %v10375_v14 = vld [vmem:[#allocation16_spill] sm:$0xff]  ;;  %v10377_v0 = vld [vmem:[#allocation37_spill] sm:$0xff]  ;;  %v10378_v50 = vld [vmem:[#allocation110_spill] sm:$0xff] }
 0x314   : > { %4480 = vmatmul.msk.f32.gmra.mxu0 %vm1790_vm11, %v1758_v15  ;;  %v1476_v15 = vpop.permute.xlu1 %1475  ;;  %v1641_v17 = vsel %vm1616_vm6, %v1608_v31, %v10351_v41  ;;  %v1535_v18 = vsel %vm1521_vm4, %v10375_v14, %v10374_v28  ;;  %v1546_v55 = vsel %vm1521_vm4, %v10377_v0, %v10376_v45  ;;  %v10379_v8 = vld [vmem:[#allocation120_spill] sm:$0xff]  ;;  %v10380_v31 = vld [vmem:[#allocation139_spill] sm:$0xff]  ;;  %v10404_v14 = vld [vmem:[#allocation49_spill] sm:$0xff] }
 0x315   : > { %4491 = vmatmul.msk.f32.gmra.mxu2 %vm1790_vm11, %v1769_v12  ;;  %v1727_v12 = vsel %vm1715_vm10, %v1694_v36, %v10324_v27  ;;  %v1771_v10 = vsel %vm1748_vm12, %v1738_v54, %v1476_v15  ;;  %v10352_v36 = vld [vmem:[#allocation179_spill] sm:$0xff]  ;;  %v1674_v48 = vsel %vm1649_vm8, %v1641_v17, %v10353_v9  ;;  %v10354_v27 = vld [vmem:[#allocation29_spill] sm:$0xff]  ;;  %v10355_v54 = vld [vmem:[#allocation46_spill] sm:$0xff]  ;;  %v1566_v26 = vsel %vm1552_vm5, %v1535_v18, %v10378_v50 }
 0x316   : > { %v1760_v63 = vsel %vm1748_vm12, %v1727_v12, %v6179_v51  ;;  %v1574_v51 = vsel %vm1552_vm5, %v1543_v42, %v10331_v46  ;;  %v1663_v15 = vsel %vm1649_vm8, %v1630_v4, %v10352_v36  ;;  %v10359_v42 = vld [vmem:[#allocation17_spill] sm:$0xff]  ;;  %v1599_v37 = vsel %vm1583_vm7, %v1566_v26, %v10380_v31  ;;  %v10381_v4 = vld [vmem:[#allocation138_spill] sm:$0xff]  ;;  %v10382_v17 = vld [vmem:[#allocation55_spill] sm:$0xff] }
 0x317   : > { %v1607_v23 = vsel %vm1583_vm7, %v1574_v51, %v10333_v11  ;;  %v1696_v12 = vsel %vm1682_vm9, %v1663_v15, %v10354_v27  ;;  %v1534_v58 = vsel %vm1521_vm4, %v10359_v42, %v10358_v21  ;;  %v10360_v46 = vld [vmem:[#allocation77_spill] sm:$0xff]  ;;  %v10361_v51 = vld [vmem:[#allocation30_spill] sm:$0xff]  ;;  %v1632_v36 = vsel %vm1616_vm6, %v1599_v37, %v10382_v17  ;;  %v10407_v50 = vld [vmem:[#allocation35_spill] sm:$0xff] }
 0x318   : > { %v1640_v44 = vsel %vm1616_vm6, %v1607_v23, %v10335_v56  ;;  %v1729_v53 = vsel %vm1715_vm10, %v1696_v12, %v10356_v40  ;;  %v1545_v13 = vsel %vm1521_vm4, %v10361_v51, %v10360_v46  ;;  %v1565_v11 = vsel %vm1552_vm5, %v1534_v58, %v10362_v6  ;;  %v10363_v23 = vld [vmem:[#allocation108_spill] sm:$0xff]  ;;  %v10365_v56 = vld [vmem:[#allocation147_spill] sm:$0xff]  ;;  %v10383_v15 = vld [vmem:[#allocation174_spill] sm:$0xff]  ;;  %v1484_v40 = vpop.permute.xlu2 %1483 }
 0x319   : > { %v1673_v52 = vsel %vm1649_vm8, %v1640_v44, %v10337_v22  ;;  %v1762_v38 = vsel %vm1748_vm12, %v1729_v53, %v6191_v30  ;;  %v1576_v30 = vsel %vm1552_vm5, %v1545_v13, %v10363_v23  ;;  %v1598_v61 = vsel %vm1583_vm7, %v1565_v11, %v10364_v43  ;;  %v10367_v22 = vld [vmem:[#allocation173_spill] sm:$0xff]  ;;  %v10385_v12 = vld [vmem:[#allocation11_spill] sm:$0xff]  ;;  %v10387_v53 = vld [vmem:[#allocation28_spill] sm:$0xff] }
 0x31a   : > { %v1609_v44 = vsel %vm1583_vm7, %v1576_v30, %v10365_v56  ;;  %v1631_v7 = vsel %vm1616_vm6, %v1598_v61, %v10366_v34  ;;  %v10389_v21 = vld [vmem:[#allocation189_spill] sm:$0xff]  ;;  %v10390_v46 = vld [vmem:[#allocation92_spill] sm:$0xff]  ;;  %v10391_v51 = vld [vmem:[#allocation39_spill] sm:$0xff] }
 0x31b   : > { %v1664_v57 = vsel %vm1649_vm8, %v1631_v7, %v10368_v3  ;;  %v1547_v13 = vsel %vm1521_vm4, %v10391_v51, %v10390_v46  ;;  %v10392_v6 = vld [vmem:[#allocation121_spill] sm:$0xff]  ;;  %v10394_v43 = vld [vmem:[#allocation75_spill] sm:$0xff]  ;;  %v10396_v7 = vld [vmem:[#allocation50_spill] sm:$0xff] }
 0x31c   : > { %4481 = vmatmul.msk.f32.gmra.mxu0 %vm1790_vm11, %v1759_v25  ;;  %v10339_v25 = vld [vmem:[#allocation23_spill] sm:$0xff]  ;;  %v1482_v62 = vpop.permute.xlu1 %1481  ;;  %v1578_v11 = vsel %vm1552_vm5, %v1547_v13, %v10392_v6  ;;  %v10393_v23 = vld [vmem:[#allocation149_spill] sm:$0xff]  ;;  %v10418_v46 = vld [vmem:[#allocation168_spill] sm:$0xff] }
 0x31d   : > { %4492 = vmatmul.msk.f32.gmra.mxu2 %vm1790_vm11, %v1770_v16  ;;  %v1706_v5 = vsel %vm1682_vm9, %v1673_v52, %v10339_v25  ;;  %v10341_v16 = vld [vmem:[#allocation76_spill] sm:$0xff]  ;;  %v1642_v52 = vsel %vm1616_vm6, %v1609_v44, %v10367_v22  ;;  %v1611_v30 = vsel %vm1583_vm7, %v1578_v11, %v10393_v23  ;;  %v1486_v44 = vpop.permute.xlu0 %1485  ;;  %v10409_v31 = vld [vmem:[#allocation141_spill] sm:$0xff]  ;;  %v10419_v13 = vld [vmem:[#allocation15_spill] sm:$0xff] }
 0x31e   : > { %v1739_v20 = vsel %vm1715_vm10, %v1706_v5, %v10341_v16  ;;  %v10370_v5 = vld [vmem:[#allocation14_spill] sm:$0xff]  ;;  %v10371_v16 = vld [vmem:[#allocation47_spill] sm:$0xff]  ;;  %v1644_v61 = vsel %vm1616_vm6, %v1611_v30, %v10394_v43  ;;  %v10411_v17 = vld [vmem:[#allocation9_spill] sm:$0xff] }
 0x31f   : > { %v1772_v39 = vsel %vm1748_vm12, %v1739_v20, %v1478_v32  ;;  %v10369_v32 = vld [vmem:[#allocation183_spill] sm:$0xff]  ;;  %v1697_v24 = vsel %vm1682_vm9, %v1664_v57, %v10370_v5 }
 0x320   : > { %v1675_v25 = vsel %vm1649_vm8, %v1642_v52, %v10369_v32  ;;  %v10397_v52 = vld [vmem:[#allocation194_spill] sm:$0xff]  ;;  %v10398_v32 = vld [vmem:[#allocation81_spill] sm:$0xff] }
 0x321   : > { %v1708_v20 = vsel %vm1682_vm9, %v1675_v25, %v10371_v16  ;;  %v10399_v25 = vld [vmem:[#allocation36_spill] sm:$0xff]  ;;  %v10401_v16 = vld [vmem:[#allocation150_spill] sm:$0xff] }
 0x322   : > { %v1741_v49 = vsel %vm1715_vm10, %v1708_v20, %v10373_v47  ;;  %v1548_v5 = vsel %vm1521_vm4, %v10399_v25, %v10398_v32  ;;  %v10403_v47 = vld [vmem:[#allocation186_spill] sm:$0xff] }
 0x323   : > { %v1774_v2 = vsel %vm1748_vm12, %v1741_v49, %v1482_v62  ;;  %v10424_v25 = vld [vmem:[#allocation178_spill] sm:$0xff] }
 0x324   : > { %4482 = vmatmul.msk.f32.gmra.mxu0 %vm1790_vm11, %v1760_v63  ;;  %v1707_v63 = vsel %vm1682_vm9, %v1674_v48, %v10355_v54  ;;  %v10384_v48 = vld [vmem:[#allocation185_spill] sm:$0xff]  ;;  %v10386_v54 = vld [vmem:[#allocation34_spill] sm:$0xff] }
 0x325   : > { %4493 = vmatmul.msk.f32.gmra.mxu2 %vm1790_vm11, %v1771_v10  ;;  %v1740_v10 = vsel %vm1715_vm10, %v1707_v63, %v10357_v35  ;;  %v1665_v27 = vsel %vm1649_vm8, %v1632_v36, %v10384_v48  ;;  %v10412_v48 = vld [vmem:[#allocation33_spill] sm:$0xff] }
 0x326   : > { %v1773_v33 = vsel %vm1748_vm12, %v1740_v10, %v1480_v1  ;;  %v1698_v63 = vsel %vm1682_vm9, %v1665_v27, %v10386_v54  ;;  %v10388_v10 = vld [vmem:[#allocation70_spill] sm:$0xff] }
 0x32c   : > { %4483 = vmatmul.msk.f32.gmra.mxu0 %vm1790_vm11, %v1761_v60  ;;  %v10372_v60 = vld [vmem:[#allocation52_spill] sm:$0xff] }
 0x32d   : > { %4494 = vmatmul.msk.f32.gmra.mxu2 %vm1790_vm11, %v1772_v39  ;;  %v1730_v59 = vsel %vm1715_vm10, %v1697_v24, %v10372_v60  ;;  %v10400_v24 = vld [vmem:[#allocation111_spill] sm:$0xff] }
 0x32e   : > { %v1763_v39 = vsel %vm1748_vm12, %v1730_v59, %v6208_v19  ;;  %v1577_v19 = vsel %vm1552_vm5, %v1546_v55, %v10379_v8  ;;  %v1579_v62 = vsel %vm1552_vm5, %v1548_v5, %v10400_v24  ;;  %v10402_v60 = vld [vmem:[#allocation175_spill] sm:$0xff]  ;;  %v10406_v55 = vld [vmem:[#allocation94_spill] sm:$0xff] }
 0x32f   : > { %v1610_v41 = vsel %vm1583_vm7, %v1577_v19, %v10381_v4  ;;  %v1612_v20 = vsel %vm1583_vm7, %v1579_v62, %v10401_v16  ;;  %v1549_v26 = vsel %vm1521_vm4, %v10407_v50, %v10406_v55  ;;  %v10408_v8 = vld [vmem:[#allocation123_spill] sm:$0xff]  ;;  %v10410_v4 = vld [vmem:[#allocation176_spill] sm:$0xff] }
 0x330   : > { %v1643_v9 = vsel %vm1616_vm6, %v1610_v41, %v10383_v15  ;;  %v1645_v59 = vsel %vm1616_vm6, %v1612_v20, %v10402_v60  ;;  %v1580_v19 = vsel %vm1552_vm5, %v1549_v26, %v10408_v8  ;;  %v1490_v15 = vpop.permute.xlu2 %1489  ;;  %v10425_v5 = vld [vmem:[#allocation187_spill] sm:$0xff] }
 0x331   : > { %v1676_v1 = vsel %vm1649_vm8, %v1643_v9, %v10385_v12  ;;  %v1678_v49 = vsel %vm1649_vm8, %v1645_v59, %v10403_v47  ;;  %v1613_v37 = vsel %vm1583_vm7, %v1580_v19, %v10409_v31  ;;  %v10413_v12 = vld [vmem:[#allocation193_spill] sm:$0xff] }
 0x332   : > { %v1709_v35 = vsel %vm1682_vm9, %v1676_v1, %v10387_v53  ;;  %v1711_v18 = vsel %vm1682_vm9, %v1678_v49, %v10404_v14  ;;  %v1646_v41 = vsel %vm1616_vm6, %v1613_v37, %v10410_v4 }
 0x333   : > { %v1742_v42 = vsel %vm1715_vm10, %v1709_v35, %v10389_v21  ;;  %v1679_v36 = vsel %vm1649_vm8, %v1646_v41, %v10411_v17  ;;  %v10415_v35 = vld [vmem:[#allocation42_spill] sm:$0xff] }
 0x334   : > { %4484 = vmatmul.msk.f32.gmra.mxu0 %vm1790_vm11, %v1762_v38  ;;  %v1731_v38 = vsel %vm1715_vm10, %v1698_v63, %v10388_v10  ;;  %v1712_v27 = vsel %vm1682_vm9, %v1679_v36, %v10412_v48  ;;  %v10414_v63 = vld [vmem:[#allocation95_spill] sm:$0xff] }
 0x335   : > { %4495 = vmatmul.msk.f32.gmra.mxu2 %vm1790_vm11, %v1773_v33  ;;  %v1764_v58 = vsel %vm1748_vm12, %v1731_v38, %v6244_v29  ;;  %v1775_v33 = vsel %vm1748_vm12, %v1742_v42, %v1484_v40  ;;  %v10395_v29 = vld [vmem:[#allocation18_spill] sm:$0xff]  ;;  %v1745_v1 = vsel %vm1715_vm10, %v1712_v27, %v10413_v12  ;;  %v1550_v10 = vsel %vm1521_vm4, %v10415_v35, %v10414_v63  ;;  %v10416_v38 = vld [vmem:[#allocation124_spill] sm:$0xff] }
 0x336   : > { %v1677_v56 = vsel %vm1649_vm8, %v1644_v61, %v10395_v29  ;;  %v1778_v54 = vsel %vm1748_vm12, %v1745_v1, %v1490_v15  ;;  %v1581_v42 = vsel %vm1552_vm5, %v1550_v10, %v10416_v38  ;;  %v10420_v61 = vld [vmem:[#allocation84_spill] sm:$0xff]  ;;  %v10421_v29 = vld [vmem:[#allocation41_spill] sm:$0xff] }
 0x337   : > { %v1710_v22 = vsel %vm1682_vm9, %v1677_v56, %v10396_v7  ;;  %v1551_v56 = vsel %vm1521_vm4, %v10421_v29, %v10420_v61 }
 0x338   : > { %v1743_v3 = vsel %vm1715_vm10, %v1710_v22, %v10397_v52  ;;  %v10422_v22 = vld [vmem:[#allocation114_spill] sm:$0xff] }
 0x339   : > { %v1776_v57 = vsel %vm1748_vm12, %v1743_v3, %v1486_v44  ;;  %v1582_v3 = vsel %vm1552_vm5, %v1551_v56, %v10422_v22 }
 0x33c   : > { %4485 = vmatmul.msk.f32.gmra.mxu0 %vm1790_vm11, %v1763_v39  ;;  %v1488_v39 = vpop.permute.xlu1 %1487 }
 0x33d   : > { %4496 = vmatmul.msk.f32.gmra.mxu2 %vm1790_vm11, %v1774_v2  ;;  %v10405_v2 = vld [vmem:[#allocation195_spill] sm:$0xff] }
 0x33e   : > { %v1744_v45 = vsel %vm1715_vm10, %v1711_v18, %v10405_v2 }
 0x33f   : > { %v1777_v0 = vsel %vm1748_vm12, %v1744_v45, %v1488_v39 }
 0x344   : > { %4486 = vmatmul.msk.f32.gmra.mxu0 %vm1790_vm11, %v1764_v58  ;;  %v10417_v58 = vld [vmem:[#allocation152_spill] sm:$0xff] }
 0x345   : > { %4497 = vmatmul.msk.f32.gmra.mxu2 %vm1790_vm11, %v1775_v33  ;;  %v1614_v33 = vsel %vm1583_vm7, %v1581_v42, %v10417_v58 }
 0x346   : > { %v1647_v51 = vsel %vm1616_vm6, %v1614_v33, %v10418_v46 }
 0x347   : > { %v1680_v6 = vsel %vm1649_vm8, %v1647_v51, %v10419_v13 }
 0x348   : > { %v1713_v23 = vsel %vm1682_vm9, %v1680_v6, %v10387_v53 }
 0x349   : > { %v1908_v34 = vpop.f32.mrf.mxu0  ;;  %v1746_v30 = vsel %vm1715_vm10, %v1713_v23, %v10389_v21 }
 0x34a   : > { %v1779_v43 = vsel %vm1748_vm12, %v1746_v30, %v1484_v40 }
 0x34d   : > { %4498 = vmatmul.msk.f32.gmra.mxu2 %vm1790_vm11, %v1776_v57  ;;  %v10423_v57 = vld [vmem:[#allocation153_spill] sm:$0xff] }
 0x34e   : > { %v1615_v32 = vsel %vm1583_vm7, %v1582_v3, %v10423_v57 }
 0x34f   : > { %v1648_v53 = vsel %vm1616_vm6, %v1615_v32, %v10424_v25 }
 0x350   : > { %v1681_v21 = vsel %vm1649_vm8, %v1648_v53, %v10425_v5 }
 0x351   : > { %v1911_v28 = vpop.f32.mrf.mxu0  ;;  %v1714_v40 = vsel %vm1682_vm9, %v1681_v21, %v10396_v7 }
 0x352   : > { %v1747_v62 = vsel %vm1715_vm10, %v1714_v40, %v10397_v52 }
 0x353   : > { %v1780_v16 = vsel %vm1748_vm12, %v1747_v62, %v1486_v44  ;;  %v6677_v44 = vld [vmem:[%s9674_s2] ss:$0 sm:$0xff] }
 0x354   : > { %v6680_v45 = vadd.f32 %v6677_v44, %v1911_v28  ;;  %v6685_v55 = vadd.f32 %v6677_v44, %v1908_v34 }
 0x355   : > { %4499 = vmatmul.msk.f32.gmra.mxu2 %vm1790_vm11, %v1777_v0 }
 0x356   : > { %v2075_v8 = vmul.f32 %v6680_v45, %v6680_v45  ;;  %v2074_v31 = vmul.f32 %v6685_v55, %v6685_v55  ;;  %v2005_v28 = vsel %vm1521_vm4, %v6680_v45, 0.0  ;;  %v2004_v4 = vsel %vm1521_vm4, %v6685_v55, 0.0 }
 0x357   : > { %v2006_v27 = vadd.f32 %v2005_v28, %v2004_v4 }
 0x358   : > { %v2107_v41 = vsel %vm1521_vm4, %v2075_v8, 0.0  ;;  %v2106_v48 = vsel %vm1521_vm4, %v2074_v31, 0.0 }
 0x359   : > { %v1914_v9 = vpop.f32.mrf.mxu0  ;;  %v2108_v10 = vadd.f32 %v2107_v41, %v2106_v48 }
 0x35a   : > { %v6688_v26 = vadd.f32 %v6677_v44, %v1914_v9 }
 0x35c   : > { %v2076_v34 = vmul.f32 %v6688_v26, %v6688_v26  ;;  %v2007_v17 = vsel %vm1521_vm4, %v6688_v26, 0.0 }
 0x35d   : > { %4500 = vmatmul.msk.f32.gmra.mxu2 %vm1790_vm11, %v1778_v54  ;;  %v2008_v38 = vadd.f32 %v2007_v17, %v2006_v27 }
 0x35e   : > { %v2109_v1 = vsel %vm1521_vm4, %v2076_v34, 0.0 }
 0x35f   : > { %v2110_v51 = vadd.f32 %v2109_v1, %v2108_v10 }
 0x361   : > { %v1917_v11 = vpop.f32.mrf.mxu0 }
 0x362   : > { %v6693_v19 = vadd.f32 %v6677_v44, %v1917_v11 }
 0x364   : > { %v2077_v36 = vmul.f32 %v6693_v19, %v6693_v19  ;;  %v2009_v54 = vsel %vm1521_vm4, %v6693_v19, 0.0 }
 0x365   : > { %4501 = vmatmul.msk.f32.gmra.mxu2 %vm1790_vm11, %v1779_v43  ;;  %v2010_v13 = vadd.f32 %v2009_v54, %v2008_v38 }
 0x366   : > { %v2111_v42 = vsel %vm1521_vm4, %v2077_v36, 0.0 }
 0x367   : > { %v2112_v43 = vadd.f32 %v2111_v42, %v2110_v51 }
 0x369   : > { %v1920_v24 = vpop.f32.mrf.mxu0 }
 0x36a   : > { %v6702_v37 = vadd.f32 %v6677_v44, %v1920_v24 }
 0x36c   : > { %v2078_v63 = vmul.f32 %v6702_v37, %v6702_v37  ;;  %v2011_v58 = vsel %vm1521_vm4, %v6702_v37, 0.0 }
 0x36d   : > { %4502 = vmatmul.msk.f32.gmra.mxu2 %vm1790_vm11, %v1780_v16  ;;  %v2012_v61 = vadd.f32 %v2011_v58, %v2010_v13 }
 0x36e   : > { %v2113_v6 = vsel %vm1521_vm4, %v2078_v63, 0.0 }
 0x36f   : > { %v2114_v32 = vadd.f32 %v2113_v6, %v2112_v43 }
 0x371   : > { %v1923_v20 = vpop.f32.mrf.mxu0 }
 0x372   : > { %v6712_v15 = vadd.f32 %v6677_v44, %v1923_v20 }
 0x374   : > { %v2079_v33 = vmul.f32 %v6712_v15, %v6712_v15  ;;  %v2013_v11 = vsel %vm1521_vm4, %v6712_v15, 0.0 }
 0x375   : > { %v2014_v25 = vadd.f32 %v2013_v11, %v2012_v61 }
 0x376   : > { %v2115_v29 = vsel %vm1521_vm4, %v2079_v33, 0.0 }
 0x377   : > { %v2116_v62 = vadd.f32 %v2115_v29, %v2114_v32 }
 0x378   : > { %v6664_v60 = vpop.f32.mrf.mxu2 }
 0x379   : > { %v1926_v59 = vpop.f32.mrf.mxu0  ;;  %v6805_v32 = vadd.f32 %v6677_v44, %v6664_v60 }
 0x37a   : > { %v6723_v35 = vadd.f32 %v6677_v44, %v1926_v59 }
 0x37c   : > { %v2080_v23 = vmul.f32 %v6723_v35, %v6723_v35  ;;  %v2015_v56 = vsel %vm1521_vm4, %v6723_v35, 0.0 }
 0x37d   : > { %v2016_v16 = vadd.f32 %v2015_v56, %v2014_v25 }
 0x37e   : > { %v2117_v5 = vsel %vm1521_vm4, %v2080_v23, 0.0 }
 0x380   : > { %v6666_v47 = vpop.f32.mrf.mxu2 }
 0x381   : > { %v1929_v49 = vpop.f32.mrf.mxu0 }
 0x382   : > { %v6731_v46 = vadd.f32 %v6677_v44, %v1929_v49 }
 0x384   : > { %v2081_v22 = vmul.f32 %v6731_v46, %v6731_v46  ;;  %v2017_v21 = vsel %vm1521_vm4, %v6731_v46, 0.0 }
 0x385   : > { %v2018_v8 = vadd.f32 %v2017_v21, %v2016_v16  ;;  %v6814_v16 = vadd.f32 %v6677_v44, %v6666_v47 }
 0x386   : > { %v2119_v20 = vsel %vm1521_vm4, %v2081_v22, 0.0 }
 0x388   : > { %v6668_v39 = vpop.f32.mrf.mxu2 }
 0x389   : > { %v1932_v14 = vpop.f32.mrf.mxu0 }
 0x38a   : > { %v6739_v30 = vadd.f32 %v6677_v44, %v1932_v14 }
 0x38c   : > { %v2082_v24 = vmul.f32 %v6739_v30, %v6739_v30  ;;  %v2019_v59 = vsel %vm1521_vm4, %v6739_v30, 0.0 }
 0x38d   : > { %v2020_v41 = vadd.f32 %v2019_v59, %v2018_v8  ;;  %v6824_v8 = vadd.f32 %v6677_v44, %v6668_v39 }
 0x38e   : > { %v2121_v31 = vsel %vm1521_vm4, %v2082_v24, 0.0 }
 0x390   : > { %v6670_v18 = vpop.f32.mrf.mxu2 }
 0x391   : > { %v1935_v7 = vpop.f32.mrf.mxu0 }
 0x392   : > { %v6747_v3 = vadd.f32 %v6677_v44, %v1935_v7  ;;  %v2118_v7 = vadd.f32 %v2117_v5, %v2116_v62 }
 0x394   : > { %v2083_v49 = vmul.f32 %v6747_v3, %v6747_v3  ;;  %v2120_v4 = vadd.f32 %v2119_v20, %v2118_v7  ;;  %v2090_v7 = vmul.f32 %v6805_v32, %v6805_v32 }
 0x396   : > { %v2123_v17 = vsel %vm1521_vm4, %v2083_v49, 0.0  ;;  %v2122_v1 = vadd.f32 %v2121_v31, %v2120_v4  ;;  %v2035_v4 = vsel %vm1521_vm4, %v6805_v32, 0.0 }
 0x398   : > { %v6672_v2 = vpop.f32.mrf.mxu2  ;;  %v2124_v58 = vadd.f32 %v2123_v17, %v2122_v1  ;;  %v6836_v17 = vadd.f32 %v6677_v44, %v6670_v18  ;;  %v2137_v1 = vsel %vm1521_vm4, %v2090_v7, 0.0 }
 0x399   : > { %v1938_v52 = vpop.f32.mrf.mxu0 }
 0x39a   : > { %v6757_v40 = vadd.f32 %v6677_v44, %v1938_v52  ;;  %v2021_v52 = vsel %vm1521_vm4, %v6747_v3, 0.0 }
 0x39b   : > { %v2022_v54 = vadd.f32 %v2021_v52, %v2020_v41  ;;  %v2091_v41 = vmul.f32 %v6814_v16, %v6814_v16 }
 0x39c   : > { %v2084_v28 = vmul.f32 %v6757_v40, %v6757_v40 }
 0x3a0   : > { %v6682_v0 = vpop.f32.mrf.mxu2 }
 0x3a1   : > { %v1941_v50 = vpop.f32.mrf.mxu0 }
 0x3a2   : > { %v6765_v14 = vadd.f32 %v6677_v44, %v1941_v50  ;;  %v2023_v50 = vsel %vm1521_vm4, %v6757_v40, 0.0 }
 0x3a3   : > { %v2024_v33 = vadd.f32 %v2023_v50, %v2022_v54  ;;  %v2037_v54 = vsel %vm1521_vm4, %v6814_v16, 0.0 }
 0x3a4   : > { %v2085_v36 = vmul.f32 %v6765_v14, %v6765_v14  ;;  %v2025_v10 = vsel %vm1521_vm4, %v6765_v14, 0.0 }
 0x3a5   : > { %v2026_v23 = vadd.f32 %v2025_v10, %v2024_v33  ;;  %v2039_v33 = vsel %vm1521_vm4, %v6824_v8, 0.0 }
 0x3a6   : > { %v2127_v51 = vsel %vm1521_vm4, %v2085_v36, 0.0 }
 0x3a8   : > { %v6714_v9 = vpop.f32.mrf.mxu2 }
 0x3a9   : > { %v1944_v12 = vpop.f32.mrf.mxu0 }
 0x3aa   : > { %v6773_v34 = vadd.f32 %v6677_v44, %v1944_v12  ;;  %v2125_v12 = vsel %vm1521_vm4, %v2084_v28, 0.0 }
 0x3ab   : > { %v2126_v11 = vadd.f32 %v2125_v12, %v2124_v58  ;;  %v6846_v12 = vadd.f32 %v6677_v44, %v6672_v2  ;;  %v2139_v58 = vsel %vm1521_vm4, %v2091_v41, 0.0 }
 0x3ac   : > { %v2086_v38 = vmul.f32 %v6773_v34, %v6773_v34  ;;  %v2027_v13 = vsel %vm1521_vm4, %v6773_v34, 0.0 }
 0x3ad   : > { %v2128_v56 = vadd.f32 %v2127_v51, %v2126_v11  ;;  %v2028_v22 = vadd.f32 %v2027_v13, %v2026_v23  ;;  %v2093_v51 = vmul.f32 %v6836_v17, %v6836_v17  ;;  %v6855_v13 = vadd.f32 %v6677_v44, %v6682_v0 }
 0x3ae   : > { %v2129_v43 = vsel %vm1521_vm4, %v2086_v38, 0.0  ;;  %v2041_v23 = vsel %vm1521_vm4, %v6836_v17, 0.0 }
 0x3af   : > { %v2130_v21 = vadd.f32 %v2129_v43, %v2128_v56  ;;  %v2094_v43 = vmul.f32 %v6846_v12, %v6846_v12  ;;  %v2143_v56 = vsel %vm1521_vm4, %v2093_v51, 0.0  ;;  %v2095_v0 = vmul.f32 %v6855_v13, %v6855_v13 }
 0x3b0   : > { %v6749_v57 = vpop.f32.mrf.mxu2 }
 0x3b1   : > { %v1947_v53 = vpop.f32.mrf.mxu0  ;;  %v2147_v7 = vsel %vm1521_vm4, %v2095_v0, 0.0 }
 0x3b2   : > { %v6781_v48 = vadd.f32 %v6677_v44, %v1947_v53 }
 0x3b4   : > { %v2087_v6 = vmul.f32 %v6781_v48, %v6781_v48  ;;  %v2029_v61 = vsel %vm1521_vm4, %v6781_v48, 0.0 }
 0x3b5   : > { %v2030_v24 = vadd.f32 %v2029_v61, %v2028_v22  ;;  %v2043_v22 = vsel %vm1521_vm4, %v6846_v12, 0.0 }
 0x3b6   : > { %v2131_v25 = vsel %vm1521_vm4, %v2087_v6, 0.0 }
 0x3b7   : > { %v2132_v60 = vadd.f32 %v2131_v25, %v2130_v21  ;;  %v6869_v25 = vadd.f32 %v6677_v44, %v6714_v9 }
 0x3b8   : > { %v6783_v27 = vpop.f32.mrf.mxu2 }
 0x3b9   : > { %v1950_v63 = vpop.f32.mrf.mxu0 }
 0x3ba   : > { %v6791_v42 = vadd.f32 %v6677_v44, %v1950_v63  ;;  %v2092_v63 = vmul.f32 %v6824_v8, %v6824_v8 }
 0x3bc   : > { %v2088_v29 = vmul.f32 %v6791_v42, %v6791_v42  ;;  %v2031_v53 = vsel %vm1521_vm4, %v6791_v42, 0.0  ;;  %v2141_v2 = vsel %vm1521_vm4, %v2092_v63, 0.0 }
 0x3bd   : > { %v2032_v49 = vadd.f32 %v2031_v53, %v2030_v24  ;;  %v2145_v24 = vsel %vm1521_vm4, %v2094_v43, 0.0 }
 0x3be   : > { %v2133_v20 = vsel %vm1521_vm4, %v2088_v29, 0.0 }
 0x3bf   : > { %v2134_v52 = vadd.f32 %v2133_v20, %v2132_v60  ;;  %v2045_v20 = vsel %vm1521_vm4, %v6855_v13, 0.0 }
 0x3c0   : > { %v6810_v5 = vpop.f32.mrf.mxu2 }
 0x3c1   : > { %v1953_v62 = vpop.f32.mrf.mxu0 }
 0x3c2   : > { %v6818_v59 = vadd.f32 %v6677_v44, %v1953_v62 }
 0x3c4   : > { %v2033_v31 = vsel %vm1521_vm4, %v6818_v59, 0.0  ;;  %v2089_v47 = vmul.f32 %v6818_v59, %v6818_v59 }
 0x3c5   : > { %v2034_v28 = vadd.f32 %v2033_v31, %v2032_v49  ;;  %v2096_v31 = vmul.f32 %v6869_v25, %v6869_v25 }
 0x3c6   : > { %v2135_v39 = vsel %vm1521_vm4, %v2089_v47, 0.0  ;;  %v6879_v47 = vadd.f32 %v6677_v44, %v6749_v57 }
 0x3c7   : > { %v2036_v50 = vadd.f32 %v2035_v4, %v2034_v28  ;;  %v2136_v36 = vadd.f32 %v2135_v39, %v2134_v52  ;;  %v2047_v52 = vsel %vm1521_vm4, %v6869_v25, 0.0  ;;  %v2149_v4 = vsel %vm1521_vm4, %v2096_v31, 0.0 }
 0x3c8   : > { %v1986_v10 = vpop.f32.mrf.mxu2  ;;  %v2097_v41 = vmul.f32 %v6879_v47, %v6879_v47  ;;  %v6888_v39 = vadd.f32 %v6677_v44, %v6783_v27  ;;  %v2049_v57 = vsel %vm1521_vm4, %v6879_v47, 0.0 }
 0x3c9   : > { %v2038_v38 = vadd.f32 %v2037_v54, %v2036_v50  ;;  %v2138_v18 = vadd.f32 %v2137_v1, %v2136_v36 }
 0x3ca   : > { %v2151_v54 = vsel %vm1521_vm4, %v2097_v41, 0.0  ;;  %v2098_v63 = vmul.f32 %v6888_v39, %v6888_v39  ;;  %v2051_v27 = vsel %vm1521_vm4, %v6888_v39, 0.0 }
 0x3cb   : > { %v2040_v6 = vadd.f32 %v2039_v33, %v2038_v38  ;;  %v2140_v11 = vadd.f32 %v2139_v58, %v2138_v18  ;;  %v6897_v38 = vadd.f32 %v6677_v44, %v6810_v5 }
 0x3cc   : > { %v2153_v33 = vsel %vm1521_vm4, %v2098_v63, 0.0 }
 0x3cd   : > { %v2042_v61 = vadd.f32 %v2041_v23, %v2040_v6  ;;  %v2142_v29 = vadd.f32 %v2141_v2, %v2140_v11  ;;  %v2099_v51 = vmul.f32 %v6897_v38, %v6897_v38  ;;  %v6905_v6 = vadd.f32 %v6677_v44, %v1986_v10 }
 0x3ce   : > { %v2053_v23 = vsel %vm1521_vm4, %v6897_v38, 0.0 }
 0x3cf   : > { %v2044_v53 = vadd.f32 %v2043_v22, %v2042_v61  ;;  %v2144_v21 = vadd.f32 %v2143_v56, %v2142_v29  ;;  %v2155_v43 = vsel %vm1521_vm4, %v2099_v51, 0.0  ;;  %v2100_v61 = vmul.f32 %v6905_v6, %v6905_v6 }
 0x3d0   : > { %v1989_v62 = vpop.f32.mrf.mxu2  ;;  %v2055_v22 = vsel %vm1521_vm4, %v6905_v6, 0.0 }
 0x3d1   : > { %v2146_v60 = vadd.f32 %v2145_v24, %v2144_v21  ;;  %v2046_v49 = vadd.f32 %v2045_v20, %v2044_v53  ;;  %v6913_v29 = vadd.f32 %v6677_v44, %v1989_v62  ;;  %v2157_v0 = vsel %vm1521_vm4, %v2100_v61, 0.0 }
 0x3d3   : > { %v2148_v9 = vadd.f32 %v2147_v7, %v2146_v60  ;;  %v2048_v28 = vadd.f32 %v2047_v52, %v2046_v49  ;;  %v2101_v53 = vmul.f32 %v6913_v29, %v6913_v29  ;;  %v2057_v62 = vsel %vm1521_vm4, %v6913_v29, 0.0 }
 0x3d5   : > { %v2150_v50 = vadd.f32 %v2149_v4, %v2148_v9  ;;  %v2050_v1 = vadd.f32 %v2049_v57, %v2048_v28  ;;  %v2159_v31 = vsel %vm1521_vm4, %v2101_v53, 0.0 }
 0x3d7   : > { %v2152_v18 = vadd.f32 %v2151_v54, %v2150_v50  ;;  %v2052_v58 = vadd.f32 %v2051_v27, %v2050_v1 }
 0x3d8   : > { %v1992_v36 = vpop.f32.mrf.mxu2 }
 0x3d9   : > { %v2154_v11 = vadd.f32 %v2153_v33, %v2152_v18  ;;  %v2054_v5 = vadd.f32 %v2053_v23, %v2052_v58  ;;  %v6921_v21 = vadd.f32 %v6677_v44, %v1992_v36 }
 0x3db   : > { %v2156_v56 = vadd.f32 %v2155_v43, %v2154_v11  ;;  %v2056_v10 = vadd.f32 %v2055_v22, %v2054_v5  ;;  %v2102_v9 = vmul.f32 %v6921_v21, %v6921_v21  ;;  %v2059_v4 = vsel %vm1521_vm4, %v6921_v21, 0.0 }
 0x3dd   : > { %v2158_v20 = vadd.f32 %v2157_v0, %v2156_v56  ;;  %v2058_v7 = vadd.f32 %v2057_v62, %v2056_v10  ;;  %v2161_v57 = vsel %vm1521_vm4, %v2102_v9, 0.0 }
 0x3df   : > { %v2160_v28 = vadd.f32 %v2159_v31, %v2158_v20  ;;  %v2060_v36 = vadd.f32 %v2059_v4, %v2058_v7 }
 0x3e0   : > { %v1995_v2 = vpop.f32.mrf.mxu2 }
 0x3e1   : > { %v6924_v24 = vadd.f32 %v6677_v44, %v1995_v2  ;;  %v2162_v63 = vadd.f32 %v2161_v57, %v2160_v28 }
 0x3e3   : > { %v2103_v52 = vmul.f32 %v6924_v24, %v6924_v24  ;;  %v2061_v41 = vsel %vm1521_vm4, %v6924_v24, 0.0 }
 0x3e4   : > { %v2062_v18 = vadd.f32 %v2061_v41, %v2060_v36 }
 0x3e5   : > { %v2163_v1 = vsel %vm1521_vm4, %v2103_v52, 0.0 }
 0x3e6   : > { %v2164_v51 = vadd.f32 %v2163_v1, %v2162_v63 }
 0x3e8   : > { %v1998_v60 = vpop.f32.mrf.mxu2 }
 0x3e9   : > { %v6929_v49 = vadd.f32 %v6677_v44, %v1998_v60 }
 0x3eb   : > { %v2104_v50 = vmul.f32 %v6929_v49, %v6929_v49  ;;  %v2063_v54 = vsel %vm1521_vm4, %v6929_v49, 0.0 }
 0x3ec   : > { %v2064_v11 = vadd.f32 %v2063_v54, %v2062_v18 }
 0x3ed   : > { %v2165_v58 = vsel %vm1521_vm4, %v2104_v50, 0.0 }
 0x3ee   : > { %v2166_v5 = vadd.f32 %v2165_v58, %v2164_v51 }
 0x3f0   : > { %v2001_v27 = vpop.f32.mrf.mxu2 }
 0x3f1   : > { %v2002_v33 = vadd.f32 %v6677_v44, %v2001_v27 }
 0x3f3   : > { %v2065_v2 = vsel %vm1521_vm4, %v2002_v33, 0.0  ;;  %v2105_v23 = vmul.f32 %v2002_v33, %v2002_v33 }
 0x3f4   : > { %v2066_v43 = vadd.f32 %v2065_v2, %v2064_v11 }
 0x3f5   : > { %v2167_v61 = vsel %vm1521_vm4, %v2105_v23, 0.0 }
 0x3f6   : > { %v2067_v56 = vrot.slane %v2066_v43, 4  ;;  %v2168_v22 = vadd.f32 %v2167_v61, %v2166_v5 }
 0x3f8   : > { %v2068_v10 = vadd.f32 %v2067_v56, %v2066_v43  ;;  %v2169_v0 = vrot.slane %v2168_v22, 4  ;;  %v6981_v43 = vld [vmem:[%s9676_s4] ss:$0 sm:$0xff] }
 0x3fa   : > { %v2069_v53 = vrot.slane %v2068_v10, 2  ;;  %v2170_v20 = vadd.f32 %v2169_v0, %v2168_v22 }
 0x3fc   : > { %v2070_v60 = vadd.f32 %v2069_v53, %v2068_v10  ;;  %v2171_v62 = vrot.slane %v2170_v20, 2 }
 0x3fe   : > { %v2071_v7 = vrot.slane %v2070_v60, 1  ;;  %v2172_v31 = vadd.f32 %v2171_v62, %v2170_v20 }
 0x400   : > { %v2072_v44 = vadd.f32 %v2071_v7, %v2070_v60  ;;  %v2173_v9 = vrot.slane %v2172_v31, 1 }
 0x402   : > { %v6950_v52 = vmul.f32 0.00390625, %v2072_v44  ;;  %v2174_v28 = vadd.f32 %v2173_v9, %v2172_v31 }
 0x404   : > { %v2175_v4 = vmul.f32 0.00390625, %v2174_v28  ;;  %v2176_v41 = vmul.f32 %v6950_v52, %v6950_v52  ;;  %v2209_v50 = vsub.f32 %v2002_v33, %v6950_v52  ;;  %v2205_v1 = vsub.f32 %v6913_v29, %v6950_v52  ;;  %v6966_v29 = vld [vmem:[%s9675_s3] ss:$0 sm:$0xff] }
 0x405   : > { %v2206_v54 = vsub.f32 %v6921_v21, %v6950_v52  ;;  %v2207_v63 = vsub.f32 %v6924_v24, %v6950_v52  ;;  %v2208_v18 = vsub.f32 %v6929_v49, %v6950_v52  ;;  %v2180_v21 = vsub.f32 %v6688_v26, %v6950_v52 }
 0x406   : > { %v2177_v36 = vsub.f32 %v2175_v4, %v2176_v41  ;;  %v2181_v24 = vsub.f32 %v6693_v19, %v6950_v52  ;;  %v2178_v23 = vsub.f32 %v6685_v55, %v6950_v52  ;;  %v2179_v5 = vsub.f32 %v6680_v45, %v6950_v52 }
 0x407   : > { %v2192_v26 = vsub.f32 %v6791_v42, %v6950_v52  ;;  %v2193_v55 = vsub.f32 %v6818_v59, %v6950_v52  ;;  %v2194_v45 = vsub.f32 %v6805_v32, %v6950_v52  ;;  %v2195_v22 = vsub.f32 %v6814_v16, %v6950_v52 }
 0x408   : > { %v2210_v57 = vadd.f32 1e-05, %v2177_v36  ;;  %v2196_v10 = vsub.f32 %v6824_v8, %v6950_v52  ;;  %v2197_v42 = vsub.f32 %v6836_v17, %v6950_v52  ;;  %v2198_v59 = vsub.f32 %v6846_v12, %v6950_v52 }
 0x409   : > { %v2199_v32 = vsub.f32 %v6855_v13, %v6950_v52  ;;  %v2200_v16 = vsub.f32 %v6869_v25, %v6950_v52  ;;  %v2201_v8 = vsub.f32 %v6879_v47, %v6950_v52  ;;  %v2202_v60 = vsub.f32 %v6888_v39, %v6950_v52 }
 0x40a   : > { %4572 = vrsqrt.f32 %v2210_v57  ;;  %vm2217_vm14 = vweird.f32 %v2210_v57  ;;  %v2203_v17 = vsub.f32 %v6897_v38, %v6950_v52  ;;  %v2204_v12 = vsub.f32 %v6905_v6, %v6950_v52 }
 0x410   : > { %v4573_v27 = vpop.eup %4572 }
 0x411   : > { %v2212_v58 = vmul.f32 %v4573_v27, %v2210_v57  ;;  %vm2218_vm13 = vweird.f32 %v4573_v27 }
 0x412   : > { %vm2219_vm15 = vmor %vm2217_vm14, %vm2218_vm13 }
 0x413   : > { %v2213_v51 = vmul.f32 %v4573_v27, %v2212_v58 }
 0x415   : > { %v2214_v11 = vmul.f32 0.5, %v2213_v51 }
 0x417   : > { %v2215_v33 = vsub.f32 1.5, %v2214_v11 }
 0x419   : > { %v2216_v2 = vmul.f32 %v4573_v27, %v2215_v33 }
 0x41b   : > { %v6972_v49 = vsel %vm2219_vm15, %v4573_v27, %v2216_v2 }
 0x41c   : > { %v2252_v61 = vmul.f32 %v6972_v49, %v2209_v50  ;;  %v2223_v19 = vmul.f32 %v6972_v49, %v2180_v21  ;;  %v2224_v56 = vmul.f32 %v6972_v49, %v2181_v24  ;;  %v2221_v13 = vmul.f32 %v6972_v49, %v2178_v23 }
 0x41d   : > { %v2222_v25 = vmul.f32 %v6972_v49, %v2179_v5  ;;  %v2235_v31 = vmul.f32 %v6972_v49, %v2192_v26  ;;  %v2239_v39 = vmul.f32 %v6972_v49, %v2196_v10  ;;  %v2240_v9 = vmul.f32 %v6972_v49, %v2197_v42 }
 0x41e   : > { %v6997_v0 = vmul.f32 %v6966_v29, %v2252_v61  ;;  %v2259_v53 = vmul.f32 %v6966_v29, %v2223_v19  ;;  %v2260_v20 = vmul.f32 %v6966_v29, %v2224_v56  ;;  %v2241_v38 = vmul.f32 %v6972_v49, %v2198_v59 }
 0x41f   : > { %v2242_v28 = vmul.f32 %v6972_v49, %v2199_v32  ;;  %v2243_v4 = vmul.f32 %v6972_v49, %v2200_v16  ;;  %v2244_v6 = vmul.f32 %v6972_v49, %v2201_v8  ;;  %v2245_v57 = vmul.f32 %v6972_v49, %v2202_v60 }
 0x420   : > { %v2295_v62 = vadd.f32 %v6981_v43, %v2259_v53  ;;  %v2296_v7 = vadd.f32 %v6981_v43, %v2260_v20  ;;  %v2246_v27 = vmul.f32 %v6972_v49, %v2203_v17  ;;  %v2247_v58 = vmul.f32 %v6972_v49, %v2204_v12 }
 0x421   : > { %v2248_v51 = vmul.f32 %v6972_v49, %v2205_v1  ;;  %v2249_v11 = vmul.f32 %v6972_v49, %v2206_v54  ;;  %v2250_v21 = vmul.f32 %v6972_v49, %v2207_v63  ;;  %v2251_v24 = vmul.f32 %v6972_v49, %v2208_v18 }
 0x422   : > { %v2327_v47 = vmax.f32 %v2295_v62, 0.0  ;;  %v2328_v44 = vmax.f32 %v2296_v7, 0.0  ;;  %v2236_v61 = vmul.f32 %v6972_v49, %v2193_v55  ;;  %v2182_v1 = vsub.f32 %v6702_v37, %v6950_v52 }
 0x423   : > { %v2183_v54 = vsub.f32 %v6712_v15, %v6950_v52  ;;  %v2237_v19 = vmul.f32 %v6972_v49, %v2194_v45  ;;  %v2238_v56 = vmul.f32 %v6972_v49, %v2195_v22  ;;  %v2257_v15 = vmul.f32 %v6966_v29, %v2221_v13 }
 0x424   : > { %v2421_v41 = vrot.slane %v2327_v47, 7  ;;  %v2422_v50 = vrot.slane %v2328_v44, 7  ;;  %v2516_v36 = vrot.slane %v2328_v44, 5  ;;  %v2373_v26 = vrot.slane %v2327_v47, 1 }
 0x425   : > { %v2225_v55 = vmul.f32 %v6972_v49, %v2182_v1  ;;  %v2226_v37 = vmul.f32 %v6972_v49, %v2183_v54  ;;  %v2258_v45 = vmul.f32 %v6966_v29, %v2222_v25  ;;  %v7064_v22 = vmul.f32 %v6966_v29, %v2235_v31 }
 0x426   : > { %v7034_v33 = vsel %vm429_vm0, %v2421_v41, %v2422_v50  ;;  %v7037_v2 = vsel %vm429_vm0, %v2422_v50, %v2516_v36  ;;  %v7054_v18 = vsel %vm429_vm0, %v2373_v26, %v2421_v41  ;;  %v7067_v42 = vmul.f32 %v6966_v29, %v2236_v61 }
 0x427   : > { %v2611_v23 = vrot.slane %v7034_v33, 1  ;;  %v2613_v5 = vrot.slane %v7037_v2, 1  ;;  %v2610_v10 = vrot.slane %v7054_v18, 1  ;;  %v7073_v20 = vmul.f32 %v6966_v29, %v2237_v19 }
 0x428   : > { %v7076_v59 = vmul.f32 %v6966_v29, %v2238_v56  ;;  %v7079_v32 = vmul.f32 %v6966_v29, %v2239_v39  ;;  %v7084_v16 = vmul.f32 %v6966_v29, %v2240_v9  ;;  %v7087_v8 = vmul.f32 %v6966_v29, %v2241_v38 }
 0x429   : > { %v7051_v63 = vsel %vm619_vm1, %v2611_v23, %v2613_v5  ;;  %v7070_v53 = vsel %vm619_vm1, %v2610_v10, %v2611_v23  ;;  %v7090_v60 = vmul.f32 %v6966_v29, %v2242_v28  ;;  %v7093_v17 = vmul.f32 %v6966_v29, %v2243_v4 }
 0x42a   : > { %10426 = vst [vmem:[#allocation58_spill] sm:$0xff] %v7051_v63  ;;  %2774 = vrot.lane.b32.xlu1 %v7051_v63, %s4616_s15  ;;  %2772 = vrot.lane.b32.xlu0 %v7070_v53, %s4616_s15  ;;  %v7096_v62 = vmul.f32 %v6966_v29, %v2244_v6  ;;  %v7099_v7 = vmul.f32 %v6966_v29, %v2245_v57 }
 0x42b   : > { %10427 = vst [vmem:[#allocation97_spill] sm:$0xff] %v7070_v53  ;;  %v7102_v12 = vmul.f32 %v6966_v29, %v2246_v27  ;;  %v7105_v13 = vmul.f32 %v6966_v29, %v2247_v58  ;;  %v7108_v25 = vmul.f32 %v6966_v29, %v2248_v51  ;;  %v7111_v31 = vmul.f32 %v6966_v29, %v2249_v11 }
 0x42c   : > { %v7114_v47 = vmul.f32 %v6966_v29, %v2250_v21  ;;  %v7117_v44 = vmul.f32 %v6966_v29, %v2251_v24  ;;  %v2293_v39 = vadd.f32 %v6981_v43, %v2257_v15  ;;  %v7121_v9 = vadd.f32 %v6981_v43, %v2258_v45 }
 0x42d   : > { %v2261_v38 = vmul.f32 %v6966_v29, %v2225_v55  ;;  %v2262_v28 = vmul.f32 %v6966_v29, %v2226_v37  ;;  %v2184_v41 = vsub.f32 %v6723_v35, %v6950_v52  ;;  %v2185_v50 = vsub.f32 %v6731_v46, %v6950_v52 }
 0x42e   : > { %v2325_v4 = vmax.f32 %v2293_v39, 0.0  ;;  %v2326_v6 = vmax.f32 %v7121_v9, 0.0  ;;  %v2186_v36 = vsub.f32 %v6739_v30, %v6950_v52  ;;  %v2187_v57 = vsub.f32 %v6747_v3, %v6950_v52 }
 0x42f   : > { %v2188_v27 = vsub.f32 %v6757_v40, %v6950_v52  ;;  %v2189_v21 = vsub.f32 %v6765_v14, %v6950_v52  ;;  %v2190_v35 = vsub.f32 %v6773_v34, %v6950_v52  ;;  %v2297_v46 = vadd.f32 %v6981_v43, %v2261_v38 }
 0x430   : > { %v2374_v58 = vrot.slane %v2325_v4, 1  ;;  %v2424_v51 = vrot.slane %v2325_v4, 7  ;;  %v2425_v11 = vrot.slane %v2326_v6, 7  ;;  %v7142_v24 = vadd.f32 %v6981_v43, %v2262_v28 }
 0x431   : > { %v2191_v30 = vsub.f32 %v6781_v48, %v6950_v52  ;;  %v2227_v3 = vmul.f32 %v6972_v49, %v2184_v41  ;;  %v2228_v14 = vmul.f32 %v6972_v49, %v2185_v50  ;;  %v2229_v34 = vmul.f32 %v6972_v49, %v2186_v36 }
 0x432   : > { %v7148_v40 = vsel %vm429_vm0, %v2424_v51, %v2425_v11  ;;  %v7151_v23 = vsel %vm429_vm0, %v2374_v58, %v2424_v51  ;;  %v2230_v26 = vmul.f32 %v6972_v49, %v2187_v57  ;;  %v2231_v48 = vmul.f32 %v6972_v49, %v2188_v27 }
 0x433   : > { %10428 = vst [vmem:[#allocation126_spill] sm:$0xff] %v7148_v40  ;;  %v2615_v5 = vrot.slane %v7151_v23, 1  ;;  %v2616_v61 = vrot.slane %v7148_v40, 1  ;;  %v2232_v52 = vmul.f32 %v6972_v49, %v2189_v21  ;;  %v2233_v1 = vmul.f32 %v6972_v49, %v2190_v35 }
 0x434   : > { %v2234_v54 = vmul.f32 %v6972_v49, %v2191_v30  ;;  %v2329_v56 = vmax.f32 %v2297_v46, 0.0  ;;  %v2330_v55 = vmax.f32 %v7142_v24, 0.0  ;;  %v2263_v37 = vmul.f32 %v6966_v29, %v2227_v3 }
 0x435   : > { %v7163_v19 = vsel %vm619_vm1, %v2615_v5, %v2616_v61  ;;  %v2264_v10 = vmul.f32 %v6966_v29, %v2228_v14  ;;  %v2265_v49 = vmul.f32 %v6966_v29, %v2229_v34  ;;  %v2266_v9 = vmul.f32 %v6966_v29, %v2230_v26 }
 0x436   : > { %10429 = vst [vmem:[#allocation44_spill] sm:$0xff] %v7163_v19  ;;  %2776 = vrot.lane.b32.xlu2 %v7163_v19, %s4616_s15  ;;  %v2375_v15 = vrot.slane %v2329_v56, 1  ;;  %v2427_v45 = vrot.slane %v2329_v56, 7  ;;  %v7172_v39 = vrot.slane %v2330_v55, 7  ;;  %v2267_v38 = vmul.f32 %v6966_v29, %v2231_v48 }
 0x437   : > { %v2268_v28 = vmul.f32 %v6966_v29, %v2232_v52  ;;  %v2269_v4 = vmul.f32 %v6966_v29, %v2233_v1  ;;  %v2270_v41 = vmul.f32 %v6966_v29, %v2234_v54  ;;  %v2299_v58 = vadd.f32 %v6981_v43, %v2263_v37 }
 0x438   : > { %v7182_v50 = vsel %vm429_vm0, %v2427_v45, %v7172_v39  ;;  %v7185_v36 = vsel %vm429_vm0, %v2375_v15, %v2427_v45  ;;  %v2300_v51 = vadd.f32 %v6981_v43, %v2264_v10  ;;  %v2301_v21 = vadd.f32 %v6981_v43, %v2265_v49 }
 0x439   : > { %v2620_v57 = vrot.slane %v7185_v36, 1  ;;  %v2621_v27 = vrot.slane %v7182_v50, 1  ;;  %v7193_v35 = vadd.f32 %v6981_v43, %v2266_v9  ;;  %v2303_v29 = vadd.f32 %v6981_v43, %v2267_v38 }
 0x43a   : > { %v7202_v30 = vadd.f32 %v6981_v43, %v2268_v28  ;;  %v7205_v3 = vadd.f32 %v6981_v43, %v2269_v4  ;;  %v7208_v14 = vadd.f32 %v6981_v43, %v2270_v41  ;;  %v7212_v34 = vadd.f32 %v6981_v43, %v7064_v22 }
 0x43b   : > { %v7199_v46 = vsel %vm619_vm1, %v2620_v57, %v2621_v27  ;;  %v7218_v5 = vadd.f32 %v6981_v43, %v7067_v42  ;;  %v7222_v26 = vadd.f32 %v6981_v43, %v7073_v20  ;;  %v7226_v48 = vadd.f32 %v6981_v43, %v7076_v59 }
 0x43c   : > { %10430 = vst [vmem:[#allocation63_spill] sm:$0xff] %v7199_v46  ;;  %2780 = vrot.lane.b32.xlu1 %v7199_v46, %s4616_s15  ;;  %v2517_v52 = vrot.slane %v2326_v6, 5  ;;  %v7230_v22 = vadd.f32 %v6981_v43, %v7079_v32  ;;  %v7234_v1 = vadd.f32 %v6981_v43, %v7084_v16  ;;  %v7238_v42 = vadd.f32 %v6981_v43, %v7087_v8 }
 0x43d   : > { %v2331_v54 = vmax.f32 %v2299_v58, 0.0  ;;  %v7242_v20 = vadd.f32 %v6981_v43, %v7090_v60  ;;  %v7246_v59 = vadd.f32 %v6981_v43, %v7093_v17  ;;  %v7250_v32 = vadd.f32 %v6981_v43, %v7096_v62 }
 0x43e   : > { %v7253_v16 = vsel %vm429_vm0, %v2425_v11, %v2517_v52  ;;  %v7257_v8 = vadd.f32 %v6981_v43, %v7099_v7  ;;  %v7261_v6 = vadd.f32 %v6981_v43, %v7102_v12  ;;  %v7265_v60 = vadd.f32 %v6981_v43, %v7105_v13 }
 0x43f   : > { %v2618_v17 = vrot.slane %v7253_v16, 1  ;;  %v7270_v62 = vadd.f32 %v6981_v43, %v7108_v25  ;;  %v7274_v11 = vadd.f32 %v6981_v43, %v7111_v31  ;;  %v2333_v7 = vmax.f32 %v2301_v21, 0.0 }
 0x440   : > { %v2335_v56 = vmax.f32 %v2303_v29, 0.0  ;;  %v2332_v37 = vmax.f32 %v2300_v51, 0.0  ;;  %v2376_v10 = vrot.slane %v2331_v54, 1  ;;  %v2430_v15 = vrot.slane %v2331_v54, 7 }
 0x441   : > { %v7277_v12 = vsel %vm619_vm1, %v2616_v61, %v2618_v17  ;;  %v7281_v13 = vadd.f32 %v6981_v43, %v7114_v47  ;;  %v2334_v45 = vmax.f32 %v7193_v35, 0.0  ;;  %v2336_v25 = vmax.f32 %v7202_v30, 0.0 }
 0x442   : > { %10431 = vst [vmem:[#allocation98_spill] sm:$0xff] %v7277_v12  ;;  %v2337_v49 = vmax.f32 %v7205_v3, 0.0  ;;  %2778 = vrot.lane.b32.xlu0 %v7277_v12, %s4616_s15  ;;  %v2338_v31 = vmax.f32 %v7208_v14, 0.0  ;;  %v9782_v61 = vmax.f32 %v7212_v34, 0.0  ;;  %v9783_v9 = vmax.f32 %v7218_v5, 0.0 }
 0x443   : > { %v9785_v38 = vmax.f32 %v7222_v26, 0.0  ;;  %v9784_v47 = vmax.f32 %v7226_v48, 0.0  ;;  %v2377_v4 = vrot.slane %v2333_v7, 1  ;;  %v2378_v41 = vrot.slane %v2335_v56, 1 }
 0x444   : > { %v2518_v57 = vrot.slane %v2330_v55, 5  ;;  %v2431_v58 = vrot.slane %v2332_v37, 7  ;;  %v2519_v51 = vrot.slane %v2332_v37, 5  ;;  %v7297_v21 = vsel %vm429_vm0, %v2376_v10, %v2430_v15 }
 0x445   : > { %v2433_v35 = vrot.slane %v2333_v7, 7  ;;  %v2434_v29 = vrot.slane %v2334_v45, 7  ;;  %v2436_v30 = vrot.slane %v2335_v56, 7  ;;  %v2437_v3 = vrot.slane %v2336_v25, 7 }
 0x446   : > { %v7301_v14 = vsel %vm429_vm0, %v7172_v39, %v2518_v57  ;;  %v7304_v52 = vsel %vm429_vm0, %v2430_v15, %v2431_v58  ;;  %v7307_v54 = vsel %vm429_vm0, %v2431_v58, %v2519_v51  ;;  %v2625_v24 = vrot.slane %v7297_v21, 1 }
 0x447   : > { %v2623_v17 = vrot.slane %v7301_v14, 1  ;;  %v2626_v7 = vrot.slane %v7304_v52, 1  ;;  %v2628_v56 = vrot.slane %v7307_v54, 1  ;;  %v7316_v39 = vrot.slane %v9782_v61, 7 }
 0x448   : > { %v7320_v37 = vrot.slane %v9783_v9, 7  ;;  %v7324_v10 = vrot.slane %v9785_v38, 7  ;;  %v2520_v15 = vrot.slane %v2334_v45, 5  ;;  %v7335_v51 = vsel %vm429_vm0, %v2433_v35, %v2434_v29 }
 0x449   : > { %v7329_v57 = vsel %vm619_vm1, %v2621_v27, %v2623_v17  ;;  %v7332_v58 = vsel %vm619_vm1, %v2626_v7, %v2628_v56  ;;  %10434 = vst [vmem:[#allocation59_spill] sm:$0xff] %v7335_v51  ;;  %v7338_v61 = vsel %vm429_vm0, %v2377_v4, %v2433_v35  ;;  %v7342_v9 = vrot.slane %v9784_v47, 7 }
 0x44a   : > { %10432 = vst [vmem:[#allocation127_spill] sm:$0xff] %v7329_v57  ;;  %2782 = vrot.lane.b32.xlu2 %v7329_v57, %s4616_s15  ;;  %2786 = vrot.lane.b32.xlu1 %v7332_v58, %s4616_s15  ;;  %v7349_v27 = vsel %vm619_vm1, %v2625_v24, %v2626_v7  ;;  %v7352_v45 = vsel %vm429_vm0, %v2436_v30, %v2437_v3  ;;  %v2439_v7 = vrot.slane %v2337_v49, 7  ;;  %v2630_v38 = vrot.slane %v7338_v61, 1 }
 0x44b   : > { %10433 = vst [vmem:[#allocation155_spill] sm:$0xff] %v7332_v58  ;;  %v7355_v17 = vsel %vm429_vm0, %v2378_v41, %v2436_v30  ;;  %2784 = vrot.lane.b32.xlu0 %v7349_v27, %s4616_s15  ;;  %v7363_v47 = vsel %vm429_vm0, %v2434_v29, %v2520_v15  ;;  %v7370_v41 = vsel %vm429_vm0, %v7316_v39, %v7320_v37  ;;  %v2631_v30 = vrot.slane %v7335_v51, 1 }
 0x44c   : > { %10435 = vst [vmem:[#allocation3_spill] sm:$0xff] %v7338_v61  ;;  %v2635_v55 = vrot.slane %v7355_v17, 1  ;;  %v2636_v56 = vrot.slane %v7352_v45, 1  ;;  %v2521_v35 = vrot.slane %v2336_v25, 5  ;;  %v2633_v29 = vrot.slane %v7363_v47, 1 }
 0x44d   : > { %10436 = vst [vmem:[#allocation87_spill] sm:$0xff] %v7349_v27  ;;  %v2440_v15 = vrot.slane %v2338_v31, 7  ;;  %v2522_v4 = vrot.slane %v2338_v31, 5  ;;  %v7379_v24 = vsel %vm429_vm0, %v7324_v10, %v7342_v9  ;;  %v2379_v27 = vrot.slane %v2337_v49, 1 }
 0x44e   : > { %10437 = vst [vmem:[#allocation117_spill] sm:$0xff] %v7352_v45  ;;  %v10442_v46 = vmax.f32 %v7230_v22, 0.0  ;;  %v10443_v63 = vmax.f32 %v7238_v42, 0.0  ;;  %v10444_v31 = vmax.f32 %v7242_v20, 0.0  ;;  %v10445_v19 = vmax.f32 %v7246_v59, 0.0 }
 0x44f   : > { %10438 = vst [vmem:[#allocation156_spill] sm:$0xff] %v7355_v17  ;;  %v7401_v49 = vsel %vm619_vm1, %v2630_v38, %v2631_v30  ;;  %v7407_v25 = vsel %vm429_vm0, %v2437_v3, %v2521_v35  ;;  %v7423_v38 = vsel %vm429_vm0, %v2439_v7, %v2440_v15  ;;  %v7426_v3 = vsel %vm429_vm0, %v2440_v15, %v2522_v4 }
 0x450   : > { %10439 = vst [vmem:[#allocation64_spill] sm:$0xff] %v7363_v47  ;;  %v7385_v57 = vrot.slane %v10442_v46, 7  ;;  %v7390_v12 = vrot.slane %v10443_v63, 7  ;;  %v7394_v53 = vrot.slane %v10444_v31, 7  ;;  %v7398_v28 = vrot.slane %v10445_v19, 7 }
 0x451   : > { %10440 = vst [vmem:[#allocation2_spill] sm:$0xff] %v7370_v41  ;;  %v7404_v46 = vsel %vm619_vm1, %v2635_v55, %v2636_v56  ;;  %v10449_v63 = vmax.f32 %v7234_v1, 0.0  ;;  %v10450_v47 = vmax.f32 %v7250_v32, 0.0  ;;  %v7420_v19 = vsel %vm619_vm1, %v2631_v30, %v2633_v29 }
 0x452   : > { %10441 = vst [vmem:[#allocation100_spill] sm:$0xff] %v7379_v24  ;;  %2788 = vrot.lane.b32.xlu2 %v7401_v49, %s4616_s15  ;;  %2792 = vrot.lane.b32.xlu1 %v7404_v46, %s4616_s15  ;;  %v7433_v35 = vsel %vm429_vm0, %v2379_v27, %v2439_v7  ;;  %v10456_v15 = vmax.f32 %v7265_v60, 0.0  ;;  %v10457_v27 = vmax.f32 %v7270_v62, 0.0  ;;  %v2641_v29 = vrot.slane %v7423_v38, 1 }
 0x453   : > { %10446 = vst [vmem:[#allocation129_spill] sm:$0xff] %v7401_v49  ;;  %v2449_v58 = vrot.slane %v10449_v63, 7  ;;  %v7413_v31 = vrot.slane %v10450_v47, 7  ;;  %2790 = vrot.lane.b32.xlu0 %v7420_v19, %s4616_s15  ;;  %v10455_v63 = vmax.f32 %v7212_v34, 0.0  ;;  %v7449_v47 = vsel %vm429_vm0, %v7390_v12, %v7394_v53 }
 0x454   : > { %10447 = vst [vmem:[#allocation45_spill] sm:$0xff] %v7404_v46  ;;  %v7444_v55 = vrot.slane %v10456_v15, 7  ;;  %v7453_v7 = vrot.slane %v10457_v27, 7  ;;  %v2638_v46 = vrot.slane %v7407_v25, 1  ;;  %v2643_v34 = vrot.slane %v7426_v3, 1 }
 0x455   : > { %10448 = vst [vmem:[#allocation130_spill] sm:$0xff] %v7407_v25  ;;  %v7437_v30 = vsel %vm429_vm0, %v7385_v57, %v2449_v58  ;;  %v2380_v4 = vrot.slane %v10455_v63, 1  ;;  %v10458_v63 = vmax.f32 %v7222_v26, 0.0  ;;  %v10459_v15 = vmax.f32 %v7257_v8, 0.0 }
 0x456   : > { %10451 = vst [vmem:[#allocation157_spill] sm:$0xff] %v7420_v19  ;;  %v2640_v45 = vrot.slane %v7433_v35, 1  ;;  %v7468_v27 = vsel %vm429_vm0, %v7398_v28, %v7413_v31  ;;  %v10460_v25 = vmax.f32 %v7218_v5, 0.0  ;;  %v10462_v26 = vmax.f32 %v7281_v13, 0.0 }
 0x457   : > { %10452 = vst [vmem:[#allocation62_spill] sm:$0xff] %v7423_v38  ;;  %v2381_v19 = vrot.slane %v10458_v63, 1  ;;  %v7462_v49 = vrot.slane %v10459_v15, 7  ;;  %v10461_v38 = vmax.f32 %v7274_v11, 0.0  ;;  %v10463_v15 = vmax.f32 %v7261_v6, 0.0 }
 0x458   : > { %10453 = vst [vmem:[#allocation99_spill] sm:$0xff] %v7426_v3  ;;  %v2523_v17 = vrot.slane %v10460_v25, 5  ;;  %v7478_v63 = vrot.slane %v10462_v26, 7  ;;  %v7486_v61 = vsel %vm619_vm1, %v2641_v29, %v2643_v34  ;;  %v7490_v5 = vsel %vm429_vm0, %v2380_v4, %v7316_v39 }
 0x459   : > { %10454 = vst [vmem:[#allocation4_spill] sm:$0xff] %v7433_v35  ;;  %v7474_v3 = vrot.slane %v10461_v38, 7  ;;  %v2458_v51 = vrot.slane %v10463_v15, 7  ;;  %v7483_v35 = vsel %vm619_vm1, %v2636_v56, %v2638_v46  ;;  %v7495_v25 = vsel %vm429_vm0, %v7444_v55, %v7453_v7 }
 0x45a   : > { %10464 = vst [vmem:[#allocation140_spill] sm:$0xff] %v7483_v35  ;;  %2794 = vrot.lane.b32.xlu2 %v7483_v35, %s4616_s15  ;;  %2798 = vrot.lane.b32.xlu1 %v7486_v61, %s4616_s15  ;;  %v7502_v56 = vsel %vm619_vm1, %v2640_v45, %v2641_v29  ;;  %v7506_v46 = vsel %vm429_vm0, %v2381_v19, %v7324_v10  ;;  %v2645_v29 = vrot.slane %v7490_v5, 1  ;;  %v2646_v10 = vrot.slane %v7370_v41, 1 }
 0x45b   : > { %10465 = vst [vmem:[#allocation158_spill] sm:$0xff] %v7486_v61  ;;  %v7510_v39 = vsel %vm429_vm0, %v7462_v49, %v2458_v51  ;;  %2796 = vrot.lane.b32.xlu0 %v7502_v56, %s4616_s15  ;;  %v7516_v38 = vsel %vm429_vm0, %v7320_v37, %v2523_v17  ;;  %v7521_v45 = vsel %vm429_vm0, %v7474_v3, %v7478_v63  ;;  %v2650_v19 = vrot.slane %v7506_v46, 1 }
 0x45c   : > { %10466 = vst [vmem:[#allocation48_spill] sm:$0xff] %v7490_v5  ;;  %v2651_v4 = vrot.slane %v7379_v24, 1  ;;  %v2648_v34 = vrot.slane %v7516_v38, 1  ;;  %v10472_v26 = vmax.f32 %v7226_v48, 0.0  ;;  %v10473_v37 = vmax.f32 %v7234_v1, 0.0 }
 0x45d   : > { %10467 = vst [vmem:[#allocation82_spill] sm:$0xff] %v7495_v25  ;;  %v10474_v61 = vmax.f32 %v7230_v22, 0.0  ;;  %v7535_v35 = vsel %vm619_vm1, %v2645_v29, %v2646_v10  ;;  %v10478_v29 = vmax.f32 %v7238_v42, 0.0 }
 0x45e   : > { %10468 = vst [vmem:[#allocation101_spill] sm:$0xff] %v7502_v56  ;;  %v2524_v15 = vrot.slane %v10472_v26, 5  ;;  %v2525_v17 = vrot.slane %v10473_v37, 5  ;;  %v7538_v41 = vsel %vm619_vm1, %v2650_v19, %v2651_v4  ;;  %v7545_v48 = vsel %vm619_vm1, %v2646_v10, %v2648_v34 }
 0x45f   : > { %10469 = vst [vmem:[#allocation112_spill] sm:$0xff] %v7506_v46  ;;  %v2382_v56 = vrot.slane %v10474_v61, 1  ;;  %v2383_v19 = vrot.slane %v10478_v29, 1  ;;  %v2656_v34 = vrot.slane %v7437_v30, 1  ;;  %v10479_v26 = vmax.f32 %v7246_v59, 0.0 }
 0x460   : > { %10470 = vst [vmem:[#allocation132_spill] sm:$0xff] %v7510_v39  ;;  %v7549_v1 = vsel %vm429_vm0, %v7342_v9, %v2524_v15  ;;  %v7552_v22 = vsel %vm429_vm0, %v2449_v58, %v2525_v17  ;;  %v10480_v37 = vmax.f32 %v7242_v20, 0.0  ;;  %v2661_v29 = vrot.slane %v7449_v47, 1 }
 0x461   : > { %10471 = vst [vmem:[#allocation131_spill] sm:$0xff] %v7521_v45  ;;  %v7558_v61 = vsel %vm429_vm0, %v2382_v56, %v7385_v57  ;;  %v2653_v10 = vrot.slane %v7549_v1, 1  ;;  %v2658_v9 = vrot.slane %v7552_v22, 1  ;;  %v2384_v58 = vrot.slane %v10479_v26, 1 }
 0x462   : > { %10475 = vst [vmem:[#allocation148_spill] sm:$0xff] %v7535_v35  ;;  %2800 = vrot.lane.b32.xlu2 %v7535_v35, %s4616_s15  ;;  %2804 = vrot.lane.b32.xlu1 %v7538_v41, %s4616_s15  ;;  %v2655_v15 = vrot.slane %v7558_v61, 1  ;;  %v2526_v17 = vrot.slane %v10480_v37, 5  ;;  %v7578_v56 = vsel %vm429_vm0, %v2383_v19, %v7390_v12  ;;  %v10485_v26 = vmax.f32 %v7261_v6, 0.0 }
 0x463   : > { %10476 = vst [vmem:[#allocation167_spill] sm:$0xff] %v7538_v41  ;;  %2802 = vrot.lane.b32.xlu0 %v7545_v48, %s4616_s15  ;;  %v7571_v57 = vsel %vm619_vm1, %v2651_v4, %v2653_v10  ;;  %v7574_v42 = vsel %vm619_vm1, %v2656_v34, %v2658_v9  ;;  %v7589_v20 = vsel %vm429_vm0, %v2384_v58, %v7398_v28  ;;  %v2660_v4 = vrot.slane %v7578_v56, 1 }
 0x464   : > { %10477 = vst [vmem:[#allocation51_spill] sm:$0xff] %v7545_v48  ;;  %v7585_v59 = vsel %vm619_vm1, %v2655_v15, %v2656_v34  ;;  %v7595_v12 = vsel %vm429_vm0, %v7394_v53, %v2526_v17  ;;  %v2665_v19 = vrot.slane %v7589_v20, 1  ;;  %v2666_v10 = vrot.slane %v7468_v27, 1 }
 0x465   : > { %10481 = vst [vmem:[#allocation83_spill] sm:$0xff] %v7571_v57  ;;  %v10484_v34 = vmax.f32 %v7250_v32, 0.0  ;;  %v2663_v28 = vrot.slane %v7595_v12, 1  ;;  %v2528_v58 = vrot.slane %v10485_v26, 5  ;;  %v10486_v15 = vmax.f32 %v7257_v8, 0.0 }
 0x466   : > { %10482 = vst [vmem:[#allocation90_spill] sm:$0xff] %v7574_v42  ;;  %v7609_v37 = vsel %vm619_vm1, %v2660_v4, %v2661_v29  ;;  %v7612_v17 = vsel %vm619_vm1, %v2665_v19, %v2666_v10  ;;  %v7630_v6 = vadd.f32 %v6981_v43, %v7117_v44  ;;  %v2324_v4 = vadd.f32 %v6981_v43, %v6997_v0 }
 0x467   : > { %10483 = vst [vmem:[#allocation113_spill] sm:$0xff] %v7578_v56  ;;  %v2527_v9 = vrot.slane %v10484_v34, 5  ;;  %v2385_v53 = vrot.slane %v10486_v15, 1  ;;  %v7623_v32 = vsel %vm619_vm1, %v2661_v29, %v2663_v28  ;;  %v7626_v8 = vsel %vm429_vm0, %v2458_v51, %v2528_v58 }
 0x468   : > { %10487 = vst [vmem:[#allocation133_spill] sm:$0xff] %v7612_v17  ;;  %v9835_v29 = vmax.f32 %v7630_v6, 0.0  ;;  %v2671_v51 = vrot.slane %v7510_v39, 1  ;;  %v2673_v34 = vrot.slane %v7626_v8, 1  ;;  %v2356_v44 = vmax.f32 %v2324_v4, 0.0 }
 0x469   : > { %10488 = vst [vmem:[#allocation142_spill] sm:$0xff] %v7623_v32  ;;  %v10491_v26 = vmax.f32 %v7274_v11, 0.0  ;;  %v10492_v0 = vmax.f32 %v7270_v62, 0.0 }
 0x46a   : > { %2806 = vrot.lane.b32.xlu2 %v7571_v57, %s4616_s15  ;;  %2810 = vrot.lane.b32.xlu1 %v7574_v42, %s4616_s15  ;;  %v7616_v42 = vsel %vm429_vm0, %v7413_v31, %v2527_v9  ;;  %v7636_v31 = vsel %vm429_vm0, %v2385_v53, %v7462_v49  ;;  %v10490_v9 = vmax.f32 %v7265_v60, 0.0  ;;  %v7651_v43 = vrot.slane %v9835_v29, 7 }
 0x46b   : > { %2808 = vrot.lane.b32.xlu0 %v7585_v59, %s4616_s15  ;;  %10489 = vst [vmem:[#allocation160_spill] sm:$0xff] %v7636_v31  ;;  %v2668_v19 = vrot.slane %v7616_v42, 1  ;;  %v2387_v58 = vrot.slane %v10491_v26, 1  ;;  %v2670_v49 = vrot.slane %v7636_v31, 1  ;;  %v2529_v15 = vrot.slane %v10492_v0, 5 }
 0x46c   : > { %v2386_v28 = vrot.slane %v10490_v9, 1  ;;  %v2467_v53 = vrot.slane %v2356_v44, 7  ;;  %v7659_v60 = vsel %vm619_vm1, %v2671_v51, %v2673_v34  ;;  %v2686_v0 = vrot.slane %v7034_v33, 2 }
 0x46d   : > { %10494 = vst [vmem:[#allocation68_spill] sm:$0xff] %v7659_v60  ;;  %v7673_v62 = vsel %vm619_vm1, %v2670_v49, %v2671_v51  ;;  %v2676_v51 = vrot.slane %v7495_v25, 1 }
 0x46e   : > { %v7663_v11 = vsel %vm429_vm0, %v7651_v43, %v2467_v53  ;;  %10497 = vst [vmem:[#allocation102_spill] sm:$0xff] %v7673_v62 }
 0x46f   : > { %10495 = vst [vmem:[#allocation67_spill] sm:$0xff] %v7663_v11 }
 0x472   : > { %2812 = vrot.lane.b32.xlu2 %v7609_v37, %s4616_s15  ;;  %2816 = vrot.lane.b32.xlu1 %v7612_v17, %s4616_s15  ;;  %v2531_v17 = vrot.slane %v2356_v44, 5 }
 0x473   : > { %2814 = vrot.lane.b32.xlu0 %v7623_v32, %s4616_s15  ;;  %v7656_v32 = vsel %vm619_vm1, %v2666_v10, %v2668_v19  ;;  %v7677_v10 = vsel %vm429_vm0, %v2386_v28, %v7444_v55  ;;  %v7681_v19 = vsel %vm429_vm0, %v2387_v58, %v7474_v3  ;;  %v2681_v55 = vrot.slane %v7521_v45, 1 }
 0x474   : > { %10493 = vst [vmem:[#allocation159_spill] sm:$0xff] %v7656_v32  ;;  %v7666_v4 = vsel %vm429_vm0, %v2467_v53, %v2531_v17  ;;  %v7687_v17 = vsel %vm429_vm0, %v7453_v7, %v2529_v15  ;;  %v2675_v34 = vrot.slane %v7677_v10, 1  ;;  %v2680_v44 = vrot.slane %v7681_v19, 1 }
 0x475   : > { %10496 = vst [vmem:[#allocation103_spill] sm:$0xff] %v7666_v4  ;;  %v2678_v9 = vrot.slane %v7687_v17, 1  ;;  %v10500_v3 = vmax.f32 %v7281_v13, 0.0  ;;  %v2688_v15 = vrot.slane %v7037_v2, 2  ;;  %v2685_v53 = vrot.slane %v7054_v18, 2 }
 0x476   : > { %10498 = vst [vmem:[#allocation122_spill] sm:$0xff] %v7677_v10  ;;  %v7697_v26 = vsel %vm619_vm1, %v2675_v34, %v2676_v51  ;;  %v7700_v58 = vsel %vm619_vm1, %v2680_v44, %v2681_v55  ;;  %v2690_v2 = vrot.slane %v7151_v23, 2  ;;  %v2691_v44 = vrot.slane %v7148_v40, 2 }
 0x477   : > { %10499 = vst [vmem:[#allocation143_spill] sm:$0xff] %v7681_v19  ;;  %v2530_v28 = vrot.slane %v10500_v3, 5  ;;  %v7707_v7 = vsel %vm619_vm1, %v2676_v51, %v2678_v9  ;;  %v7723_v51 = vsel %vm695_vm2, %v2686_v0, %v2688_v15  ;;  %v2696_v9 = vrot.slane %v7182_v50, 2 }
 0x478   : > { %10501 = vst [vmem:[#allocation161_spill] sm:$0xff] %v7697_v26  ;;  %v2693_v3 = vrot.slane %v7253_v16, 2  ;;  %v2698_v16 = vrot.slane %v7301_v14, 2  ;;  %v2701_v15 = vrot.slane %v7304_v52, 2 }
 0x479   : > { %10502 = vst [vmem:[#allocation169_spill] sm:$0xff] %v7700_v58  ;;  %v7711_v49 = vsel %vm429_vm0, %v7478_v63, %v2530_v28  ;;  %v7730_v63 = vsel %vm695_vm2, %v2685_v53, %v2686_v0  ;;  %v7740_v28 = vsel %vm695_vm2, %v2690_v2, %v2691_v44  ;;  %v2703_v53 = vrot.slane %v7307_v54, 2  ;;  %v10514_v54 = vld [vmem:[#allocation3_spill] sm:$0xff] }
 0x47a   : > { %2818 = vrot.lane.b32.xlu2 %v7656_v32, %s4616_s15  ;;  %2822 = vrot.lane.b32.xlu1 %v7659_v60, %s4616_s15  ;;  %10503 = vst [vmem:[#allocation69_spill] sm:$0xff] %v7707_v7  ;;  %v2683_v13 = vrot.slane %v7711_v49, 1  ;;  %v7750_v0 = vsel %vm695_vm2, %v2691_v44, %v2693_v3  ;;  %v2700_v2 = vrot.slane %v7297_v21, 2  ;;  %v10515_v3 = vld [vmem:[#allocation59_spill] sm:$0xff] }
 0x47b   : > { %2820 = vrot.lane.b32.xlu0 %v7673_v62, %s4616_s15  ;;  %10505 = vst [vmem:[#allocation85_spill] sm:$0xff] %v7723_v51  ;;  %v7762_v29 = vsel %vm695_vm2, %v2701_v15, %v2703_v53  ;;  %v10516_v53 = vld [vmem:[#allocation156_spill] sm:$0xff] }
 0x47c   : > { %v7720_v34 = vsel %vm619_vm1, %v2681_v55, %v2683_v13  ;;  %10506 = vst [vmem:[#allocation104_spill] sm:$0xff] %v7730_v63  ;;  %v2695_v55 = vrot.slane %v7185_v36, 2  ;;  %v7771_v14 = vsel %vm695_vm2, %v2700_v2, %v2701_v15 }
 0x47d   : > { %10504 = vst [vmem:[#allocation8_spill] sm:$0xff] %v7720_v34 }
 0x47e   : > { %10507 = vst [vmem:[#allocation115_spill] sm:$0xff] %v7740_v28  ;;  %v7743_v13 = vsel %vm695_vm2, %v2695_v55, %v2696_v9  ;;  %v7759_v55 = vsel %vm695_vm2, %v2696_v9, %v2698_v16  ;;  %v2705_v9 = vrot.slane %v10514_v54, 2  ;;  %v2706_v16 = vrot.slane %v10515_v3, 2 }
 0x47f   : > { %10508 = vst [vmem:[#allocation134_spill] sm:$0xff] %v7743_v13 }
 0x480   : > { %10509 = vst [vmem:[#allocation31_spill] sm:$0xff] %v7750_v0 }
 0x481   : > { %10510 = vst [vmem:[#allocation151_spill] sm:$0xff] %v7759_v55 }
 0x482   : > { %2824 = vrot.lane.b32.xlu2 %v7697_v26, %s4616_s15  ;;  %2828 = vrot.lane.b32.xlu1 %v7700_v58, %s4616_s15  ;;  %10511 = vst [vmem:[#allocation170_spill] sm:$0xff] %v7762_v29  ;;  %v10525_v58 = vld [vmem:[#allocation4_spill] sm:$0xff] }
 0x483   : > { %2826 = vrot.lane.b32.xlu0 %v7707_v7, %s4616_s15  ;;  %10513 = vst [vmem:[#allocation20_spill] sm:$0xff] %v7771_v14 }
 0x48a   : > { %2830 = vrot.lane.b32.xlu2 %v7720_v34, %s4616_s15  ;;  %2864 = vrot.lane.b32.xlu1 %v7723_v51, %s4617_s16  ;;  %v2715_v34 = vrot.slane %v10525_v58, 2 }
 0x48b   : > { %2862 = vrot.lane.b32.xlu0 %v7730_v63, %s4617_s16  ;;  %v10517_v63 = vld [vmem:[#allocation117_spill] sm:$0xff] }
 0x48c   : > { %v2711_v51 = vrot.slane %v10517_v63, 2 }
 0x490   : > { %v7766_v44 = vpop.permute.xlu2 %2776 }
 0x491   : > { %10512 = vst [vmem:[#allocation26_spill] sm:$0xff] %v7766_v44  ;;  %v7781_v44 = vsel %vm695_vm2, %v2705_v9, %v2706_v16 }
 0x492   : > { %2866 = vrot.lane.b32.xlu2 %v7740_v28, %s4617_s16  ;;  %2870 = vrot.lane.b32.xlu1 %v7743_v13, %s4617_s16  ;;  %v2710_v13 = vrot.slane %v10516_v53, 2  ;;  %10519 = vst [vmem:[#allocation56_spill] sm:$0xff] %v7781_v44 }
 0x493   : > { %2868 = vrot.lane.b32.xlu0 %v7750_v0, %s4617_s16 }
 0x49a   : > { %2872 = vrot.lane.b32.xlu2 %v7759_v55, %s4617_s16  ;;  %2876 = vrot.lane.b32.xlu1 %v7762_v29, %s4617_s16  ;;  %v10518_v55 = vld [vmem:[#allocation64_spill] sm:$0xff]  ;;  %v7784_v29 = vsel %vm695_vm2, %v2710_v13, %v2711_v51  ;;  %v10524_v13 = vld [vmem:[#allocation99_spill] sm:$0xff] }
 0x49b   : > { %2874 = vrot.lane.b32.xlu0 %v7771_v14, %s4617_s16  ;;  %v2708_v0 = vrot.slane %v10518_v55, 2  ;;  %10520 = vst [vmem:[#allocation71_spill] sm:$0xff] %v7784_v29  ;;  %v10522_v55 = vld [vmem:[#allocation130_spill] sm:$0xff]  ;;  %v2718_v4 = vrot.slane %v10524_v13, 2 }
 0x49c   : > { %v2713_v9 = vrot.slane %v10522_v55, 2  ;;  %v10523_v14 = vld [vmem:[#allocation62_spill] sm:$0xff] }
 0x49d   : > { %v7791_v15 = vsel %vm695_vm2, %v2706_v16, %v2708_v0  ;;  %v2716_v28 = vrot.slane %v10523_v14, 2  ;;  %v7809_v16 = vpop.permute.xlu0 %2772 }
 0x49e   : > { %10529 = vst [vmem:[#allocation93_spill] sm:$0xff] %v7809_v16  ;;  %v2723_v16 = vrot.slane %v7516_v38, 2 }
 0x49f   : > { %v7807_v0 = vsel %vm695_vm2, %v2716_v28, %v2718_v4  ;;  %v7816_v55 = vsel %vm695_vm2, %v2715_v34, %v2716_v28  ;;  %v10532_v4 = vld [vmem:[#allocation2_spill] sm:$0xff] }
 0x4a0   : > { %10528 = vst [vmem:[#allocation27_spill] sm:$0xff] %v7807_v0 }
 0x4a1   : > { %10530 = vst [vmem:[#allocation116_spill] sm:$0xff] %v7816_v55 }
 0x4a2   : > { %2878 = vrot.lane.b32.xlu2 %v7781_v44, %s4617_s16  ;;  %2882 = vrot.lane.b32.xlu1 %v7784_v29, %s4617_s16  ;;  %v7801_v44 = vpop.permute.xlu1 %2774  ;;  %v7804_v29 = vsel %vm695_vm2, %v2711_v51, %v2713_v9  ;;  %v2720_v51 = vrot.slane %v7490_v5, 2  ;;  %v2721_v9 = vrot.slane %v10532_v4, 2 }
 0x4a3   : > { %2880 = vrot.lane.b32.xlu0 %v7791_v15, %s4617_s16  ;;  %10526 = vst [vmem:[#allocation7_spill] sm:$0xff] %v7801_v44  ;;  %v2726_v44 = vrot.slane %v7379_v24, 2 }
 0x4a4   : > { %v7795_v2 = vpop.permute.xlu2 %2782  ;;  %10527 = vst [vmem:[#allocation86_spill] sm:$0xff] %v7804_v29  ;;  %v7838_v28 = vsel %vm695_vm2, %v2721_v9, %v2723_v16 }
 0x4a5   : > { %10521 = vst [vmem:[#allocation54_spill] sm:$0xff] %v7795_v2  ;;  %v2725_v2 = vrot.slane %v7506_v46, 2 }
 0x4a6   : > { %10535 = vst [vmem:[#allocation65_spill] sm:$0xff] %v7838_v28 }
 0x4a7   : > { %v7831_v34 = vsel %vm695_vm2, %v2725_v2, %v2726_v44  ;;  %v2728_v2 = vrot.slane %v7549_v1, 2 }
 0x4a8   : > { %10534 = vst [vmem:[#allocation162_spill] sm:$0xff] %v7831_v34 }
 0x4a9   : > { %v7853_v16 = vsel %vm695_vm2, %v2726_v44, %v2728_v2  ;;  %v2735_v44 = vrot.slane %v7578_v56, 2 }
 0x4aa   : > { %2884 = vrot.lane.b32.xlu2 %v7804_v29, %s4617_s16  ;;  %2888 = vrot.lane.b32.xlu1 %v7807_v0, %s4617_s16  ;;  %v7828_v0 = vsel %vm695_vm2, %v2720_v51, %v2721_v9  ;;  %10539 = vst [vmem:[#allocation40_spill] sm:$0xff] %v7853_v16 }
 0x4ab   : > { %2886 = vrot.lane.b32.xlu0 %v7816_v55, %s4617_s16  ;;  %10533 = vst [vmem:[#allocation144_spill] sm:$0xff] %v7828_v0 }
 0x4ac   : > { %v7820_v13 = vpop.permute.xlu2 %2788 }
 0x4ad   : > { %10531 = vst [vmem:[#allocation135_spill] sm:$0xff] %v7820_v13  ;;  %v2731_v13 = vrot.slane %v7437_v30, 2 }
 0x4ae   : > { %v7840_v55 = vpop.permute.xlu1 %2780 }
 0x4af   : > { %10536 = vst [vmem:[#allocation177_spill] sm:$0xff] %v7840_v55  ;;  %v2741_v55 = vrot.slane %v7468_v27, 2 }
 0x4b2   : > { %2890 = vrot.lane.b32.xlu2 %v7828_v0, %s4617_s16  ;;  %2894 = vrot.lane.b32.xlu1 %v7831_v34, %s4617_s16  ;;  %v2733_v0 = vrot.slane %v7552_v22, 2  ;;  %v2730_v34 = vrot.slane %v7558_v61, 2 }
 0x4b3   : > { %2892 = vrot.lane.b32.xlu0 %v7838_v28, %s4617_s16  ;;  %v2740_v28 = vrot.slane %v7589_v20, 2 }
 0x4b4   : > { %v7844_v38 = vpop.permute.xlu0 %2778  ;;  %v7846_v51 = vpop.permute.xlu2 %2794  ;;  %v7856_v9 = vsel %vm695_vm2, %v2731_v13, %v2733_v0  ;;  %v7863_v1 = vsel %vm695_vm2, %v2730_v34, %v2731_v13  ;;  %v2736_v0 = vrot.slane %v7449_v47, 2  ;;  %v2738_v13 = vrot.slane %v7595_v12, 2 }
 0x4b5   : > { %10537 = vst [vmem:[#allocation188_spill] sm:$0xff] %v7844_v38  ;;  %v7882_v38 = vsel %vm695_vm2, %v2740_v28, %v2741_v55 }
 0x4b6   : > { %10538 = vst [vmem:[#allocation19_spill] sm:$0xff] %v7846_v51  ;;  %v7879_v34 = vsel %vm695_vm2, %v2735_v44, %v2736_v0  ;;  %v2743_v44 = vrot.slane %v7616_v42, 2 }
 0x4b7   : > { %10543 = vst [vmem:[#allocation6_spill] sm:$0xff] %v7879_v34 }
 0x4b8   : > { %10544 = vst [vmem:[#allocation72_spill] sm:$0xff] %v7882_v38 }
 0x4ba   : > { %2896 = vrot.lane.b32.xlu2 %v7853_v16, %s4617_s16  ;;  %2900 = vrot.lane.b32.xlu1 %v7856_v9, %s4617_s16 }
 0x4bb   : > { %2898 = vrot.lane.b32.xlu0 %v7863_v1, %s4617_s16 }
 0x4bc   : > { %v7867_v22 = vpop.permute.xlu2 %2800  ;;  %v7869_v51 = vpop.permute.xlu1 %2786 }
 0x4bd   : > { %10540 = vst [vmem:[#allocation61_spill] sm:$0xff] %v7867_v22  ;;  %v7873_v2 = vpop.permute.xlu0 %2784 }
 0x4be   : > { %10541 = vst [vmem:[#allocation80_spill] sm:$0xff] %v7869_v51  ;;  %v2746_v51 = vrot.slane %v7510_v39, 2 }
 0x4bf   : > { %10542 = vst [vmem:[#allocation73_spill] sm:$0xff] %v7873_v2  ;;  %v7889_v2 = vsel %vm695_vm2, %v2736_v0, %v2738_v13  ;;  %v7904_v0 = vsel %vm695_vm2, %v2741_v55, %v2743_v44  ;;  %v2750_v55 = vrot.slane %v7677_v10, 2 }
 0x4c0   : > { %10547 = vst [vmem:[#allocation105_spill] sm:$0xff] %v7904_v0 }
 0x4c2   : > { %2902 = vrot.lane.b32.xlu2 %v7879_v34, %s4617_s16  ;;  %2906 = vrot.lane.b32.xlu1 %v7882_v38, %s4617_s16  ;;  %v2748_v34 = vrot.slane %v7626_v8, 2  ;;  %v2745_v38 = vrot.slane %v7636_v31, 2 }
 0x4c3   : > { %2904 = vrot.lane.b32.xlu0 %v7889_v2, %s4617_s16 }
 0x4c4   : > { %v7893_v22 = vpop.permute.xlu2 %2806  ;;  %v7895_v12 = vpop.permute.xlu1 %2792  ;;  %v7907_v13 = vsel %vm695_vm2, %v2746_v51, %v2748_v34  ;;  %v7914_v42 = vsel %vm695_vm2, %v2745_v38, %v2746_v51  ;;  %v2751_v34 = vrot.slane %v7495_v25, 2  ;;  %v2753_v38 = vrot.slane %v7687_v17, 2 }
 0x4c5   : > { %10545 = vst [vmem:[#allocation25_spill] sm:$0xff] %v7893_v22  ;;  %v7898_v28 = vpop.permute.xlu0 %2790  ;;  %v2755_v22 = vrot.slane %v7681_v19, 2 }
 0x4c6   : > { %10546 = vst [vmem:[#allocation106_spill] sm:$0xff] %v7895_v12  ;;  %v7930_v51 = vsel %vm695_vm2, %v2750_v55, %v2751_v34  ;;  %v2758_v55 = vrot.slane %v7711_v49, 2 }
 0x4c7   : > { %10548 = vst [vmem:[#allocation125_spill] sm:$0xff] %v7907_v13 }
 0x4c8   : > { %10549 = vst [vmem:[#allocation145_spill] sm:$0xff] %v7914_v42 }
 0x4c9   : > { %10553 = vst [vmem:[#allocation180_spill] sm:$0xff] %v7930_v51 }
 0x4ca   : > { %2908 = vrot.lane.b32.xlu2 %v7904_v0, %s4617_s16  ;;  %2912 = vrot.lane.b32.xlu1 %v7907_v13, %s4617_s16  ;;  %v2756_v13 = vrot.slane %v7521_v45, 2 }
 0x4cb   : > { %2910 = vrot.lane.b32.xlu0 %v7914_v42, %s4617_s16 }
 0x4cc   : > { %v7918_v8 = vpop.permute.xlu2 %2812  ;;  %v7920_v12 = vpop.permute.xlu1 %2798  ;;  %v7933_v42 = vsel %vm695_vm2, %v2755_v22, %v2756_v13 }
 0x4cd   : > { %10550 = vst [vmem:[#allocation163_spill] sm:$0xff] %v7918_v8  ;;  %v7924_v44 = vpop.permute.xlu0 %2796  ;;  %v7952_v8 = vsel %vm695_vm2, %v2756_v13, %v2758_v55 }
 0x4ce   : > { %10551 = vst [vmem:[#allocation171_spill] sm:$0xff] %v7920_v12  ;;  %v7940_v12 = vsel %vm695_vm2, %v2751_v34, %v2753_v38 }
 0x4cf   : > { %10552 = vst [vmem:[#allocation181_spill] sm:$0xff] %v7924_v44 }
 0x4d0   : > { %10554 = vst [vmem:[#allocation21_spill] sm:$0xff] %v7933_v42 }
 0x4d1   : > { %10555 = vst [vmem:[#allocation43_spill] sm:$0xff] %v7940_v12 }
 0x4d2   : > { %2914 = vrot.lane.b32.xlu2 %v7930_v51, %s4617_s16  ;;  %2918 = vrot.lane.b32.xlu1 %v7933_v42, %s4617_s16  ;;  %10559 = vst [vmem:[#allocation13_spill] sm:$0xff] %v7952_v8 }
 0x4d3   : > { %2916 = vrot.lane.b32.xlu0 %v7940_v12, %s4617_s16 }
 0x4d4   : > { %v7944_v44 = vpop.permute.xlu2 %2818  ;;  %v7946_v17 = vpop.permute.xlu1 %2804 }
 0x4d5   : > { %10556 = vst [vmem:[#allocation53_spill] sm:$0xff] %v7944_v44  ;;  %v7949_v22 = vpop.permute.xlu0 %2802 }
 0x4d6   : > { %10557 = vst [vmem:[#allocation190_spill] sm:$0xff] %v7946_v17 }
 0x4d7   : > { %10558 = vst [vmem:[#allocation74_spill] sm:$0xff] %v7949_v22  ;;  %v10606_v22 = vld [vmem:[#allocation157_spill] sm:$0xff] }
 0x4da   : > { %2920 = vrot.lane.b32.xlu2 %v7952_v8, %s4617_s16  ;;  %2954 = vrot.lane.b32.xlu1 %v7148_v40, %s4618_s17  ;;  %s332_s16 = scalar_lea.vmem %s9681_s9, %s4539_s27 }
 0x4db   : > { %2952 = vrot.lane.b32.xlu0 %v7151_v23, %s4618_s17 }
 0x4dc   : > { %v7960_v34 = vpop.permute.xlu2 %2824  ;;  %v7962_v38 = vpop.permute.xlu1 %2810 }
 0x4dd   : > { %10560 = vst [vmem:[#allocation88_spill] sm:$0xff] %v7960_v34  ;;  %v7964_v44 = vpop.permute.xlu0 %2808 }
 0x4de   : > { %10561 = vst [vmem:[#allocation24_spill] sm:$0xff] %v7962_v38 }
 0x4df   : > { %10562 = vst [vmem:[#allocation107_spill] sm:$0xff] %v7964_v44 }
 0x4e2   : > { %2956 = vrot.lane.b32.xlu2 %v7054_v18, %s4618_s17  ;;  %2960 = vrot.lane.b32.xlu1 %v7185_v36, %s4618_s17 }
 0x4e3   : > { %2958 = vrot.lane.b32.xlu0 %v7034_v33, %s4618_s17 }
 0x4e4   : > { %v7972_v49 = vpop.permute.xlu2 %2830  ;;  %v7974_v13 = vpop.permute.xlu1 %2816 }
 0x4e5   : > { %10563 = vst [vmem:[#allocation118_spill] sm:$0xff] %v7972_v49  ;;  %v7976_v55 = vpop.permute.xlu0 %2814 }
 0x4e6   : > { %10564 = vst [vmem:[#allocation136_spill] sm:$0xff] %v7974_v13 }
 0x4e7   : > { %10565 = vst [vmem:[#allocation38_spill] sm:$0xff] %v7976_v55 }
 0x4ea   : > { %2962 = vrot.lane.b32.xlu2 %v7182_v50, %s4618_s17  ;;  %2966 = vrot.lane.b32.xlu1 %v7304_v52, %s4618_s17 }
 0x4eb   : > { %2964 = vrot.lane.b32.xlu0 %v7297_v21, %s4618_s17 }
 0x4ec   : > { %v7984_v34 = vpop.permute.xlu2 %2866  ;;  %v7986_v8 = vpop.permute.xlu1 %2822 }
 0x4ed   : > { %10566 = vst [vmem:[#allocation154_spill] sm:$0xff] %v7986_v8  ;;  %v7988_v38 = vpop.permute.xlu0 %2820 }
 0x4ee   : > { %10567 = vst [vmem:[#allocation172_spill] sm:$0xff] %v7988_v38 }
 0x4f2   : > { %2968 = vrot.lane.b32.xlu2 %v10514_v54, %s4618_s17  ;;  %2972 = vrot.lane.b32.xlu1 %v10516_v53, %s4618_s17 }
 0x4f3   : > { %2970 = vrot.lane.b32.xlu0 %v10515_v3, %s4618_s17 }
 0x4f4   : > { %v7996_v49 = vpop.permute.xlu2 %2872  ;;  %v7998_v13 = vpop.permute.xlu1 %2828 }
 0x4f5   : > { %10568 = vst [vmem:[#allocation182_spill] sm:$0xff] %v7996_v49  ;;  %v8000_v55 = vpop.permute.xlu0 %2826 }
 0x4f6   : > { %10569 = vst [vmem:[#allocation12_spill] sm:$0xff] %v7998_v13 }
 0x4f7   : > { %10570 = vst [vmem:[#allocation22_spill] sm:$0xff] %v8000_v55 }
 0x4fa   : > { %2974 = vrot.lane.b32.xlu2 %v10517_v63, %s4618_s17  ;;  %2978 = vrot.lane.b32.xlu1 %v10523_v14, %s4618_s17 }
 0x4fb   : > { %2976 = vrot.lane.b32.xlu0 %v10525_v58, %s4618_s17 }
 0x4fc   : > { %v8008_v8 = vpop.permute.xlu2 %2878  ;;  %v8010_v38 = vpop.permute.xlu1 %2864 }
 0x4fd   : > { %v8012_v42 = vpop.permute.xlu0 %2862 }
 0x502   : > { %2980 = vrot.lane.b32.xlu2 %v7490_v5, %s4618_s17  ;;  %2984 = vrot.lane.b32.xlu1 %v7506_v46, %s4618_s17 }
 0x503   : > { %2982 = vrot.lane.b32.xlu0 %v10532_v4, %s4618_s17 }
 0x504   : > { %v8020_v13 = vpop.permute.xlu2 %2884  ;;  %v8022_v55 = vpop.permute.xlu1 %2870 }
 0x505   : > { %10571 = vst [vmem:[#allocation23_spill] sm:$0xff] %v8020_v13  ;;  %v8024_v49 = vpop.permute.xlu0 %2868 }
 0x506   : > { %10572 = vst [vmem:[#allocation60_spill] sm:$0xff] %v8022_v55 }
 0x507   : > { %10573 = vst [vmem:[#allocation76_spill] sm:$0xff] %v8024_v49 }
 0x50a   : > { %2986 = vrot.lane.b32.xlu2 %v7379_v24, %s4618_s17  ;;  %2990 = vrot.lane.b32.xlu1 %v7437_v30, %s4618_s17 }
 0x50b   : > { %2988 = vrot.lane.b32.xlu0 %v7558_v61, %s4618_s17 }
 0x50c   : > { %v8032_v44 = vpop.permute.xlu2 %2890  ;;  %v8034_v12 = vpop.permute.xlu1 %2876 }
 0x50d   : > { %10574 = vst [vmem:[#allocation57_spill] sm:$0xff] %v8032_v44  ;;  %v8036_v51 = vpop.permute.xlu0 %2874 }
 0x50e   : > { %10575 = vst [vmem:[#allocation10_spill] sm:$0xff] %v8036_v51 }
 0x512   : > { %2992 = vrot.lane.b32.xlu2 %v7578_v56, %s4618_s17  ;;  %2996 = vrot.lane.b32.xlu1 %v7589_v20, %s4618_s17 }
 0x513   : > { %2994 = vrot.lane.b32.xlu0 %v7449_v47, %s4618_s17 }
 0x514   : > { %v8044_v13 = vpop.permute.xlu2 %2896  ;;  %v8046_v24 = vpop.permute.xlu1 %2882 }
 0x515   : > { %10576 = vst [vmem:[#allocation89_spill] sm:$0xff] %v8044_v13  ;;  %v8048_v55 = vpop.permute.xlu0 %2880 }
 0x516   : > { %10577 = vst [vmem:[#allocation32_spill] sm:$0xff] %v8046_v24 }
 0x51a   : > { %2998 = vrot.lane.b32.xlu2 %v7468_v27, %s4618_s17  ;;  %3002 = vrot.lane.b32.xlu1 %v7510_v39, %s4618_s17 }
 0x51b   : > { %3000 = vrot.lane.b32.xlu0 %v7636_v31, %s4618_s17 }
 0x51c   : > { %v8056_v51 = vpop.permute.xlu2 %2902  ;;  %v8058_v46 = vpop.permute.xlu1 %2888 }
 0x51d   : > { %10578 = vst [vmem:[#allocation96_spill] sm:$0xff] %v8056_v51  ;;  %v8060_v17 = vpop.permute.xlu0 %2886  ;;  %v10584_v51 = vmax.f32 %v7630_v6, 0.0  ;;  %v10589_v6 = vld [vmem:[#allocation44_spill] sm:$0xff] }
 0x51e   : > { %10579 = vst [vmem:[#allocation119_spill] sm:$0xff] %v8058_v46 }
 0x51f   : > { %10580 = vst [vmem:[#allocation137_spill] sm:$0xff] %v8060_v17  ;;  %v2388_v46 = vrot.slane %v10584_v51, 1  ;;  %v10590_v51 = vld [vmem:[#allocation97_spill] sm:$0xff] }
 0x521   : > { %v8082_v17 = vsel %vm429_vm0, %v2388_v46, %v7651_v43 }
 0x522   : > { %3004 = vrot.lane.b32.xlu2 %v7677_v10, %s4618_s17  ;;  %3008 = vrot.lane.b32.xlu1 %v7681_v19, %s4618_s17  ;;  %10585 = vst [vmem:[#allocation179_spill] sm:$0xff] %v8082_v17 }
 0x523   : > { %3006 = vrot.lane.b32.xlu0 %v7495_v25, %s4618_s17 }
 0x524   : > { %v8068_v24 = vpop.permute.xlu2 %2908  ;;  %v8070_v13 = vpop.permute.xlu1 %2894 }
 0x525   : > { %10581 = vst [vmem:[#allocation146_spill] sm:$0xff] %v8068_v24  ;;  %v8072_v14 = vpop.permute.xlu0 %2892 }
 0x526   : > { %10582 = vst [vmem:[#allocation165_spill] sm:$0xff] %v8070_v13 }
 0x527   : > { %10583 = vst [vmem:[#allocation164_spill] sm:$0xff] %v8072_v14 }
 0x52a   : > { %3010 = vrot.lane.b32.xlu2 %v7521_v45, %s4618_s17  ;;  %3014 = vrot.lane.b32.xlu1 %v7663_v11, %s4618_s17  ;;  %v10591_v45 = vld [vmem:[#allocation98_spill] sm:$0xff] }
 0x52b   : > { %3012 = vrot.lane.b32.xlu0 %v8082_v17, %s4618_s17 }
 0x52c   : > { %v8086_v24 = vpop.permute.xlu2 %2914  ;;  %v8088_v19 = vpop.permute.xlu1 %2900 }
 0x52d   : > { %10586 = vst [vmem:[#allocation5_spill] sm:$0xff] %v8086_v24  ;;  %v8090_v25 = vpop.permute.xlu0 %2898  ;;  %v10595_v24 = vld [vmem:[#allocation58_spill] sm:$0xff] }
 0x52e   : > { %10587 = vst [vmem:[#allocation29_spill] sm:$0xff] %v8088_v19  ;;  %v10596_v19 = vld [vmem:[#allocation127_spill] sm:$0xff] }
 0x52f   : > { %10588 = vst [vmem:[#allocation46_spill] sm:$0xff] %v8090_v25 }
 0x532   : > { %3048 = vrot.lane.b32.xlu2 %v10589_v6, %s4619_s18  ;;  %3052 = vrot.lane.b32.xlu1 %v10590_v51, %s4619_s18  ;;  %v10597_v6 = vld [vmem:[#allocation63_spill] sm:$0xff] }
 0x533   : > { %3050 = vrot.lane.b32.xlu0 %v10591_v45, %s4619_s18 }
 0x534   : > { %v8098_v46 = vpop.permute.xlu2 %2920  ;;  %v8100_v43 = vpop.permute.xlu1 %2906 }
 0x535   : > { %10592 = vst [vmem:[#allocation66_spill] sm:$0xff] %v8098_v46  ;;  %v8102_v13 = vpop.permute.xlu0 %2904  ;;  %v10600_v46 = vld [vmem:[#allocation87_spill] sm:$0xff] }
 0x536   : > { %10593 = vst [vmem:[#allocation191_spill] sm:$0xff] %v8100_v43  ;;  %v10601_v43 = vld [vmem:[#allocation129_spill] sm:$0xff] }
 0x537   : > { %10594 = vst [vmem:[#allocation78_spill] sm:$0xff] %v8102_v13  ;;  %v10602_v13 = vld [vmem:[#allocation155_spill] sm:$0xff] }
 0x53a   : > { %3054 = vrot.lane.b32.xlu2 %v10595_v24, %s4619_s18  ;;  %3058 = vrot.lane.b32.xlu1 %v10596_v19, %s4619_s18 }
 0x53b   : > { %3056 = vrot.lane.b32.xlu0 %v10597_v6, %s4619_s18 }
 0x53c   : > { %v8110_v25 = vpop.permute.xlu2 %2956  ;;  %v8112_v10 = vpop.permute.xlu1 %2912 }
 0x53d   : > { %10598 = vst [vmem:[#allocation17_spill] sm:$0xff] %v8112_v10  ;;  %v8114_v45 = vpop.permute.xlu0 %2910  ;;  %v10607_v10 = vld [vmem:[#allocation140_spill] sm:$0xff] }
 0x53e   : > { %10599 = vst [vmem:[#allocation77_spill] sm:$0xff] %v8114_v45  ;;  %v10608_v45 = vld [vmem:[#allocation45_spill] sm:$0xff] }
 0x542   : > { %3060 = vrot.lane.b32.xlu2 %v10600_v46, %s4619_s18  ;;  %3064 = vrot.lane.b32.xlu1 %v10601_v43, %s4619_s18 }
 0x543   : > { %3062 = vrot.lane.b32.xlu0 %v10602_v13, %s4619_s18 }
 0x544   : > { %v8122_v39 = vpop.permute.xlu2 %2962  ;;  %v8124_v14 = vpop.permute.xlu1 %2918 }
 0x545   : > { %10603 = vst [vmem:[#allocation30_spill] sm:$0xff] %v8122_v39  ;;  %v8126_v4 = vpop.permute.xlu0 %2916  ;;  %v10610_v39 = vld [vmem:[#allocation101_spill] sm:$0xff] }
 0x546   : > { %10604 = vst [vmem:[#allocation109_spill] sm:$0xff] %v8124_v14  ;;  %v10611_v14 = vld [vmem:[#allocation158_spill] sm:$0xff] }
 0x547   : > { %10605 = vst [vmem:[#allocation108_spill] sm:$0xff] %v8126_v4 }
 0x54a   : > { %3066 = vrot.lane.b32.xlu2 %v10606_v22, %s4619_s18  ;;  %3070 = vrot.lane.b32.xlu1 %v10607_v10, %s4619_s18 }
 0x54b   : > { %3068 = vrot.lane.b32.xlu0 %v10608_v45, %s4619_s18 }
 0x54c   : > { %v8134_v58 = vpop.permute.xlu2 %2968  ;;  %v8136_v44 = vpop.permute.xlu1 %2954 }
 0x54d   : > { %10609 = vst [vmem:[#allocation128_spill] sm:$0xff] %v8134_v58  ;;  %v8138_v5 = vpop.permute.xlu0 %2952 }
 0x552   : > { %3072 = vrot.lane.b32.xlu2 %v10610_v39, %s4619_s18  ;;  %3076 = vrot.lane.b32.xlu1 %v7535_v35, %s4619_s18 }
 0x553   : > { %3074 = vrot.lane.b32.xlu0 %v10611_v14, %s4619_s18 }
 0x554   : > { %v8146_v4 = vpop.permute.xlu2 %2974  ;;  %v8148_v10 = vpop.permute.xlu1 %2960 }
 0x555   : > { %10612 = vst [vmem:[#allocation147_spill] sm:$0xff] %v8148_v10  ;;  %v8150_v31 = vpop.permute.xlu0 %2958 }
 0x556   : > { %10613 = vst [vmem:[#allocation166_spill] sm:$0xff] %v8150_v31 }
 0x55a   : > { %3078 = vrot.lane.b32.xlu2 %v7545_v48, %s4619_s18  ;;  %3082 = vrot.lane.b32.xlu1 %v7571_v57, %s4619_s18  ;;  %v10617_v48 = vld [vmem:[#allocation90_spill] sm:$0xff] }
 0x55b   : > { %3080 = vrot.lane.b32.xlu0 %v7538_v41, %s4619_s18 }
 0x55c   : > { %v8158_v58 = vpop.permute.xlu2 %2980  ;;  %v8160_v35 = vpop.permute.xlu1 %2966 }
 0x55d   : > { %10614 = vst [vmem:[#allocation173_spill] sm:$0xff] %v8158_v58  ;;  %v8162_v14 = vpop.permute.xlu0 %2964  ;;  %v10619_v58 = vld [vmem:[#allocation142_spill] sm:$0xff] }
 0x55e   : > { %10615 = vst [vmem:[#allocation184_spill] sm:$0xff] %v8160_v35  ;;  %v10620_v35 = vld [vmem:[#allocation133_spill] sm:$0xff] }
 0x55f   : > { %10616 = vst [vmem:[#allocation183_spill] sm:$0xff] %v8162_v14 }
 0x562   : > { %3084 = vrot.lane.b32.xlu2 %v7585_v59, %s4619_s18  ;;  %3088 = vrot.lane.b32.xlu1 %v7609_v37, %s4619_s18 }
 0x563   : > { %3086 = vrot.lane.b32.xlu0 %v10617_v48, %s4619_s18 }
 0x564   : > { %v8170_v10 = vpop.permute.xlu2 %2986  ;;  %v8172_v57 = vpop.permute.xlu1 %2972 }
 0x565   : > { %10618 = vst [vmem:[#allocation14_spill] sm:$0xff] %v8170_v10  ;;  %v8174_v41 = vpop.permute.xlu0 %2970 }
 0x56a   : > { %3090 = vrot.lane.b32.xlu2 %v10619_v58, %s4619_s18  ;;  %3094 = vrot.lane.b32.xlu1 %v7656_v32, %s4619_s18 }
 0x56b   : > { %3092 = vrot.lane.b32.xlu0 %v10620_v35, %s4619_s18 }
 0x56c   : > { %v8182_v14 = vpop.permute.xlu2 %2992  ;;  %v8184_v39 = vpop.permute.xlu1 %2978 }
 0x56d   : > { %10621 = vst [vmem:[#allocation47_spill] sm:$0xff] %v8182_v14  ;;  %v8186_v31 = vpop.permute.xlu0 %2976 }
 0x56e   : > { %10622 = vst [vmem:[#allocation52_spill] sm:$0xff] %v8184_v39  ;;  %v10627_v39 = vld [vmem:[#allocation8_spill] sm:$0xff] }
 0x56f   : > { %10623 = vst [vmem:[#allocation192_spill] sm:$0xff] %v8186_v31  ;;  %v10628_v31 = vld [vmem:[#allocation169_spill] sm:$0xff] }
 0x572   : > { %3096 = vrot.lane.b32.xlu2 %v7673_v62, %s4619_s18  ;;  %3100 = vrot.lane.b32.xlu1 %v7697_v26, %s4619_s18 }
 0x573   : > { %3098 = vrot.lane.b32.xlu0 %v7659_v60, %s4619_s18  ;;  %v2763_v60 = vrot.slane %v7663_v11, 1 }
 0x574   : > { %v8194_v10 = vpop.permute.xlu2 %2998  ;;  %v8196_v49 = vpop.permute.xlu1 %2984 }
 0x575   : > { %10624 = vst [vmem:[#allocation79_spill] sm:$0xff] %v8194_v10  ;;  %v8198_v40 = vpop.permute.xlu0 %2982  ;;  %v2762_v10 = vrot.slane %v8082_v17, 1 }
 0x576   : > { %10625 = vst [vmem:[#allocation16_spill] sm:$0xff] %v8196_v49 }
 0x577   : > { %10626 = vst [vmem:[#allocation91_spill] sm:$0xff] %v8198_v40  ;;  %v10632_v40 = vld [vmem:[#allocation103_spill] sm:$0xff] }
 0x578   : > { %v2765_v49 = vrot.slane %v10632_v40, 1 }
 0x57a   : > { %3102 = vrot.lane.b32.xlu2 %v7707_v7, %s4619_s18  ;;  %3106 = vrot.lane.b32.xlu1 %v10627_v39, %s4619_s18  ;;  %v8216_v7 = vsel %vm619_vm1, %v2762_v10, %v2763_v60  ;;  %v8221_v39 = vsel %vm619_vm1, %v2763_v60, %v2765_v49  ;;  %v10639_v10 = vld [vmem:[#allocation31_spill] sm:$0xff]  ;;  %v10641_v60 = vld [vmem:[#allocation104_spill] sm:$0xff] }
 0x57b   : > { %3104 = vrot.lane.b32.xlu0 %v10628_v31, %s4619_s18  ;;  %10633 = vst [vmem:[#allocation139_spill] sm:$0xff] %v8216_v7 }
 0x57c   : > { %v8206_v14 = vpop.permute.xlu2 %3004  ;;  %v8208_v26 = vpop.permute.xlu1 %2990  ;;  %10634 = vst [vmem:[#allocation138_spill] sm:$0xff] %v8221_v39 }
 0x57d   : > { %10629 = vst [vmem:[#allocation37_spill] sm:$0xff] %v8206_v14  ;;  %v8212_v62 = vpop.permute.xlu0 %2988  ;;  %v10635_v14 = vld [vmem:[#allocation115_spill] sm:$0xff] }
 0x57e   : > { %10630 = vst [vmem:[#allocation110_spill] sm:$0xff] %v8208_v26 }
 0x57f   : > { %10631 = vst [vmem:[#allocation120_spill] sm:$0xff] %v8212_v62  ;;  %v10650_v62 = vld [vmem:[#allocation170_spill] sm:$0xff] }
 0x582   : > { %3108 = vrot.lane.b32.xlu2 %v8216_v7, %s4619_s18  ;;  %3144 = vrot.lane.b32.xlu1 %v10635_v14, %s4620_s19  ;;  %v10640_v7 = vld [vmem:[#allocation85_spill] sm:$0xff] }
 0x583   : > { %3110 = vrot.lane.b32.xlu0 %v8221_v39, %s4619_s18 }
 0x584   : > { %v8227_v11 = vpop.permute.xlu2 %3010  ;;  %v8229_v17 = vpop.permute.xlu1 %2996 }
 0x585   : > { %10636 = vst [vmem:[#allocation55_spill] sm:$0xff] %v8227_v11  ;;  %v8231_v40 = vpop.permute.xlu0 %2994  ;;  %v10644_v11 = vld [vmem:[#allocation134_spill] sm:$0xff] }
 0x586   : > { %10637 = vst [vmem:[#allocation174_spill] sm:$0xff] %v8229_v17  ;;  %v10645_v17 = vld [vmem:[#allocation20_spill] sm:$0xff] }
 0x587   : > { %10638 = vst [vmem:[#allocation185_spill] sm:$0xff] %v8231_v40 }
 0x58a   : > { %3146 = vrot.lane.b32.xlu2 %v10639_v10, %s4620_s19  ;;  %3150 = vrot.lane.b32.xlu1 %v10640_v7, %s4620_s19  ;;  %v10646_v10 = vld [vmem:[#allocation151_spill] sm:$0xff] }
 0x58b   : > { %3148 = vrot.lane.b32.xlu0 %v10641_v60, %s4620_s19 }
 0x58c   : > { %v8239_v49 = vpop.permute.xlu2 %3048  ;;  %v8241_v14 = vpop.permute.xlu1 %3002 }
 0x58d   : > { %10642 = vst [vmem:[#allocation11_spill] sm:$0xff] %v8241_v14  ;;  %v8243_v39 = vpop.permute.xlu0 %3000  ;;  %v10651_v14 = vld [vmem:[#allocation56_spill] sm:$0xff] }
 0x58e   : > { %10643 = vst [vmem:[#allocation34_spill] sm:$0xff] %v8243_v39 }
 0x592   : > { %3152 = vrot.lane.b32.xlu2 %v10644_v11, %s4620_s19  ;;  %3156 = vrot.lane.b32.xlu1 %v10645_v17, %s4620_s19 }
 0x593   : > { %3154 = vrot.lane.b32.xlu0 %v10646_v10, %s4620_s19 }
 0x594   : > { %v8251_v40 = vpop.permute.xlu2 %3054  ;;  %v8253_v31 = vpop.permute.xlu1 %3008 }
 0x595   : > { %10647 = vst [vmem:[#allocation28_spill] sm:$0xff] %v8251_v40  ;;  %v8255_v26 = vpop.permute.xlu0 %3006  ;;  %v10655_v40 = vld [vmem:[#allocation71_spill] sm:$0xff] }
 0x596   : > { %10648 = vst [vmem:[#allocation70_spill] sm:$0xff] %v8253_v31 }
 0x597   : > { %10649 = vst [vmem:[#allocation189_spill] sm:$0xff] %v8255_v26 }
 0x59a   : > { %3158 = vrot.lane.b32.xlu2 %v10650_v62, %s4620_s19  ;;  %3162 = vrot.lane.b32.xlu1 %v7791_v15, %s4620_s19 }
 0x59b   : > { %3160 = vrot.lane.b32.xlu0 %v10651_v14, %s4620_s19 }
 0x59c   : > { %v8263_v39 = vpop.permute.xlu2 %3060  ;;  %v8265_v0 = vpop.permute.xlu1 %3014 }
 0x59d   : > { %10652 = vst [vmem:[#allocation92_spill] sm:$0xff] %v8263_v39  ;;  %v8267_v63 = vpop.permute.xlu0 %3012 }
 0x59e   : > { %10653 = vst [vmem:[#allocation39_spill] sm:$0xff] %v8265_v0 }
 0x59f   : > { %10654 = vst [vmem:[#allocation121_spill] sm:$0xff] %v8267_v63 }
 0x5a2   : > { %3164 = vrot.lane.b32.xlu2 %v10655_v40, %s4620_s19  ;;  %3240 = vrot.lane.b32.xlu1 %v7054_v18, %s4621_s20 }
 0x5a3   : > { %3166 = vrot.lane.b32.xlu0 %v7804_v29, %s4620_s19 }
 0x5a4   : > { %v8275_v31 = vpop.permute.xlu2 %3066  ;;  %v8277_v26 = vpop.permute.xlu1 %3052 }
 0x5a5   : > { %v8279_v32 = vpop.permute.xlu0 %3050 }
 0x5aa   : > { %3330 = vrot.lane.b32.xlu2 %v10590_v51, %s4622_s21  ;;  %3242 = vrot.lane.b32.xlu1 %v7034_v33, %s4621_s20 }
 0x5ab   : > { %3420 = vrot.lane.b32.xlu0 %v10641_v60, %s4623_s22 }
 0x5ac   : > { %v8287_v0 = vpop.permute.xlu2 %3072  ;;  %v8289_v63 = vpop.permute.xlu1 %3058 }
 0x5ad   : > { %10656 = vst [vmem:[#allocation149_spill] sm:$0xff] %v8287_v0  ;;  %v8291_v39 = vpop.permute.xlu0 %3056 }
 0x5b2   : > { %3332 = vrot.lane.b32.xlu2 %v10595_v24, %s4622_s21  ;;  %3244 = vrot.lane.b32.xlu1 %v7185_v36, %s4621_s20 }
 0x5b3   : > { %3422 = vrot.lane.b32.xlu0 %v10640_v7, %s4623_s22 }
 0x5b4   : > { %v8299_v51 = vpop.permute.xlu2 %3078  ;;  %v8301_v29 = vpop.permute.xlu1 %3064 }
 0x5b5   : > { %10657 = vst [vmem:[#allocation75_spill] sm:$0xff] %v8299_v51  ;;  %v8303_v60 = vpop.permute.xlu0 %3062  ;;  %v10660_v51 = vld [vmem:[#allocation162_spill] sm:$0xff] }
 0x5b6   : > { %10658 = vst [vmem:[#allocation18_spill] sm:$0xff] %v8301_v29 }
 0x5b7   : > { %10659 = vst [vmem:[#allocation50_spill] sm:$0xff] %v8303_v60 }
 0x5ba   : > { %3334 = vrot.lane.b32.xlu2 %v10597_v6, %s4622_s21  ;;  %3246 = vrot.lane.b32.xlu1 %v7182_v50, %s4621_s20 }
 0x5bb   : > { %3424 = vrot.lane.b32.xlu0 %v10644_v11, %s4623_s22 }
 0x5bc   : > { %v8311_v24 = vpop.permute.xlu2 %3084  ;;  %v8313_v0 = vpop.permute.xlu1 %3070 }
 0x5bd   : > { %v3069_v7 = vpop.permute.xlu0 %3068 }
 0x5c2   : > { %3176 = vrot.lane.b32.xlu2 %v10660_v51, %s4620_s19  ;;  %3272 = vrot.lane.b32.xlu1 %v7558_v61, %s4621_s20 }
 0x5c3   : > { %3336 = vrot.lane.b32.xlu0 %v10596_v19, %s4622_s21 }
 0x5c4   : > { %v8321_v6 = vpop.permute.xlu2 %3090  ;;  %v8323_v29 = vpop.permute.xlu1 %3076 }
 0x5c5   : > { %10661 = vst [vmem:[#allocation194_spill] sm:$0xff] %v8323_v29  ;;  %v8325_v60 = vpop.permute.xlu0 %3074 }
 0x5c6   : > { %10662 = vst [vmem:[#allocation81_spill] sm:$0xff] %v8325_v60 }
 0x5ca   : > { %3426 = vrot.lane.b32.xlu2 %v10646_v10, %s4623_s22  ;;  %3452 = vrot.lane.b32.xlu1 %v7863_v1, %s4623_s22 }
 0x5cb   : > { %3362 = vrot.lane.b32.xlu0 %v7585_v59, %s4622_s21 }
 0x5cc   : > { %v8333_v11 = vpop.permute.xlu2 %3096  ;;  %v8335_v51 = vpop.permute.xlu1 %3082 }
 0x5cd   : > { %10663 = vst [vmem:[#allocation36_spill] sm:$0xff] %v8333_v11  ;;  %v8337_v19 = vpop.permute.xlu0 %3080 }
 0x5d2   : > { %3248 = vrot.lane.b32.xlu2 %v7297_v21, %s4621_s20  ;;  %3338 = vrot.lane.b32.xlu1 %v10600_v46, %s4622_s21 }
 0x5d3   : > { %3178 = vrot.lane.b32.xlu0 %v7853_v16, %s4620_s19  ;;  %v10674_v16 = vld [vmem:[#allocation135_spill] sm:$0xff] }
 0x5d4   : > { %v8345_v10 = vpop.permute.xlu2 %3102  ;;  %v8347_v29 = vpop.permute.xlu1 %3088 }
 0x5d5   : > { %10664 = vst [vmem:[#allocation111_spill] sm:$0xff] %v8345_v10  ;;  %v8349_v59 = vpop.permute.xlu0 %3086 }
 0x5da   : > { %3274 = vrot.lane.b32.xlu2 %v7437_v30, %s4621_s20  ;;  %3364 = vrot.lane.b32.xlu1 %v10617_v48, %s4622_s21 }
 0x5db   : > { %3428 = vrot.lane.b32.xlu0 %v10645_v17, %s4623_s22 }
 0x5dc   : > { %v8357_v60 = vpop.permute.xlu2 %3108  ;;  %v8359_v46 = vpop.permute.xlu1 %3094 }
 0x5dd   : > { %10665 = vst [vmem:[#allocation150_spill] sm:$0xff] %v8357_v60  ;;  %v8361_v11 = vpop.permute.xlu0 %3092 }
 0x5de   : > { %10666 = vst [vmem:[#allocation175_spill] sm:$0xff] %v8359_v46 }
 0x5df   : > { %10667 = vst [vmem:[#allocation186_spill] sm:$0xff] %v8361_v11 }
 0x5e2   : > { %3454 = vrot.lane.b32.xlu2 %v7856_v9, %s4623_s22  ;;  %3180 = vrot.lane.b32.xlu1 %v7863_v1, %s4620_s19 }
 0x5e3   : > { %3250 = vrot.lane.b32.xlu0 %v7304_v52, %s4621_s20 }
 0x5e4   : > { %v8369_v10 = vpop.permute.xlu2 %3146  ;;  %v8371_v48 = vpop.permute.xlu1 %3100 }
 0x5e5   : > { %10668 = vst [vmem:[#allocation49_spill] sm:$0xff] %v8371_v48  ;;  %v8373_v17 = vpop.permute.xlu0 %3098 }
 0x5e6   : > { %10669 = vst [vmem:[#allocation195_spill] sm:$0xff] %v8373_v17 }
 0x5ea   : > { %3340 = vrot.lane.b32.xlu2 %v10602_v13, %s4622_s21  ;;  %3430 = vrot.lane.b32.xlu1 %v10650_v62, %s4623_s22  ;;  %v10672_v13 = vld [vmem:[#allocation6_spill] sm:$0xff] }
 0x5eb   : > { %3276 = vrot.lane.b32.xlu0 %v7578_v56, %s4621_s20 }
 0x5ec   : > { %v8381_v60 = vpop.permute.xlu2 %3152  ;;  %v8383_v1 = vpop.permute.xlu1 %3106 }
 0x5ed   : > { %10670 = vst [vmem:[#allocation94_spill] sm:$0xff] %v8383_v1  ;;  %v8385_v46 = vpop.permute.xlu0 %3104  ;;  %v3518_v1 = vsel %vm1521_vm4, %v10514_v54, %v10674_v16 }
 0x5ee   : > { %10671 = vst [vmem:[#allocation35_spill] sm:$0xff] %v8385_v46  ;;  %v3548_v46 = vsel %vm1552_vm5, %v3518_v1, %v8008_v8  ;;  %v3764_v8 = vld [vmem:[%s9677_s5 + $0x10] sm:$0xff] }
 0x5f2   : > { %3366 = vrot.lane.b32.xlu2 %v7609_v37, %s4622_s21  ;;  %3252 = vrot.lane.b32.xlu1 %v10514_v54, %s4621_s20  ;;  %v3580_v37 = vsel %vm1583_vm7, %v3548_v46, %v8172_v57  ;;  %v3765_v57 = vld [vmem:[%s9677_s5 + $0x18] sm:$0xff]  ;;  %v3762_v46 = vld [vmem:[%s9677_s5] sm:$0xff] }
 0x5f3   : > { %3456 = vrot.lane.b32.xlu0 %v10672_v13, %s4623_s22 }
 0x5f4   : > { %v8393_v48 = vpop.permute.xlu2 %3158  ;;  %v3145_v62 = vpop.permute.xlu1 %3144 }
 0x5f5   : > { %v8395_v17 = vpop.permute.xlu0 %3110 }
 0x5f6   : > { %10673 = vst [vmem:[#allocation123_spill] sm:$0xff] %v8395_v17  ;;  %v3612_v17 = vsel %vm1616_vm6, %v3580_v37, %v3069_v7 }
 0x5fa   : > { %3182 = vrot.lane.b32.xlu2 %v7856_v9, %s4620_s19  ;;  %3278 = vrot.lane.b32.xlu1 %v7449_v47, %s4621_s20  ;;  %v3766_v9 = vld [vmem:[%s9677_s5 + $0x20] sm:$0xf] }
 0x5fb   : > { %3342 = vrot.lane.b32.xlu0 %v10601_v43, %s4622_s21  ;;  %4503 = vmatpush.msk.msra.mxu1 %vm1887_vm3, %v3766_v9  ;;  %v3763_v43 = vld [vmem:[%s9677_s5 + $0x8] sm:$0xff] }
 0x5fc   : > { %v3165_v11 = vpop.permute.xlu2 %3164  ;;  %v8411_v56 = vpop.permute.xlu1 %3150  ;;  %4545 = vmatpush.msk.msra.mxu3 %vm1887_vm3, %v3766_v9 }
 0x5fd   : > { %v8414_v54 = vsel %vm1649_vm8, %v3612_v17, %v3165_v11  ;;  %v8416_v16 = vpop.permute.xlu0 %3148  ;;  %3882 = vmatpush.msra.mxu1 %v3765_v57  ;;  %v10675_v17 = vld [vmem:[#allocation80_spill] sm:$0xff] }
 0x5fe   : > { %4546 = vmatpush.msra.mxu3 %v3765_v57  ;;  %v3517_v1 = vsel %vm1521_vm4, %v7304_v52, %v10675_v17 }
 0x5ff   : > { %3883 = vmatpush.msra.mxu1 %v3764_v8 }
 0x600   : > { %4547 = vmatpush.msra.mxu3 %v3764_v8 }
 0x601   : > { %3884 = vmatpush.msra.mxu1 %v3763_v43 }
 0x602   : > { %3432 = vrot.lane.b32.xlu2 %v10651_v14, %s4623_s22  ;;  %3458 = vrot.lane.b32.xlu1 %v7889_v2, %s4623_s22 }
 0x603   : > { %3368 = vrot.lane.b32.xlu0 %v10619_v58, %s4622_s21  ;;  %4548 = vmatpush.msra.mxu3 %v3763_v43  ;;  %v3547_v58 = vsel %vm1552_vm5, %v3517_v1, %v8034_v12  ;;  %v10677_v1 = vld [vmem:[#allocation72_spill] sm:$0xff] }
 0x604   : > { %v3331_v7 = vpop.permute.xlu2 %3330  ;;  %v8438_v11 = vpop.permute.xlu1 %3156  ;;  %3885 = vmatpush.msra.mxu1 %v3762_v46  ;;  %v3579_v37 = vsel %vm1583_vm7, %v3547_v58, %v8174_v41 }
 0x605   : > { %v8443_v14 = vpop.permute.xlu0 %3154  ;;  %4549 = vmatpush.msra.mxu3 %v3762_v46  ;;  %v3611_v9 = vsel %vm1616_vm6, %v3579_v37, %v8275_v31  ;;  %v10676_v46 = vld [vmem:[#allocation93_spill] sm:$0xff]  ;;  %v10678_v37 = vld [vmem:[#allocation7_spill] sm:$0xff] }
 0x60a   : > { %3254 = vrot.lane.b32.xlu2 %v10515_v3, %s4621_s20  ;;  %3344 = vrot.lane.b32.xlu1 %v10606_v22, %s4622_s21  ;;  %v3519_v22 = vsel %vm1521_vm4, %v10515_v3, %v7898_v28  ;;  %v3510_v3 = vsel %vm1521_vm4, %v7054_v18, %v10676_v46 }
 0x60b   : > { %3184 = vrot.lane.b32.xlu0 %v10672_v13, %s4620_s19  ;;  %v3549_v41 = vsel %vm1552_vm5, %v3519_v22, %v8048_v55 }
 0x60c   : > { %v3333_v57 = vpop.permute.xlu2 %3332  ;;  %v3163_v52 = vpop.permute.xlu1 %3162  ;;  %v3581_v31 = vsel %vm1583_vm7, %v3549_v41, %v8146_v4  ;;  %v10679_v41 = vld [vmem:[#allocation26_spill] sm:$0xff] }
 0x60d   : > { %v8460_v8 = vpop.permute.xlu0 %3160  ;;  %v8463_v12 = vsel %vm1649_vm8, %v3611_v9, %v3163_v52  ;;  %v3613_v28 = vsel %vm1616_vm6, %v3581_v31, %v8313_v0 }
 0x612   : > { %3280 = vrot.lane.b32.xlu2 %v7589_v20, %s4621_s20  ;;  %3370 = vrot.lane.b32.xlu1 %v10620_v35, %s4622_s21  ;;  %v8485_v35 = vsel %vm1552_vm5, %v3510_v3, %v8012_v42 }
 0x613   : > { %3434 = vrot.lane.b32.xlu0 %v7791_v15, %s4623_s22  ;;  %v3570_v15 = vsel %vm1583_vm7, %v8485_v35, %v8138_v5  ;;  %v3511_v5 = vsel %vm1521_vm4, %v7034_v33, %v10678_v37 }
 0x614   : > { %v3335_v13 = vpop.permute.xlu2 %3334  ;;  %v3241_v43 = vpop.permute.xlu1 %3240  ;;  %v3602_v4 = vsel %vm1616_vm6, %v3570_v15, %v8239_v49  ;;  %v8509_v9 = vsel %vm1552_vm5, %v3511_v5, %v8010_v38  ;;  %v10686_v5 = vld [vmem:[#allocation166_spill] sm:$0xff] }
 0x615   : > { %v3167_v17 = vpop.permute.xlu0 %3166  ;;  %v3634_v18 = vsel %vm1649_vm8, %v3602_v4, %v3145_v62 }
 0x616   : > { %v8488_v55 = vsel %vm1649_vm8, %v3613_v28, %v3167_v17  ;;  %v3666_v0 = vsel %vm1682_vm9, %v3634_v18, %v3241_v43  ;;  %v10682_v28 = vld [vmem:[#allocation105_spill] sm:$0xff]  ;;  %v10684_v18 = vld [vmem:[#allocation126_spill] sm:$0xff] }
 0x617   : > { %v3698_v62 = vsel %vm1715_vm10, %v3666_v0, %v3331_v7 }
 0x61a   : > { %3460 = vrot.lane.b32.xlu2 %v10677_v1, %s4623_s22  ;;  %3186 = vrot.lane.b32.xlu1 %v7889_v2, %s4620_s19  ;;  %v3571_v2 = vsel %vm1583_vm7, %v8509_v9, %v8136_v44 }
 0x61b   : > { %3256 = vrot.lane.b32.xlu0 %v10516_v53, %s4621_s20  ;;  %v3603_v22 = vsel %vm1616_vm6, %v3571_v2, %v8279_v32  ;;  %v3512_v32 = vsel %vm1521_vm4, %v7151_v23, %v10679_v41  ;;  %v10680_v23 = vld [vmem:[#allocation159_spill] sm:$0xff]  ;;  %v10689_v2 = vld [vmem:[#allocation140_spill] sm:$0xff] }
 0x61c   : > { %v3177_v42 = vpop.permute.xlu2 %3176  ;;  %v3243_v58 = vpop.permute.xlu1 %3242  ;;  %v3635_v33 = vsel %vm1649_vm8, %v3603_v22, %v8369_v10 }
 0x61d   : > { %v3421_v49 = vpop.permute.xlu0 %3420  ;;  %v3667_v38 = vsel %vm1682_vm9, %v3635_v33, %v3243_v58  ;;  %v10685_v58 = vld [vmem:[#allocation76_spill] sm:$0xff] }
 0x61e   : > { %v3730_v52 = vsel %vm1748_vm12, %v3698_v62, %v3421_v49  ;;  %v3699_v10 = vsel %vm1715_vm10, %v3667_v38, %v3333_v57  ;;  %v10687_v62 = vld [vmem:[#allocation160_spill] sm:$0xff] }
 0x61f   : > { %4504 = vmatmul.msk.f32.vlgmr.msra.gmra.mxu1 %vm1790_vm11, %v3730_v52 }
 0x622   : > { %3346 = vrot.lane.b32.xlu2 %v10608_v45, %s4622_s21  ;;  %3436 = vrot.lane.b32.xlu1 %v10655_v40, %s4623_s22  ;;  %v3542_v45 = vsel %vm1552_vm5, %v3512_v32, %v7984_v34  ;;  %v10681_v34 = vld [vmem:[#allocation117_spill] sm:$0xff] }
 0x623   : > { %3282 = vrot.lane.b32.xlu0 %v7468_v27, %s4621_s20  ;;  %v3572_v40 = vsel %vm1583_vm7, %v3542_v45, %v8110_v25 }
 0x624   : > { %v3427_v44 = vpop.permute.xlu2 %3426  ;;  %v3245_v7 = vpop.permute.xlu1 %3244  ;;  %v3604_v46 = vsel %vm1616_vm6, %v3572_v40, %v8277_v26 }
 0x625   : > { %v3423_v31 = vpop.permute.xlu0 %3422  ;;  %v3636_v3 = vsel %vm1649_vm8, %v3604_v46, %v8416_v16  ;;  %v10683_v16 = vld [vmem:[#allocation188_spill] sm:$0xff] }
 0x626   : > { %v3731_v43 = vsel %vm1748_vm12, %v3699_v10, %v3423_v31  ;;  %v3668_v57 = vsel %vm1682_vm9, %v3636_v3, %v3245_v7  ;;  %v3513_v0 = vsel %vm1521_vm4, %v10684_v18, %v10683_v16  ;;  %v10690_v31 = vld [vmem:[#allocation61_spill] sm:$0xff]  ;;  %v10691_v10 = vld [vmem:[#allocation48_spill] sm:$0xff]  ;;  %v10694_v3 = vld [vmem:[#allocation86_spill] sm:$0xff] }
 0x627   : > { %4505 = vmatmul.msk.f32.gmra.mxu1 %vm1790_vm11, %v3731_v43  ;;  %v3700_v4 = vsel %vm1715_vm10, %v3668_v57, %v3335_v13  ;;  %v3543_v37 = vsel %vm1552_vm5, %v3513_v0, %v10685_v58  ;;  %v10688_v13 = vld [vmem:[#allocation28_spill] sm:$0xff]  ;;  %v3524_v45 = vsel %vm1521_vm4, %v10691_v10, %v10690_v31  ;;  %v10692_v43 = vld [vmem:[#allocation57_spill] sm:$0xff]  ;;  %v10696_v57 = vld [vmem:[#allocation102_spill] sm:$0xff] }
 0x628   : > { %v3573_v49 = vsel %vm1583_vm7, %v3543_v37, %v10686_v5  ;;  %v3554_v40 = vsel %vm1552_vm5, %v3524_v45, %v10692_v43  ;;  %v10693_v46 = vld [vmem:[#allocation16_spill] sm:$0xff]  ;;  %v10699_v5 = vld [vmem:[#allocation74_spill] sm:$0xff] }
 0x629   : > { %v3605_v52 = vsel %vm1616_vm6, %v3573_v49, %v10688_v13  ;;  %v10697_v58 = vld [vmem:[#allocation4_spill] sm:$0xff]  ;;  %v10700_v49 = vld [vmem:[#allocation2_spill] sm:$0xff] }
 0x62a   : > { %3372 = vrot.lane.b32.xlu2 %v10680_v23, %s4622_s21  ;;  %3258 = vrot.lane.b32.xlu1 %v10681_v34, %s4621_s20  ;;  %v3637_v22 = vsel %vm1649_vm8, %v3605_v52, %v8411_v56  ;;  %v3586_v56 = vsel %vm1583_vm7, %v3554_v40, %v10693_v46  ;;  %v10695_v23 = vld [vmem:[#allocation145_spill] sm:$0xff]  ;;  %v3525_v13 = vsel %vm1521_vm4, %v10700_v49, %v10699_v5  ;;  %v10704_v45 = vld [vmem:[#allocation132_spill] sm:$0xff]  ;;  %v10711_v5 = vld [vmem:[#allocation27_spill] sm:$0xff] }
 0x62b   : > { %3462 = vrot.lane.b32.xlu0 %v10682_v28, %s4623_s22  ;;  %v10705_v43 = vld [vmem:[#allocation68_spill] sm:$0xff] }
 0x62c   : > { %v3249_v25 = vpop.permute.xlu2 %3248  ;;  %v3247_v17 = vpop.permute.xlu1 %3246 }
 0x62d   : > { %v3425_v15 = vpop.permute.xlu0 %3424  ;;  %v3669_v7 = vsel %vm1682_vm9, %v3637_v22, %v3247_v17 }
 0x62e   : > { %v3732_v26 = vsel %vm1748_vm12, %v3700_v4, %v3425_v15 }
 0x62f   : > { %4506 = vmatmul.msk.f32.gmra.mxu1 %vm1790_vm11, %v3732_v26 }
 0x632   : > { %3188 = vrot.lane.b32.xlu2 %v10677_v1, %s4620_s19  ;;  %3284 = vrot.lane.b32.xlu1 %v10687_v62, %s4621_s20 }
 0x633   : > { %3348 = vrot.lane.b32.xlu0 %v10689_v2, %s4622_s21  ;;  %v10701_v2 = vld [vmem:[#allocation164_spill] sm:$0xff] }
 0x634   : > { %v3275_v33 = vpop.permute.xlu2 %3274  ;;  %v3273_v38 = vpop.permute.xlu1 %3272  ;;  %v3555_v22 = vsel %vm1552_vm5, %v3525_v13, %v10701_v2  ;;  %v10712_v13 = vld [vmem:[#allocation122_spill] sm:$0xff] }
 0x635   : > { %v3337_v41 = vpop.permute.xlu0 %3336 }
 0x636   : > { %v3701_v32 = vsel %vm1715_vm10, %v3669_v7, %v3337_v41 }
 0x637   : > { %v3733_v1 = vsel %vm1748_vm12, %v3701_v32, %v3427_v44  ;;  %v3618_v44 = vsel %vm1616_vm6, %v3586_v56, %v8337_v19  ;;  %v10698_v19 = vld [vmem:[#allocation101_spill] sm:$0xff]  ;;  %v10703_v32 = vld [vmem:[#allocation147_spill] sm:$0xff] }
 0x638   : > { %4507 = vmatmul.msk.f32.gmra.mxu1 %vm1790_vm11, %v3733_v1  ;;  %v3650_v17 = vsel %vm1649_vm8, %v3618_v44, %v3177_v42 }
 0x639   : > { %v3682_v26 = vsel %vm1682_vm9, %v3650_v17, %v3273_v38  ;;  %v10702_v38 = vld [vmem:[#allocation14_spill] sm:$0xff] }
 0x63a   : > { %3438 = vrot.lane.b32.xlu2 %v10694_v3, %s4623_s22  ;;  %3464 = vrot.lane.b32.xlu1 %v10695_v23, %s4623_s22  ;;  %v3587_v7 = vsel %vm1583_vm7, %v3555_v22, %v10702_v38  ;;  %v10713_v22 = vld [vmem:[#allocation190_spill] sm:$0xff] }
 0x63b   : > { %3374 = vrot.lane.b32.xlu0 %v10696_v57, %s4622_s21  ;;  %v3619_v41 = vsel %vm1616_vm6, %v3587_v7, %v8335_v51  ;;  %v10706_v51 = vld [vmem:[#allocation116_spill] sm:$0xff] }
 0x63c   : > { %v3455_v15 = vpop.permute.xlu2 %3454  ;;  %v3453_v4 = vpop.permute.xlu1 %3452 }
 0x63d   : > { %v3363_v16 = vpop.permute.xlu0 %3362 }
 0x63e   : > { %v3714_v18 = vsel %vm1715_vm10, %v3682_v26, %v3363_v16 }
 0x63f   : > { %v3746_v0 = vsel %vm1748_vm12, %v3714_v18, %v3453_v4  ;;  %v10709_v18 = vld [vmem:[#allocation30_spill] sm:$0xff] }
 0x640   : > { %4520 = vmatmul.msk.f32.vlgmr.msra.gmra.mxu3 %vm1790_vm11, %v3746_v0 }
 0x642   : > { %3260 = vrot.lane.b32.xlu2 %v10697_v58, %s4621_s20  ;;  %3350 = vrot.lane.b32.xlu1 %v10698_v19, %s4622_s21 }
 0x643   : > { %3190 = vrot.lane.b32.xlu0 %v10682_v28, %s4620_s19  ;;  %v3574_v28 = vsel %vm1583_vm7, %v8485_v35, %v10703_v32 }
 0x644   : > { %v3341_v42 = vpop.permute.xlu2 %3340  ;;  %v3339_v37 = vpop.permute.xlu1 %3338  ;;  %v3606_v31 = vsel %vm1616_vm6, %v3574_v28, %v8291_v39  ;;  %v10716_v28 = vld [vmem:[#allocation120_spill] sm:$0xff] }
 0x645   : > { %v3179_v52 = vpop.permute.xlu0 %3178  ;;  %v3638_v40 = vsel %vm1649_vm8, %v3606_v31, %v8381_v60  ;;  %v10707_v60 = vld [vmem:[#allocation125_spill] sm:$0xff] }
 0x646   : > { %v3651_v1 = vsel %vm1649_vm8, %v3619_v41, %v3179_v52  ;;  %v3670_v46 = vsel %vm1682_vm9, %v3638_v40, %v3249_v25  ;;  %v10708_v25 = vld [vmem:[#allocation62_spill] sm:$0xff]  ;;  %v10715_v41 = vld [vmem:[#allocation165_spill] sm:$0xff] }
 0x647   : > { %v3683_v3 = vsel %vm1682_vm9, %v3651_v1, %v3275_v33  ;;  %v3702_v39 = vsel %vm1715_vm10, %v3670_v46, %v3339_v37  ;;  %v10718_v46 = vld [vmem:[#allocation180_spill] sm:$0xff] }
 0x64a   : > { %3286 = vrot.lane.b32.xlu2 %v10704_v45, %s4621_s20  ;;  %3376 = vrot.lane.b32.xlu1 %v10705_v43, %s4622_s21  ;;  %v10717_v43 = vld [vmem:[#allocation161_spill] sm:$0xff] }
 0x64b   : > { %3440 = vrot.lane.b32.xlu0 %v10706_v51, %s4623_s22 }
 0x64c   : > { %v3367_v35 = vpop.permute.xlu2 %3366  ;;  %v3365_v56 = vpop.permute.xlu1 %3364 }
 0x64d   : > { %v3429_v44 = vpop.permute.xlu0 %3428  ;;  %v3715_v57 = vsel %vm1715_vm10, %v3683_v3, %v3365_v56 }
 0x64e   : > { %v3734_v17 = vsel %vm1748_vm12, %v3702_v39, %v3429_v44  ;;  %v3747_v4 = vsel %vm1748_vm12, %v3715_v57, %v3455_v15  ;;  %v3575_v15 = vsel %vm1583_vm7, %v8509_v9, %v10709_v18  ;;  %v10719_v57 = vld [vmem:[#allocation177_spill] sm:$0xff]  ;;  %v10722_v18 = vld [vmem:[#allocation148_spill] sm:$0xff] }
 0x64f   : > { %4508 = vmatmul.msk.f32.gmra.mxu1 %vm1790_vm11, %v3734_v17  ;;  %4521 = vmatmul.msk.f32.gmra.mxu3 %vm1790_vm11, %v3747_v4  ;;  %v3607_v0 = vsel %vm1616_vm6, %v3575_v15, %v8289_v63  ;;  %v10714_v63 = vld [vmem:[#allocation112_spill] sm:$0xff]  ;;  %v3514_v17 = vsel %vm1521_vm4, %v7185_v36, %v10719_v57 }
 0x650   : > { %v3639_v19 = vsel %vm1649_vm8, %v3607_v0, %v8443_v14  ;;  %v3526_v38 = vsel %vm1521_vm4, %v10714_v63, %v10713_v22  ;;  %v10720_v4 = vld [vmem:[#allocation60_spill] sm:$0xff] }
 0x651   : > { %v3556_v32 = vsel %vm1552_vm5, %v3526_v38, %v10715_v41  ;;  %v10725_v22 = vld [vmem:[#allocation100_spill] sm:$0xff]  ;;  %v10728_v41 = vld [vmem:[#allocation82_spill] sm:$0xff] }
 0x652   : > { %3466 = vrot.lane.b32.xlu2 %v10707_v60, %s4623_s22  ;;  %3192 = vrot.lane.b32.xlu1 %v10695_v23, %s4620_s19  ;;  %v10710_v23 = vld [vmem:[#allocation158_spill] sm:$0xff]  ;;  %v3588_v1 = vsel %vm1583_vm7, %v3556_v32, %v10716_v28  ;;  %v10729_v32 = vld [vmem:[#allocation69_spill] sm:$0xff]  ;;  %v10730_v28 = vld [vmem:[#allocation144_spill] sm:$0xff] }
 0x653   : > { %3262 = vrot.lane.b32.xlu0 %v10708_v25, %s4621_s20  ;;  %v3620_v31 = vsel %vm1616_vm6, %v3588_v1, %v8311_v24 }
 0x654   : > { %v3183_v33 = vpop.permute.xlu2 %3182  ;;  %v3181_v26 = vpop.permute.xlu1 %3180 }
 0x655   : > { %v3251_v16 = vpop.permute.xlu0 %3250 }
 0x656   : > { %v3671_v37 = vsel %vm1682_vm9, %v3639_v19, %v3251_v16 }
 0x657   : > { %v3703_v9 = vsel %vm1715_vm10, %v3671_v37, %v3341_v42  ;;  %v3652_v42 = vsel %vm1649_vm8, %v3620_v31, %v3181_v26  ;;  %v3544_v26 = vsel %vm1552_vm5, %v3514_v17, %v10720_v4  ;;  %v10733_v4 = vld [vmem:[#allocation46_spill] sm:$0xff] }
 0x65a   : > { %3352 = vrot.lane.b32.xlu2 %v10710_v23, %s4622_s21  ;;  %3442 = vrot.lane.b32.xlu1 %v10711_v5, %s4623_s22 }
 0x65b   : > { %3288 = vrot.lane.b32.xlu0 %v10712_v13, %s4621_s20 }
 0x65c   : > { %v3433_v52 = vpop.permute.xlu2 %3432  ;;  %v3431_v2 = vpop.permute.xlu1 %3430 }
 0x65d   : > { %v3277_v14 = vpop.permute.xlu0 %3276  ;;  %v3735_v7 = vsel %vm1748_vm12, %v3703_v9, %v3431_v2  ;;  %v10724_v9 = vld [vmem:[#allocation25_spill] sm:$0xff] }
 0x65e   : > { %4509 = vmatmul.msk.f32.gmra.mxu1 %vm1790_vm11, %v3735_v7  ;;  %v3684_v40 = vsel %vm1682_vm9, %v3652_v42, %v3277_v14  ;;  %v3527_v38 = vsel %vm1521_vm4, %v10725_v22, %v10724_v9  ;;  %v10726_v14 = vld [vmem:[#allocation89_spill] sm:$0xff]  ;;  %v10727_v7 = vld [vmem:[#allocation110_spill] sm:$0xff] }
 0x65f   : > { %v3716_v44 = vsel %vm1715_vm10, %v3684_v40, %v3367_v35  ;;  %v10723_v35 = vld [vmem:[#allocation92_spill] sm:$0xff] }
 0x662   : > { %3378 = vrot.lane.b32.xlu2 %v10717_v43, %s4622_s21  ;;  %3168 = vrot.lane.b32.xlu1 %v10706_v51, %s4620_s19  ;;  %v10721_v51 = vld [vmem:[#allocation183_spill] sm:$0xff] }
 0x663   : > { %3468 = vrot.lane.b32.xlu0 %v10718_v46, %s4623_s22  ;;  %v3576_v16 = vsel %vm1583_vm7, %v3544_v26, %v10721_v51  ;;  %v10734_v51 = vld [vmem:[#allocation54_spill] sm:$0xff] }
 0x664   : > { %v3255_v56 = vpop.permute.xlu2 %3254  ;;  %v3253_v3 = vpop.permute.xlu1 %3252  ;;  %v3608_v15 = vsel %vm1616_vm6, %v3576_v16, %v10723_v35  ;;  %v3515_v16 = vsel %vm1521_vm4, %v7182_v50, %v10734_v51  ;;  %v10736_v35 = vld [vmem:[#allocation182_spill] sm:$0xff]  ;;  %v10739_v50 = vld [vmem:[#allocation143_spill] sm:$0xff] }
 0x665   : > { %v3457_v39 = vpop.permute.xlu0 %3456  ;;  %v3640_v36 = vsel %vm1649_vm8, %v3608_v15, %v8438_v11 }
 0x666   : > { %v3748_v24 = vsel %vm1748_vm12, %v3716_v44, %v3457_v39  ;;  %v3672_v37 = vsel %vm1682_vm9, %v3640_v36, %v3253_v3  ;;  %v10731_v44 = vld [vmem:[#allocation43_spill] sm:$0xff]  ;;  %v10737_v36 = vld [vmem:[#allocation184_spill] sm:$0xff] }
 0x667   : > { %4522 = vmatmul.msk.f32.gmra.mxu3 %vm1790_vm11, %v3748_v24  ;;  %v10732_v24 = vld [vmem:[#allocation107_spill] sm:$0xff] }
 0x668   : > { %v3528_v57 = vsel %vm1521_vm4, %v7558_v61, %v10732_v24  ;;  %v10747_v24 = vld [vmem:[#allocation18_spill] sm:$0xff] }
 0x669   : > { %v3558_v26 = vsel %vm1552_vm5, %v3528_v57, %v10733_v4 }
 0x66a   : > { %3264 = vrot.lane.b32.xlu2 %v10691_v10, %s4621_s20  ;;  %3354 = vrot.lane.b32.xlu1 %v10722_v18, %s4622_s21  ;;  %v10735_v18 = vld [vmem:[#allocation47_spill] sm:$0xff] }
 0x66b   : > { %3194 = vrot.lane.b32.xlu0 %v10707_v60, %s4620_s19  ;;  %v3557_v60 = vsel %vm1552_vm5, %v3527_v38, %v10726_v14 }
 0x66c   : > { %v3281_v0 = vpop.permute.xlu2 %3280  ;;  %v3279_v19 = vpop.permute.xlu1 %3278  ;;  %v3589_v11 = vsel %vm1583_vm7, %v3557_v60, %v10727_v7 }
 0x66d   : > { %v3343_v23 = vpop.permute.xlu0 %3342 }
 0x66e   : > { %v3704_v2 = vsel %vm1715_vm10, %v3672_v37, %v3343_v23  ;;  %v10738_v37 = vld [vmem:[#allocation50_spill] sm:$0xff] }
 0x66f   : > { %v3736_v10 = vsel %vm1748_vm12, %v3704_v2, %v3433_v52  ;;  %v3621_v52 = vsel %vm1616_vm6, %v3589_v11, %v8349_v59 }
 0x670   : > { %4510 = vmatmul.msk.f32.gmra.mxu1 %vm1790_vm11, %v3736_v10  ;;  %v3653_v1 = vsel %vm1649_vm8, %v3621_v52, %v3183_v33  ;;  %v10740_v10 = vld [vmem:[#allocation51_spill] sm:$0xff]  ;;  %v10744_v52 = vld [vmem:[#allocation73_spill] sm:$0xff] }
 0x671   : > { %v3685_v43 = vsel %vm1682_vm9, %v3653_v1, %v3279_v19  ;;  %v3516_v1 = vsel %vm1521_vm4, %v7297_v21, %v10744_v52 }
 0x672   : > { %3290 = vrot.lane.b32.xlu2 %v10728_v41, %s4621_s20  ;;  %3380 = vrot.lane.b32.xlu1 %v10729_v32, %s4622_s21 }
 0x673   : > { %3444 = vrot.lane.b32.xlu0 %v10730_v28, %s4623_s22 }
 0x674   : > { %v3461_v31 = vpop.permute.xlu2 %3460  ;;  %v3459_v42 = vpop.permute.xlu1 %3458 }
 0x675   : > { %v3369_v40 = vpop.permute.xlu0 %3368 }
 0x676   : > { %v3717_v3 = vsel %vm1715_vm10, %v3685_v43, %v3369_v40 }
 0x677   : > { %v3749_v39 = vsel %vm1748_vm12, %v3717_v3, %v3459_v42 }
 0x678   : > { %4523 = vmatmul.msk.f32.gmra.mxu3 %vm1790_vm11, %v3749_v39  ;;  %v10746_v39 = vld [vmem:[#allocation128_spill] sm:$0xff] }
 0x67a   : > { %3470 = vrot.lane.b32.xlu2 %v10731_v44, %s4623_s22  ;;  %3266 = vrot.lane.b32.xlu1 %v10700_v49, %s4621_s20  ;;  %v3590_v49 = vsel %vm1583_vm7, %v3558_v26, %v10735_v18 }
 0x67b   : > { %3170 = vrot.lane.b32.xlu0 %v10711_v5, %s4620_s19  ;;  %v3545_v5 = vsel %vm1552_vm5, %v3515_v16, %v10736_v35  ;;  %v3622_v15 = vsel %vm1616_vm6, %v3590_v49, %v8347_v29  ;;  %v10748_v16 = vld [vmem:[#allocation24_spill] sm:$0xff]  ;;  %v10749_v35 = vld [vmem:[#allocation29_spill] sm:$0xff] }
 0x67c   : > { %v3347_v59 = vpop.permute.xlu2 %3346  ;;  %v3345_v33 = vpop.permute.xlu1 %3344  ;;  %v3577_v61 = vsel %vm1583_vm7, %v3545_v5, %v10737_v36  ;;  %v3529_v18 = vsel %vm1521_vm4, %v7437_v30, %v10748_v16  ;;  %v10752_v36 = vld [vmem:[#allocation162_spill] sm:$0xff] }
 0x67d   : > { %v3185_v17 = vpop.permute.xlu0 %3184  ;;  %v3609_v23 = vsel %vm1616_vm6, %v3577_v61, %v10738_v37  ;;  %v10753_v61 = vld [vmem:[#allocation131_spill] sm:$0xff] }
 0x67e   : > { %v3654_v19 = vsel %vm1649_vm8, %v3622_v15, %v3185_v17  ;;  %v3641_v2 = vsel %vm1649_vm8, %v3609_v23, %v8393_v48  ;;  %v10741_v48 = vld [vmem:[#allocation65_spill] sm:$0xff]  ;;  %v10751_v15 = vld [vmem:[#allocation167_spill] sm:$0xff] }
 0x67f   : > { %v3673_v29 = vsel %vm1682_vm9, %v3641_v2, %v3255_v56  ;;  %v3686_v14 = vsel %vm1682_vm9, %v3654_v19, %v3281_v0  ;;  %v10742_v56 = vld [vmem:[#allocation21_spill] sm:$0xff] }
 0x680   : > { %v3705_v60 = vsel %vm1715_vm10, %v3673_v29, %v3345_v33  ;;  %v10743_v0 = vld [vmem:[#allocation169_spill] sm:$0xff] }
 0x681   : > { %v10755_v29 = vld [vmem:[#allocation13_spill] sm:$0xff] }
 0x682   : > { %3196 = vrot.lane.b32.xlu2 %v10718_v46, %s4620_s19  ;;  %3292 = vrot.lane.b32.xlu1 %v10739_v50, %s4621_s20 }
 0x683   : > { %3356 = vrot.lane.b32.xlu0 %v10740_v10, %s4622_s21  ;;  %v10754_v10 = vld [vmem:[#allocation8_spill] sm:$0xff] }
 0x684   : > { %v3373_v9 = vpop.permute.xlu2 %3372  ;;  %v3371_v38 = vpop.permute.xlu1 %3370 }
 0x685   : > { %v3435_v7 = vpop.permute.xlu0 %3434  ;;  %v3718_v46 = vsel %vm1715_vm10, %v3686_v14, %v3371_v38 }
 0x686   : > { %v3737_v11 = vsel %vm1748_vm12, %v3705_v60, %v3435_v7  ;;  %v3750_v32 = vsel %vm1748_vm12, %v3718_v46, %v3461_v31  ;;  %v10745_v31 = vld [vmem:[#allocation10_spill] sm:$0xff] }
 0x687   : > { %4511 = vmatmul.msk.f32.gmra.mxu1 %vm1790_vm11, %v3737_v11  ;;  %4524 = vmatmul.msk.f32.gmra.mxu3 %vm1790_vm11, %v3750_v32  ;;  %v3546_v40 = vsel %vm1552_vm5, %v3516_v1, %v10745_v31  ;;  %v10756_v11 = vld [vmem:[#allocation163_spill] sm:$0xff]  ;;  %v10757_v32 = vld [vmem:[#allocation113_spill] sm:$0xff]  ;;  %v10759_v1 = vld [vmem:[#allocation174_spill] sm:$0xff] }
 0x688   : > { %v3578_v33 = vsel %vm1583_vm7, %v3546_v40, %v10746_v39  ;;  %v10761_v31 = vld [vmem:[#allocation186_spill] sm:$0xff] }
 0x689   : > { %v3610_v57 = vsel %vm1616_vm6, %v3578_v33, %v10747_v24 }
 0x68a   : > { %3446 = vrot.lane.b32.xlu2 %v10741_v48, %s4623_s22  ;;  %3472 = vrot.lane.b32.xlu1 %v10742_v56, %s4623_s22  ;;  %v3642_v17 = vsel %vm1649_vm8, %v3610_v57, %v8460_v8 }
 0x68b   : > { %3382 = vrot.lane.b32.xlu0 %v10743_v0, %s4622_s21  ;;  %v3530_v0 = vsel %vm1521_vm4, %v10757_v32, %v10756_v11 }
 0x68c   : > { %v3189_v42 = vpop.permute.xlu2 %3188  ;;  %v3187_v43 = vpop.permute.xlu1 %3186 }
 0x68d   : > { %v3257_v3 = vpop.permute.xlu0 %3256 }
 0x68e   : > { %v3674_v4 = vsel %vm1682_vm9, %v3642_v17, %v3257_v3 }
 0x68f   : > { %v3706_v51 = vsel %vm1715_vm10, %v3674_v4, %v3347_v59  ;;  %v10762_v4 = vld [vmem:[#allocation179_spill] sm:$0xff] }
 0x690   : > { %v2767_v16 = vrot.slane %v10762_v4, 2 }
 0x692   : > { %3172 = vrot.lane.b32.xlu2 %v10730_v28, %s4620_s19  ;;  %3198 = vrot.lane.b32.xlu1 %v10731_v44, %s4620_s19  ;;  %v3559_v28 = vsel %vm1552_vm5, %v3529_v18, %v10749_v35  ;;  %v10750_v44 = vld [vmem:[#allocation185_spill] sm:$0xff] }
 0x693   : > { %3268 = vrot.lane.b32.xlu0 %v10714_v63, %s4621_s20  ;;  %v3591_v5 = vsel %vm1583_vm7, %v3559_v28, %v10750_v44  ;;  %v10767_v28 = vld [vmem:[#allocation78_spill] sm:$0xff] }
 0x694   : > { %v3439_v21 = vpop.permute.xlu2 %3438  ;;  %v3437_v26 = vpop.permute.xlu1 %3436  ;;  %v3623_v63 = vsel %vm1616_vm6, %v3591_v5, %v8321_v6  ;;  %v10768_v5 = vld [vmem:[#allocation79_spill] sm:$0xff] }
 0x695   : > { %v3283_v8 = vpop.permute.xlu0 %3282  ;;  %v3738_v49 = vsel %vm1748_vm12, %v3706_v51, %v3437_v26  ;;  %v3655_v59 = vsel %vm1649_vm8, %v3623_v63, %v3187_v43  ;;  %v10765_v26 = vld [vmem:[#allocation67_spill] sm:$0xff] }
 0x696   : > { %4512 = vmatmul.msk.f32.gmra.mxu1 %vm1790_vm11, %v3738_v49  ;;  %v3687_v30 = vsel %vm1682_vm9, %v3655_v59, %v3283_v8  ;;  %v2768_v51 = vrot.slane %v10765_v26, 2  ;;  %v10766_v49 = vld [vmem:[#allocation38_spill] sm:$0xff]  ;;  %v10769_v59 = vld [vmem:[#allocation175_spill] sm:$0xff] }
 0x697   : > { %v3719_v2 = vsel %vm1715_vm10, %v3687_v30, %v3373_v9  ;;  %v3531_v35 = vsel %vm1521_vm4, %v7449_v47, %v10766_v49  ;;  %v10778_v49 = vld [vmem:[#allocation32_spill] sm:$0xff] }
 0x698   : > { %v3561_v44 = vsel %vm1552_vm5, %v3531_v35, %v10767_v28  ;;  %v2769_v30 = vsel %vm695_vm2, %v2767_v16, %v2768_v51  ;;  %v10779_v28 = vld [vmem:[#allocation146_spill] sm:$0xff] }
 0x699   : > { %v3593_v63 = vsel %vm1583_vm7, %v3561_v44, %v10768_v5  ;;  %v10780_v5 = vld [vmem:[#allocation192_spill] sm:$0xff] }
 0x69a   : > { %3358 = vrot.lane.b32.xlu2 %v10751_v15, %s4622_s21  ;;  %3448 = vrot.lane.b32.xlu1 %v10752_v36, %s4623_s22  ;;  %v3625_v15 = vsel %vm1616_vm6, %v3593_v63, %v10769_v59  ;;  %v10781_v59 = vld [vmem:[#allocation11_spill] sm:$0xff] }
 0x69b   : > { %3294 = vrot.lane.b32.xlu0 %v10753_v61, %s4621_s20 }
 0x69c   : > { %v3261_v19 = vpop.permute.xlu2 %3260  ;;  %v3259_v23 = vpop.permute.xlu1 %3258 }
 0x69d   : > { %v3463_v37 = vpop.permute.xlu0 %3462  ;;  %v3675_v14 = vsel %vm1682_vm9, %v8463_v12, %v3259_v23  ;;  %v10760_v12 = vld [vmem:[#allocation83_spill] sm:$0xff]  ;;  %v3676_v47 = vsel %vm1682_vm9, %v8414_v54, %v3261_v19  ;;  %v10771_v54 = vld [vmem:[#allocation138_spill] sm:$0xff] }
 0x69e   : > { %v3751_v6 = vsel %vm1748_vm12, %v3719_v2, %v3463_v37 }
 0x69f   : > { %4525 = vmatmul.msk.f32.gmra.mxu3 %vm1790_vm11, %v3751_v6 }
 0x6a2   : > { %3384 = vrot.lane.b32.xlu2 %v10754_v10, %s4622_s21  ;;  %3174 = vrot.lane.b32.xlu1 %v10741_v48, %s4620_s19  ;;  %v10758_v48 = vld [vmem:[#allocation96_spill] sm:$0xff] }
 0x6a3   : > { %3474 = vrot.lane.b32.xlu0 %v10755_v29, %s4623_s22  ;;  %v3560_v52 = vsel %vm1552_vm5, %v3530_v0, %v10758_v48  ;;  %v10772_v48 = vld [vmem:[#allocation136_spill] sm:$0xff] }
 0x6a4   : > { %v3287_v38 = vpop.permute.xlu2 %3286  ;;  %v3285_v7 = vpop.permute.xlu1 %3284  ;;  %v3592_v43 = vsel %vm1583_vm7, %v3560_v52, %v10759_v1  ;;  %v3532_v52 = vsel %vm1521_vm4, %v7589_v20, %v10772_v48  ;;  %v10786_v48 = vld [vmem:[#allocation52_spill] sm:$0xff] }
 0x6a5   : > { %v3349_v60 = vpop.permute.xlu0 %3348  ;;  %v3624_v40 = vsel %vm1616_vm6, %v3592_v43, %v10761_v31  ;;  %v10773_v31 = vld [vmem:[#allocation191_spill] sm:$0xff] }
 0x6a6   : > { %v3707_v9 = vsel %vm1715_vm10, %v3675_v14, %v3349_v60  ;;  %v3656_v3 = vsel %vm1649_vm8, %v3624_v40, %v3189_v42  ;;  %v3562_v40 = vsel %vm1552_vm5, %v3532_v52, %v10773_v31 }
 0x6a7   : > { %v3739_v46 = vsel %vm1748_vm12, %v3707_v9, %v3439_v21  ;;  %v3688_v33 = vsel %vm1682_vm9, %v3656_v3, %v3285_v7  ;;  %v10763_v21 = vld [vmem:[#allocation139_spill] sm:$0xff] }
 0x6a8   : > { %4513 = vmatmul.msk.f32.gmra.mxu1 %vm1790_vm11, %v3739_v46  ;;  %v10770_v7 = vld [vmem:[#allocation103_spill] sm:$0xff] }
 0x6a9   : > { %v2770_v9 = vrot.slane %v10770_v7, 2 }
 0x6aa   : > { %3270 = vrot.lane.b32.xlu2 %v10725_v22, %s4621_s20  ;;  %3360 = vrot.lane.b32.xlu1 %v10760_v12, %s4622_s21 }
 0x6ab   : > { %3200 = vrot.lane.b32.xlu0 %v10742_v56, %s4620_s19  ;;  %v10764_v56 = vld [vmem:[#allocation40_spill] sm:$0xff]  ;;  %v2771_v19 = vsel %vm695_vm2, %v2768_v51, %v2770_v9 }
 0x6ac   : > { %v3467_v39 = vpop.permute.xlu2 %3466  ;;  %v3465_v57 = vpop.permute.xlu1 %3464 }
 0x6ad   : > { %v3375_v24 = vpop.permute.xlu0 %3374 }
 0x6ae   : > { %v3720_v17 = vsel %vm1715_vm10, %v3688_v33, %v3375_v24 }
 0x6af   : > { %v3752_v22 = vsel %vm1748_vm12, %v3720_v17, %v3465_v57 }
 0x6b0   : > { %4526 = vmatmul.msk.f32.gmra.mxu3 %vm1790_vm11, %v3752_v22 }
 0x6b2   : > { %3296 = vrot.lane.b32.xlu2 %v10762_v4, %s4621_s20  ;;  %3386 = vrot.lane.b32.xlu1 %v10763_v21, %s4622_s21 }
 0x6b3   : > { %3450 = vrot.lane.b32.xlu0 %v10764_v56, %s4623_s22 }
 0x6b4   : > { %v3353_v42 = vpop.permute.xlu2 %3352  ;;  %v3351_v8 = vpop.permute.xlu1 %3350 }
 0x6b5   : > { %v3191_v18 = vpop.permute.xlu0 %3190  ;;  %v3708_v23 = vsel %vm1715_vm10, %v3676_v47, %v3351_v8  ;;  %v10783_v47 = vld [vmem:[#allocation195_spill] sm:$0xff] }
 0x6b6   : > { %v3657_v36 = vsel %vm1649_vm8, %v3625_v15, %v3191_v18  ;;  %v10777_v18 = vld [vmem:[#allocation53_spill] sm:$0xff] }
 0x6b7   : > { %v3689_v10 = vsel %vm1682_vm9, %v3657_v36, %v3287_v38  ;;  %v3533_v8 = vsel %vm1521_vm4, %v7468_v27, %v10777_v18 }
 0x6b8   : > { %v3563_v44 = vsel %vm1552_vm5, %v3533_v8, %v10779_v28  ;;  %v10792_v8 = vld [vmem:[#allocation181_spill] sm:$0xff] }
 0x6b9   : > { %v3595_v15 = vsel %vm1583_vm7, %v3563_v44, %v10781_v59  ;;  %v10793_v44 = vld [vmem:[#allocation137_spill] sm:$0xff] }
 0x6ba   : > { %3476 = vrot.lane.b32.xlu2 %v2769_v30, %s4623_s22  ;;  %3298 = vrot.lane.b32.xlu1 %v10765_v26, %s4621_s20 }
 0x6bb   : > { %3202 = vrot.lane.b32.xlu0 %v10755_v29, %s4620_s19 }
 0x6bc   : > { %v3379_v37 = vpop.permute.xlu2 %3378  ;;  %v3377_v6 = vpop.permute.xlu1 %3376 }
 0x6bd   : > { %v3441_v2 = vpop.permute.xlu0 %3440  ;;  %v3721_v14 = vsel %vm1715_vm10, %v3689_v10, %v3377_v6 }
 0x6be   : > { %v3740_v60 = vsel %vm1748_vm12, %v3708_v23, %v3441_v2  ;;  %v3753_v29 = vsel %vm1748_vm12, %v3721_v14, %v3467_v39  ;;  %v10774_v39 = vld [vmem:[#allocation34_spill] sm:$0xff] }
 0x6bf   : > { %4514 = vmatmul.msk.f32.gmra.mxu1 %vm1790_vm11, %v3740_v60  ;;  %4527 = vmatmul.msk.f32.gmra.mxu3 %vm1790_vm11, %v3753_v29  ;;  %v3594_v33 = vsel %vm1583_vm7, %v3562_v40, %v10774_v39 }
 0x6c2   : > { %3388 = vrot.lane.b32.xlu2 %v10771_v54, %s4622_s21  ;;  %3204 = vrot.lane.b32.xlu1 %v2769_v30, %s4620_s19  ;;  %v10782_v30 = vld [vmem:[#allocation149_spill] sm:$0xff] }
 0x6c3   : > { %3478 = vrot.lane.b32.xlu0 %v2771_v19, %s4623_s22 }
 0x6c4   : > { %v3265_v38 = vpop.permute.xlu2 %3264  ;;  %v3193_v11 = vpop.permute.xlu1 %3192 }
 0x6c5   : > { %v3263_v46 = vpop.permute.xlu0 %3262 }
 0x6c6   : > { %v3677_v32 = vsel %vm1682_vm9, %v8488_v55, %v3263_v46  ;;  %v10775_v55 = vld [vmem:[#allocation36_spill] sm:$0xff] }
 0x6c7   : > { %v3709_v12 = vsel %vm1715_vm10, %v3677_v32, %v3353_v42  ;;  %v3626_v24 = vsel %vm1616_vm6, %v3594_v33, %v10775_v55  ;;  %v10776_v42 = vld [vmem:[#allocation106_spill] sm:$0xff]  ;;  %v10785_v32 = vld [vmem:[#allocation23_spill] sm:$0xff]  ;;  %v10788_v55 = vld [vmem:[#allocation172_spill] sm:$0xff] }
 0x6c8   : > { %v3658_v57 = vsel %vm1649_vm8, %v3626_v24, %v3193_v11  ;;  %v3520_v26 = vsel %vm1521_vm4, %v10516_v53, %v10776_v42  ;;  %v3534_v24 = vsel %vm1521_vm4, %v10687_v62, %v10788_v55  ;;  %v10804_v55 = vld [vmem:[#allocation91_spill] sm:$0xff] }
 0x6c9   : > { %v3550_v35 = vsel %vm1552_vm5, %v3520_v26, %v10778_v49  ;;  %v3522_v49 = vsel %vm1521_vm4, %v10697_v58, %v10792_v8 }
 0x6ca   : > { %3206 = vrot.lane.b32.xlu2 %v2771_v19, %s4620_s19  ;;  %v3582_v63 = vsel %vm1583_vm7, %v3550_v35, %v10780_v5  ;;  %v3552_v5 = vsel %vm1552_vm5, %v3522_v49, %v10793_v44 }
 0x6cb   : > { %v3614_v53 = vsel %vm1616_vm6, %v3582_v63, %v10782_v30  ;;  %v10794_v63 = vld [vmem:[#allocation173_spill] sm:$0xff] }
 0x6cc   : > { %v3291_v0 = vpop.permute.xlu2 %3290  ;;  %v3443_v43 = vpop.permute.xlu1 %3442  ;;  %v3584_v59 = vsel %vm1583_vm7, %v3552_v5, %v10794_v63  ;;  %v10808_v5 = vld [vmem:[#allocation22_spill] sm:$0xff] }
 0x6cd   : > { %v3289_v1 = vpop.permute.xlu0 %3288  ;;  %v3741_v3 = vsel %vm1748_vm12, %v3709_v12, %v3443_v43  ;;  %v3537_v63 = vsel %vm1521_vm4, %v10728_v41, %v10808_v5 }
 0x6ce   : > { %4515 = vmatmul.msk.f32.gmra.mxu1 %vm1790_vm11, %v3741_v3  ;;  %v3690_v20 = vsel %vm1682_vm9, %v3658_v57, %v3289_v1  ;;  %v10787_v1 = vld [vmem:[#allocation81_spill] sm:$0xff] }
 0x6cf   : > { %v3722_v4 = vsel %vm1715_vm10, %v3690_v20, %v3379_v37  ;;  %v3627_v37 = vsel %vm1616_vm6, %v3595_v15, %v10783_v47  ;;  %v10789_v57 = vld [vmem:[#allocation77_spill] sm:$0xff]  ;;  %v10795_v15 = vld [vmem:[#allocation194_spill] sm:$0xff] }
 0x6d0   : > { %v3564_v20 = vsel %vm1552_vm5, %v3534_v24, %v10789_v57  ;;  %v3616_v30 = vsel %vm1616_vm6, %v3584_v59, %v10795_v15  ;;  %v10805_v57 = vld [vmem:[#allocation70_spill] sm:$0xff]  ;;  %v10809_v59 = vld [vmem:[#allocation108_spill] sm:$0xff] }
 0x6d1   : > { %v3567_v15 = vsel %vm1552_vm5, %v3537_v63, %v10809_v59 }
 0x6d4   : > { %v3169_v22 = vpop.permute.xlu1 %3168  ;;  %v3471_v21 = vpop.permute.xlu2 %3470 }
 0x6d5   : > { %v3469_v17 = vpop.permute.xlu0 %3468  ;;  %v3646_v27 = vsel %vm1649_vm8, %v3614_v53, %v3169_v22 }
 0x6d6   : > { %v3754_v56 = vsel %vm1748_vm12, %v3722_v4, %v3469_v17  ;;  %v3678_v2 = vsel %vm1682_vm9, %v3646_v27, %v3265_v38  ;;  %v10784_v38 = vld [vmem:[#allocation19_spill] sm:$0xff]  ;;  %v10790_v17 = vld [vmem:[#allocation37_spill] sm:$0xff] }
 0x6d7   : > { %4528 = vmatmul.msk.f32.gmra.mxu3 %vm1790_vm11, %v3754_v56  ;;  %v3521_v11 = vsel %vm1521_vm4, %v10681_v34, %v10784_v38  ;;  %v3596_v22 = vsel %vm1583_vm7, %v3564_v20, %v10790_v17  ;;  %v10791_v4 = vld [vmem:[#allocation49_spill] sm:$0xff]  ;;  %v10806_v17 = vld [vmem:[#allocation75_spill] sm:$0xff] }
 0x6dc   : > { %v3355_v16 = vpop.permute.xlu1 %3354  ;;  %v3197_v36 = vpop.permute.xlu2 %3196 }
 0x6dd   : > { %v3195_v51 = vpop.permute.xlu0 %3194  ;;  %v3710_v6 = vsel %vm1715_vm10, %v3678_v2, %v3355_v16 }
 0x6de   : > { %v3659_v23 = vsel %vm1649_vm8, %v3627_v37, %v3195_v51  ;;  %v10796_v37 = vld [vmem:[#allocation154_spill] sm:$0xff] }
 0x6df   : > { %v3691_v60 = vsel %vm1682_vm9, %v3659_v23, %v3291_v0  ;;  %v3551_v0 = vsel %vm1552_vm5, %v3521_v11, %v10785_v32  ;;  %v3535_v58 = vsel %vm1521_vm4, %v10704_v45, %v10796_v37 }
 0x6e0   : > { %v3583_v52 = vsel %vm1583_vm7, %v3551_v0, %v10786_v48  ;;  %v10800_v48 = vld [vmem:[#allocation171_spill] sm:$0xff] }
 0x6e1   : > { %v3615_v43 = vsel %vm1616_vm6, %v3583_v52, %v10787_v1  ;;  %v3523_v52 = vsel %vm1521_vm4, %v10708_v25, %v10800_v48 }
 0x6e4   : > { %v3381_v14 = vpop.permute.xlu1 %3380  ;;  %v3447_v54 = vpop.permute.xlu2 %3446 }
 0x6e5   : > { %v3445_v10 = vpop.permute.xlu0 %3444  ;;  %v3723_v7 = vsel %vm1715_vm10, %v3691_v60, %v3381_v14  ;;  %v10798_v60 = vld [vmem:[#allocation189_spill] sm:$0xff] }
 0x6e6   : > { %v3742_v9 = vsel %vm1748_vm12, %v3710_v6, %v3445_v10  ;;  %v3755_v29 = vsel %vm1748_vm12, %v3723_v7, %v3471_v21  ;;  %v3628_v21 = vsel %vm1616_vm6, %v3596_v22, %v10791_v4  ;;  %v10797_v6 = vld [vmem:[#allocation17_spill] sm:$0xff]  ;;  %v10807_v22 = vld [vmem:[#allocation35_spill] sm:$0xff] }
 0x6e7   : > { %4516 = vmatmul.msk.f32.gmra.mxu1 %vm1790_vm11, %v3742_v9  ;;  %4529 = vmatmul.msk.f32.gmra.mxu3 %vm1790_vm11, %v3755_v29  ;;  %v3660_v56 = vsel %vm1649_vm8, %v3628_v21, %v3197_v36  ;;  %v3565_v10 = vsel %vm1552_vm5, %v3535_v58, %v10797_v6  ;;  %v10799_v9 = vld [vmem:[#allocation111_spill] sm:$0xff]  ;;  %v10811_v58 = vld [vmem:[#allocation94_spill] sm:$0xff] }
 0x6e8   : > { %v3597_v7 = vsel %vm1583_vm7, %v3565_v10, %v10798_v60 }
 0x6e9   : > { %v3629_v29 = vsel %vm1616_vm6, %v3597_v7, %v10799_v9  ;;  %v10813_v7 = vld [vmem:[#allocation109_spill] sm:$0xff] }
 0x6ec   : > { %v3267_v46 = vpop.permute.xlu1 %3266  ;;  %v3173_v31 = vpop.permute.xlu2 %3172 }
 0x6ed   : > { %v3171_v19 = vpop.permute.xlu0 %3170  ;;  %v3648_v36 = vsel %vm1649_vm8, %v3616_v30, %v3173_v31  ;;  %v10810_v30 = vld [vmem:[#allocation55_spill] sm:$0xff] }
 0x6ee   : > { %v3647_v12 = vsel %vm1649_vm8, %v3615_v43, %v3171_v19 }
 0x6ef   : > { %v3679_v40 = vsel %vm1682_vm9, %v3647_v12, %v3267_v46  ;;  %v10801_v12 = vld [vmem:[#allocation88_spill] sm:$0xff] }
 0x6f0   : > { %v3536_v31 = vsel %vm1521_vm4, %v10712_v13, %v10801_v12 }
 0x6f4   : > { %v8930_v39 = vpop.permute.xlu1 %3292  ;;  %v3359_v62 = vpop.permute.xlu2 %3358 }
 0x6f5   : > { %v3357_v3 = vpop.permute.xlu0 %3356  ;;  %v3692_v42 = vsel %vm1682_vm9, %v3660_v56, %v8930_v39  ;;  %v9013_v56 = vpop.f32.mrf.mxu1 }
 0x6f6   : > { %v3711_v33 = vsel %vm1715_vm10, %v3679_v40, %v3357_v3  ;;  %v10802_v40 = vld [vmem:[#allocation119_spill] sm:$0xff] }
 0x6f7   : > { %v3743_v34 = vsel %vm1748_vm12, %v3711_v33, %v3447_v54  ;;  %v3553_v3 = vsel %vm1552_vm5, %v3523_v52, %v10802_v40  ;;  %v10803_v33 = vld [vmem:[#allocation5_spill] sm:$0xff]  ;;  %v10817_v40 = vld [vmem:[#allocation66_spill] sm:$0xff] }
 0x6f8   : > { %4517 = vmatmul.msk.f32.gmra.mxu1 %vm1790_vm11, %v3743_v34  ;;  %v3566_v34 = vsel %vm1552_vm5, %v3536_v31, %v10803_v33  ;;  %v3585_v24 = vsel %vm1583_vm7, %v3553_v3, %v10804_v55  ;;  %v10819_v55 = vld [vmem:[#allocation123_spill] sm:$0xff] }
 0x6f9   : > { %v3598_v20 = vsel %vm1583_vm7, %v3566_v34, %v10805_v57  ;;  %v3617_v25 = vsel %vm1616_vm6, %v3585_v24, %v10806_v17  ;;  %v10818_v34 = vld [vmem:[#allocation39_spill] sm:$0xff] }
 0x6fa   : > { %v3630_v4 = vsel %vm1616_vm6, %v3598_v20, %v10807_v22 }
 0x6fc   : > { %v8949_v51 = vpop.permute.xlu1 %3472  ;;  %v8965_v53 = vpop.permute.xlu2 %3384 }
 0x6fd   : > { %v8947_v26 = vpop.permute.xlu0 %3382 }
 0x6fe   : > { %v3724_v16 = vsel %vm1715_vm10, %v3692_v42, %v8947_v26 }
 0x6ff   : > { %v3756_v18 = vsel %vm1748_vm12, %v3724_v16, %v8949_v51 }
 0x700   : > { %4530 = vmatmul.msk.f32.gmra.mxu3 %vm1790_vm11, %v3756_v18 }
 0x704   : > { %v3199_v28 = vpop.permute.xlu1 %3198  ;;  %v3271_v54 = vpop.permute.xlu2 %3270 }
 0x705   : > { %v3269_v35 = vpop.permute.xlu0 %3268  ;;  %v3661_v45 = vsel %vm1649_vm8, %v3629_v29, %v3199_v28  ;;  %v10814_v29 = vld [vmem:[#allocation121_spill] sm:$0xff] }
 0x706   : > { %v3680_v47 = vsel %vm1682_vm9, %v3648_v36, %v3269_v35  ;;  %v3599_v36 = vsel %vm1583_vm7, %v3567_v15, %v10810_v30 }
 0x707   : > { %v3712_v2 = vsel %vm1715_vm10, %v3680_v47, %v3359_v62 }
 0x70c   : > { %v3449_v23 = vpop.permute.xlu1 %3448  ;;  %v3297_v0 = vpop.permute.xlu2 %3296 }
 0x70d   : > { %v8972_v27 = vpop.permute.xlu0 %3294  ;;  %v3744_v14 = vsel %vm1748_vm12, %v3712_v2, %v3449_v23  ;;  %v3631_v23 = vsel %vm1616_vm6, %v3599_v36, %v10811_v58  ;;  %v3890_v2 = vpop.f32.mrf.mxu1 }
 0x70e   : > { %4518 = vmatmul.msk.f32.gmra.mxu1 %vm1790_vm11, %v3744_v14  ;;  %v3693_v19 = vsel %vm1682_vm9, %v3661_v45, %v8972_v27  ;;  %v10812_v14 = vld [vmem:[#allocation12_spill] sm:$0xff] }
 0x70f   : > { %v3725_v11 = vsel %vm1715_vm10, %v3693_v19, %v8965_v53  ;;  %v3538_v60 = vsel %vm1521_vm4, %v10739_v50, %v10812_v14 }
 0x710   : > { %v3568_v9 = vsel %vm1552_vm5, %v3538_v60, %v10813_v7 }
 0x711   : > { %v3600_v45 = vsel %vm1583_vm7, %v3568_v9, %v10814_v29 }
 0x714   : > { %v3175_v38 = vpop.permute.xlu1 %3174  ;;  %v3477_v49 = vpop.permute.xlu2 %3476 }
 0x715   : > { %v8986_v46 = vpop.permute.xlu0 %3474  ;;  %v3649_v13 = vsel %vm1649_vm8, %v3617_v25, %v3175_v38  ;;  %v3893_v52 = vpop.f32.mrf.mxu1 }
 0x716   : > { %v3757_v32 = vsel %vm1748_vm12, %v3725_v11, %v8986_v46  ;;  %v3681_v42 = vsel %vm1682_vm9, %v3649_v13, %v3271_v54  ;;  %v10815_v54 = vld [vmem:[#allocation150_spill] sm:$0xff]  ;;  %v9071_v25 = vpop.f32.mrf.mxu3 }
 0x717   : > { %4531 = vmatmul.msk.f32.gmra.mxu3 %vm1790_vm11, %v3757_v32  ;;  %v3632_v19 = vsel %vm1616_vm6, %v3600_v45, %v10815_v54 }
 0x71c   : > { %v3361_v43 = vpop.permute.xlu1 %3360  ;;  %v3389_v10 = vpop.permute.xlu2 %3388 }
 0x71d   : > { %v3201_v1 = vpop.permute.xlu0 %3200  ;;  %v3713_v62 = vsel %vm1715_vm10, %v3681_v42, %v3361_v43  ;;  %v10816_v43 = vld [vmem:[#allocation118_spill] sm:$0xff] }
 0x71e   : > { %v3662_v21 = vsel %vm1649_vm8, %v3630_v4, %v3201_v1  ;;  %v3539_v12 = vsel %vm1521_vm4, %v10753_v61, %v10816_v43  ;;  %v9073_v4 = vpop.f32.mrf.mxu3 }
 0x71f   : > { %v3694_v8 = vsel %vm1682_vm9, %v3662_v21, %v3297_v0  ;;  %v3569_v3 = vsel %vm1552_vm5, %v3539_v12, %v10817_v40 }
 0x724   : > { %v3387_v18 = vpop.permute.xlu1 %3386  ;;  %v3207_v33 = vpop.permute.xlu2 %3206 }
 0x725   : > { %v3451_v16 = vpop.permute.xlu0 %3450  ;;  %v3726_v35 = vsel %vm1715_vm10, %v3694_v8, %v3387_v18  ;;  %v9086_v8 = vld [vmem:[%s9678_s6] ss:$0 sm:$0xff] }
 0x726   : > { %v3745_v28 = vsel %vm1748_vm12, %v3713_v62, %v3451_v16  ;;  %v3758_v44 = vsel %vm1748_vm12, %v3726_v35, %v3477_v49  ;;  %v9075_v21 = vpop.f32.mrf.mxu3  ;;  %v9098_v5 = vadd.f32 %v9086_v8, %v3893_v52 }
 0x727   : > { %4519 = vmatmul.msk.f32.gmra.mxu1 %vm1790_vm11, %v3745_v28  ;;  %4532 = vmatmul.msk.f32.gmra.mxu3 %vm1790_vm11, %v3758_v44  ;;  %v9091_v28 = vadd.f32 %v9086_v8, %v3890_v2  ;;  %v9095_v44 = vadd.f32 %v9086_v8, %v9013_v56 }
 0x728   : > { %v4055_v36 = vmul.f32 %v9098_v5, %v9098_v5  ;;  %v3986_v2 = vsel %vm1521_vm4, %v9098_v5, 0.0 }
 0x729   : > { %v4054_v63 = vmul.f32 %v9091_v28, %v9091_v28  ;;  %v4053_v15 = vmul.f32 %v9095_v44, %v9095_v44  ;;  %v3984_v30 = vsel %vm1521_vm4, %v9091_v28, 0.0 }
 0x72b   : > { %v4085_v14 = vsel %vm1521_vm4, %v4053_v15, 0.0 }
 0x72c   : > { %v3299_v37 = vpop.permute.xlu1 %3298 }
 0x72d   : > { %v3203_v47 = vpop.permute.xlu0 %3202 }
 0x72e   : > { %v3663_v6 = vsel %vm1649_vm8, %v3631_v23, %v3203_v47  ;;  %v3983_v47 = vsel %vm1521_vm4, %v9095_v44, 0.0  ;;  %v4086_v23 = vsel %vm1521_vm4, %v4054_v63, 0.0 }
 0x72f   : > { %v3695_v41 = vsel %vm1682_vm9, %v3663_v6, %v3299_v37  ;;  %v3985_v60 = vadd.f32 %v3984_v30, %v3983_v47  ;;  %v4087_v45 = vadd.f32 %v4086_v23, %v4085_v14 }
 0x730   : > { %v3727_v32 = vsel %vm1715_vm10, %v3695_v41, %v3389_v10  ;;  %v4088_v41 = vsel %vm1521_vm4, %v4055_v36, 0.0 }
 0x731   : > { %v3987_v54 = vadd.f32 %v3986_v2, %v3985_v60 }
 0x734   : > { %v3205_v11 = vpop.permute.xlu1 %3204 }
 0x735   : > { %v3479_v38 = vpop.permute.xlu0 %3478  ;;  %v3664_v0 = vsel %vm1649_vm8, %v3632_v19, %v3205_v11 }
 0x736   : > { %v3759_v48 = vsel %vm1748_vm12, %v3727_v32, %v3479_v38  ;;  %v3696_v50 = vsel %vm1682_vm9, %v3664_v0, %v8930_v39  ;;  %v3601_v39 = vsel %vm1583_vm7, %v3569_v3, %v10818_v34  ;;  %v4089_v0 = vadd.f32 %v4088_v41, %v4087_v45 }
 0x737   : > { %4533 = vmatmul.msk.f32.gmra.mxu3 %vm1790_vm11, %v3759_v48  ;;  %v3728_v1 = vsel %vm1715_vm10, %v3696_v50, %v8947_v26  ;;  %v3633_v24 = vsel %vm1616_vm6, %v3601_v39, %v10819_v55  ;;  %v3896_v26 = vpop.f32.mrf.mxu1 }
 0x738   : > { %v3760_v31 = vsel %vm1748_vm12, %v3728_v1, %v8949_v51  ;;  %v3665_v57 = vsel %vm1649_vm8, %v3633_v24, %v3207_v33  ;;  %v9103_v59 = vadd.f32 %v9086_v8, %v3896_v26 }
 0x739   : > { %v3697_v61 = vsel %vm1682_vm9, %v3665_v57, %v8972_v27  ;;  %v9077_v27 = vpop.f32.mrf.mxu3 }
 0x73a   : > { %v3729_v51 = vsel %vm1715_vm10, %v3697_v61, %v8965_v53  ;;  %v4056_v6 = vmul.f32 %v9103_v59, %v9103_v59  ;;  %v3988_v7 = vsel %vm1521_vm4, %v9103_v59, 0.0 }
 0x73b   : > { %v3761_v20 = vsel %vm1748_vm12, %v3729_v51, %v8986_v46  ;;  %v3989_v48 = vadd.f32 %v3988_v7, %v3987_v54 }
 0x73c   : > { %v4090_v19 = vsel %vm1521_vm4, %v4056_v6, 0.0 }
 0x73d   : > { %v4091_v12 = vadd.f32 %v4090_v19, %v4089_v0 }
 0x73f   : > { %4534 = vmatmul.msk.f32.gmra.mxu3 %vm1790_vm11, %v3760_v31  ;;  %v3899_v17 = vpop.f32.mrf.mxu1 }
 0x740   : > { %v9112_v56 = vadd.f32 %v9086_v8, %v3899_v17 }
 0x741   : > { %v9079_v16 = vpop.f32.mrf.mxu3 }
 0x742   : > { %v4057_v9 = vmul.f32 %v9112_v56, %v9112_v56  ;;  %v3990_v38 = vsel %vm1521_vm4, %v9112_v56, 0.0 }
 0x743   : > { %v3991_v31 = vadd.f32 %v3990_v38, %v3989_v48 }
 0x744   : > { %v4092_v50 = vsel %vm1521_vm4, %v4057_v9, 0.0 }
 0x745   : > { %v4093_v24 = vadd.f32 %v4092_v50, %v4091_v12 }
 0x747   : > { %4535 = vmatmul.msk.f32.gmra.mxu3 %vm1790_vm11, %v3761_v20  ;;  %v3902_v22 = vpop.f32.mrf.mxu1 }
 0x748   : > { %v9124_v10 = vadd.f32 %v9086_v8, %v3902_v22 }
 0x749   : > { %v9081_v18 = vpop.f32.mrf.mxu3 }
 0x74a   : > { %v4058_v11 = vmul.f32 %v9124_v10, %v9124_v10  ;;  %v3992_v52 = vsel %vm1521_vm4, %v9124_v10, 0.0 }
 0x74b   : > { %v3993_v57 = vadd.f32 %v3992_v52, %v3991_v31 }
 0x74c   : > { %v4094_v33 = vsel %vm1521_vm4, %v4058_v11, 0.0 }
 0x74d   : > { %v4095_v17 = vadd.f32 %v4094_v33, %v4093_v24 }
 0x74f   : > { %v3905_v13 = vpop.f32.mrf.mxu1 }
 0x750   : > { %v9133_v29 = vadd.f32 %v9086_v8, %v3905_v13 }
 0x751   : > { %v9088_v49 = vpop.f32.mrf.mxu3 }
 0x752   : > { %v4059_v1 = vmul.f32 %v9133_v29, %v9133_v29  ;;  %v3994_v34 = vsel %vm1521_vm4, %v9133_v29, 0.0 }
 0x753   : > { %v3995_v22 = vadd.f32 %v3994_v34, %v3993_v57  ;;  %v9217_v57 = vadd.f32 %v9086_v8, %v9071_v25 }
 0x754   : > { %v4096_v61 = vsel %vm1521_vm4, %v4059_v1, 0.0 }
 0x755   : > { %v4097_v63 = vadd.f32 %v4096_v61, %v4095_v17 }
 0x757   : > { %v3908_v42 = vpop.f32.mrf.mxu1 }
 0x758   : > { %v9141_v32 = vadd.f32 %v9086_v8, %v3908_v42 }
 0x759   : > { %v9116_v37 = vpop.f32.mrf.mxu3 }
 0x75a   : > { %v4060_v39 = vmul.f32 %v9141_v32, %v9141_v32  ;;  %v3996_v26 = vsel %vm1521_vm4, %v9141_v32, 0.0 }
 0x75b   : > { %v3997_v15 = vadd.f32 %v3996_v26, %v3995_v22 }
 0x75c   : > { %v4098_v13 = vsel %vm1521_vm4, %v4060_v39, 0.0 }
 0x75d   : > { %v4099_v23 = vadd.f32 %v4098_v13, %v4097_v63  ;;  %v9224_v13 = vadd.f32 %v9086_v8, %v9073_v4 }
 0x75f   : > { %v3911_v62 = vpop.f32.mrf.mxu1 }
 0x760   : > { %v9149_v43 = vadd.f32 %v9086_v8, %v3911_v62 }
 0x761   : > { %v9151_v40 = vpop.f32.mrf.mxu3 }
 0x762   : > { %v4061_v51 = vmul.f32 %v9149_v43, %v9149_v43  ;;  %v3998_v42 = vsel %vm1521_vm4, %v9149_v43, 0.0 }
 0x763   : > { %v3999_v2 = vadd.f32 %v3998_v42, %v3997_v15  ;;  %v4069_v15 = vmul.f32 %v9217_v57, %v9217_v57 }
 0x764   : > { %v4100_v30 = vsel %vm1521_vm4, %v4061_v51, 0.0 }
 0x765   : > { %v4101_v9 = vadd.f32 %v4100_v30, %v4099_v23  ;;  %v9234_v30 = vadd.f32 %v9086_v8, %v9075_v21 }
 0x767   : > { %v3914_v53 = vpop.f32.mrf.mxu1 }
 0x768   : > { %v9159_v55 = vadd.f32 %v9086_v8, %v3914_v53 }
 0x76a   : > { %v4062_v62 = vmul.f32 %v9159_v55, %v9159_v55  ;;  %v9185_v6 = vpop.f32.mrf.mxu3 }
 0x76f   : > { %v3917_v46 = vpop.f32.mrf.mxu1 }
 0x770   : > { %v9167_v20 = vadd.f32 %v9086_v8, %v3917_v46  ;;  %v4000_v46 = vsel %vm1521_vm4, %v9159_v55, 0.0 }
 0x771   : > { %v4001_v45 = vadd.f32 %v4000_v46, %v3999_v2  ;;  %v4014_v2 = vsel %vm1521_vm4, %v9217_v57, 0.0 }
 0x772   : > { %v4063_v36 = vmul.f32 %v9167_v20, %v9167_v20  ;;  %v4002_v60 = vsel %vm1521_vm4, %v9167_v20, 0.0 }
 0x773   : > { %v4003_v0 = vadd.f32 %v4002_v60, %v4001_v45  ;;  %v4116_v45 = vsel %vm1521_vm4, %v4069_v15, 0.0  ;;  %v9292_v15 = vadd.f32 %v9086_v8, %v9151_v40 }
 0x777   : > { %v3920_v35 = vpop.f32.mrf.mxu1 }
 0x778   : > { %v9175_v53 = vadd.f32 %v9086_v8, %v3920_v35  ;;  %v4102_v35 = vsel %vm1521_vm4, %v4062_v62, 0.0 }
 0x779   : > { %v4103_v11 = vadd.f32 %v4102_v35, %v4101_v9  ;;  %v9246_v35 = vadd.f32 %v9086_v8, %v9077_v27 }
 0x77a   : > { %v4064_v41 = vmul.f32 %v9175_v53, %v9175_v53  ;;  %v4004_v54 = vsel %vm1521_vm4, %v9175_v53, 0.0 }
 0x77b   : > { %v4005_v12 = vadd.f32 %v4004_v54, %v4003_v0  ;;  %v4071_v54 = vmul.f32 %v9234_v30, %v9234_v30 }
 0x77c   : > { %v4106_v48 = vsel %vm1521_vm4, %v4064_v41, 0.0 }
 0x77f   : > { %v3923_v58 = vpop.f32.mrf.mxu1 }
 0x780   : > { %v9183_v47 = vadd.f32 %v9086_v8, %v3923_v58  ;;  %v4104_v58 = vsel %vm1521_vm4, %v4063_v36, 0.0 }
 0x781   : > { %v4105_v1 = vadd.f32 %v4104_v58, %v4103_v11  ;;  %v4016_v58 = vsel %vm1521_vm4, %v9224_v13, 0.0 }
 0x782   : > { %v4065_v19 = vmul.f32 %v9183_v47, %v9183_v47  ;;  %v4006_v50 = vsel %vm1521_vm4, %v9183_v47, 0.0 }
 0x783   : > { %v4107_v34 = vadd.f32 %v4106_v48, %v4105_v1  ;;  %v4007_v39 = vadd.f32 %v4006_v50, %v4005_v12  ;;  %v9213_v24 = vpop.f32.mrf.mxu3  ;;  %v4018_v48 = vsel %vm1521_vm4, %v9234_v30, 0.0  ;;  %v4072_v50 = vmul.f32 %v9246_v35, %v9246_v35 }
 0x784   : > { %v4108_v31 = vsel %vm1521_vm4, %v4065_v19, 0.0  ;;  %v9256_v19 = vadd.f32 %v9086_v8, %v9079_v16  ;;  %v4020_v16 = vsel %vm1521_vm4, %v9246_v35, 0.0 }
 0x785   : > { %v4109_v51 = vadd.f32 %v4108_v31, %v4107_v34  ;;  %v4120_v31 = vsel %vm1521_vm4, %v4071_v54, 0.0 }
 0x787   : > { %v3926_v3 = vpop.f32.mrf.mxu1 }
 0x788   : > { %v9193_v7 = vadd.f32 %v9086_v8, %v3926_v3 }
 0x78a   : > { %v4066_v52 = vmul.f32 %v9193_v7, %v9193_v7  ;;  %v4008_v3 = vsel %vm1521_vm4, %v9193_v7, 0.0 }
 0x78b   : > { %v4009_v17 = vadd.f32 %v4008_v3, %v4007_v39  ;;  %v4073_v3 = vmul.f32 %v9256_v19, %v9256_v19 }
 0x78c   : > { %v4110_v61 = vsel %vm1521_vm4, %v4066_v52, 0.0  ;;  %v9265_v52 = vadd.f32 %v9086_v8, %v9081_v18  ;;  %v4022_v18 = vsel %vm1521_vm4, %v9256_v19, 0.0 }
 0x78d   : > { %v4111_v63 = vadd.f32 %v4110_v61, %v4109_v51  ;;  %v4122_v61 = vsel %vm1521_vm4, %v4072_v50, 0.0  ;;  %v9283_v51 = vadd.f32 %v9086_v8, %v9116_v37 }
 0x78f   : > { %v3929_v14 = vpop.f32.mrf.mxu1  ;;  %v4028_v40 = vsel %vm1521_vm4, %v9283_v51, 0.0 }
 0x790   : > { %v9201_v38 = vadd.f32 %v9086_v8, %v3929_v14  ;;  %v4070_v14 = vmul.f32 %v9224_v13, %v9224_v13 }
 0x792   : > { %v4067_v33 = vmul.f32 %v9201_v38, %v9201_v38  ;;  %v4010_v26 = vsel %vm1521_vm4, %v9201_v38, 0.0  ;;  %v4118_v0 = vsel %vm1521_vm4, %v4070_v14, 0.0 }
 0x793   : > { %v4011_v25 = vadd.f32 %v4010_v26, %v4009_v17  ;;  %v4074_v26 = vmul.f32 %v9265_v52, %v9265_v52 }
 0x794   : > { %v4112_v42 = vsel %vm1521_vm4, %v4067_v33, 0.0  ;;  %v9274_v33 = vadd.f32 %v9086_v8, %v9088_v49  ;;  %v4124_v49 = vsel %vm1521_vm4, %v4073_v3, 0.0 }
 0x795   : > { %v4113_v36 = vadd.f32 %v4112_v42, %v4111_v63  ;;  %v4024_v63 = vsel %vm1521_vm4, %v9265_v52, 0.0  ;;  %v4126_v37 = vsel %vm1521_vm4, %v4074_v26, 0.0 }
 0x79a   : > { %v3968_v60 = vpop.f32.mrf.mxu3 }
 0x7a4   : > { %v3932_v22 = vpop.f32.mrf.mxu1 }
 0x7a5   : > { %v9228_v62 = vadd.f32 %v9086_v8, %v3932_v22 }
 0x7a7   : > { %v4012_v46 = vsel %vm1521_vm4, %v9228_v62, 0.0  ;;  %v4068_v4 = vmul.f32 %v9228_v62, %v9228_v62 }
 0x7a8   : > { %v4013_v23 = vadd.f32 %v4012_v46, %v4011_v25  ;;  %v4075_v25 = vmul.f32 %v9274_v33, %v9274_v33 }
 0x7a9   : > { %v4114_v21 = vsel %vm1521_vm4, %v4068_v4, 0.0 }
 0x7aa   : > { %v4015_v41 = vadd.f32 %v4014_v2, %v4013_v23  ;;  %v4115_v9 = vadd.f32 %v4114_v21, %v4113_v36  ;;  %v3971_v42 = vpop.f32.mrf.mxu3  ;;  %v4026_v36 = vsel %vm1521_vm4, %v9274_v33, 0.0  ;;  %v4076_v23 = vmul.f32 %v9283_v51, %v9283_v51 }
 0x7ab   : > { %v9301_v2 = vadd.f32 %v9086_v8, %v9185_v6  ;;  %v4030_v6 = vsel %vm1521_vm4, %v9292_v15, 0.0 }
 0x7ac   : > { %v4017_v11 = vadd.f32 %v4016_v58, %v4015_v41  ;;  %v4117_v27 = vadd.f32 %v4116_v45, %v4115_v9  ;;  %v4128_v41 = vsel %vm1521_vm4, %v4075_v25, 0.0  ;;  %v4077_v9 = vmul.f32 %v9292_v15, %v9292_v15 }
 0x7ad   : > { %v9310_v45 = vadd.f32 %v9086_v8, %v9213_v24  ;;  %v4032_v24 = vsel %vm1521_vm4, %v9301_v2, 0.0 }
 0x7ae   : > { %v4019_v1 = vadd.f32 %v4018_v48, %v4017_v11  ;;  %v4119_v12 = vadd.f32 %v4118_v0, %v4117_v27  ;;  %v4130_v11 = vsel %vm1521_vm4, %v4076_v23, 0.0  ;;  %v4078_v27 = vmul.f32 %v9301_v2, %v9301_v2 }
 0x7af   : > { %v9318_v0 = vadd.f32 %v9086_v8, %v3968_v60 }
 0x7b0   : > { %v4021_v34 = vadd.f32 %v4020_v16, %v4019_v1  ;;  %v4121_v39 = vadd.f32 %v4120_v31, %v4119_v12  ;;  %v4132_v12 = vsel %vm1521_vm4, %v4077_v9, 0.0  ;;  %v4079_v31 = vmul.f32 %v9310_v45, %v9310_v45 }
 0x7b1   : > { %v4080_v60 = vmul.f32 %v9318_v0, %v9318_v0 }
 0x7b2   : > { %v4023_v17 = vadd.f32 %v4022_v18, %v4021_v34  ;;  %v4123_v22 = vadd.f32 %v4122_v61, %v4121_v39  ;;  %v4134_v34 = vsel %vm1521_vm4, %v4078_v27, 0.0  ;;  %v4034_v39 = vsel %vm1521_vm4, %v9310_v45, 0.0 }
 0x7b3   : > { %v9331_v61 = vadd.f32 %v9086_v8, %v3971_v42  ;;  %v4138_v25 = vsel %vm1521_vm4, %v4080_v60, 0.0 }
 0x7b4   : > { %v4025_v46 = vadd.f32 %v4024_v63, %v4023_v17  ;;  %v4125_v4 = vadd.f32 %v4124_v49, %v4123_v22  ;;  %v4136_v17 = vsel %vm1521_vm4, %v4079_v31, 0.0  ;;  %v4036_v22 = vsel %vm1521_vm4, %v9318_v0, 0.0 }
 0x7b6   : > { %v4127_v14 = vadd.f32 %v4126_v37, %v4125_v4  ;;  %v4027_v21 = vadd.f32 %v4026_v36, %v4025_v46  ;;  %v4081_v46 = vmul.f32 %v9331_v61, %v9331_v61  ;;  %v4038_v36 = vsel %vm1521_vm4, %v9331_v61, 0.0 }
 0x7b8   : > { %v4029_v58 = vadd.f32 %v4028_v40, %v4027_v21  ;;  %v4129_v54 = vadd.f32 %v4128_v41, %v4127_v14  ;;  %v4140_v21 = vsel %vm1521_vm4, %v4081_v46, 0.0 }
 0x7ba   : > { %v4031_v48 = vadd.f32 %v4030_v6, %v4029_v58  ;;  %v4131_v50 = vadd.f32 %v4130_v11, %v4129_v54  ;;  %v3974_v1 = vpop.f32.mrf.mxu3 }
 0x7bb   : > { %v9340_v4 = vadd.f32 %v9086_v8, %v3974_v1 }
 0x7bc   : > { %v4033_v16 = vadd.f32 %v4032_v24, %v4031_v48  ;;  %v4133_v3 = vadd.f32 %v4132_v12, %v4131_v50 }
 0x7bd   : > { %v4082_v41 = vmul.f32 %v9340_v4, %v9340_v4  ;;  %v4040_v9 = vsel %vm1521_vm4, %v9340_v4, 0.0 }
 0x7be   : > { %v4035_v18 = vadd.f32 %v4034_v39, %v4033_v16  ;;  %v4135_v26 = vadd.f32 %v4134_v34, %v4133_v3 }
 0x7bf   : > { %v4142_v11 = vsel %vm1521_vm4, %v4082_v41, 0.0 }
 0x7c0   : > { %v4037_v49 = vadd.f32 %v4036_v22, %v4035_v18  ;;  %v4137_v63 = vadd.f32 %v4136_v17, %v4135_v26 }
 0x7c2   : > { %v4139_v37 = vadd.f32 %v4138_v25, %v4137_v63  ;;  %v3977_v42 = vpop.f32.mrf.mxu3  ;;  %v4039_v14 = vadd.f32 %v4038_v36, %v4037_v49 }
 0x7c3   : > { %v9345_v23 = vadd.f32 %v9086_v8, %v3977_v42 }
 0x7c4   : > { %v4141_v40 = vadd.f32 %v4140_v21, %v4139_v37  ;;  %v4041_v54 = vadd.f32 %v4040_v9, %v4039_v14 }
 0x7c5   : > { %v4083_v58 = vmul.f32 %v9345_v23, %v9345_v23  ;;  %v4042_v6 = vsel %vm1521_vm4, %v9345_v23, 0.0 }
 0x7c6   : > { %v4143_v27 = vadd.f32 %v4142_v11, %v4141_v40  ;;  %v4043_v12 = vadd.f32 %v4042_v6, %v4041_v54 }
 0x7c7   : > { %v4144_v50 = vsel %vm1521_vm4, %v4083_v58, 0.0 }
 0x7c8   : > { %v4145_v16 = vadd.f32 %v4144_v50, %v4143_v27 }
 0x7ca   : > { %v3980_v48 = vpop.f32.mrf.mxu3 }
 0x7cb   : > { %v3981_v1 = vadd.f32 %v9086_v8, %v3980_v48 }
 0x7cd   : > { %v4044_v24 = vsel %vm1521_vm4, %v3981_v1, 0.0  ;;  %v4084_v31 = vmul.f32 %v3981_v1, %v3981_v1 }
 0x7ce   : > { %v4045_v3 = vadd.f32 %v4044_v24, %v4043_v12 }
 0x7cf   : > { %v4146_v34 = vsel %vm1521_vm4, %v4084_v31, 0.0 }
 0x7d0   : > { %v4046_v39 = vrot.slane %v4045_v3, 4  ;;  %v4147_v60 = vadd.f32 %v4146_v34, %v4145_v16 }
 0x7d2   : > { %v4047_v18 = vadd.f32 %v4046_v39, %v4045_v3  ;;  %v4148_v26 = vrot.slane %v4147_v60, 4 }
 0x7d4   : > { %v4048_v17 = vrot.slane %v4047_v18, 2  ;;  %v4149_v22 = vadd.f32 %v4148_v26, %v4147_v60 }
 0x7d6   : > { %v4049_v49 = vadd.f32 %v4048_v17, %v4047_v18  ;;  %v4150_v63 = vrot.slane %v4149_v22, 2 }
 0x7d8   : > { %v4050_v25 = vrot.slane %v4049_v49, 1  ;;  %v4151_v46 = vadd.f32 %v4150_v63, %v4149_v22 }
 0x7da   : > { %v4051_v37 = vadd.f32 %v4050_v25, %v4049_v49  ;;  %v4152_v8 = vrot.slane %v4151_v46, 1 }
 0x7dc   : > { %v9361_v42 = vmul.f32 0.00390625, %v4051_v37  ;;  %v4153_v36 = vadd.f32 %v4152_v8, %v4151_v46 }
 0x7de   : > { %v4154_v14 = vmul.f32 0.00390625, %v4153_v36  ;;  %v4155_v21 = vmul.f32 %v9361_v42, %v9361_v42  ;;  %v4188_v41 = vsub.f32 %v3981_v1, %v9361_v42  ;;  %v4172_v58 = vsub.f32 %v9228_v62, %v9361_v42 }
 0x7df   : > { %v4185_v54 = vsub.f32 %v9331_v61, %v9361_v42  ;;  %v4186_v11 = vsub.f32 %v9340_v4, %v9361_v42  ;;  %v4187_v6 = vsub.f32 %v9345_v23, %v9361_v42  ;;  %v4157_v62 = vsub.f32 %v9095_v44, %v9361_v42  ;;  %v9381_v4 = vld [vmem:[%s9679_s7] ss:$0 sm:$0xff] }
 0x7e0   : > { %v4156_v40 = vsub.f32 %v4154_v14, %v4155_v21  ;;  %v4173_v61 = vsub.f32 %v9217_v57, %v9361_v42  ;;  %v4158_v31 = vsub.f32 %v9091_v28, %v9361_v42  ;;  %v4165_v16 = vsub.f32 %v9149_v43, %v9361_v42  ;;  %v9402_v28 = vld [vmem:[%s9680_s8] ss:$0 sm:$0xff] }
 0x7e1   : > { %v4166_v3 = vsub.f32 %v9159_v55, %v9361_v42  ;;  %v4167_v57 = vsub.f32 %v9167_v20, %v9361_v42  ;;  %v4168_v34 = vsub.f32 %v9175_v53, %v9361_v42  ;;  %v4169_v43 = vsub.f32 %v9183_v47, %v9361_v42  ;;  %v4576_v14 = vld [vmem:[%s4688_s14 + $0x80] sm:$0xff] }
 0x7e2   : > { %v4189_v9 = vadd.f32 1e-05, %v4156_v40  ;;  %v4170_v55 = vsub.f32 %v9193_v7, %v9361_v42  ;;  %v4171_v60 = vsub.f32 %v9201_v38, %v9361_v42  ;;  %v4174_v20 = vsub.f32 %v9224_v13, %v9361_v42 }
 0x7e3   : > { %v4181_v53 = vsub.f32 %v9292_v15, %v9361_v42  ;;  %v4182_v25 = vsub.f32 %v9301_v2, %v9361_v42  ;;  %v4183_v46 = vsub.f32 %v9310_v45, %v9361_v42  ;;  %v4184_v37 = vsub.f32 %v9318_v0, %v9361_v42 }
 0x7e4   : > { %4574 = vrsqrt.f32 %v4189_v9  ;;  %vm4196_vm1 = vweird.f32 %v4189_v9  ;;  %v4175_v36 = vsub.f32 %v9234_v30, %v9361_v42 }
 0x7ea   : > { %v4575_v27 = vpop.eup %4574 }
 0x7eb   : > { %v4191_v48 = vmul.f32 %v4575_v27, %v4189_v9  ;;  %vm4197_vm0 = vweird.f32 %v4575_v27 }
 0x7ec   : > { %vm4198_vm2 = vmor %vm4196_vm1, %vm4197_vm0 }
 0x7ed   : > { %v4192_v50 = vmul.f32 %v4575_v27, %v4191_v48 }
 0x7ef   : > { %v4193_v12 = vmul.f32 0.5, %v4192_v50 }
 0x7f1   : > { %v4194_v1 = vsub.f32 1.5, %v4193_v12 }
 0x7f3   : > { %v4195_v24 = vmul.f32 %v4575_v27, %v4194_v1 }
 0x7f5   : > { %v9383_v23 = vsel %vm4198_vm2, %v4575_v27, %v4195_v24  ;;  %v4577_v24 = vld [vmem:[%s4688_s14] sm:$0xff] }
 0x7f6   : > { %v9392_v44 = vmul.f32 %v9383_v23, %v4188_v41  ;;  %v4216_v39 = vmul.f32 %v9383_v23, %v4173_v61  ;;  %v4200_v26 = vmul.f32 %v9383_v23, %v4157_v62  ;;  %v9417_v17 = vmul.f32 %v9383_v23, %v4165_v16 }
 0x7f7   : > { %v9420_v47 = vmul.f32 %v9383_v23, %v4166_v3  ;;  %v9423_v7 = vmul.f32 %v9383_v23, %v4167_v57  ;;  %v9426_v38 = vmul.f32 %v9383_v23, %v4168_v34  ;;  %v9429_v13 = vmul.f32 %v9383_v23, %v4169_v43  ;;  %v4579_v43 = vld [vmem:[%s4688_s14 + $0x8] sm:$0xff] }
 0x7f8   : > { %v4252_v18 = vmul.f32 %v9381_v4, %v4216_v39  ;;  %v9433_v22 = vmul.f32 %v9383_v23, %v4170_v55  ;;  %v9436_v49 = vmul.f32 %v9383_v23, %v4171_v60  ;;  %v9439_v63 = vmul.f32 %v9383_v23, %v4172_v58 }
 0x7f9   : > { %v4217_v8 = vmul.f32 %v9383_v23, %v4174_v20  ;;  %v4201_v41 = vmul.f32 %v9383_v23, %v4158_v31  ;;  %v9453_v40 = vmul.f32 %v9383_v23, %v4181_v53  ;;  %v9456_v2 = vmul.f32 %v9383_v23, %v4182_v25  ;;  %v4580_v20 = vld [vmem:[%s4688_s14 + $0x90] sm:$0xff] }
 0x7fa   : > { %v4288_v15 = vadd.f32 %v9402_v28, %v4252_v18  ;;  %v9459_v45 = vmul.f32 %v9383_v23, %v4183_v46  ;;  %v9462_v0 = vmul.f32 %v9383_v23, %v4184_v37  ;;  %v9465_v30 = vmul.f32 %v9383_v23, %v4185_v54 }
 0x7fb   : > { %v9468_v9 = vmul.f32 %v9383_v23, %v4186_v11  ;;  %v9471_v58 = vmul.f32 %v9383_v23, %v4187_v6  ;;  %v4236_v27 = vmul.f32 %v9381_v4, %v4200_v26  ;;  %v4253_v48 = vmul.f32 %v9381_v4, %v4217_v8  ;;  %v4578_v6 = vld [vmem:[%s4688_s14 + $0x88] sm:$0xff] }
 0x7fc   : > { %v4320_v21 = vadd.f32 %v4576_v14, %v4288_v15  ;;  %v4218_v50 = vmul.f32 %v9383_v23, %v4175_v36  ;;  %v4237_v62 = vmul.f32 %v9381_v4, %v4201_v41  ;;  %v4159_v11 = vsub.f32 %v9098_v5, %v9361_v42  ;;  %v4581_v36 = vld [vmem:[%s4688_s14 + $0x10] sm:$0xff]  ;;  %v4582_v41 = vld [vmem:[%s4688_s14 + $0x98] sm:$0xff] }
 0x7fd   : > { %v4272_v12 = vadd.f32 %v9402_v28, %v4236_v27  ;;  %v4289_v1 = vadd.f32 %v9402_v28, %v4253_v48  ;;  %v4176_v16 = vsub.f32 %v9246_v35, %v9361_v42  ;;  %v4160_v60 = vsub.f32 %v9103_v59, %v9361_v42 }
 0x7fe   : > { %4368 = vxpose.xlu1.b32.start [1/16] (narrow) %v4320_v21, 8  ;;  %v4254_v31 = vmul.f32 %v9381_v4, %v4218_v50  ;;  %v4202_v3 = vmul.f32 %v9383_v23, %v4159_v11  ;;  %v4273_v57 = vadd.f32 %v9402_v28, %v4237_v62  ;;  %v4177_v35 = vsub.f32 %v9256_v19, %v9361_v42  ;;  %v4584_v11 = vld [vmem:[%s4688_s14 + $0xa0] sm:$0xff] }
 0x7ff   : > { %v4304_v54 = vadd.f32 %v4577_v24, %v4272_v12  ;;  %v4321_v61 = vadd.f32 %v4578_v6, %v4289_v1  ;;  %v4219_v34 = vmul.f32 %v9383_v23, %v4176_v16  ;;  %v4203_v26 = vmul.f32 %v9383_v23, %v4160_v60 }
 0x800   : > { %v4290_v39 = vadd.f32 %v9402_v28, %v4254_v31  ;;  %v4305_v5 = vadd.f32 %v4579_v43, %v4273_v57  ;;  %v4238_v55 = vmul.f32 %v9381_v4, %v4202_v3  ;;  %v4220_v15 = vmul.f32 %v9383_v23, %v4177_v35  ;;  %v4585_v35 = vld [vmem:[%s4688_s14 + $0x20] sm:$0xff] }
 0x801   : > { %4336 = vxpose.xlu0.b32.start [1/16] (narrow) %v4304_v54, 8  ;;  %v4255_v18 = vmul.f32 %v9381_v4, %v4219_v34  ;;  %v4161_v46 = vsub.f32 %v9112_v56, %v9361_v42  ;;  %v4239_v19 = vmul.f32 %v9381_v4, %v4203_v26  ;;  %v4178_v21 = vsub.f32 %v9265_v52, %v9361_v42  ;;  %v4583_v54 = vld [vmem:[%s4688_s14 + $0x18] sm:$0xff] }
 0x802   : > { %v4322_v53 = vadd.f32 %v4580_v20, %v4290_v39  ;;  %v4274_v25 = vadd.f32 %v9402_v28, %v4238_v55  ;;  %v4256_v37 = vmul.f32 %v9381_v4, %v4220_v15  ;;  %v4162_v1 = vsub.f32 %v9124_v10, %v9361_v42 }
 0x803   : > { %v4291_v59 = vadd.f32 %v9402_v28, %v4255_v18  ;;  %v4204_v8 = vmul.f32 %v9383_v23, %v4161_v46  ;;  %v4221_v56 = vmul.f32 %v9383_v23, %v4178_v21  ;;  %v4275_v48 = vadd.f32 %v9402_v28, %v4239_v19 }
 0x804   : > { %v4306_v14 = vadd.f32 %v4581_v36, %v4274_v25  ;;  %v4292_v50 = vadd.f32 %v9402_v28, %v4256_v37  ;;  %v4179_v24 = vsub.f32 %v9274_v33, %v9361_v42  ;;  %v4205_v52 = vmul.f32 %v9383_v23, %v4162_v1 }
 0x805   : > { %v4323_v27 = vadd.f32 %v4582_v41, %v4291_v59  ;;  %v4240_v12 = vmul.f32 %v9381_v4, %v4204_v8  ;;  %v4307_v62 = vadd.f32 %v4583_v54, %v4275_v48  ;;  %v4260_v16 = vmul.f32 %v9381_v4, %v9453_v40  ;;  %v4586_v8 = vld [vmem:[%s4688_s14 + $0xa8] sm:$0xff] }
 0x806   : > { %4369 = vxpose.xlu1.b32.cont [2/16] (narrow) %v4321_v61, 8  ;;  %v4324_v6 = vadd.f32 %v4584_v11, %v4292_v50  ;;  %v4257_v61 = vmul.f32 %v9381_v4, %v4221_v56  ;;  %v4244_v3 = vmul.f32 %v9381_v4, %v9417_v17  ;;  %v4261_v10 = vmul.f32 %v9381_v4, %v9456_v2  ;;  %v4587_v48 = vld [vmem:[%s4688_s14 + $0x28] sm:$0xff] }
 0x807   : > { %v4276_v31 = vadd.f32 %v9402_v28, %v4240_v12  ;;  %v4245_v33 = vmul.f32 %v9381_v4, %v9420_v47  ;;  %v4262_v57 = vmul.f32 %v9381_v4, %v9459_v45  ;;  %v4246_v34 = vmul.f32 %v9381_v4, %v9423_v7 }
 0x808   : > { %v4263_v39 = vmul.f32 %v9381_v4, %v9462_v0  ;;  %v9539_v40 = vadd.f32 %v9402_v28, %v4260_v16  ;;  %v9542_v17 = vadd.f32 %v9402_v28, %v4244_v3  ;;  %v9545_v2 = vadd.f32 %v9402_v28, %v4261_v10  ;;  %v4592_v10 = vld [vmem:[%s4688_s14 + $0xc0] sm:$0xff] }
 0x809   : > { %4337 = vxpose.xlu0.b32.cont [2/16] (narrow) %v4305_v5, 8  ;;  %v4247_v47 = vmul.f32 %v9381_v4, %v9426_v38  ;;  %v9550_v45 = vadd.f32 %v9402_v28, %v4245_v33  ;;  %v9553_v7 = vadd.f32 %v9402_v28, %v4262_v57  ;;  %v9556_v0 = vadd.f32 %v9402_v28, %v4246_v34  ;;  %v4593_v57 = vld [vmem:[%s4688_s14 + $0x40] sm:$0xff]  ;;  %v4594_v34 = vld [vmem:[%s4688_s14 + $0xc8] sm:$0xff] }
 0x80a   : > { %v9559_v43 = vadd.f32 %v9402_v28, %v4263_v39  ;;  %v4222_v55 = vmul.f32 %v9383_v23, %v4179_v24  ;;  %v4293_v38 = vadd.f32 %v9402_v28, %v4257_v61  ;;  %v4241_v60 = vmul.f32 %v9381_v4, %v4205_v52 }
 0x80b   : > { %v9562_v5 = vadd.f32 %v9402_v28, %v4247_v47  ;;  %v4308_v20 = vadd.f32 %v4585_v35, %v4276_v31  ;;  %v4248_v18 = vmul.f32 %v9381_v4, %v9429_v13  ;;  %v4265_v26 = vmul.f32 %v9381_v4, %v9468_v9  ;;  %v4599_v35 = vld [vmem:[%s4688_s14 + $0x58] sm:$0xff] }
 0x80c   : > { %v4249_v15 = vmul.f32 %v9381_v4, %v9433_v22  ;;  %v4266_v25 = vmul.f32 %v9381_v4, %v9471_v58  ;;  %v4250_v46 = vmul.f32 %v9381_v4, %v9436_v49  ;;  %v4267_v59 = vmul.f32 %v9381_v4, %v9392_v44 }
 0x80d   : > { %v9586_v13 = vadd.f32 %v9402_v28, %v4248_v18  ;;  %v9589_v9 = vadd.f32 %v9402_v28, %v4265_v26  ;;  %v4251_v22 = vmul.f32 %v9381_v4, %v9439_v63  ;;  %v4163_v37 = vsub.f32 %v9133_v29, %v9361_v42  ;;  %v4602_v18 = vld [vmem:[%s4688_s14 + $0xe8] sm:$0xff] }
 0x80e   : > { %4370 = vxpose.xlu1.b32.cont [3/16] (narrow) %v4322_v53, 8  ;;  %v4264_v53 = vmul.f32 %v9381_v4, %v9465_v30  ;;  %v9594_v58 = vadd.f32 %v9402_v28, %v4249_v15  ;;  %v9597_v49 = vadd.f32 %v9402_v28, %v4266_v25  ;;  %v9600_v44 = vadd.f32 %v9402_v28, %v4250_v46  ;;  %v4603_v26 = vld [vmem:[%s4688_s14 + $0x68] sm:$0xff]  ;;  %v4604_v15 = vld [vmem:[%s4688_s14 + $0xf0] sm:$0xff] }
 0x80f   : > { %v9603_v19 = vadd.f32 %v9402_v28, %v4267_v59  ;;  %v4325_v63 = vadd.f32 %v4586_v8, %v4293_v38  ;;  %v4258_v36 = vmul.f32 %v9381_v4, %v4222_v55  ;;  %v4180_v21 = vsub.f32 %v9283_v51, %v9361_v42  ;;  %v4588_v51 = vld [vmem:[%s4688_s14 + $0xb0] sm:$0xff] }
 0x810   : > { %v9583_v30 = vadd.f32 %v9402_v28, %v4264_v53  ;;  %v4206_v41 = vmul.f32 %v9383_v23, %v4163_v37  ;;  %v4164_v1 = vsub.f32 %v9141_v32, %v9361_v42  ;;  %v4590_v42 = vld [vmem:[%s4688_s14 + $0xb8] sm:$0xff]  ;;  %v4328_v33 = vadd.f32 %v4592_v10, %v9539_v40  ;;  %v4596_v55 = vld [vmem:[%s4688_s14 + $0xd0] sm:$0xff]  ;;  %v4601_v53 = vld [vmem:[%s4688_s14 + $0x60] sm:$0xff] }
 0x811   : > { %4338 = vxpose.xlu0.b32.cont [3/16] (narrow) %v4306_v14, 8  ;;  %v9610_v14 = vadd.f32 %v9402_v28, %v4251_v22  ;;  %v4223_v29 = vmul.f32 %v9383_v23, %v4180_v21  ;;  %v4294_v56 = vadd.f32 %v9402_v28, %v4258_v36  ;;  %v4329_v39 = vadd.f32 %v4594_v34, %v9545_v2  ;;  %v4597_v38 = vld [vmem:[%s4688_s14 + $0x50] sm:$0xff]  ;;  %v4607_v22 = vld [vmem:[%s4688_s14 + $0x78] sm:$0xff] }
 0x812   : > { %v4242_v12 = vmul.f32 %v9381_v4, %v4206_v41  ;;  %v4207_v54 = vmul.f32 %v9383_v23, %v4164_v1  ;;  %v4591_v23 = vld [vmem:[%s4688_s14 + $0x38] sm:$0xff]  ;;  %v4330_v40 = vadd.f32 %v4596_v55, %v9553_v7  ;;  %v4334_v25 = vadd.f32 %v4604_v15, %v9597_v49  ;;  %v4605_v46 = vld [vmem:[%s4688_s14 + $0x70] sm:$0xff] }
 0x813   : > { %v4326_v24 = vadd.f32 %v4588_v51, %v4294_v56  ;;  %v4259_v52 = vmul.f32 %v9381_v4, %v4223_v29  ;;  %v4318_v59 = vadd.f32 %v4605_v46, %v9600_v44 }
 0x814   : > { %v4243_v32 = vmul.f32 %v9381_v4, %v4207_v54  ;;  %v4312_v4 = vadd.f32 %v4593_v57, %v9542_v17  ;;  %v4314_v17 = vadd.f32 %v4597_v38, %v9556_v0  ;;  %v4316_v0 = vadd.f32 %v4601_v53, %v9586_v13 }
 0x815   : > { %v4295_v11 = vadd.f32 %v9402_v28, %v4259_v52 }
 0x816   : > { %4371 = vxpose.xlu1.b32.cont [4/16] (narrow) %v4323_v27, 8  ;;  %v4277_v27 = vadd.f32 %v9402_v28, %v4241_v60  ;;  %v4279_v16 = vadd.f32 %v9402_v28, %v4243_v32  ;;  %v4598_v60 = vld [vmem:[%s4688_s14 + $0xd8] sm:$0xff] }
 0x817   : > { %v4327_v31 = vadd.f32 %v4590_v42, %v4295_v11  ;;  %v4331_v2 = vadd.f32 %v4598_v60, %v9559_v43  ;;  %v4333_v43 = vadd.f32 %v4602_v18, %v9589_v9  ;;  %v4319_v9 = vadd.f32 %v4607_v22, %v9610_v14 }
 0x818   : > { %v4309_v50 = vadd.f32 %v4587_v48, %v4277_v27  ;;  %v4311_v3 = vadd.f32 %v4591_v23, %v4279_v16 }
 0x819   : > { %4339 = vxpose.xlu0.b32.cont [4/16] (narrow) %v4307_v62, 8  ;;  %v4278_v62 = vadd.f32 %v9402_v28, %v4242_v12  ;;  %v4595_v28 = vld [vmem:[%s4688_s14 + $0x48] sm:$0xff] }
 0x81a   : > { %v4313_v47 = vadd.f32 %v4595_v28, %v9550_v45  ;;  %v4315_v45 = vadd.f32 %v4599_v35, %v9562_v5  ;;  %v4317_v5 = vadd.f32 %v4603_v26, %v9594_v58 }
 0x81e   : > { %4372 = vxpose.xlu1.b32.cont [5/16] (narrow) %v4324_v6, 8  ;;  %v4589_v6 = vld [vmem:[%s4688_s14 + $0x30] sm:$0xff] }
 0x81f   : > { %v4310_v61 = vadd.f32 %v4589_v6, %v4278_v62 }
 0x821   : > { %4340 = vxpose.xlu0.b32.cont [5/16] (narrow) %v4308_v20, 8  ;;  %v4600_v20 = vld [vmem:[%s4688_s14 + $0xe0] sm:$0xff] }
 0x822   : > { %v4332_v7 = vadd.f32 %v4600_v20, %v9583_v30  ;;  %v4606_v30 = vld [vmem:[%s4688_s14 + $0xf8] sm:$0xff] }
 0x823   : > { %v4335_v13 = vadd.f32 %v4606_v30, %v9603_v19 }
 0x826   : > { %4373 = vxpose.xlu1.b32.cont [6/16] (narrow) %v4325_v63, 8 }
 0x829   : > { %4341 = vxpose.xlu0.b32.cont [6/16] (narrow) %v4309_v50, 8 }
 0x82e   : > { %4374 = vxpose.xlu1.b32.cont [7/16] (narrow) %v4326_v24, 8 }
 0x831   : > { %4342 = vxpose.xlu0.b32.cont [7/16] (narrow) %v4310_v61, 8 }
 0x836   : > { %4375 = vxpose.xlu1.b32.cont [8/16] (narrow) %v4327_v31, 8 }
 0x839   : > { %4343 = vxpose.xlu0.b32.cont [8/16] (narrow) %v4311_v3, 8 }
 0x83e   : > { %4376 = vxpose.xlu1.b32.cont [9/16] (narrow) %v4328_v33, 8 }
 0x841   : > { %4344 = vxpose.xlu0.b32.cont [9/16] (narrow) %v4312_v4, 8 }
 0x846   : > { %4377 = vxpose.xlu1.b32.cont [10/16] (narrow) %v4329_v39, 8 }
 0x849   : > { %4345 = vxpose.xlu0.b32.cont [10/16] (narrow) %v4313_v47, 8 }
 0x84e   : > { %4378 = vxpose.xlu1.b32.cont [11/16] (narrow) %v4330_v40, 8 }
 0x851   : > { %4346 = vxpose.xlu0.b32.cont [11/16] (narrow) %v4314_v17, 8 }
 0x856   : > { %4379 = vxpose.xlu1.b32.cont [12/16] (narrow) %v4331_v2, 8 }
 0x859   : > { %4347 = vxpose.xlu0.b32.cont [12/16] (narrow) %v4315_v45, 8 }
 0x85e   : > { %4380 = vxpose.xlu1.b32.cont [13/16] (narrow) %v4332_v7, 8 }
 0x861   : > { %4348 = vxpose.xlu0.b32.cont [13/16] (narrow) %v4316_v0, 8 }
 0x866   : > { %4381 = vxpose.xlu1.b32.cont [14/16] (narrow) %v4333_v43, 8 }
 0x869   : > { %4349 = vxpose.xlu0.b32.cont [14/16] (narrow) %v4317_v5, 8 }
 0x86e   : > { %4382 = vxpose.xlu1.b32.cont [15/16] (narrow) %v4334_v25, 8 }
 0x871   : > { %4350 = vxpose.xlu0.b32.cont [15/16] (narrow) %v4318_v59, 8 }
 0x876   : > { %4383 = vxpose.xlu1.b32.end [16/16] (narrow) %v4335_v13, 8 }
 0x879   : > { %4351 = vxpose.xlu0.b32.end [16/16] (narrow) %v4319_v9, 8 }
 0x8a2   : > { %v4384_v37 = vpop.trf.xlu1 }
 0x8a3   : > { %v4402_v58 = vrot.slane %v4384_v37, 4 }
 0x8a5   : > { %v4352_v49 = vpop.trf.xlu0 }
 0x8a6   : > { %v4403_v8 = vsel %vm1887_vm3, %v4352_v49, %v4402_v58 }
 0x8a7   : > { %4405 = vst [vmem:[%s332_s16] sm:$0xff] %v4403_v8 }
 0x8a8 PF: > { %s19_s30 = sadd.s32 1, %s4614_s30  }
 0x8a9   : > { %p16_p4 = scmp.ge.s32.totalorder %s19_s30, 4  }
 0x8ab   :  { %18 = sbr.rel (!%p16_p4) target bundleno = 1 (0x1), region = 86 }

</bundles_post_ra>
